<compile_context>
chip_gen: v6e
topology: v6e:2x2x1
jax: 0.10.0
libtpu: 0.0.40
codegen_flags: <defaults>
</compile_context>

<pallas_src>
import functools

import jax
import jax.numpy as jnp
import numpy as np
from jax import lax
from jax.experimental import pallas as pl
from jax.experimental.pallas import tpu as pltpu

BN_EPS = 1e-5
LANE = 128          # lane width of the packed channel dimension


# ----------------------------------------------------------------------------
# Pallas kernel
# ----------------------------------------------------------------------------
def _global_conv_kernel(
    x_ref,      # (1, H, W, Cp)        bf16 VMEM  (packed images x channels)
    wl1_ref,    # (k*Cp, Cp)           bf16 (gcl conv1, (k,1), block-diagonal)
    wl2_ref,    # (k*Cp, Cp)           bf16 (gcl conv2, (1,k), BN-scale folded)
    wr1_ref,    # (k*Cp, Cp)           bf16 (gcr conv1, (1,k))
    wr2_ref,    # (k*Cp, Cp)           bf16 (gcr conv2, (k,1), BN-scale folded)
    b_ref,      # (1, Cp)              f32  (BN bias, per-slot replicated)
    o_ref,      # (1, H, W, Cp)        f32
    padv_ref,   # scratch (H + 2p, W, Cp)        bf16: H-padded activation
    padh_ref,   # scratch (H, pad_l + W + p, Cp) f32 : W-padded activation
    col_ref,    # scratch (H*W, k*Cp)            bf16: im2col matrix
    *,
    k: int,
    d: int,
):
    _, H, W, Cp = x_ref.shape
    HW = H * W
    pad = d * (k // 2)
    pad_l = ((pad + 7) // 8) * 8          # sublane-aligned left halo for padh
    f32 = jnp.float32
    bf16 = jnp.bfloat16

    # ---- zero only the halo strips, once per grid step (safe on all TCs) ----
    if pad > 0:
        padv_ref[0:pad, :, :] = jnp.zeros((pad, W, Cp), bf16)
        padv_ref[pad + H:pad + H + pad, :, :] = jnp.zeros((pad, W, Cp), bf16)
        padh_ref[:, 0:pad_l, :] = jnp.zeros((H, pad_l, Cp), f32)
        padh_ref[:, pad_l + W:pad_l + W + pad, :] = jnp.zeros((H, pad, Cp), f32)

    def conv_v(a3, w_ref):
        """(k,1) conv as one im2col matmul.  a3: (H, W, Cp) -> (HW, Cp) f32."""
        padv_ref[pad:pad + H, :, :] = a3.astype(bf16)
        for t in range(k):                    # H shifts: outer-dim slices (cheap)
            win = padv_ref[t * d:t * d + H, :, :]
            col_ref[:, t * Cp:(t + 1) * Cp] = (
                win.reshape(HW, Cp).astype(col_ref.dtype))
        return jnp.dot(col_ref[...], w_ref[...], preferred_element_type=f32)

    def conv_h(a3, w_ref):
        """(1,k) conv as one im2col matmul.  a3: (H, W, Cp) -> (HW, Cp) f32."""
        padh_ref[:, pad_l:pad_l + W, :] = a3.astype(f32)   # 8-aligned interior
        for t in range(k):                    # W shifts: sublane slices
            off = pad_l - pad + t * d
            win = padh_ref[:, off:off + W, :]
            col_ref[:, t * Cp:(t + 1) * Cp] = (
                win.reshape(HW, Cp).astype(col_ref.dtype))
        return jnp.dot(col_ref[...], w_ref[...], preferred_element_type=f32)

    x = x_ref[0]                              # (H, W, Cp) bf16

    # gcl: (k,1) then (1,k);  gcr: (1,k) then (k,1).
    yl = conv_h(conv_v(x, wl1_ref).reshape(H, W, Cp), wl2_ref)
    yr = conv_v(conv_h(x, wr1_ref).reshape(H, W, Cp), wr2_ref)

    out = jnp.maximum(yl + yr + b_ref[...], 0.0)      # BN bias + ReLU (f32 VPU)
    o_ref[...] = out.reshape(1, H, W, Cp).astype(o_ref.dtype)


# ----------------------------------------------------------------------------
# Wrapper
# ----------------------------------------------------------------------------
def global_conv_forward(x, params, *, k=7, d=1):
    """x: (N, H, W, chi) float32 NHWC.  Returns (N, H, W, cho) float32."""
    assert k % 2 == 1, "GlobalConv uses an odd kernel size"
    N, H, W, chi = x.shape
    assert chi == params["chi"]
    g, c_slot, Cp, cho = params["g"], params["c_slot"], params["cp"], params["cho"]
    pad = d * (k // 2)
    pad_l = ((pad + 7) // 8) * 8

    # ---- batch-to-lane packing (bf16): (N,H,W,chi) -> (Ng,H,W,g*c_slot) -----
    Ng = -(-N // g)
    xp = x.astype(jnp.bfloat16)
    if Ng * g != N:
        xp = jnp.pad(xp, ((0, Ng * g - N), (0, 0), (0, 0), (0, 0)))
    xp = xp.reshape(Ng, g, H, W, chi).transpose(0, 2, 3, 1, 4)   # (Ng,H,W,g,chi)
    if c_slot != chi:
        xp = jnp.pad(xp, ((0, 0), (0, 0), (0, 0), (0, 0), (0, c_slot - chi)))
    xp = xp.reshape(Ng, H, W, Cp)

    kernel = functools.partial(_global_conv_kernel, k=k, d=d)

    grid_spec = pltpu.PrefetchScalarGridSpec(
        num_scalar_prefetch=0,
        grid=(Ng,),
        in_specs=[
            pl.BlockSpec((1, H, W, Cp), lambda n: (n, 0, 0, 0)),
            pl.BlockSpec((k * Cp, Cp), lambda n: (0, 0)),
            pl.BlockSpec((k * Cp, Cp), lambda n: (0, 0)),
            pl.BlockSpec((k * Cp, Cp), lambda n: (0, 0)),
            pl.BlockSpec((k * Cp, Cp), lambda n: (0, 0)),
            pl.BlockSpec((1, Cp), lambda n: (0, 0)),
        ],
        out_specs=pl.BlockSpec((1, H, W, Cp), lambda n: (n, 0, 0, 0)),
        scratch_shapes=[
            pltpu.VMEM((H + 2 * pad, W, Cp), jnp.bfloat16),
            pltpu.VMEM((H, pad_l + W + pad, Cp), jnp.float32),
            pltpu.VMEM((H * W, k * Cp), jnp.bfloat16),
        ],
    )

    out_p = pl.pallas_call(
        kernel,
        out_shape=jax.ShapeDtypeStruct((Ng, H, W, Cp), jnp.float32),
        grid_spec=grid_spec,
        compiler_params=pltpu.CompilerParams(
            dimension_semantics=("parallel",)),
    )(xp, params["wl1"], params["wl2"], params["wr1"], params["wr2"],
      params["bias"])

    # ---- unpack lanes back to batch / channels ------------------------------
    out = out_p.reshape(Ng, H, W, g, c_slot).transpose(0, 3, 1, 2, 4)
    out = out.reshape(Ng * g, H, W, c_slot)
    return out[:N, :, :, :cho]


# ----------------------------------------------------------------------------
# Parameter construction (synthetic weights, matches module __init__ shapes)
# ----------------------------------------------------------------------------
def make_params(key, chi, cho, k=7, d=1, lane=LANE):
    ks = jax.random.split(key, 8)
    raw = {
        # PyTorch Conv2d weight layout: OIHW
        "wl1": 0.1 * jax.random.normal(ks[0], (cho, chi, k, 1), jnp.float32),
        "wl2": 0.1 * jax.random.normal(ks[1], (cho, cho, 1, k), jnp.float32),
        "wr1": 0.1 * jax.random.normal(ks[2], (cho, chi, 1, k), jnp.float32),
        "wr2": 0.1 * jax.random.normal(ks[3], (cho, cho, k, 1), jnp.float32),
        "gamma": 1.0 + 0.1 * jax.random.normal(ks[4], (cho,), jnp.float32),
        "beta": 0.1 * jax.random.normal(ks[5], (cho,), jnp.float32),
        "mean": 0.1 * jax.random.normal(ks[6], (cho,), jnp.float32),
        "var": 1.0 + 0.2 * jax.random.uniform(ks[7], (cho,), jnp.float32),
    }

    scale = raw["gamma"] / jnp.sqrt(raw["var"] + BN_EPS)       # (cho,)
    bias = raw["beta"] - raw["mean"] * scale

    # ---- batch-to-lane packing geometry -------------------------------------
    cmax = max(chi, cho)
    if cmax >= lane:
        c_slot = lane * (-(-cmax // lane))
        g, Cp = 1, c_slot
    else:
        c_slot = 1
        while c_slot < cmax:
            c_slot *= 2                        # slot width divides the lane width
        g = lane // c_slot                     # images per 128-lane group
        Cp = lane

    def pack(w_oihw, vertical, out_scale=None):
        # OIHW -> (k, Cin, Cout), optional BN-scale fold, embed into a
        # (c_slot, c_slot) slot, g-way block-diagonal -> (k*Cp, Cp) bf16.
        taps = w_oihw[:, :, :, 0] if vertical else w_oihw[:, :, 0, :]  # (O,I,k)
        w = jnp.transpose(taps, (2, 1, 0))                             # (k,I,O)
        if out_scale is not None:
            w = w * out_scale[None, None, :]
        cin, cout = w.shape[1], w.shape[2]
        w = jnp.pad(w, ((0, 0), (0, c_slot - cin), (0, c_slot - cout)))
        eye = jnp.eye(g, dtype=w.dtype)
        w = jnp.einsum("kab,ij->kiajb", w, eye).reshape(k, Cp, Cp)
        return w.reshape(k * Cp, Cp).astype(jnp.bfloat16)

    bias_p = jnp.tile(jnp.pad(bias, (0, c_slot - cho)), g).reshape(1, Cp)

    params = {
        "wl1": pack(raw["wl1"], vertical=True),
        "wl2": pack(raw["wl2"], vertical=False, out_scale=scale),  # BN fold
        "wr1": pack(raw["wr1"], vertical=False),
        "wr2": pack(raw["wr2"], vertical=True, out_scale=scale),   # BN fold
        "bias": bias_p.astype(jnp.float32),
        "cp": Cp, "c_slot": c_slot, "g": g, "chi": chi, "cho": cho,
    }
    return params, raw


# ----------------------------------------------------------------------------
# Pure-JAX reference (NHWC) for validation
# ----------------------------------------------------------------------------
def _ref_forward(x, raw, k, d):
    pad = d * (k // 2)

    def conv(inp, w_oihw, pad_hw):
        w = jnp.transpose(w_oihw, (2, 3, 1, 0))                 # OIHW -> HWIO
        return lax.conv_general_dilated(
            inp, w, window_strides=(1, 1),
            padding=[(pad_hw[0], pad_hw[0]), (pad_hw[1], pad_hw[1])],
            rhs_dilation=(d, d),
            dimension_numbers=("NHWC", "HWIO", "NHWC"),
            precision=lax.Precision.HIGHEST)

    gcl = conv(conv(x, raw["wl1"], (pad, 0)), raw["wl2"], (0, pad))
    gcr = conv(conv(x, raw["wr1"], (0, pad)), raw["wr2"], (pad, 0))
    y = gcl + gcr
    y = (y - raw["mean"]) / jnp.sqrt(raw["var"] + BN_EPS) * raw["gamma"] \
        + raw["beta"]
    return jnp.maximum(y, 0.0)


if __name__ == "__main__":
    # Small shapes consistent with the module: chi=cho=16, k=7, d=1
    N, H, W = 2, 16, 16
    chi, cho = 16, 16
    k, d = 7, 1

    key = jax.random.PRNGKey(0)
    kx, kp = jax.random.split(key)
    x = jax.random.normal(kx, (N, H, W, chi), jnp.float32)   # NHWC

    params, raw = make_params(kp, chi, cho, k=k, d=d)

    out = global_conv_forward(x, params, k=k, d=d)
    out = jax.block_until_ready(out)

    ref = _ref_forward(x, raw, k, d)
    # bf16 MXU inputs -> loosened tolerance vs f32-HIGHEST reference
    np.testing.assert_allclose(np.asarray(out), np.asarray(ref),
                               rtol=3e-2, atol=3e-2)

    print("KERNEL_OK")
</pallas_src>

<mosaic_0001>
module attributes {stable_mosaic.version = 11 : i64} {
  func.func @_global_conv_kernel(%arg0: i32, %arg1: memref<1x16x16x128xbf16, #tpu.memory_space<vmem>>, %arg2: memref<896x128xbf16, #tpu.memory_space<vmem>>, %arg3: memref<896x128xbf16, #tpu.memory_space<vmem>>, %arg4: memref<896x128xbf16, #tpu.memory_space<vmem>>, %arg5: memref<896x128xbf16, #tpu.memory_space<vmem>>, %arg6: memref<1x128xf32, #tpu.memory_space<vmem>>, %arg7: memref<1x16x16x128xf32, #tpu.memory_space<vmem>>, %arg8: memref<22x16x128xbf16, #tpu.memory_space<vmem>>, %arg9: memref<16x27x128xf32, #tpu.memory_space<vmem>>, %arg10: memref<256x896xbf16, #tpu.memory_space<vmem>>) attributes {dimension_semantics = [#tpu.dimension_semantics<parallel>], iteration_bounds = array<i64: 1>, scalar_prefetch = 0 : i64, scratch_operands = 3 : i64, tpu.core_type = #tpu.core_type<tc>, window_params = [{transform_indices = @transform_0, window_bounds = array<i64: 1, 16, 16, 128>}, {pipeline_mode = #tpu.pipeline_mode<synchronous>, transform_indices = @transform_1, window_bounds = array<i64: 896, 128>}, {pipeline_mode = #tpu.pipeline_mode<synchronous>, transform_indices = @transform_2, window_bounds = array<i64: 896, 128>}, {pipeline_mode = #tpu.pipeline_mode<synchronous>, transform_indices = @transform_3, window_bounds = array<i64: 896, 128>}, {pipeline_mode = #tpu.pipeline_mode<synchronous>, transform_indices = @transform_4, window_bounds = array<i64: 896, 128>}, {pipeline_mode = #tpu.pipeline_mode<synchronous>, transform_indices = @transform_5, window_bounds = array<i64: 1, 128>}, {transform_indices = @transform_6, window_bounds = array<i64: 1, 16, 16, 128>}]} {
    %cst = arith.constant 0.000000e+00 : bf16
    %0 = vector.broadcast %cst : bf16 to vector<3x16x128xbf16>
    %c0 = arith.constant 0 : index
    %c0_0 = arith.constant 0 : index
    %c0_1 = arith.constant 0 : index
    %1 = vector.load %arg8[%c0, %c0_0, %c0_1] : memref<22x16x128xbf16, #tpu.memory_space<vmem>>, vector<3x16x128xbf16>
    tpu.vector_store %arg8[%c0, %c0_0, %c0_1], %0 {strides = array<i32>} : memref<22x16x128xbf16, #tpu.memory_space<vmem>>, vector<3x16x128xbf16>,
    %cst_2 = arith.constant 0.000000e+00 : bf16
    %2 = vector.broadcast %cst_2 : bf16 to vector<3x16x128xbf16>
    %c19 = arith.constant 19 : index
    %c0_3 = arith.constant 0 : index
    %c0_4 = arith.constant 0 : index
    %3 = vector.load %arg8[%c19, %c0_3, %c0_4] : memref<22x16x128xbf16, #tpu.memory_space<vmem>>, vector<3x16x128xbf16>
    tpu.vector_store %arg8[%c19, %c0_3, %c0_4], %2 {strides = array<i32>} : memref<22x16x128xbf16, #tpu.memory_space<vmem>>, vector<3x16x128xbf16>,
    %cst_5 = arith.constant 0.000000e+00 : f32
    %4 = vector.broadcast %cst_5 : f32 to vector<16x8x128xf32>
    %c0_6 = arith.constant 0 : index
    %c0_7 = arith.constant 0 : index
    %c0_8 = arith.constant 0 : index
    %5 = vector.load %arg9[%c0_6, %c0_7, %c0_8] : memref<16x27x128xf32, #tpu.memory_space<vmem>>, vector<16x8x128xf32>
    tpu.vector_store %arg9[%c0_6, %c0_7, %c0_8], %4 {strides = array<i32>} : memref<16x27x128xf32, #tpu.memory_space<vmem>>, vector<16x8x128xf32>,
    %cst_9 = arith.constant 0.000000e+00 : f32
    %6 = vector.broadcast %cst_9 : f32 to vector<16x3x128xf32>
    %c0_10 = arith.constant 0 : index
    %c24 = arith.constant 24 : index
    %c0_11 = arith.constant 0 : index
    %7 = vector.load %arg9[%c0_10, %c24, %c0_11] : memref<16x27x128xf32, #tpu.memory_space<vmem>>, vector<16x3x128xf32>
    tpu.vector_store %arg9[%c0_10, %c24, %c0_11], %6 {strides = array<i32>} : memref<16x27x128xf32, #tpu.memory_space<vmem>>, vector<16x3x128xf32>,
    %c0_12 = arith.constant 0 : index
    %c0_13 = arith.constant 0 : index
    %c0_14 = arith.constant 0 : index
    %c0_15 = arith.constant 0 : index
    %8 = vector.load %arg1[%c0_12, %c0_13, %c0_14, %c0_15] : memref<1x16x16x128xbf16, #tpu.memory_space<vmem>>, vector<1x16x16x128xbf16>
    %9 = vector.shape_cast %8 : vector<1x16x16x128xbf16> to vector<16x16x128xbf16>
    %c3 = arith.constant 3 : index
    %c0_16 = arith.constant 0 : index
    %c0_17 = arith.constant 0 : index
    %10 = vector.load %arg8[%c3, %c0_16, %c0_17] : memref<22x16x128xbf16, #tpu.memory_space<vmem>>, vector<16x16x128xbf16>
    tpu.vector_store %arg8[%c3, %c0_16, %c0_17], %9 {strides = array<i32>} : memref<22x16x128xbf16, #tpu.memory_space<vmem>>, vector<16x16x128xbf16>,
    %c0_18 = arith.constant 0 : index
    %c0_19 = arith.constant 0 : index
    %c0_20 = arith.constant 0 : index
    %11 = vector.load %arg8[%c0_18, %c0_19, %c0_20] : memref<22x16x128xbf16, #tpu.memory_space<vmem>>, vector<16x16x128xbf16>
    %12 = vector.shape_cast %11 : vector<16x16x128xbf16> to vector<256x128xbf16>
    %c0_21 = arith.constant 0 : index
    %c0_22 = arith.constant 0 : index
    %13 = vector.load %arg10[%c0_21, %c0_22] : memref<256x896xbf16, #tpu.memory_space<vmem>>, vector<256x128xbf16>
    tpu.vector_store %arg10[%c0_21, %c0_22], %12 {strides = array<i32>} : memref<256x896xbf16, #tpu.memory_space<vmem>>, vector<256x128xbf16>,
    %c1 = arith.constant 1 : index
    %c0_23 = arith.constant 0 : index
    %c0_24 = arith.constant 0 : index
    %14 = vector.load %arg8[%c1, %c0_23, %c0_24] : memref<22x16x128xbf16, #tpu.memory_space<vmem>>, vector<16x16x128xbf16>
    %15 = vector.shape_cast %14 : vector<16x16x128xbf16> to vector<256x128xbf16>
    %c0_25 = arith.constant 0 : index
    %c128 = arith.constant 128 : index
    %16 = vector.load %arg10[%c0_25, %c128] : memref<256x896xbf16, #tpu.memory_space<vmem>>, vector<256x128xbf16>
    tpu.vector_store %arg10[%c0_25, %c128], %15 {strides = array<i32>} : memref<256x896xbf16, #tpu.memory_space<vmem>>, vector<256x128xbf16>,
    %c2 = arith.constant 2 : index
    %c0_26 = arith.constant 0 : index
    %c0_27 = arith.constant 0 : index
    %17 = vector.load %arg8[%c2, %c0_26, %c0_27] : memref<22x16x128xbf16, #tpu.memory_space<vmem>>, vector<16x16x128xbf16>
    %18 = vector.shape_cast %17 : vector<16x16x128xbf16> to vector<256x128xbf16>
    %c0_28 = arith.constant 0 : index
    %c256 = arith.constant 256 : index
    %19 = vector.load %arg10[%c0_28, %c256] : memref<256x896xbf16, #tpu.memory_space<vmem>>, vector<256x128xbf16>
    tpu.vector_store %arg10[%c0_28, %c256], %18 {strides = array<i32>} : memref<256x896xbf16, #tpu.memory_space<vmem>>, vector<256x128xbf16>,
    %c3_29 = arith.constant 3 : index
    %c0_30 = arith.constant 0 : index
    %c0_31 = arith.constant 0 : index
    %20 = vector.load %arg8[%c3_29, %c0_30, %c0_31] : memref<22x16x128xbf16, #tpu.memory_space<vmem>>, vector<16x16x128xbf16>
    %21 = vector.shape_cast %20 : vector<16x16x128xbf16> to vector<256x128xbf16>
    %c0_32 = arith.constant 0 : index
    %c384 = arith.constant 384 : index
    %22 = vector.load %arg10[%c0_32, %c384] : memref<256x896xbf16, #tpu.memory_space<vmem>>, vector<256x128xbf16>
    tpu.vector_store %arg10[%c0_32, %c384], %21 {strides = array<i32>} : memref<256x896xbf16, #tpu.memory_space<vmem>>, vector<256x128xbf16>,
    %c4 = arith.constant 4 : index
    %c0_33 = arith.constant 0 : index
    %c0_34 = arith.constant 0 : index
    %23 = vector.load %arg8[%c4, %c0_33, %c0_34] : memref<22x16x128xbf16, #tpu.memory_space<vmem>>, vector<16x16x128xbf16>
    %24 = vector.shape_cast %23 : vector<16x16x128xbf16> to vector<256x128xbf16>
    %c0_35 = arith.constant 0 : index
    %c512 = arith.constant 512 : index
    %25 = vector.load %arg10[%c0_35, %c512] : memref<256x896xbf16, #tpu.memory_space<vmem>>, vector<256x128xbf16>
    tpu.vector_store %arg10[%c0_35, %c512], %24 {strides = array<i32>} : memref<256x896xbf16, #tpu.memory_space<vmem>>, vector<256x128xbf16>,
    %c5 = arith.constant 5 : index
    %c0_36 = arith.constant 0 : index
    %c0_37 = arith.constant 0 : index
    %26 = vector.load %arg8[%c5, %c0_36, %c0_37] : memref<22x16x128xbf16, #tpu.memory_space<vmem>>, vector<16x16x128xbf16>
    %27 = vector.shape_cast %26 : vector<16x16x128xbf16> to vector<256x128xbf16>
    %c0_38 = arith.constant 0 : index
    %c640 = arith.constant 640 : index
    %28 = vector.load %arg10[%c0_38, %c640] : memref<256x896xbf16, #tpu.memory_space<vmem>>, vector<256x128xbf16>
    tpu.vector_store %arg10[%c0_38, %c640], %27 {strides = array<i32>} : memref<256x896xbf16, #tpu.memory_space<vmem>>, vector<256x128xbf16>,
    %c6 = arith.constant 6 : index
    %c0_39 = arith.constant 0 : index
    %c0_40 = arith.constant 0 : index
    %29 = vector.load %arg8[%c6, %c0_39, %c0_40] : memref<22x16x128xbf16, #tpu.memory_space<vmem>>, vector<16x16x128xbf16>
    %30 = vector.shape_cast %29 : vector<16x16x128xbf16> to vector<256x128xbf16>
    %c0_41 = arith.constant 0 : index
    %c768 = arith.constant 768 : index
    %31 = vector.load %arg10[%c0_41, %c768] : memref<256x896xbf16, #tpu.memory_space<vmem>>, vector<256x128xbf16>
    tpu.vector_store %arg10[%c0_41, %c768], %30 {strides = array<i32>} : memref<256x896xbf16, #tpu.memory_space<vmem>>, vector<256x128xbf16>,
    %c0_42 = arith.constant 0 : index
    %c0_43 = arith.constant 0 : index
    %32 = vector.load %arg10[%c0_42, %c0_43] : memref<256x896xbf16, #tpu.memory_space<vmem>>, vector<256x896xbf16>
    %c0_44 = arith.constant 0 : index
    %c0_45 = arith.constant 0 : index
    %33 = vector.load %arg2[%c0_44, %c0_45] : memref<896x128xbf16, #tpu.memory_space<vmem>>, vector<896x128xbf16>
    %cst_46 = arith.constant dense<0.000000e+00> : vector<256x128xf32>
    %34 = tpu.matmul %32, %33, %cst_46 {dimension_numbers = #tpu.dot_dimension_numbers<[1], [0], [0], [1], [0, 0, 1, 1], [], []>} : vector<256x896xbf16>, vector<896x128xbf16>, vector<256x128xf32> -> vector<256x128xf32>
    %35 = vector.shape_cast %34 : vector<256x128xf32> to vector<16x16x128xf32>
    %c0_47 = arith.constant 0 : index
    %c8 = arith.constant 8 : index
    %c0_48 = arith.constant 0 : index
    %36 = vector.load %arg9[%c0_47, %c8, %c0_48] : memref<16x27x128xf32, #tpu.memory_space<vmem>>, vector<16x16x128xf32>
    tpu.vector_store %arg9[%c0_47, %c8, %c0_48], %35 {strides = array<i32>} : memref<16x27x128xf32, #tpu.memory_space<vmem>>, vector<16x16x128xf32>,
    %c0_49 = arith.constant 0 : index
    %c5_50 = arith.constant 5 : index
    %c0_51 = arith.constant 0 : index
    %37 = vector.load %arg9[%c0_49, %c5_50, %c0_51] : memref<16x27x128xf32, #tpu.memory_space<vmem>>, vector<16x16x128xf32>
    %38 = vector.shape_cast %37 : vector<16x16x128xf32> to vector<256x128xf32>
    %39 = arith.truncf %38 : vector<256x128xf32> to vector<256x128xbf16>
    %c0_52 = arith.constant 0 : index
    %c0_53 = arith.constant 0 : index
    %40 = vector.load %arg10[%c0_52, %c0_53] : memref<256x896xbf16, #tpu.memory_space<vmem>>, vector<256x128xbf16>
    tpu.vector_store %arg10[%c0_52, %c0_53], %39 {strides = array<i32>} : memref<256x896xbf16, #tpu.memory_space<vmem>>, vector<256x128xbf16>,
    %c0_54 = arith.constant 0 : index
    %c6_55 = arith.constant 6 : index
    %c0_56 = arith.constant 0 : index
    %41 = vector.load %arg9[%c0_54, %c6_55, %c0_56] : memref<16x27x128xf32, #tpu.memory_space<vmem>>, vector<16x16x128xf32>
    %42 = vector.shape_cast %41 : vector<16x16x128xf32> to vector<256x128xf32>
    %43 = arith.truncf %42 : vector<256x128xf32> to vector<256x128xbf16>
    %c0_57 = arith.constant 0 : index
    %c128_58 = arith.constant 128 : index
    %44 = vector.load %arg10[%c0_57, %c128_58] : memref<256x896xbf16, #tpu.memory_space<vmem>>, vector<256x128xbf16>
    tpu.vector_store %arg10[%c0_57, %c128_58], %43 {strides = array<i32>} : memref<256x896xbf16, #tpu.memory_space<vmem>>, vector<256x128xbf16>,
    %c0_59 = arith.constant 0 : index
    %c7 = arith.constant 7 : index
    %c0_60 = arith.constant 0 : index
    %45 = vector.load %arg9[%c0_59, %c7, %c0_60] : memref<16x27x128xf32, #tpu.memory_space<vmem>>, vector<16x16x128xf32>
    %46 = vector.shape_cast %45 : vector<16x16x128xf32> to vector<256x128xf32>
    %47 = arith.truncf %46 : vector<256x128xf32> to vector<256x128xbf16>
    %c0_61 = arith.constant 0 : index
    %c256_62 = arith.constant 256 : index
    %48 = vector.load %arg10[%c0_61, %c256_62] : memref<256x896xbf16, #tpu.memory_space<vmem>>, vector<256x128xbf16>
    tpu.vector_store %arg10[%c0_61, %c256_62], %47 {strides = array<i32>} : memref<256x896xbf16, #tpu.memory_space<vmem>>, vector<256x128xbf16>,
    %c0_63 = arith.constant 0 : index
    %c8_64 = arith.constant 8 : index
    %c0_65 = arith.constant 0 : index
    %49 = vector.load %arg9[%c0_63, %c8_64, %c0_65] : memref<16x27x128xf32, #tpu.memory_space<vmem>>, vector<16x16x128xf32>
    %50 = vector.shape_cast %49 : vector<16x16x128xf32> to vector<256x128xf32>
    %51 = arith.truncf %50 : vector<256x128xf32> to vector<256x128xbf16>
    %c0_66 = arith.constant 0 : index
    %c384_67 = arith.constant 384 : index
    %52 = vector.load %arg10[%c0_66, %c384_67] : memref<256x896xbf16, #tpu.memory_space<vmem>>, vector<256x128xbf16>
    tpu.vector_store %arg10[%c0_66, %c384_67], %51 {strides = array<i32>} : memref<256x896xbf16, #tpu.memory_space<vmem>>, vector<256x128xbf16>,
    %c0_68 = arith.constant 0 : index
    %c9 = arith.constant 9 : index
    %c0_69 = arith.constant 0 : index
    %53 = vector.load %arg9[%c0_68, %c9, %c0_69] : memref<16x27x128xf32, #tpu.memory_space<vmem>>, vector<16x16x128xf32>
    %54 = vector.shape_cast %53 : vector<16x16x128xf32> to vector<256x128xf32>
    %55 = arith.truncf %54 : vector<256x128xf32> to vector<256x128xbf16>
    %c0_70 = arith.constant 0 : index
    %c512_71 = arith.constant 512 : index
    %56 = vector.load %arg10[%c0_70, %c512_71] : memref<256x896xbf16, #tpu.memory_space<vmem>>, vector<256x128xbf16>
    tpu.vector_store %arg10[%c0_70, %c512_71], %55 {strides = array<i32>} : memref<256x896xbf16, #tpu.memory_space<vmem>>, vector<256x128xbf16>,
    %c0_72 = arith.constant 0 : index
    %c10 = arith.constant 10 : index
    %c0_73 = arith.constant 0 : index
    %57 = vector.load %arg9[%c0_72, %c10, %c0_73] : memref<16x27x128xf32, #tpu.memory_space<vmem>>, vector<16x16x128xf32>
    %58 = vector.shape_cast %57 : vector<16x16x128xf32> to vector<256x128xf32>
    %59 = arith.truncf %58 : vector<256x128xf32> to vector<256x128xbf16>
    %c0_74 = arith.constant 0 : index
    %c640_75 = arith.constant 640 : index
    %60 = vector.load %arg10[%c0_74, %c640_75] : memref<256x896xbf16, #tpu.memory_space<vmem>>, vector<256x128xbf16>
    tpu.vector_store %arg10[%c0_74, %c640_75], %59 {strides = array<i32>} : memref<256x896xbf16, #tpu.memory_space<vmem>>, vector<256x128xbf16>,
    %c0_76 = arith.constant 0 : index
    %c11 = arith.constant 11 : index
    %c0_77 = arith.constant 0 : index
    %61 = vector.load %arg9[%c0_76, %c11, %c0_77] : memref<16x27x128xf32, #tpu.memory_space<vmem>>, vector<16x16x128xf32>
    %62 = vector.shape_cast %61 : vector<16x16x128xf32> to vector<256x128xf32>
    %63 = arith.truncf %62 : vector<256x128xf32> to vector<256x128xbf16>
    %c0_78 = arith.constant 0 : index
    %c768_79 = arith.constant 768 : index
    %64 = vector.load %arg10[%c0_78, %c768_79] : memref<256x896xbf16, #tpu.memory_space<vmem>>, vector<256x128xbf16>
    tpu.vector_store %arg10[%c0_78, %c768_79], %63 {strides = array<i32>} : memref<256x896xbf16, #tpu.memory_space<vmem>>, vector<256x128xbf16>,
    %c0_80 = arith.constant 0 : index
    %c0_81 = arith.constant 0 : index
    %65 = vector.load %arg10[%c0_80, %c0_81] : memref<256x896xbf16, #tpu.memory_space<vmem>>, vector<256x896xbf16>
    %c0_82 = arith.constant 0 : index
    %c0_83 = arith.constant 0 : index
    %66 = vector.load %arg3[%c0_82, %c0_83] : memref<896x128xbf16, #tpu.memory_space<vmem>>, vector<896x128xbf16>
    %cst_84 = arith.constant dense<0.000000e+00> : vector<256x128xf32>
    %67 = tpu.matmul %65, %66, %cst_84 {dimension_numbers = #tpu.dot_dimension_numbers<[1], [0], [0], [1], [0, 0, 1, 1], [], []>} : vector<256x896xbf16>, vector<896x128xbf16>, vector<256x128xf32> -> vector<256x128xf32>
    %68 = arith.extf %9 : vector<16x16x128xbf16> to vector<16x16x128xf32>
    %c0_85 = arith.constant 0 : index
    %c8_86 = arith.constant 8 : index
    %c0_87 = arith.constant 0 : index
    %69 = vector.load %arg9[%c0_85, %c8_86, %c0_87] : memref<16x27x128xf32, #tpu.memory_space<vmem>>, vector<16x16x128xf32>
    tpu.vector_store %arg9[%c0_85, %c8_86, %c0_87], %68 {strides = array<i32>} : memref<16x27x128xf32, #tpu.memory_space<vmem>>, vector<16x16x128xf32>,
    %c0_88 = arith.constant 0 : index
    %c5_89 = arith.constant 5 : index
    %c0_90 = arith.constant 0 : index
    %70 = vector.load %arg9[%c0_88, %c5_89, %c0_90] : memref<16x27x128xf32, #tpu.memory_space<vmem>>, vector<16x16x128xf32>
    %71 = vector.shape_cast %70 : vector<16x16x128xf32> to vector<256x128xf32>
    %72 = arith.truncf %71 : vector<256x128xf32> to vector<256x128xbf16>
    %c0_91 = arith.constant 0 : index
    %c0_92 = arith.constant 0 : index
    %73 = vector.load %arg10[%c0_91, %c0_92] : memref<256x896xbf16, #tpu.memory_space<vmem>>, vector<256x128xbf16>
    tpu.vector_store %arg10[%c0_91, %c0_92], %72 {strides = array<i32>} : memref<256x896xbf16, #tpu.memory_space<vmem>>, vector<256x128xbf16>,
    %c0_93 = arith.constant 0 : index
    %c6_94 = arith.constant 6 : index
    %c0_95 = arith.constant 0 : index
    %74 = vector.load %arg9[%c0_93, %c6_94, %c0_95] : memref<16x27x128xf32, #tpu.memory_space<vmem>>, vector<16x16x128xf32>
    %75 = vector.shape_cast %74 : vector<16x16x128xf32> to vector<256x128xf32>
    %76 = arith.truncf %75 : vector<256x128xf32> to vector<256x128xbf16>
    %c0_96 = arith.constant 0 : index
    %c128_97 = arith.constant 128 : index
    %77 = vector.load %arg10[%c0_96, %c128_97] : memref<256x896xbf16, #tpu.memory_space<vmem>>, vector<256x128xbf16>
    tpu.vector_store %arg10[%c0_96, %c128_97], %76 {strides = array<i32>} : memref<256x896xbf16, #tpu.memory_space<vmem>>, vector<256x128xbf16>,
    %c0_98 = arith.constant 0 : index
    %c7_99 = arith.constant 7 : index
    %c0_100 = arith.constant 0 : index
    %78 = vector.load %arg9[%c0_98, %c7_99, %c0_100] : memref<16x27x128xf32, #tpu.memory_space<vmem>>, vector<16x16x128xf32>
    %79 = vector.shape_cast %78 : vector<16x16x128xf32> to vector<256x128xf32>
    %80 = arith.truncf %79 : vector<256x128xf32> to vector<256x128xbf16>
    %c0_101 = arith.constant 0 : index
    %c256_102 = arith.constant 256 : index
    %81 = vector.load %arg10[%c0_101, %c256_102] : memref<256x896xbf16, #tpu.memory_space<vmem>>, vector<256x128xbf16>
    tpu.vector_store %arg10[%c0_101, %c256_102], %80 {strides = array<i32>} : memref<256x896xbf16, #tpu.memory_space<vmem>>, vector<256x128xbf16>,
    %c0_103 = arith.constant 0 : index
    %c8_104 = arith.constant 8 : index
    %c0_105 = arith.constant 0 : index
    %82 = vector.load %arg9[%c0_103, %c8_104, %c0_105] : memref<16x27x128xf32, #tpu.memory_space<vmem>>, vector<16x16x128xf32>
    %83 = vector.shape_cast %82 : vector<16x16x128xf32> to vector<256x128xf32>
    %84 = arith.truncf %83 : vector<256x128xf32> to vector<256x128xbf16>
    %c0_106 = arith.constant 0 : index
    %c384_107 = arith.constant 384 : index
    %85 = vector.load %arg10[%c0_106, %c384_107] : memref<256x896xbf16, #tpu.memory_space<vmem>>, vector<256x128xbf16>
    tpu.vector_store %arg10[%c0_106, %c384_107], %84 {strides = array<i32>} : memref<256x896xbf16, #tpu.memory_space<vmem>>, vector<256x128xbf16>,
    %c0_108 = arith.constant 0 : index
    %c9_109 = arith.constant 9 : index
    %c0_110 = arith.constant 0 : index
    %86 = vector.load %arg9[%c0_108, %c9_109, %c0_110] : memref<16x27x128xf32, #tpu.memory_space<vmem>>, vector<16x16x128xf32>
    %87 = vector.shape_cast %86 : vector<16x16x128xf32> to vector<256x128xf32>
    %88 = arith.truncf %87 : vector<256x128xf32> to vector<256x128xbf16>
    %c0_111 = arith.constant 0 : index
    %c512_112 = arith.constant 512 : index
    %89 = vector.load %arg10[%c0_111, %c512_112] : memref<256x896xbf16, #tpu.memory_space<vmem>>, vector<256x128xbf16>
    tpu.vector_store %arg10[%c0_111, %c512_112], %88 {strides = array<i32>} : memref<256x896xbf16, #tpu.memory_space<vmem>>, vector<256x128xbf16>,
    %c0_113 = arith.constant 0 : index
    %c10_114 = arith.constant 10 : index
    %c0_115 = arith.constant 0 : index
    %90 = vector.load %arg9[%c0_113, %c10_114, %c0_115] : memref<16x27x128xf32, #tpu.memory_space<vmem>>, vector<16x16x128xf32>
    %91 = vector.shape_cast %90 : vector<16x16x128xf32> to vector<256x128xf32>
    %92 = arith.truncf %91 : vector<256x128xf32> to vector<256x128xbf16>
    %c0_116 = arith.constant 0 : index
    %c640_117 = arith.constant 640 : index
    %93 = vector.load %arg10[%c0_116, %c640_117] : memref<256x896xbf16, #tpu.memory_space<vmem>>, vector<256x128xbf16>
    tpu.vector_store %arg10[%c0_116, %c640_117], %92 {strides = array<i32>} : memref<256x896xbf16, #tpu.memory_space<vmem>>, vector<256x128xbf16>,
    %c0_118 = arith.constant 0 : index
    %c11_119 = arith.constant 11 : index
    %c0_120 = arith.constant 0 : index
    %94 = vector.load %arg9[%c0_118, %c11_119, %c0_120] : memref<16x27x128xf32, #tpu.memory_space<vmem>>, vector<16x16x128xf32>
    %95 = vector.shape_cast %94 : vector<16x16x128xf32> to vector<256x128xf32>
    %96 = arith.truncf %95 : vector<256x128xf32> to vector<256x128xbf16>
    %c0_121 = arith.constant 0 : index
    %c768_122 = arith.constant 768 : index
    %97 = vector.load %arg10[%c0_121, %c768_122] : memref<256x896xbf16, #tpu.memory_space<vmem>>, vector<256x128xbf16>
    tpu.vector_store %arg10[%c0_121, %c768_122], %96 {strides = array<i32>} : memref<256x896xbf16, #tpu.memory_space<vmem>>, vector<256x128xbf16>,
    %c0_123 = arith.constant 0 : index
    %c0_124 = arith.constant 0 : index
    %98 = vector.load %arg10[%c0_123, %c0_124] : memref<256x896xbf16, #tpu.memory_space<vmem>>, vector<256x896xbf16>
    %c0_125 = arith.constant 0 : index
    %c0_126 = arith.constant 0 : index
    %99 = vector.load %arg4[%c0_125, %c0_126] : memref<896x128xbf16, #tpu.memory_space<vmem>>, vector<896x128xbf16>
    %cst_127 = arith.constant dense<0.000000e+00> : vector<256x128xf32>
    %100 = tpu.matmul %98, %99, %cst_127 {dimension_numbers = #tpu.dot_dimension_numbers<[1], [0], [0], [1], [0, 0, 1, 1], [], []>} : vector<256x896xbf16>, vector<896x128xbf16>, vector<256x128xf32> -> vector<256x128xf32>
    %101 = vector.shape_cast %100 : vector<256x128xf32> to vector<16x16x128xf32>
    %102 = arith.truncf %101 : vector<16x16x128xf32> to vector<16x16x128xbf16>
    %c3_128 = arith.constant 3 : index
    %c0_129 = arith.constant 0 : index
    %c0_130 = arith.constant 0 : index
    %103 = vector.load %arg8[%c3_128, %c0_129, %c0_130] : memref<22x16x128xbf16, #tpu.memory_space<vmem>>, vector<16x16x128xbf16>
    tpu.vector_store %arg8[%c3_128, %c0_129, %c0_130], %102 {strides = array<i32>} : memref<22x16x128xbf16, #tpu.memory_space<vmem>>, vector<16x16x128xbf16>,
    %c0_131 = arith.constant 0 : index
    %c0_132 = arith.constant 0 : index
    %c0_133 = arith.constant 0 : index
    %104 = vector.load %arg8[%c0_131, %c0_132, %c0_133] : memref<22x16x128xbf16, #tpu.memory_space<vmem>>, vector<16x16x128xbf16>
    %105 = vector.shape_cast %104 : vector<16x16x128xbf16> to vector<256x128xbf16>
    %c0_134 = arith.constant 0 : index
    %c0_135 = arith.constant 0 : index
    %106 = vector.load %arg10[%c0_134, %c0_135] : memref<256x896xbf16, #tpu.memory_space<vmem>>, vector<256x128xbf16>
    tpu.vector_store %arg10[%c0_134, %c0_135], %105 {strides = array<i32>} : memref<256x896xbf16, #tpu.memory_space<vmem>>, vector<256x128xbf16>,
    %c1_136 = arith.constant 1 : index
    %c0_137 = arith.constant 0 : index
    %c0_138 = arith.constant 0 : index
    %107 = vector.load %arg8[%c1_136, %c0_137, %c0_138] : memref<22x16x128xbf16, #tpu.memory_space<vmem>>, vector<16x16x128xbf16>
    %108 = vector.shape_cast %107 : vector<16x16x128xbf16> to vector<256x128xbf16>
    %c0_139 = arith.constant 0 : index
    %c128_140 = arith.constant 128 : index
    %109 = vector.load %arg10[%c0_139, %c128_140] : memref<256x896xbf16, #tpu.memory_space<vmem>>, vector<256x128xbf16>
    tpu.vector_store %arg10[%c0_139, %c128_140], %108 {strides = array<i32>} : memref<256x896xbf16, #tpu.memory_space<vmem>>, vector<256x128xbf16>,
    %c2_141 = arith.constant 2 : index
    %c0_142 = arith.constant 0 : index
    %c0_143 = arith.constant 0 : index
    %110 = vector.load %arg8[%c2_141, %c0_142, %c0_143] : memref<22x16x128xbf16, #tpu.memory_space<vmem>>, vector<16x16x128xbf16>
    %111 = vector.shape_cast %110 : vector<16x16x128xbf16> to vector<256x128xbf16>
    %c0_144 = arith.constant 0 : index
    %c256_145 = arith.constant 256 : index
    %112 = vector.load %arg10[%c0_144, %c256_145] : memref<256x896xbf16, #tpu.memory_space<vmem>>, vector<256x128xbf16>
    tpu.vector_store %arg10[%c0_144, %c256_145], %111 {strides = array<i32>} : memref<256x896xbf16, #tpu.memory_space<vmem>>, vector<256x128xbf16>,
    %c3_146 = arith.constant 3 : index
    %c0_147 = arith.constant 0 : index
    %c0_148 = arith.constant 0 : index
    %113 = vector.load %arg8[%c3_146, %c0_147, %c0_148] : memref<22x16x128xbf16, #tpu.memory_space<vmem>>, vector<16x16x128xbf16>
    %114 = vector.shape_cast %113 : vector<16x16x128xbf16> to vector<256x128xbf16>
    %c0_149 = arith.constant 0 : index
    %c384_150 = arith.constant 384 : index
    %115 = vector.load %arg10[%c0_149, %c384_150] : memref<256x896xbf16, #tpu.memory_space<vmem>>, vector<256x128xbf16>
    tpu.vector_store %arg10[%c0_149, %c384_150], %114 {strides = array<i32>} : memref<256x896xbf16, #tpu.memory_space<vmem>>, vector<256x128xbf16>,
    %c4_151 = arith.constant 4 : index
    %c0_152 = arith.constant 0 : index
    %c0_153 = arith.constant 0 : index
    %116 = vector.load %arg8[%c4_151, %c0_152, %c0_153] : memref<22x16x128xbf16, #tpu.memory_space<vmem>>, vector<16x16x128xbf16>
    %117 = vector.shape_cast %116 : vector<16x16x128xbf16> to vector<256x128xbf16>
    %c0_154 = arith.constant 0 : index
    %c512_155 = arith.constant 512 : index
    %118 = vector.load %arg10[%c0_154, %c512_155] : memref<256x896xbf16, #tpu.memory_space<vmem>>, vector<256x128xbf16>
    tpu.vector_store %arg10[%c0_154, %c512_155], %117 {strides = array<i32>} : memref<256x896xbf16, #tpu.memory_space<vmem>>, vector<256x128xbf16>,
    %c5_156 = arith.constant 5 : index
    %c0_157 = arith.constant 0 : index
    %c0_158 = arith.constant 0 : index
    %119 = vector.load %arg8[%c5_156, %c0_157, %c0_158] : memref<22x16x128xbf16, #tpu.memory_space<vmem>>, vector<16x16x128xbf16>
    %120 = vector.shape_cast %119 : vector<16x16x128xbf16> to vector<256x128xbf16>
    %c0_159 = arith.constant 0 : index
    %c640_160 = arith.constant 640 : index
    %121 = vector.load %arg10[%c0_159, %c640_160] : memref<256x896xbf16, #tpu.memory_space<vmem>>, vector<256x128xbf16>
    tpu.vector_store %arg10[%c0_159, %c640_160], %120 {strides = array<i32>} : memref<256x896xbf16, #tpu.memory_space<vmem>>, vector<256x128xbf16>,
    %c6_161 = arith.constant 6 : index
    %c0_162 = arith.constant 0 : index
    %c0_163 = arith.constant 0 : index
    %122 = vector.load %arg8[%c6_161, %c0_162, %c0_163] : memref<22x16x128xbf16, #tpu.memory_space<vmem>>, vector<16x16x128xbf16>
    %123 = vector.shape_cast %122 : vector<16x16x128xbf16> to vector<256x128xbf16>
    %c0_164 = arith.constant 0 : index
    %c768_165 = arith.constant 768 : index
    %124 = vector.load %arg10[%c0_164, %c768_165] : memref<256x896xbf16, #tpu.memory_space<vmem>>, vector<256x128xbf16>
    tpu.vector_store %arg10[%c0_164, %c768_165], %123 {strides = array<i32>} : memref<256x896xbf16, #tpu.memory_space<vmem>>, vector<256x128xbf16>,
    %c0_166 = arith.constant 0 : index
    %c0_167 = arith.constant 0 : index
    %125 = vector.load %arg10[%c0_166, %c0_167] : memref<256x896xbf16, #tpu.memory_space<vmem>>, vector<256x896xbf16>
    %c0_168 = arith.constant 0 : index
    %c0_169 = arith.constant 0 : index
    %126 = vector.load %arg5[%c0_168, %c0_169] : memref<896x128xbf16, #tpu.memory_space<vmem>>, vector<896x128xbf16>
    %cst_170 = arith.constant dense<0.000000e+00> : vector<256x128xf32>
    %127 = tpu.matmul %125, %126, %cst_170 {dimension_numbers = #tpu.dot_dimension_numbers<[1], [0], [0], [1], [0, 0, 1, 1], [], []>} : vector<256x896xbf16>, vector<896x128xbf16>, vector<256x128xf32> -> vector<256x128xf32>
    %128 = arith.addf %67, %127 : vector<256x128xf32>
    %c0_171 = arith.constant 0 : index
    %c0_172 = arith.constant 0 : index
    %129 = vector.load %arg6[%c0_171, %c0_172] : memref<1x128xf32, #tpu.memory_space<vmem>>, vector<1x128xf32>
    %130 = vector.broadcast %129 : vector<1x128xf32> to vector<256x128xf32>
    %131 = arith.addf %128, %130 : vector<256x128xf32>
    %cst_173 = arith.constant 0.000000e+00 : f32
    %132 = vector.broadcast %cst_173 : f32 to vector<256x128xf32>
    %133 = arith.maximumf %131, %132 : vector<256x128xf32>
    %134 = vector.shape_cast %133 : vector<256x128xf32> to vector<1x16x16x128xf32>
    %c0_174 = arith.constant 0 : index
    %c0_175 = arith.constant 0 : index
    %c0_176 = arith.constant 0 : index
    %c0_177 = arith.constant 0 : index
    %135 = vector.load %arg7[%c0_174, %c0_175, %c0_176, %c0_177] : memref<1x16x16x128xf32, #tpu.memory_space<vmem>>, vector<1x16x16x128xf32>
    tpu.vector_store %arg7[%c0_174, %c0_175, %c0_176, %c0_177], %134 {strides = array<i32>} : memref<1x16x16x128xf32, #tpu.memory_space<vmem>>, vector<1x16x16x128xf32>,
    return
  }
  func.func @transform_0(%arg0: i32) -> (i32, i32, i32, i32) {
    %c0_i32 = arith.constant 0 : i32
    %c0_i32_0 = arith.constant 0 : i32
    %c0_i32_1 = arith.constant 0 : i32
    %c0_i32_2 = arith.constant 0 : i32
    return %arg0, %c0_i32, %c0_i32_0, %c0_i32_1 : i32, i32, i32, i32
  }
  func.func @transform_1(%arg0: i32) -> (i32, i32) {
    %c0_i32 = arith.constant 0 : i32
    %c0_i32_0 = arith.constant 0 : i32
    %c0_i32_1 = arith.constant 0 : i32
    return %c0_i32, %c0_i32_0 : i32, i32
  }
  func.func @transform_2(%arg0: i32) -> (i32, i32) {
    %c0_i32 = arith.constant 0 : i32
    %c0_i32_0 = arith.constant 0 : i32
    %c0_i32_1 = arith.constant 0 : i32
    return %c0_i32, %c0_i32_0 : i32, i32
  }
  func.func @transform_3(%arg0: i32) -> (i32, i32) {
    %c0_i32 = arith.constant 0 : i32
    %c0_i32_0 = arith.constant 0 : i32
    %c0_i32_1 = arith.constant 0 : i32
    return %c0_i32, %c0_i32_0 : i32, i32
  }
  func.func @transform_4(%arg0: i32) -> (i32, i32) {
    %c0_i32 = arith.constant 0 : i32
    %c0_i32_0 = arith.constant 0 : i32
    %c0_i32_1 = arith.constant 0 : i32
    return %c0_i32, %c0_i32_0 : i32, i32
  }
  func.func @transform_5(%arg0: i32) -> (i32, i32) {
    %c0_i32 = arith.constant 0 : i32
    %c0_i32_0 = arith.constant 0 : i32
    %c0_i32_1 = arith.constant 0 : i32
    return %c0_i32, %c0_i32_0 : i32, i32
  }
  func.func @transform_6(%arg0: i32) -> (i32, i32, i32, i32) {
    %c0_i32 = arith.constant 0 : i32
    %c0_i32_0 = arith.constant 0 : i32
    %c0_i32_1 = arith.constant 0 : i32
    %c0_i32_2 = arith.constant 0 : i32
    return %arg0, %c0_i32, %c0_i32_0, %c0_i32_1 : i32, i32, i32, i32
  }
}

</mosaic_0001>

<bundles_post_ra>
// kernel: tpu_custom_call.1
= control target key start
LH: loop header
LB: loop body
LE: loop exit
PB: predicated region body
PF: predicated region fallthrough
CT: control target
= control target key end

     0   :  { %11 = vsyncpa [#allocation6], 0  ;;  %s17316_s0 = inlined_call_operand.hbm [shape: bf16[1,16,16,128], index: 0, kind: input, shape index: {}]   ;;  %s17317_s1 = inlined_call_operand.hbm [shape: bf16[896,128], index: 1, kind: input, shape index: {}]   ;;  %s17318_s2 = inlined_call_operand.hbm [shape: bf16[896,128], index: 2, kind: input, shape index: {}]   ;;  %s17319_s3 = inlined_call_operand.hbm [shape: bf16[896,128], index: 3, kind: input, shape index: {}]   ;;  %s17320_s4 = inlined_call_operand.hbm [shape: bf16[896,128], index: 4, kind: input, shape index: {}]   ;;  %s17321_s5 = inlined_call_operand.vmem [shape: f32[1,128], index: 5, kind: input, shape index: {}]   ;;  %s17322_s6 = inlined_call_operand.hbm [shape: f32[1,16,16,128], index: 6, kind: output, shape index: {}]  }
   0x1   :  { %12 = vsyncpa [#allocation9], 0 }
   0x2   :  { %13 = vsyncpa [#allocation12], 0 }
   0x3   :  { %14 = vsyncpa [#allocation7], 0  ;;  %s15556_s21 = smov [#allocation8]   ;;  %s15557_s23 = smov [#allocation11]  }
   0x4   :  { %s32_s22 = sshll.u32 %s15556_s21, 4  ;;  %s56_s24 = sshll.u32 %s15557_s23, 4  ;;  %s33_s22 = int_to_ptr.vmem [resolvable:$true] %s32_s22  ;;  %s57_s24 = int_to_ptr.vmem [resolvable:$true] %s56_s24 }
   0x5   :  { %s15436_s25 = scalar_lea.vmem %s33_s22, 7168  ;;  %p15441_p1 = scmp.lt.s32.totalorder %s33_s22, %s33_s22 }
   0x6   :  { %p15437_p0 = scmp.ne.s32.totalorder %s33_s22, %s15436_s25  ;;  %p15442_p2 = scmp.lt.s32.totalorder %s15436_s25, %s15436_s25 }
   0x8   :  { %p15443_p3 = por %p15442_p2, %p15441_p1 }
   0xa   :  { %p15444_p4 = pnand %p15443_p3, %p15437_p0 }
   0xc   :  { %15447 = shalt.err (!%p15444_p4)
}
   0xd   :  { %s15558_s26 = smov 64   ;;  %s15559_s27 = smov 4  }
   0xe   :  { %38 = dma.hbm_to_vmem [thread:$0]  %s17317_s1, 7168, %s33_s22, [#allocation9], %s15558_s26, %s15558_s26, %s15559_s27  }
   0xf   :  { %s15456_s30 = scalar_lea.vmem %s57_s24, 7168  ;;  %p15461_p6 = scmp.lt.s32.totalorder %s57_s24, %s57_s24 }
  0x10   :  { %p15457_p5 = scmp.ne.s32.totalorder %s57_s24, %s15456_s30  ;;  %p15462_p7 = scmp.lt.s32.totalorder %s15456_s30, %s15456_s30 }
  0x12   :  { %p15463_p8 = por %p15462_p7, %p15461_p6 }
  0x14   :  { %p15464_p9 = pnand %p15463_p8, %p15457_p5 }
  0x16   :  { %15467 = shalt.err (!%p15464_p9)
}
  0x17   :  { %62 = dma.hbm_to_vmem [thread:$0]  %s17319_s3, 7168, %s57_s24, [#allocation12], %s15558_s26, %s15558_s26, %s15559_s27  }
  0x18   :  { %s15560_s9 = smov [#allocation5]   ;;  %s15561_s11 = smov [#allocation10]  }
  0x19   :  { %s20_s10 = sshll.u32 %s15560_s9, 4  ;;  %s44_s12 = sshll.u32 %s15561_s11, 4  ;;  %s21_s10 = int_to_ptr.vmem [resolvable:$true] %s20_s10  ;;  %s45_s12 = int_to_ptr.vmem [resolvable:$true] %s44_s12 }
  0x1a   :  { %s15476_s1 = scalar_lea.vmem %s21_s10, 2048  ;;  %p15481_p11 = scmp.lt.s32.totalorder %s21_s10, %s21_s10 }
  0x1b   :  { %p15477_p10 = scmp.ne.s32.totalorder %s21_s10, %s15476_s1  ;;  %p15482_p12 = scmp.lt.s32.totalorder %s15476_s1, %s15476_s1 }
  0x1d   :  { %p15483_p13 = por %p15482_p12, %p15481_p11 }
  0x1f   :  { %p15484_p0 = pnand %p15483_p13, %p15477_p10 }
  0x21   :  { %15487 = shalt.err (!%p15484_p0)
}
  0x22   :  { %26 = dma.hbm_to_vmem [thread:$0]  %s17316_s0, 2048, %s21_s10, [#allocation6], %s15558_s26, %s15558_s26, %s15559_s27  }
  0x23   :  { %s15496_s3 = scalar_lea.vmem %s45_s12, 7168  ;;  %p15501_p2 = scmp.lt.s32.totalorder %s45_s12, %s45_s12 }
  0x24   :  { %p15497_p1 = scmp.ne.s32.totalorder %s45_s12, %s15496_s3  ;;  %p15502_p3 = scmp.lt.s32.totalorder %s15496_s3, %s15496_s3 }
  0x26   :  { %p15503_p4 = por %p15502_p3, %p15501_p2 }
  0x28   :  { %p15504_p5 = pnand %p15503_p4, %p15497_p1 }
  0x2a   :  { %15507 = shalt.err (!%p15504_p5)
}
  0x2b   :  { %50 = dma.hbm_to_vmem [thread:$0]  %s17318_s2, 7168, %s45_s12, [#allocation9], %s15558_s26, %s15558_s26, %s15559_s27  }
  0x2c   :  { %s15562_s17 = smov [#allocation13]  }
  0x2d   :  { %s68_s18 = sshll.u32 %s15562_s17, 4  ;;  %s69_s18 = int_to_ptr.vmem [resolvable:$true] %s68_s18 }
  0x2e   :  { %s15516_s19 = scalar_lea.vmem %s69_s18, 7168  ;;  %p15521_p7 = scmp.lt.s32.totalorder %s69_s18, %s69_s18 }
  0x2f   :  { %p15517_p6 = scmp.ne.s32.totalorder %s69_s18, %s15516_s19  ;;  %p15522_p8 = scmp.lt.s32.totalorder %s15516_s19, %s15516_s19 }
  0x31   :  { %p15523_p9 = por %p15522_p8, %p15521_p7 }
  0x33   :  { %p15524_p10 = pnand %p15523_p9, %p15517_p6 }
  0x35   :  { %15527 = shalt.err (!%p15524_p10)
}
  0x36   :  { %74 = dma.hbm_to_vmem [thread:$0]  %s17320_s4, 7168, %s69_s18, [#allocation12], %s15558_s26, %s15558_s26, %s15559_s27  }
  0x37   :  { %15548 = dma.done.wait [#allocation6], 2048  }
  0x38   :  { %15549 = vsyncadd [#allocation6], 4294965248 }
  0x39   :  { %15550 = dma.done.wait [#allocation9], 14336  }
  0x3a   :  { %15551 = vsyncadd [#allocation9], 4294952960 }
  0x3b   :  { %15552 = dma.done.wait [#allocation12], 14336  }
  0x3c   :  { %15553 = vsyncadd [#allocation12], 4294952960  ;;  %v15563_v0 = vmov 0   ;;  %v14726_v1 = vld [vmem:[#allocation8 + $0x78] sm:$0xff]   ;;  %v14730_v5 = vld [vmem:[#allocation8 + $0x70] sm:$0xff]  }
  0x3d   :  { %93 = vst [vmem:[#allocation2] sm:$0xf] %v15563_v0  ;;  %94 = vst [vmem:[#allocation2 + $0x4] sm:$0xf] %v15563_v0  ;;  %v14727_v2 = vld [vmem:[#allocation8 + $0xf8] sm:$0xff]   ;;  %13082 = vmatprep.subr.bf16.mxu0 %v14726_v1  ;;  %v14731_v6 = vld [vmem:[#allocation8 + $0xf0] sm:$0xff]  }
  0x3e   :  { %95 = vst [vmem:[#allocation2 + $0x8] sm:$0xf] %v15563_v0  ;;  %96 = vst [vmem:[#allocation2 + $0xc] sm:$0xf] %v15563_v0  ;;  %v14728_v3 = vld [vmem:[#allocation8 + $0x38] sm:$0xff]   ;;  %13194 = vmatprep.subr.bf16.mxu1 %v14727_v2  ;;  %v14732_v7 = vld [vmem:[#allocation8 + $0x30] sm:$0xff]  }
  0x3f   :  { %97 = vst [vmem:[#allocation2 + $0x10] sm:$0xf] %v15563_v0  ;;  %98 = vst [vmem:[#allocation2 + $0x14] sm:$0xf] %v15563_v0  ;;  %v14729_v4 = vld [vmem:[#allocation8 + $0xb8] sm:$0xff]   ;;  %13083 = vmatpush3.bf16.msra.mxu0 %v14728_v3  ;;  %v14733_v8 = vld [vmem:[#allocation8 + $0xb0] sm:$0xff]  }
  0x40   :  { %100 = vst [vmem:[#allocation2 + $0x98] sm:$0xf] %v15563_v0  ;;  %101 = vst [vmem:[#allocation2 + $0x9c] sm:$0xf] %v15563_v0  ;;  %13195 = vmatpush3.bf16.msra.mxu1 %v14729_v4  ;;  %13084 = vmatprep.subr.bf16.mxu0 %v14730_v5  ;;  %v14734_v9 = vld [vmem:[#allocation8 + $0x68] sm:$0xff]   ;;  %v14738_v13 = vld [vmem:[#allocation8 + $0x60] sm:$0xff]  }
  0x41   :  { %102 = vst [vmem:[#allocation2 + $0xa0] sm:$0xf] %v15563_v0  ;;  %103 = vst [vmem:[#allocation2 + $0xa4] sm:$0xf] %v15563_v0  ;;  %13196 = vmatprep.subr.bf16.mxu1 %v14731_v6  ;;  %v14735_v10 = vld [vmem:[#allocation8 + $0xe8] sm:$0xff]   ;;  %v14739_v14 = vld [vmem:[#allocation8 + $0xe0] sm:$0xff]  }
  0x42   :  { %104 = vst [vmem:[#allocation2 + $0xa8] sm:$0xf] %v15563_v0  ;;  %105 = vst [vmem:[#allocation2 + $0xac] sm:$0xf] %v15563_v0  ;;  %v14736_v11 = vld [vmem:[#allocation8 + $0x28] sm:$0xff]   ;;  %v14740_v15 = vld [vmem:[#allocation8 + $0x20] sm:$0xff]  }
  0x43   :  { %13085 = vmatpush3.bf16.msra.mxu0 %v14732_v7  ;;  %v14737_v12 = vld [vmem:[#allocation8 + $0xa8] sm:$0xff]   ;;  %v14741_v16 = vld [vmem:[#allocation8 + $0xa0] sm:$0xff]   ;;  %v14742_v17 = vld [vmem:[#allocation8 + $0x58] sm:$0xff]  }
  0x44   :  { %13197 = vmatpush3.bf16.msra.mxu1 %v14733_v8  ;;  %13086 = vmatprep.subr.bf16.mxu0 %v14734_v9  ;;  %v14743_v18 = vld [vmem:[#allocation8 + $0xd8] sm:$0xff]   ;;  %v14746_v21 = vld [vmem:[#allocation8 + $0x50] sm:$0xff]   ;;  %v14750_v25 = vld [vmem:[#allocation8 + $0x48] sm:$0xff]  }
  0x45   :  { %13198 = vmatprep.subr.bf16.mxu1 %v14735_v10  ;;  %v14744_v19 = vld [vmem:[#allocation8 + $0x18] sm:$0xff]   ;;  %v14747_v22 = vld [vmem:[#allocation8 + $0xd0] sm:$0xff]   ;;  %v14751_v26 = vld [vmem:[#allocation8 + $0xc8] sm:$0xff]  }
  0x46   :  { %v14745_v20 = vld [vmem:[#allocation8 + $0x98] sm:$0xff]   ;;  %v14748_v23 = vld [vmem:[#allocation8 + $0x10] sm:$0xff]   ;;  %v14752_v27 = vld [vmem:[#allocation8 + $0x8] sm:$0xff]  }
  0x47   :  { %13087 = vmatpush3.bf16.msra.mxu0 %v14736_v11  ;;  %v14749_v24 = vld [vmem:[#allocation8 + $0x90] sm:$0xff]   ;;  %v14753_v28 = vld [vmem:[#allocation8 + $0x88] sm:$0xff]   ;;  %v14754_v29 = vld [vmem:[#allocation8 + $0x40] sm:$0xff]  }
  0x48   :  { %13199 = vmatpush3.bf16.msra.mxu1 %v14737_v12  ;;  %13088 = vmatprep.subr.bf16.mxu0 %v14738_v13  ;;  %v14755_v30 = vld [vmem:[#allocation8 + $0xc0] sm:$0xff]   ;;  %v203_v33 = vld [vmem:[#allocation2] sm:$0xf]  ;;  %v204_v34 = vld [vmem:[#allocation2 + $0x4] sm:$0xf] }
  0x49   :  { %13200 = vmatprep.subr.bf16.mxu1 %v14739_v14  ;;  %v14756_v31 = vld [vmem:[#allocation8] sm:$0xff]   ;;  %v268_v35 = vld [vmem:[#allocation2 + $0x8] sm:$0xf]  ;;  %235 = vst [vmem:[#allocation4] sm:$0xf] %v203_v33  ;;  %v14776_v0 = vld [vmem:[#allocation8 + $0x170] sm:$0xff]  }
  0x4a   :  { %v14757_v32 = vld [vmem:[#allocation8 + $0x80] sm:$0xff]   ;;  %236 = vst [vmem:[#allocation4 + $0x1c] sm:$0xf] %v204_v34  ;;  %v269_v36 = vld [vmem:[#allocation2 + $0xc] sm:$0xf]  ;;  %v14777_v1 = vld [vmem:[#allocation8 + $0x130] sm:$0xff]  }
  0x4b   :  { %13089 = vmatpush3.bf16.msra.mxu0 %v14740_v15  ;;  %300 = vst [vmem:[#allocation4 + $0x4] sm:$0xf] %v268_v35  ;;  %v15633_v37 = vld [vmem:[#allocation5] sm:$0xf]  ;;  %v15635_v38 = vld [vmem:[#allocation5 + $0x4] sm:$0xf] }
  0x4c   :  { %13201 = vmatpush3.bf16.msra.mxu1 %v14741_v16  ;;  %13090 = vmatprep.subr.bf16.mxu0 %v14742_v17  ;;  %301 = vst [vmem:[#allocation4 + $0x20] sm:$0xf] %v269_v36  ;;  %171 = vst [vmem:[#allocation2 + $0x18] sm:$0xf] %v15633_v37  ;;  %v333_v39 = vld [vmem:[#allocation2 + $0x10] sm:$0xf] }
  0x4d   :  { %13202 = vmatprep.subr.bf16.mxu1 %v14743_v18  ;;  %172 = vst [vmem:[#allocation2 + $0x1c] sm:$0xf] %v15635_v38  ;;  %v334_v40 = vld [vmem:[#allocation2 + $0x14] sm:$0xf]  ;;  %365 = vst [vmem:[#allocation4 + $0x8] sm:$0xf] %v333_v39 }
  0x4e   :  { %366 = vst [vmem:[#allocation4 + $0x24] sm:$0xf] %v334_v40  ;;  %v14763_v41 = vld [vmem:[#allocation8 + $0x178] sm:$0xff]   ;;  %v270_v45 = vld [vmem:[#allocation2 + $0x10] sm:$0xf]  ;;  %v14778_v11 = vld [vmem:[#allocation8 + $0x1b0] sm:$0xff]  }
  0x4f   :  { %13091 = vmatpush3.bf16.msra.mxu0 %v14744_v19  ;;  %v15639_v42 = vld [vmem:[#allocation8 + $0x1b8] sm:$0xff]   ;;  %v271_v46 = vld [vmem:[#allocation2 + $0x14] sm:$0xf]  ;;  %302 = vst [vmem:[#allocation4 + $0x3c] sm:$0xf] %v270_v45  ;;  %v14789_v35 = vld [vmem:[#allocation8 + $0x168] sm:$0xff]  }
  0x50   :  { %13203 = vmatpush3.bf16.msra.mxu1 %v14745_v20  ;;  %13092 = vmatprep.subr.bf16.mxu0 %v14746_v21  ;;  %v205_v43 = vld [vmem:[#allocation2 + $0x8] sm:$0xf]  ;;  %v206_v44 = vld [vmem:[#allocation2 + $0xc] sm:$0xf]  ;;  %303 = vst [vmem:[#allocation4 + $0x58] sm:$0xf] %v271_v46 }
  0x51   :  { %13204 = vmatprep.subr.bf16.mxu1 %v14747_v22  ;;  %237 = vst [vmem:[#allocation4 + $0x38] sm:$0xf] %v205_v43  ;;  %v14764_v47 = vld [vmem:[#allocation8 + $0x138] sm:$0xff]   ;;  %238 = vst [vmem:[#allocation4 + $0x54] sm:$0xf] %v206_v44  ;;  %v14790_v46 = vld [vmem:[#allocation8 + $0x128] sm:$0xff]  }
  0x52   :  { %v15642_v48 = vld [vmem:[#allocation5 + $0x8] sm:$0xf]  ;;  %v15644_v49 = vld [vmem:[#allocation5 + $0xc] sm:$0xf]  ;;  %v207_v50 = vld [vmem:[#allocation2 + $0x10] sm:$0xf] }
  0x53   :  { %13093 = vmatpush3.bf16.msra.mxu0 %v14748_v23  ;;  %v656_v51 = vld [vmem:[#allocation4] sm:$0xff]  ;;  %173 = vst [vmem:[#allocation2 + $0x20] sm:$0xf] %v15642_v48  ;;  %174 = vst [vmem:[#allocation2 + $0x24] sm:$0xf] %v15644_v49 }
  0x54   :  { %13205 = vmatpush3.bf16.msra.mxu1 %v14749_v24  ;;  %13094 = vmatprep.subr.bf16.mxu0 %v14750_v25  ;;  %v208_v52 = vld [vmem:[#allocation2 + $0x14] sm:$0xf]  ;;  %239 = vst [vmem:[#allocation4 + $0x70] sm:$0xf] %v207_v50  ;;  %v15648_v53 = vld [vmem:[#allocation5 + $0x10] sm:$0xf] }
  0x55   :  { %13206 = vmatprep.subr.bf16.mxu1 %v14751_v26  ;;  %v660_v54 = vld [vmem:[#allocation4 + $0x1c] sm:$0xff]  ;;  %v397_v56 = vld [vmem:[#allocation2 + $0x18] sm:$0xf]  ;;  %240 = vst [vmem:[#allocation4 + $0x8c] sm:$0xf] %v208_v52 }
  0x56   :  { %v14758_v55 = vld [vmem:[#allocation4 + $0x4] ss:$28 sps:$4 sm:$0xff]   ;;  %175 = vst [vmem:[#allocation2 + $0x28] sm:$0xf] %v15648_v53  ;;  %v398_v57 = vld [vmem:[#allocation2 + $0x1c] sm:$0xf]  ;;  %v11354_v58 = vcombine.low %v656_v51, %v660_v54 }
  0x57   :  { %13095 = vmatpush3.bf16.msra.mxu0 %v14752_v27  ;;  %429 = vst [vmem:[#allocation4 + $0xc] sm:$0xf] %v397_v56  ;;  %v335_v59 = vld [vmem:[#allocation2 + $0x18] sm:$0xf]  ;;  %v336_v60 = vld [vmem:[#allocation2 + $0x1c] sm:$0xf]  ;;  %1840 = vmatprep.mubr.bf16.mxu0 %v14758_v55 }
  0x58   :  { %13207 = vmatpush3.bf16.msra.mxu1 %v14753_v28  ;;  %13096 = vmatprep.subr.bf16.mxu0 %v14754_v29  ;;  %430 = vst [vmem:[#allocation4 + $0x28] sm:$0xf] %v398_v57  ;;  %367 = vst [vmem:[#allocation4 + $0x40] sm:$0xf] %v335_v59  ;;  %v272_v61 = vld [vmem:[#allocation2 + $0x18] sm:$0xf] }
  0x59   :  { %13208 = vmatprep.subr.bf16.mxu1 %v14755_v30  ;;  %368 = vst [vmem:[#allocation4 + $0x5c] sm:$0xf] %v336_v60  ;;  %v273_v62 = vld [vmem:[#allocation2 + $0x1c] sm:$0xf]  ;;  %v15651_v63 = vld [vmem:[#allocation5 + $0x14] sm:$0xf] }
  0x5a   :  { %304 = vst [vmem:[#allocation4 + $0x74] sm:$0xf] %v272_v61  ;;  %305 = vst [vmem:[#allocation4 + $0x90] sm:$0xf] %v273_v62  ;;  %v664_v2 = vld [vmem:[#allocation4 + $0x38] sm:$0xff]  ;;  %v14791_v50 = vld [vmem:[#allocation8 + $0x1a8] sm:$0xff]  }
  0x5b   :  { %13097 = vmatpush3.bf16.msra.mxu0 %v14756_v31  ;;  %176 = vst [vmem:[#allocation2 + $0x2c] sm:$0xf] %v15651_v63  ;;  %v668_v3 = vld [vmem:[#allocation4 + $0x54] sm:$0xff]  ;;  %v399_v5 = vld [vmem:[#allocation2 + $0x20] sm:$0xf] }
  0x5c   :  { %13209 = vmatpush3.bf16.msra.mxu1 %v14757_v32  ;;  %13306 = vmatprep.subr.bf16.mxu0 %v14763_v41  ;;  %v14766_v4 = vld [vmem:[#allocation4 + $0x3c] ss:$28 sps:$4 sm:$0xff]   ;;  %v400_v6 = vld [vmem:[#allocation2 + $0x24] sm:$0xf]  ;;  %v337_v7 = vld [vmem:[#allocation2 + $0x20] sm:$0xf]  ;;  %v11361_v8 = vcombine.low %v664_v2, %v668_v3 }
  0x5d   :  { %14522 = vmatprep.subr.bf16.mxu1 %v15639_v42  ;;  %431 = vst [vmem:[#allocation4 + $0x44] sm:$0xf] %v399_v5  ;;  %432 = vst [vmem:[#allocation4 + $0x60] sm:$0xf] %v400_v6  ;;  %v338_v9 = vld [vmem:[#allocation2 + $0x24] sm:$0xf] }
  0x5e   :  { %1841 = vmatmul.mubr.bf16.vlgmr.msra.gmra.mxu0 %v11354_v58  ;;  %369 = vst [vmem:[#allocation4 + $0x78] sm:$0xf] %v337_v7  ;;  %v401_v10 = vld [vmem:[#allocation2 + $0x28] sm:$0xf]  ;;  %370 = vst [vmem:[#allocation4 + $0x94] sm:$0xf] %v338_v9 }
  0x5f   :  { %13307 = vmatpush3.bf16.msra.mxu0 %v14764_v47  ;;  %1848 = vmatprep.mubr.bf16.mxu0 %v14766_v4  ;;  %433 = vst [vmem:[#allocation4 + $0x7c] sm:$0xf] %v401_v10  ;;  %v14760_v12 = vld [vmem:[#allocation4 + $0xc] ss:$28 sps:$4 sm:$0xff]   ;;  %v274_v20 = vld [vmem:[#allocation2 + $0x20] sm:$0xf] }
  0x60   :  { %13308 = vmatprep.subr.bf16.mxu0 %v14776_v0  ;;  %v14762_v13 = vld [vmem:[#allocation4 + $0x8] ss:$28 sps:$4 sm:$0xff]   ;;  %2001 = vmatprep.mubr.bf16.mxu1 %v14760_v12  ;;  %v210_v19 = vld [vmem:[#allocation2 + $0x1c] sm:$0xf]  ;;  %v275_v21 = vld [vmem:[#allocation2 + $0x24] sm:$0xf] }
  0x61   :  { %v672_v14 = vld [vmem:[#allocation4 + $0x70] sm:$0xff]  ;;  %v209_v18 = vld [vmem:[#allocation2 + $0x18] sm:$0xf]  ;;  %2002 = vmatmul.mubr.bf16.vlgmr.msra.gmra.mxu1 %v14762_v13  ;;  %242 = vst [vmem:[#allocation4 + $0xc4] sm:$0xf] %v210_v19  ;;  %v14802_v12 = vld [vmem:[#allocation8 + $0x160] sm:$0xff]  }
  0x62   :  { %v676_v15 = vld [vmem:[#allocation4 + $0x8c] sm:$0xff]  ;;  %v402_v17 = vld [vmem:[#allocation2 + $0x2c] sm:$0xf]  ;;  %241 = vst [vmem:[#allocation4 + $0xa8] sm:$0xf] %v209_v18  ;;  %14523 = vmatpush3.bf16.msra.mxu1 %v15639_v42 }
  0x63   :  { %13309 = vmatpush3.bf16.msra.mxu0 %v14777_v1  ;;  %v14771_v16 = vld [vmem:[#allocation4 + $0x74] ss:$28 sps:$4 sm:$0xff]   ;;  %434 = vst [vmem:[#allocation4 + $0x98] sm:$0xf] %v402_v17  ;;  %v15654_v22 = vld [vmem:[#allocation5 + $0x18] sm:$0xf]  ;;  %14524 = vmatprep.subr.bf16.mxu1 %v14778_v11  ;;  %v11368_v28 = vcombine.low %v672_v14, %v676_v15 }
  0x64   :  { %306 = vst [vmem:[#allocation4 + $0xac] sm:$0xf] %v274_v20  ;;  %307 = vst [vmem:[#allocation4 + $0xc8] sm:$0xf] %v275_v21  ;;  %v15657_v23 = vld [vmem:[#allocation5 + $0x1c] sm:$0xf]  ;;  %13310 = vmatprep.subr.bf16.mxu0 %v14789_v35 }
  0x65   :  { %177 = vst [vmem:[#allocation2 + $0x30] sm:$0xf] %v15654_v22  ;;  %v339_v24 = vld [vmem:[#allocation2 + $0x28] sm:$0xf]  ;;  %v340_v25 = vld [vmem:[#allocation2 + $0x2c] sm:$0xf] }
  0x66   :  { %1849 = vmatmul.mubr.bf16.gmra.mxu0 %v11361_v8  ;;  %v14768_v26 = vld [vmem:[#allocation4 + $0x44] ss:$28 sps:$4 sm:$0xff]   ;;  %178 = vst [vmem:[#allocation2 + $0x34] sm:$0xf] %v15657_v23  ;;  %371 = vst [vmem:[#allocation4 + $0xb0] sm:$0xf] %v339_v24  ;;  %14525 = vmatpush3.bf16.msra.mxu1 %v14778_v11 }
  0x67   :  { %1856 = vmatprep.mubr.bf16.mxu0 %v14771_v16  ;;  %372 = vst [vmem:[#allocation4 + $0xcc] sm:$0xf] %v340_v25  ;;  %v14770_v27 = vld [vmem:[#allocation4 + $0x40] ss:$28 sps:$4 sm:$0xff]   ;;  %v211_v29 = vld [vmem:[#allocation2 + $0x20] sm:$0xf]  ;;  %2009 = vmatprep.mubr.bf16.mxu1 %v14768_v26 }
  0x68   :  { %v212_v30 = vld [vmem:[#allocation2 + $0x24] sm:$0xf]  ;;  %243 = vst [vmem:[#allocation4 + $0xe0] sm:$0xf] %v211_v29  ;;  %v276_v31 = vld [vmem:[#allocation2 + $0x28] sm:$0xf]  ;;  %13311 = vmatpush3.bf16.msra.mxu0 %v14790_v46  ;;  %14526 = vmatprep.subr.bf16.mxu1 %v14791_v50 }
  0x69   :  { %v277_v32 = vld [vmem:[#allocation2 + $0x2c] sm:$0xf]  ;;  %244 = vst [vmem:[#allocation4 + $0xfc] sm:$0xf] %v212_v30  ;;  %308 = vst [vmem:[#allocation4 + $0xe4] sm:$0xf] %v276_v31  ;;  %2010 = vmatmul.mubr.bf16.gmra.mxu1 %v14770_v27  ;;  %13312 = vmatprep.subr.bf16.mxu0 %v14802_v12 }
  0x6a   :  { %309 = vst [vmem:[#allocation4 + $0x100] sm:$0xf] %v277_v32  ;;  %v15661_v33 = vld [vmem:[#allocation5 + $0x20] sm:$0xf]  ;;  %v15663_v34 = vld [vmem:[#allocation5 + $0x24] sm:$0xf]  ;;  %14527 = vmatpush3.bf16.msra.mxu1 %v14791_v50 }
  0x6b   :  { %179 = vst [vmem:[#allocation2 + $0x38] sm:$0xf] %v15661_v33  ;;  %180 = vst [vmem:[#allocation2 + $0x3c] sm:$0xf] %v15663_v34  ;;  %v14773_v36 = vld [vmem:[#allocation4 + $0x7c] ss:$28 sps:$4 sm:$0xff]  }
  0x6c   :  { %v680_v39 = vld [vmem:[#allocation4 + $0xa8] sm:$0xff]  ;;  %2017 = vmatprep.mubr.bf16.mxu1 %v14773_v36  ;;  %v403_v42 = vld [vmem:[#allocation2 + $0x30] sm:$0xf]  ;;  %v14775_v51 = vld [vmem:[#allocation4 + $0x78] ss:$28 sps:$4 sm:$0xff]  }
  0x6d   :  { %v684_v40 = vld [vmem:[#allocation4 + $0xc4] sm:$0xff]  ;;  %v341_v44 = vld [vmem:[#allocation2 + $0x30] sm:$0xf]  ;;  %435 = vst [vmem:[#allocation4 + $0xb4] sm:$0xf] %v403_v42 }
  0x6e   :  { %1857 = vmatmul.mubr.bf16.gmra.mxu0 %v11368_v28  ;;  %v14779_v41 = vld [vmem:[#allocation4 + $0xac] ss:$28 sps:$4 sm:$0xff]   ;;  %v404_v43 = vld [vmem:[#allocation2 + $0x34] sm:$0xf]  ;;  %373 = vst [vmem:[#allocation4 + $0xe8] sm:$0xf] %v341_v44  ;;  %v11375_v47 = vcombine.low %v680_v39, %v684_v40 }
  0x6f   :  { %1864 = vmatprep.mubr.bf16.mxu0 %v14779_v41  ;;  %436 = vst [vmem:[#allocation4 + $0xd0] sm:$0xf] %v404_v43  ;;  %v342_v45 = vld [vmem:[#allocation2 + $0x34] sm:$0xf]  ;;  %v213_v56 = vld [vmem:[#allocation2 + $0x28] sm:$0xf] }
  0x70   :  { %374 = vst [vmem:[#allocation4 + $0x104] sm:$0xf] %v342_v45  ;;  %v688_v57 = vld [vmem:[#allocation4 + $0xe0] sm:$0xff]  ;;  %v214_v59 = vld [vmem:[#allocation2 + $0x2c] sm:$0xf] }
  0x71   :  { %v14784_v52 = vld [vmem:[#allocation4 + $0xe4] ss:$28 sps:$4 sm:$0xff]   ;;  %245 = vst [vmem:[#allocation4 + $0x118] sm:$0xf] %v213_v56  ;;  %246 = vst [vmem:[#allocation4 + $0x134] sm:$0xf] %v214_v59  ;;  %2018 = vmatmul.mubr.bf16.gmra.mxu1 %v14775_v51 }
  0x72   :  { %v405_v54 = vld [vmem:[#allocation2 + $0x38] sm:$0xf]  ;;  %v406_v55 = vld [vmem:[#allocation2 + $0x3c] sm:$0xf]  ;;  %v692_v58 = vld [vmem:[#allocation4 + $0xfc] sm:$0xff] }
  0x73   :  { %437 = vst [vmem:[#allocation4 + $0xec] sm:$0xf] %v405_v54  ;;  %438 = vst [vmem:[#allocation4 + $0x108] sm:$0xf] %v406_v55  ;;  %v278_v60 = vld [vmem:[#allocation2 + $0x30] sm:$0xf]  ;;  %v11382_v9 = vcombine.low %v688_v57, %v692_v58 }
  0x74   :  { %v279_v61 = vld [vmem:[#allocation2 + $0x34] sm:$0xf]  ;;  %310 = vst [vmem:[#allocation4 + $0x11c] sm:$0xf] %v278_v60  ;;  %v15667_v62 = vld [vmem:[#allocation5 + $0x28] sm:$0xf] }
  0x75   :  { %311 = vst [vmem:[#allocation4 + $0x138] sm:$0xf] %v279_v61  ;;  %v15669_v0 = vld [vmem:[#allocation5 + $0x2c] sm:$0xf]  ;;  %v343_v1 = vld [vmem:[#allocation2 + $0x38] sm:$0xf] }
  0x76   :  { %1865 = vmatmul.mubr.bf16.gmra.mxu0 %v11375_v47  ;;  %181 = vst [vmem:[#allocation2 + $0x40] sm:$0xf] %v15667_v62  ;;  %182 = vst [vmem:[#allocation2 + $0x44] sm:$0xf] %v15669_v0  ;;  %v344_v2 = vld [vmem:[#allocation2 + $0x3c] sm:$0xf] }
  0x77   :  { %1872 = vmatprep.mubr.bf16.mxu0 %v14784_v52  ;;  %375 = vst [vmem:[#allocation4 + $0x120] sm:$0xf] %v343_v1  ;;  %v215_v3 = vld [vmem:[#allocation2 + $0x30] sm:$0xf]  ;;  %v216_v4 = vld [vmem:[#allocation2 + $0x34] sm:$0xf] }
  0x78   :  { %v14781_v5 = vld [vmem:[#allocation4 + $0xb4] ss:$28 sps:$4 sm:$0xff]   ;;  %376 = vst [vmem:[#allocation4 + $0x13c] sm:$0xf] %v344_v2  ;;  %247 = vst [vmem:[#allocation4 + $0x150] sm:$0xf] %v215_v3 }
  0x79   :  { %248 = vst [vmem:[#allocation4 + $0x16c] sm:$0xf] %v216_v4  ;;  %v14783_v6 = vld [vmem:[#allocation4 + $0xb0] ss:$28 sps:$4 sm:$0xff]   ;;  %v280_v7 = vld [vmem:[#allocation2 + $0x38] sm:$0xf]  ;;  %2025 = vmatprep.mubr.bf16.mxu1 %v14781_v5 }
  0x7a   :  { %v281_v8 = vld [vmem:[#allocation2 + $0x3c] sm:$0xf]  ;;  %312 = vst [vmem:[#allocation4 + $0x154] sm:$0xf] %v280_v7  ;;  %v15673_v10 = vld [vmem:[#allocation5 + $0x30] sm:$0xf]  ;;  %2026 = vmatmul.mubr.bf16.gmra.mxu1 %v14783_v6 }
  0x7b   :  { %313 = vst [vmem:[#allocation4 + $0x170] sm:$0xf] %v281_v8  ;;  %v15675_v11 = vld [vmem:[#allocation5 + $0x34] sm:$0xf]  ;;  %183 = vst [vmem:[#allocation2 + $0x48] sm:$0xf] %v15673_v10 }
  0x7c   :  { %184 = vst [vmem:[#allocation2 + $0x4c] sm:$0xf] %v15675_v11  ;;  %v14786_v13 = vld [vmem:[#allocation4 + $0xec] ss:$28 sps:$4 sm:$0xff]   ;;  %v696_v14 = vld [vmem:[#allocation4 + $0x118] sm:$0xff]  ;;  %v14803_v21 = vld [vmem:[#allocation8 + $0x120] sm:$0xff]  }
  0x7d   :  { %v700_v15 = vld [vmem:[#allocation4 + $0x134] sm:$0xff]  ;;  %v407_v17 = vld [vmem:[#allocation2 + $0x40] sm:$0xf]  ;;  %2033 = vmatprep.mubr.bf16.mxu1 %v14786_v13  ;;  %v14788_v24 = vld [vmem:[#allocation4 + $0xe8] ss:$28 sps:$4 sm:$0xff]   ;;  %13313 = vmatpush3.bf16.msra.mxu0 %v14803_v21 }
  0x7e   :  { %1873 = vmatmul.mubr.bf16.gmra.mxu0 %v11382_v9  ;;  %v14792_v16 = vld [vmem:[#allocation4 + $0x11c] ss:$28 sps:$4 sm:$0xff]   ;;  %v408_v18 = vld [vmem:[#allocation2 + $0x44] sm:$0xf]  ;;  %439 = vst [vmem:[#allocation4 + $0x124] sm:$0xf] %v407_v17  ;;  %v11389_v26 = vcombine.low %v696_v14, %v700_v15 }
  0x7f   :  { %440 = vst [vmem:[#allocation4 + $0x140] sm:$0xf] %v408_v18  ;;  %v345_v19 = vld [vmem:[#allocation2 + $0x40] sm:$0xf]  ;;  %v346_v20 = vld [vmem:[#allocation2 + $0x44] sm:$0xf]  ;;  %1880 = vmatprep.mubr.bf16.mxu0 %v14792_v16 }
  0x80   :  { %377 = vst [vmem:[#allocation4 + $0x158] sm:$0xf] %v345_v19  ;;  %378 = vst [vmem:[#allocation4 + $0x174] sm:$0xf] %v346_v20  ;;  %v14804_v29 = vld [vmem:[#allocation8 + $0x1a0] sm:$0xff]   ;;  %v14815_v54 = vld [vmem:[#allocation8 + $0x158] sm:$0xff]  }
  0x81   :  { %v217_v30 = vld [vmem:[#allocation2 + $0x38] sm:$0xf]  ;;  %v218_v31 = vld [vmem:[#allocation2 + $0x3c] sm:$0xf]  ;;  %v282_v32 = vld [vmem:[#allocation2 + $0x40] sm:$0xf]  ;;  %14528 = vmatprep.subr.bf16.mxu1 %v14804_v29  ;;  %13314 = vmatprep.subr.bf16.mxu0 %v14815_v54 }
  0x82   :  { %v14797_v25 = vld [vmem:[#allocation4 + $0x154] ss:$28 sps:$4 sm:$0xff]   ;;  %v409_v27 = vld [vmem:[#allocation2 + $0x48] sm:$0xf]  ;;  %249 = vst [vmem:[#allocation4 + $0x188] sm:$0xf] %v217_v30  ;;  %14529 = vmatpush3.bf16.msra.mxu1 %v14804_v29 }
  0x83   :  { %v410_v28 = vld [vmem:[#allocation2 + $0x4c] sm:$0xf]  ;;  %441 = vst [vmem:[#allocation4 + $0x15c] sm:$0xf] %v409_v27  ;;  %250 = vst [vmem:[#allocation4 + $0x1a4] sm:$0xf] %v218_v31  ;;  %2034 = vmatmul.mubr.bf16.gmra.mxu1 %v14788_v24 }
  0x84   :  { %442 = vst [vmem:[#allocation4 + $0x178] sm:$0xf] %v410_v28  ;;  %v283_v35 = vld [vmem:[#allocation2 + $0x44] sm:$0xf]  ;;  %314 = vst [vmem:[#allocation4 + $0x18c] sm:$0xf] %v282_v32 }
  0x85   :  { %v15679_v36 = vld [vmem:[#allocation5 + $0x38] sm:$0xf]  ;;  %v15681_v39 = vld [vmem:[#allocation5 + $0x3c] sm:$0xf]  ;;  %v704_v40 = vld [vmem:[#allocation4 + $0x150] sm:$0xff] }
  0x86   :  { %315 = vst [vmem:[#allocation4 + $0x1a8] sm:$0xf] %v283_v35  ;;  %185 = vst [vmem:[#allocation2 + $0x50] sm:$0xf] %v15679_v36  ;;  %v347_v41 = vld [vmem:[#allocation2 + $0x48] sm:$0xf]  ;;  %1881 = vmatmul.mubr.bf16.gmra.mxu0 %v11389_v26 }
  0x87   :  { %186 = vst [vmem:[#allocation2 + $0x54] sm:$0xf] %v15681_v39  ;;  %v348_v42 = vld [vmem:[#allocation2 + $0x4c] sm:$0xf]  ;;  %v219_v43 = vld [vmem:[#allocation2 + $0x40] sm:$0xf]  ;;  %1888 = vmatprep.mubr.bf16.mxu0 %v14797_v25 }
  0x88   :  { %v14794_v44 = vld [vmem:[#allocation4 + $0x124] ss:$28 sps:$4 sm:$0xff]   ;;  %379 = vst [vmem:[#allocation4 + $0x190] sm:$0xf] %v347_v41  ;;  %380 = vst [vmem:[#allocation4 + $0x1ac] sm:$0xf] %v348_v42 }
  0x89   :  { %251 = vst [vmem:[#allocation4 + $0x1c0] sm:$0xf] %v219_v43  ;;  %v708_v45 = vld [vmem:[#allocation4 + $0x16c] sm:$0xff]  ;;  %v220_v46 = vld [vmem:[#allocation2 + $0x44] sm:$0xf]  ;;  %2041 = vmatprep.mubr.bf16.mxu1 %v14794_v44  ;;  %v14816_v3 = vld [vmem:[#allocation8 + $0x118] sm:$0xff]  }
  0x8a   :  { %v284_v47 = vld [vmem:[#allocation2 + $0x48] sm:$0xf]  ;;  %252 = vst [vmem:[#allocation4 + $0x1dc] sm:$0xf] %v220_v46  ;;  %v285_v50 = vld [vmem:[#allocation2 + $0x4c] sm:$0xf]  ;;  %v11396_v55 = vcombine.low %v704_v40, %v708_v45  ;;  %13315 = vmatpush3.bf16.msra.mxu0 %v14816_v3 }
  0x8b   :  { %316 = vst [vmem:[#allocation4 + $0x1c4] sm:$0xf] %v284_v47  ;;  %v15685_v51 = vld [vmem:[#allocation5 + $0x40] sm:$0xf]  ;;  %v15687_v52 = vld [vmem:[#allocation5 + $0x44] sm:$0xf] }
  0x8c   :  { %317 = vst [vmem:[#allocation4 + $0x1e0] sm:$0xf] %v285_v50  ;;  %187 = vst [vmem:[#allocation2 + $0x58] sm:$0xf] %v15685_v51  ;;  %v14796_v56 = vld [vmem:[#allocation4 + $0x120] ss:$28 sps:$4 sm:$0xff]  }
  0x8d   :  { %188 = vst [vmem:[#allocation2 + $0x5c] sm:$0xf] %v15687_v52  ;;  %v14799_v57 = vld [vmem:[#allocation4 + $0x15c] ss:$28 sps:$4 sm:$0xff]   ;;  %v14805_v58 = vld [vmem:[#allocation4 + $0x18c] ss:$28 sps:$4 sm:$0xff]   ;;  %2042 = vmatmul.mubr.bf16.gmra.mxu1 %v14796_v56 }
  0x8e   :  { %v411_v59 = vld [vmem:[#allocation2 + $0x50] sm:$0xf]  ;;  %v712_v60 = vld [vmem:[#allocation4 + $0x188] sm:$0xff]  ;;  %v412_v61 = vld [vmem:[#allocation2 + $0x54] sm:$0xf]  ;;  %1889 = vmatmul.mubr.bf16.gmra.mxu0 %v11396_v55  ;;  %2049 = vmatprep.mubr.bf16.mxu1 %v14799_v57 }
  0x8f   :  { %443 = vst [vmem:[#allocation4 + $0x194] sm:$0xf] %v411_v59  ;;  %v349_v1 = vld [vmem:[#allocation2 + $0x50] sm:$0xf]  ;;  %v350_v2 = vld [vmem:[#allocation2 + $0x54] sm:$0xf]  ;;  %1896 = vmatprep.mubr.bf16.mxu0 %v14805_v58 }
  0x90   :  { %444 = vst [vmem:[#allocation4 + $0x1b0] sm:$0xf] %v412_v61  ;;  %381 = vst [vmem:[#allocation4 + $0x1c8] sm:$0xf] %v349_v1  ;;  %v716_v4 = vld [vmem:[#allocation4 + $0x1a4] sm:$0xff]  ;;  %v14817_v5 = vld [vmem:[#allocation8 + $0x198] sm:$0xff]  }
  0x91   :  { %382 = vst [vmem:[#allocation4 + $0x1e4] sm:$0xf] %v350_v2  ;;  %v14801_v7 = vld [vmem:[#allocation4 + $0x158] ss:$28 sps:$4 sm:$0xff]   ;;  %14530 = vmatprep.subr.bf16.mxu1 %v14817_v5  ;;  %v222_v13 = vld [vmem:[#allocation2 + $0x4c] sm:$0xf]  ;;  %v11403_v14 = vcombine.low %v712_v60, %v716_v4 }
  0x92   :  { %v221_v12 = vld [vmem:[#allocation2 + $0x48] sm:$0xf]  ;;  %14531 = vmatpush3.bf16.msra.mxu1 %v14817_v5  ;;  %254 = vst [vmem:[#allocation4 + $0x214] sm:$0xf] %v222_v13  ;;  %v286_v15 = vld [vmem:[#allocation2 + $0x50] sm:$0xf] }
  0x93   :  { %v413_v6 = vld [vmem:[#allocation2 + $0x58] sm:$0xf]  ;;  %v14810_v8 = vld [vmem:[#allocation4 + $0x1c4] ss:$28 sps:$4 sm:$0xff]   ;;  %253 = vst [vmem:[#allocation4 + $0x1f8] sm:$0xf] %v221_v12 }
  0x94   :  { %v414_v9 = vld [vmem:[#allocation2 + $0x5c] sm:$0xf]  ;;  %445 = vst [vmem:[#allocation4 + $0x1cc] sm:$0xf] %v413_v6  ;;  %v287_v16 = vld [vmem:[#allocation2 + $0x54] sm:$0xf] }
  0x95   :  { %446 = vst [vmem:[#allocation4 + $0x1e8] sm:$0xf] %v414_v9  ;;  %v15691_v17 = vld [vmem:[#allocation5 + $0x48] sm:$0xf]  ;;  %318 = vst [vmem:[#allocation4 + $0x1fc] sm:$0xf] %v286_v15  ;;  %2050 = vmatmul.mubr.bf16.gmra.mxu1 %v14801_v7 }
  0x96   :  { %17432 = vst [vmem:[#allocation19_spill] sm:$0xff] %v15691_v17  ;;  %319 = vst [vmem:[#allocation4 + $0x218] sm:$0xf] %v287_v16  ;;  %v15693_v18 = vld [vmem:[#allocation5 + $0x4c] sm:$0xf]  ;;  %v720_v26 = vld [vmem:[#allocation4 + $0x1c0] sm:$0xff]  ;;  %1897 = vmatmul.mubr.bf16.gmra.mxu0 %v11403_v14 }
  0x97   :  { %17433 = vst [vmem:[#allocation20_spill] sm:$0xff] %v15693_v18  ;;  %189 = vst [vmem:[#allocation2 + $0x60] sm:$0xf] %v15691_v17  ;;  %v351_v19 = vld [vmem:[#allocation2 + $0x58] sm:$0xf]  ;;  %v724_v27 = vld [vmem:[#allocation4 + $0x1dc] sm:$0xff]  ;;  %1904 = vmatprep.mubr.bf16.mxu0 %v14810_v8 }
  0x98   :  { %v352_v20 = vld [vmem:[#allocation2 + $0x5c] sm:$0xf]  ;;  %190 = vst [vmem:[#allocation2 + $0x64] sm:$0xf] %v15693_v18  ;;  %383 = vst [vmem:[#allocation4 + $0x200] sm:$0xf] %v351_v19  ;;  %v11410_v41 = vcombine.low %v720_v26, %v724_v27 }
  0x99   :  { %384 = vst [vmem:[#allocation4 + $0x21c] sm:$0xf] %v352_v20  ;;  %v223_v21 = vld [vmem:[#allocation2 + $0x50] sm:$0xf]  ;;  %v224_v24 = vld [vmem:[#allocation2 + $0x54] sm:$0xf] }
  0x9a   :  { %v14807_v25 = vld [vmem:[#allocation4 + $0x194] ss:$28 sps:$4 sm:$0xff]   ;;  %255 = vst [vmem:[#allocation4 + $0x230] sm:$0xf] %v223_v21  ;;  %256 = vst [vmem:[#allocation4 + $0x24c] sm:$0xf] %v224_v24 }
  0x9b   :  { %v288_v28 = vld [vmem:[#allocation2 + $0x58] sm:$0xf]  ;;  %v289_v29 = vld [vmem:[#allocation2 + $0x5c] sm:$0xf]  ;;  %v15697_v30 = vld [vmem:[#allocation5 + $0x50] sm:$0xf]  ;;  %2057 = vmatprep.mubr.bf16.mxu1 %v14807_v25 }
  0x9c   :  { %17434 = vst [vmem:[#allocation21_spill] sm:$0xff] %v15697_v30  ;;  %320 = vst [vmem:[#allocation4 + $0x234] sm:$0xf] %v288_v28  ;;  %v15699_v31 = vld [vmem:[#allocation5 + $0x54] sm:$0xf]  ;;  %v728_v54 = vld [vmem:[#allocation4 + $0x1f8] sm:$0xff] }
  0x9d   :  { %321 = vst [vmem:[#allocation4 + $0x250] sm:$0xf] %v289_v29  ;;  %17435 = vst [vmem:[#allocation22_spill] sm:$0xff] %v15699_v31  ;;  %v14828_v32 = vld [vmem:[#allocation8 + $0x150] sm:$0xff]   ;;  %v14812_v40 = vld [vmem:[#allocation4 + $0x1cc] ss:$28 sps:$4 sm:$0xff]  }
  0x9e   :  { %191 = vst [vmem:[#allocation2 + $0x68] sm:$0xf] %v15697_v30  ;;  %192 = vst [vmem:[#allocation2 + $0x6c] sm:$0xf] %v15699_v31  ;;  %v14809_v35 = vld [vmem:[#allocation4 + $0x190] ss:$28 sps:$4 sm:$0xff]   ;;  %13316 = vmatprep.subr.bf16.mxu0 %v14828_v32  ;;  %1905 = vmatmul.mubr.bf16.gmra.mxu0 %v11410_v41 }
  0x9f   :  { %v14818_v42 = vld [vmem:[#allocation4 + $0x1fc] ss:$28 sps:$4 sm:$0xff]   ;;  %v415_v43 = vld [vmem:[#allocation2 + $0x60] sm:$0xf]  ;;  %v416_v44 = vld [vmem:[#allocation2 + $0x64] sm:$0xf]  ;;  %2058 = vmatmul.mubr.bf16.gmra.mxu1 %v14809_v35 }
  0xa0   :  { %v353_v45 = vld [vmem:[#allocation2 + $0x60] sm:$0xf]  ;;  %447 = vst [vmem:[#allocation4 + $0x204] sm:$0xf] %v415_v43  ;;  %448 = vst [vmem:[#allocation4 + $0x220] sm:$0xf] %v416_v44  ;;  %1912 = vmatprep.mubr.bf16.mxu0 %v14818_v42  ;;  %2065 = vmatprep.mubr.bf16.mxu1 %v14812_v40 }
  0xa1   :  { %v354_v46 = vld [vmem:[#allocation2 + $0x64] sm:$0xf]  ;;  %385 = vst [vmem:[#allocation4 + $0x238] sm:$0xf] %v353_v45  ;;  %v225_v58 = vld [vmem:[#allocation2 + $0x58] sm:$0xf] }
  0xa2   :  { %v14829_v47 = vld [vmem:[#allocation8 + $0x110] sm:$0xff]   ;;  %386 = vst [vmem:[#allocation4 + $0x254] sm:$0xf] %v354_v46  ;;  %v226_v59 = vld [vmem:[#allocation2 + $0x5c] sm:$0xf] }
  0xa3   :  { %v14830_v50 = vld [vmem:[#allocation8 + $0x190] sm:$0xff]   ;;  %13317 = vmatpush3.bf16.msra.mxu0 %v14829_v47  ;;  %257 = vst [vmem:[#allocation4 + $0x268] sm:$0xf] %v225_v58  ;;  %v14814_v1 = vld [vmem:[#allocation4 + $0x1c8] ss:$28 sps:$4 sm:$0xff]  }
  0xa4   :  { %v732_v55 = vld [vmem:[#allocation4 + $0x214] sm:$0xff]  ;;  %v290_v60 = vld [vmem:[#allocation2 + $0x60] sm:$0xf]  ;;  %14532 = vmatprep.subr.bf16.mxu1 %v14830_v50  ;;  %258 = vst [vmem:[#allocation4 + $0x284] sm:$0xf] %v226_v59  ;;  %v14841_v20 = vld [vmem:[#allocation8 + $0x148] sm:$0xff]  }
  0xa5   :  { %v417_v56 = vld [vmem:[#allocation2 + $0x68] sm:$0xf]  ;;  %v418_v57 = vld [vmem:[#allocation2 + $0x6c] sm:$0xf]  ;;  %v291_v61 = vld [vmem:[#allocation2 + $0x64] sm:$0xf]  ;;  %v11417_v5 = vcombine.low %v728_v54, %v732_v55  ;;  %14533 = vmatpush3.bf16.msra.mxu1 %v14830_v50  ;;  %13318 = vmatprep.subr.bf16.mxu0 %v14841_v20 }
  0xa6   :  { %449 = vst [vmem:[#allocation4 + $0x23c] sm:$0xf] %v417_v56  ;;  %450 = vst [vmem:[#allocation4 + $0x258] sm:$0xf] %v418_v57  ;;  %v15703_v2 = vld [vmem:[#allocation5 + $0x58] sm:$0xf] }
  0xa7   :  { %322 = vst [vmem:[#allocation4 + $0x26c] sm:$0xf] %v290_v60  ;;  %323 = vst [vmem:[#allocation4 + $0x288] sm:$0xf] %v291_v61  ;;  %v15705_v3 = vld [vmem:[#allocation5 + $0x5c] sm:$0xf]  ;;  %1913 = vmatmul.mubr.bf16.gmra.mxu0 %v11417_v5  ;;  %2066 = vmatmul.mubr.bf16.gmra.mxu1 %v14814_v1 }
  0xa8   :  { %17436 = vst [vmem:[#allocation23_spill] sm:$0xff] %v15703_v2  ;;  %17437 = vst [vmem:[#allocation24_spill] sm:$0xff] %v15705_v3  ;;  %v355_v4 = vld [vmem:[#allocation2 + $0x68] sm:$0xf]  ;;  %v356_v6 = vld [vmem:[#allocation2 + $0x6c] sm:$0xf] }
  0xa9   :  { %193 = vst [vmem:[#allocation2 + $0x70] sm:$0xf] %v15703_v2  ;;  %194 = vst [vmem:[#allocation2 + $0x74] sm:$0xf] %v15705_v3  ;;  %v227_v7 = vld [vmem:[#allocation2 + $0x60] sm:$0xf] }
  0xaa   :  { %387 = vst [vmem:[#allocation4 + $0x270] sm:$0xf] %v355_v4  ;;  %v228_v8 = vld [vmem:[#allocation2 + $0x64] sm:$0xf]  ;;  %388 = vst [vmem:[#allocation4 + $0x28c] sm:$0xf] %v356_v6 }
  0xab   :  { %v14823_v9 = vld [vmem:[#allocation4 + $0x234] ss:$28 sps:$4 sm:$0xff]   ;;  %259 = vst [vmem:[#allocation4 + $0x2a0] sm:$0xf] %v227_v7  ;;  %260 = vst [vmem:[#allocation4 + $0x2bc] sm:$0xf] %v228_v8 }
  0xac   :  { %v14820_v12 = vld [vmem:[#allocation4 + $0x204] ss:$28 sps:$4 sm:$0xff]   ;;  %v292_v13 = vld [vmem:[#allocation2 + $0x68] sm:$0xf]  ;;  %v293_v14 = vld [vmem:[#allocation2 + $0x6c] sm:$0xf]  ;;  %1920 = vmatprep.mubr.bf16.mxu0 %v14823_v9 }
  0xad   :  { %v736_v15 = vld [vmem:[#allocation4 + $0x230] sm:$0xff]  ;;  %324 = vst [vmem:[#allocation4 + $0x2a4] sm:$0xf] %v292_v13  ;;  %325 = vst [vmem:[#allocation4 + $0x2c0] sm:$0xf] %v293_v14  ;;  %2073 = vmatprep.mubr.bf16.mxu1 %v14820_v12  ;;  %v14842_v35 = vld [vmem:[#allocation8 + $0x108] sm:$0xff]  }
  0xae   :  { %v15709_v16 = vld [vmem:[#allocation5 + $0x60] sm:$0xf]  ;;  %v15711_v19 = vld [vmem:[#allocation5 + $0x64] sm:$0xf]  ;;  %v740_v21 = vld [vmem:[#allocation4 + $0x24c] sm:$0xff]  ;;  %13319 = vmatpush3.bf16.msra.mxu0 %v14842_v35 }
  0xaf   :  { %17438 = vst [vmem:[#allocation25_spill] sm:$0xff] %v15709_v16  ;;  %17439 = vst [vmem:[#allocation26_spill] sm:$0xff] %v15711_v19  ;;  %v14822_v24 = vld [vmem:[#allocation4 + $0x200] ss:$28 sps:$4 sm:$0xff]   ;;  %v14831_v25 = vld [vmem:[#allocation4 + $0x26c] ss:$28 sps:$4 sm:$0xff]   ;;  %v11424_v28 = vcombine.low %v736_v15, %v740_v21 }
  0xb0   :  { %195 = vst [vmem:[#allocation2 + $0x78] sm:$0xf] %v15709_v16  ;;  %196 = vst [vmem:[#allocation2 + $0x7c] sm:$0xf] %v15711_v19  ;;  %v419_v26 = vld [vmem:[#allocation2 + $0x70] sm:$0xf]  ;;  %2074 = vmatmul.mubr.bf16.gmra.mxu1 %v14822_v24 }
  0xb1   :  { %v420_v27 = vld [vmem:[#allocation2 + $0x74] sm:$0xf]  ;;  %451 = vst [vmem:[#allocation4 + $0x274] sm:$0xf] %v419_v26  ;;  %v357_v29 = vld [vmem:[#allocation2 + $0x70] sm:$0xf]  ;;  %1921 = vmatmul.mubr.bf16.gmra.mxu0 %v11424_v28 }
  0xb2   :  { %452 = vst [vmem:[#allocation4 + $0x290] sm:$0xf] %v420_v27  ;;  %v358_v32 = vld [vmem:[#allocation2 + $0x74] sm:$0xf]  ;;  %389 = vst [vmem:[#allocation4 + $0x2a8] sm:$0xf] %v357_v29  ;;  %1928 = vmatprep.mubr.bf16.mxu0 %v14831_v25 }
  0xb3   :  { %390 = vst [vmem:[#allocation4 + $0x2c4] sm:$0xf] %v358_v32  ;;  %v14825_v40 = vld [vmem:[#allocation4 + $0x23c] ss:$28 sps:$4 sm:$0xff]   ;;  %v744_v41 = vld [vmem:[#allocation4 + $0x268] sm:$0xff]  ;;  %v14854_v12 = vld [vmem:[#allocation8 + $0x140] sm:$0xff]  }
  0xb4   :  { %v748_v42 = vld [vmem:[#allocation4 + $0x284] sm:$0xff]  ;;  %v229_v46 = vld [vmem:[#allocation2 + $0x68] sm:$0xf]  ;;  %v230_v47 = vld [vmem:[#allocation2 + $0x6c] sm:$0xf]  ;;  %2081 = vmatprep.mubr.bf16.mxu1 %v14825_v40  ;;  %13320 = vmatprep.subr.bf16.mxu0 %v14854_v12 }
  0xb5   :  { %v14843_v45 = vld [vmem:[#allocation8 + $0x188] sm:$0xff]   ;;  %v294_v50 = vld [vmem:[#allocation2 + $0x70] sm:$0xf]  ;;  %261 = vst [vmem:[#allocation4 + $0x2d8] sm:$0xf] %v229_v46  ;;  %v11431_v4 = vcombine.low %v744_v41, %v748_v42 }
  0xb6   :  { %262 = vst [vmem:[#allocation4 + $0x2f4] sm:$0xf] %v230_v47  ;;  %v295_v54 = vld [vmem:[#allocation2 + $0x74] sm:$0xf]  ;;  %326 = vst [vmem:[#allocation4 + $0x2dc] sm:$0xf] %v294_v50  ;;  %14534 = vmatprep.subr.bf16.mxu1 %v14843_v45 }
  0xb7   :  { %v421_v43 = vld [vmem:[#allocation2 + $0x78] sm:$0xf]  ;;  %v422_v44 = vld [vmem:[#allocation2 + $0x7c] sm:$0xf]  ;;  %327 = vst [vmem:[#allocation4 + $0x2f8] sm:$0xf] %v295_v54  ;;  %14535 = vmatpush3.bf16.msra.mxu1 %v14843_v45 }
  0xb8   :  { %453 = vst [vmem:[#allocation4 + $0x2ac] sm:$0xf] %v421_v43  ;;  %454 = vst [vmem:[#allocation4 + $0x2c8] sm:$0xf] %v422_v44  ;;  %v15715_v55 = vld [vmem:[#allocation5 + $0x68] sm:$0xf] }
  0xb9   :  { %17440 = vst [vmem:[#allocation27_spill] sm:$0xff] %v15715_v55  ;;  %v15717_v56 = vld [vmem:[#allocation5 + $0x6c] sm:$0xf]  ;;  %197 = vst [vmem:[#allocation2 + $0x80] sm:$0xf] %v15715_v55  ;;  %1929 = vmatmul.mubr.bf16.gmra.mxu0 %v11431_v4  ;;  %v752_v13 = vld [vmem:[#allocation4 + $0x2a0] sm:$0xff] }
  0xba   :  { %17441 = vst [vmem:[#allocation28_spill] sm:$0xff] %v15717_v56  ;;  %198 = vst [vmem:[#allocation2 + $0x84] sm:$0xf] %v15717_v56  ;;  %v359_v57 = vld [vmem:[#allocation2 + $0x78] sm:$0xf]  ;;  %v756_v14 = vld [vmem:[#allocation4 + $0x2bc] sm:$0xff] }
  0xbb   :  { %v360_v58 = vld [vmem:[#allocation2 + $0x7c] sm:$0xf]  ;;  %v231_v59 = vld [vmem:[#allocation2 + $0x70] sm:$0xf]  ;;  %v14827_v60 = vld [vmem:[#allocation4 + $0x238] ss:$28 sps:$4 sm:$0xff]   ;;  %v11438_v27 = vcombine.low %v752_v13, %v756_v14 }
  0xbc   :  { %v14836_v61 = vld [vmem:[#allocation4 + $0x2a4] ss:$28 sps:$4 sm:$0xff]   ;;  %391 = vst [vmem:[#allocation4 + $0x2e0] sm:$0xf] %v359_v57  ;;  %392 = vst [vmem:[#allocation4 + $0x2fc] sm:$0xf] %v360_v58  ;;  %2082 = vmatmul.mubr.bf16.gmra.mxu1 %v14827_v60 }
  0xbd   :  { %263 = vst [vmem:[#allocation4 + $0x310] sm:$0xf] %v231_v59  ;;  %v14833_v1 = vld [vmem:[#allocation4 + $0x274] ss:$28 sps:$4 sm:$0xff]   ;;  %v232_v5 = vld [vmem:[#allocation2 + $0x74] sm:$0xf]  ;;  %1936 = vmatprep.mubr.bf16.mxu0 %v14836_v61 }
  0xbe   :  { %v296_v6 = vld [vmem:[#allocation2 + $0x78] sm:$0xf]  ;;  %264 = vst [vmem:[#allocation4 + $0x32c] sm:$0xf] %v232_v5  ;;  %v297_v7 = vld [vmem:[#allocation2 + $0x7c] sm:$0xf]  ;;  %2089 = vmatprep.mubr.bf16.mxu1 %v14833_v1 }
  0xbf   :  { %328 = vst [vmem:[#allocation4 + $0x314] sm:$0xf] %v296_v6  ;;  %v15721_v8 = vld [vmem:[#allocation5 + $0x70] sm:$0xf]  ;;  %v15723_v9 = vld [vmem:[#allocation5 + $0x74] sm:$0xf] }
  0xc0   :  { %17442 = vst [vmem:[#allocation29_spill] sm:$0xff] %v15721_v8  ;;  %17443 = vst [vmem:[#allocation30_spill] sm:$0xff] %v15723_v9  ;;  %v423_v15 = vld [vmem:[#allocation2 + $0x80] sm:$0xf]  ;;  %v14855_v25 = vld [vmem:[#allocation8 + $0x100] sm:$0xff]  }
  0xc1   :  { %329 = vst [vmem:[#allocation4 + $0x330] sm:$0xf] %v297_v7  ;;  %199 = vst [vmem:[#allocation2 + $0x88] sm:$0xf] %v15721_v8  ;;  %v424_v20 = vld [vmem:[#allocation2 + $0x84] sm:$0xf]  ;;  %13321 = vmatpush3.bf16.msra.mxu0 %v14855_v25 }
  0xc2   :  { %200 = vst [vmem:[#allocation2 + $0x8c] sm:$0xf] %v15723_v9  ;;  %455 = vst [vmem:[#allocation4 + $0x2e4] sm:$0xf] %v423_v15  ;;  %v361_v21 = vld [vmem:[#allocation2 + $0x80] sm:$0xf]  ;;  %1937 = vmatmul.mubr.bf16.gmra.mxu0 %v11438_v27 }
  0xc3   :  { %v362_v24 = vld [vmem:[#allocation2 + $0x84] sm:$0xf]  ;;  %456 = vst [vmem:[#allocation4 + $0x300] sm:$0xf] %v424_v20  ;;  %393 = vst [vmem:[#allocation4 + $0x318] sm:$0xf] %v361_v21 }
  0xc4   :  { %394 = vst [vmem:[#allocation4 + $0x334] sm:$0xf] %v362_v24  ;;  %v14835_v26 = vld [vmem:[#allocation4 + $0x270] ss:$28 sps:$4 sm:$0xff]   ;;  %v14856_v28 = vld [vmem:[#allocation8 + $0x180] sm:$0xff]   ;;  %v760_v43 = vld [vmem:[#allocation4 + $0x2d8] sm:$0xff] }
  0xc5   :  { %v14838_v29 = vld [vmem:[#allocation4 + $0x2ac] ss:$28 sps:$4 sm:$0xff]   ;;  %v14844_v32 = vld [vmem:[#allocation4 + $0x2dc] ss:$28 sps:$4 sm:$0xff]   ;;  %14536 = vmatprep.subr.bf16.mxu1 %v14856_v28  ;;  %v298_v45 = vld [vmem:[#allocation2 + $0x80] sm:$0xf]  ;;  %2090 = vmatmul.mubr.bf16.gmra.mxu1 %v14835_v26 }
  0xc6   :  { %v233_v41 = vld [vmem:[#allocation2 + $0x78] sm:$0xf]  ;;  %v234_v42 = vld [vmem:[#allocation2 + $0x7c] sm:$0xf]  ;;  %v764_v44 = vld [vmem:[#allocation4 + $0x2f4] sm:$0xff]  ;;  %14537 = vmatpush3.bf16.msra.mxu1 %v14856_v28  ;;  %1944 = vmatprep.mubr.bf16.mxu0 %v14844_v32 }
  0xc7   :  { %265 = vst [vmem:[#allocation4 + $0x348] sm:$0xf] %v233_v41  ;;  %266 = vst [vmem:[#allocation4 + $0x364] sm:$0xf] %v234_v42  ;;  %v299_v46 = vld [vmem:[#allocation2 + $0x84] sm:$0xf]  ;;  %2097 = vmatprep.mubr.bf16.mxu1 %v14838_v29  ;;  %v11445_v6 = vcombine.low %v760_v43, %v764_v44 }
  0xc8   :  { %v425_v35 = vld [vmem:[#allocation2 + $0x88] sm:$0xf]  ;;  %330 = vst [vmem:[#allocation4 + $0x34c] sm:$0xf] %v298_v45  ;;  %331 = vst [vmem:[#allocation4 + $0x368] sm:$0xf] %v299_v46 }
  0xc9   :  { %v426_v40 = vld [vmem:[#allocation2 + $0x8c] sm:$0xf]  ;;  %457 = vst [vmem:[#allocation4 + $0x31c] sm:$0xf] %v425_v35  ;;  %v15727_v47 = vld [vmem:[#allocation5 + $0x78] sm:$0xf] }
  0xca   :  { %458 = vst [vmem:[#allocation4 + $0x338] sm:$0xf] %v426_v40  ;;  %17444 = vst [vmem:[#allocation31_spill] sm:$0xff] %v15727_v47  ;;  %v15729_v50 = vld [vmem:[#allocation5 + $0x7c] sm:$0xf]  ;;  %v768_v21 = vld [vmem:[#allocation4 + $0x310] sm:$0xff]  ;;  %1945 = vmatmul.mubr.bf16.gmra.mxu0 %v11445_v6 }
  0xcb   :  { %17445 = vst [vmem:[#allocation32_spill] sm:$0xff] %v15729_v50  ;;  %201 = vst [vmem:[#allocation2 + $0x90] sm:$0xf] %v15727_v47  ;;  %v363_v54 = vld [vmem:[#allocation2 + $0x88] sm:$0xf]  ;;  %v772_v24 = vld [vmem:[#allocation4 + $0x32c] sm:$0xff] }
  0xcc   :  { %v364_v57 = vld [vmem:[#allocation2 + $0x8c] sm:$0xf]  ;;  %202 = vst [vmem:[#allocation2 + $0x94] sm:$0xf] %v15729_v50  ;;  %395 = vst [vmem:[#allocation4 + $0x350] sm:$0xf] %v363_v54  ;;  %v11452_v44 = vcombine.low %v768_v21, %v772_v24 }
  0xcd   :  { %396 = vst [vmem:[#allocation4 + $0x36c] sm:$0xf] %v364_v57  ;;  %v462_v58 = vld [vmem:[#allocation2 + $0x20] sm:$0xf]  ;;  %v463_v59 = vld [vmem:[#allocation2 + $0x24] sm:$0xf] }
  0xce   :  { %494 = vst [vmem:[#allocation4 + $0x10] sm:$0xf] %v462_v58  ;;  %495 = vst [vmem:[#allocation4 + $0x2c] sm:$0xf] %v463_v59  ;;  %v14840_v60 = vld [vmem:[#allocation4 + $0x2a8] ss:$28 sps:$4 sm:$0xff]  }
  0xcf   :  { %v14849_v61 = vld [vmem:[#allocation4 + $0x314] ss:$28 sps:$4 sm:$0xff]   ;;  %v527_v1 = vld [vmem:[#allocation2 + $0x28] sm:$0xf]  ;;  %v528_v4 = vld [vmem:[#allocation2 + $0x2c] sm:$0xf]  ;;  %2098 = vmatmul.mubr.bf16.gmra.mxu1 %v14840_v60 }
  0xd0   :  { %v592_v5 = vld [vmem:[#allocation2 + $0x30] sm:$0xf]  ;;  %559 = vst [vmem:[#allocation4 + $0x14] sm:$0xf] %v527_v1  ;;  %560 = vst [vmem:[#allocation4 + $0x30] sm:$0xf] %v528_v4  ;;  %1952 = vmatprep.mubr.bf16.mxu0 %v14849_v61 }
  0xd1   :  { %v593_v7 = vld [vmem:[#allocation2 + $0x34] sm:$0xf]  ;;  %624 = vst [vmem:[#allocation4 + $0x18] sm:$0xf] %v592_v5  ;;  %v594_v12 = vld [vmem:[#allocation2 + $0x38] sm:$0xf] }
  0xd2   :  { %v595_v13 = vld [vmem:[#allocation2 + $0x3c] sm:$0xf]  ;;  %625 = vst [vmem:[#allocation4 + $0x34] sm:$0xf] %v593_v7  ;;  %626 = vst [vmem:[#allocation4 + $0x50] sm:$0xf] %v594_v12  ;;  %1953 = vmatmul.mubr.bf16.gmra.mxu0 %v11452_v44 }
  0xd3   :  { %627 = vst [vmem:[#allocation4 + $0x6c] sm:$0xf] %v595_v13  ;;  %v464_v14 = vld [vmem:[#allocation2 + $0x28] sm:$0xf]  ;;  %v465_v15 = vld [vmem:[#allocation2 + $0x2c] sm:$0xf] }
  0xd4   :  { %v14846_v20 = vld [vmem:[#allocation4 + $0x2e4] ss:$28 sps:$4 sm:$0xff]   ;;  %496 = vst [vmem:[#allocation4 + $0x48] sm:$0xf] %v464_v14  ;;  %497 = vst [vmem:[#allocation4 + $0x64] sm:$0xf] %v465_v15 }
  0xd5   :  { %v427_v25 = vld [vmem:[#allocation2 + $0x90] sm:$0xf]  ;;  %v428_v26 = vld [vmem:[#allocation2 + $0x94] sm:$0xf]  ;;  %v596_v29 = vld [vmem:[#allocation2 + $0x40] sm:$0xf]  ;;  %2105 = vmatprep.mubr.bf16.mxu1 %v14846_v20 }
  0xd6   :  { %v529_v27 = vld [vmem:[#allocation2 + $0x30] sm:$0xf]  ;;  %459 = vst [vmem:[#allocation4 + $0x354] sm:$0xf] %v427_v25  ;;  %460 = vst [vmem:[#allocation4 + $0x370] sm:$0xf] %v428_v26 }
  0xd7   :  { %v530_v28 = vld [vmem:[#allocation2 + $0x34] sm:$0xf]  ;;  %561 = vst [vmem:[#allocation4 + $0x4c] sm:$0xf] %v529_v27  ;;  %v597_v32 = vld [vmem:[#allocation2 + $0x44] sm:$0xf] }
  0xd8   :  { %562 = vst [vmem:[#allocation4 + $0x68] sm:$0xf] %v530_v28  ;;  %628 = vst [vmem:[#allocation4 + $0x88] sm:$0xf] %v596_v29  ;;  %v466_v35 = vld [vmem:[#allocation2 + $0x30] sm:$0xf] }
  0xd9   :  { %629 = vst [vmem:[#allocation4 + $0xa4] sm:$0xf] %v597_v32  ;;  %v467_v40 = vld [vmem:[#allocation2 + $0x34] sm:$0xf]  ;;  %v531_v41 = vld [vmem:[#allocation2 + $0x38] sm:$0xf] }
  0xda   :  { %v14848_v42 = vld [vmem:[#allocation4 + $0x2e0] ss:$28 sps:$4 sm:$0xff]   ;;  %498 = vst [vmem:[#allocation4 + $0x80] sm:$0xf] %v466_v35  ;;  %499 = vst [vmem:[#allocation4 + $0x9c] sm:$0xf] %v467_v40 }
  0xdb   :  { %563 = vst [vmem:[#allocation4 + $0x84] sm:$0xf] %v531_v41  ;;  %v14851_v43 = vld [vmem:[#allocation4 + $0x31c] ss:$28 sps:$4 sm:$0xff]   ;;  %v14857_v45 = vld [vmem:[#allocation4 + $0x34c] ss:$28 sps:$4 sm:$0xff]   ;;  %2106 = vmatmul.mubr.bf16.gmra.mxu1 %v14848_v42 }
  0xdc   :  { %v532_v46 = vld [vmem:[#allocation2 + $0x3c] sm:$0xf]  ;;  %v598_v54 = vld [vmem:[#allocation2 + $0x48] sm:$0xf]  ;;  %v599_v57 = vld [vmem:[#allocation2 + $0x4c] sm:$0xf]  ;;  %1960 = vmatprep.mubr.bf16.mxu0 %v14857_v45  ;;  %2113 = vmatprep.mubr.bf16.mxu1 %v14851_v43 }
  0xdd   :  { %564 = vst [vmem:[#allocation4 + $0xa0] sm:$0xf] %v532_v46  ;;  %630 = vst [vmem:[#allocation4 + $0xc0] sm:$0xf] %v598_v54  ;;  %v468_v58 = vld [vmem:[#allocation2 + $0x38] sm:$0xf] }
  0xde   :  { %631 = vst [vmem:[#allocation4 + $0xdc] sm:$0xf] %v599_v57  ;;  %v469_v59 = vld [vmem:[#allocation2 + $0x3c] sm:$0xf]  ;;  %v533_v60 = vld [vmem:[#allocation2 + $0x40] sm:$0xf] }
  0xdf   :  { %v776_v61 = vld [vmem:[#allocation4 + $0x348] sm:$0xff]  ;;  %500 = vst [vmem:[#allocation4 + $0xb8] sm:$0xf] %v468_v58  ;;  %501 = vst [vmem:[#allocation4 + $0xd4] sm:$0xf] %v469_v59  ;;  %v658_v24 = vld [vmem:[#allocation4 + $0x10] sm:$0xff] }
  0xe0   :  { %565 = vst [vmem:[#allocation4 + $0xbc] sm:$0xf] %v533_v60  ;;  %v780_v1 = vld [vmem:[#allocation4 + $0x364] sm:$0xff]  ;;  %v14853_v4 = vld [vmem:[#allocation4 + $0x318] ss:$28 sps:$4 sm:$0xff]   ;;  %v662_v25 = vld [vmem:[#allocation4 + $0x2c] sm:$0xff] }
  0xe1   :  { %v14862_v5 = vld [vmem:[#allocation4 + $0x14] ss:$28 sps:$4 sm:$0xff]   ;;  %v11459_v6 = vcombine.low %v776_v61, %v780_v1  ;;  %v600_v12 = vld [vmem:[#allocation2 + $0x50] sm:$0xf]  ;;  %v601_v13 = vld [vmem:[#allocation2 + $0x54] sm:$0xf]  ;;  %v11358_v54 = vcombine.low %v658_v24, %v662_v25 }
  0xe2   :  { %v534_v7 = vld [vmem:[#allocation2 + $0x44] sm:$0xf]  ;;  %632 = vst [vmem:[#allocation4 + $0xf8] sm:$0xf] %v600_v12  ;;  %633 = vst [vmem:[#allocation4 + $0x114] sm:$0xf] %v601_v13 }
  0xe3   :  { %566 = vst [vmem:[#allocation4 + $0xd8] sm:$0xf] %v534_v7  ;;  %v470_v14 = vld [vmem:[#allocation2 + $0x40] sm:$0xf]  ;;  %v471_v15 = vld [vmem:[#allocation2 + $0x44] sm:$0xf]  ;;  %1961 = vmatmul.mubr.bf16.gmra.mxu0 %v11459_v6  ;;  %2114 = vmatmul.mubr.bf16.gmra.mxu1 %v14853_v4 }
  0xe4   :  { %v535_v20 = vld [vmem:[#allocation2 + $0x48] sm:$0xf]  ;;  %v14859_v21 = vld [vmem:[#allocation4 + $0x354] ss:$28 sps:$4 sm:$0xff]   ;;  %502 = vst [vmem:[#allocation4 + $0xf0] sm:$0xf] %v470_v14  ;;  %2162 = vmatprep.mubr.bf16.mxu0 %v14862_v5 }
  0xe5   :  { %503 = vst [vmem:[#allocation4 + $0x10c] sm:$0xf] %v471_v15  ;;  %567 = vst [vmem:[#allocation4 + $0xf4] sm:$0xf] %v535_v20  ;;  %v536_v26 = vld [vmem:[#allocation2 + $0x4c] sm:$0xf]  ;;  %2121 = vmatprep.mubr.bf16.mxu1 %v14859_v21 }
  0xe6   :  { %v602_v27 = vld [vmem:[#allocation2 + $0x58] sm:$0xf]  ;;  %568 = vst [vmem:[#allocation4 + $0x110] sm:$0xf] %v536_v26  ;;  %v603_v28 = vld [vmem:[#allocation2 + $0x5c] sm:$0xf] }
  0xe7   :  { %634 = vst [vmem:[#allocation4 + $0x130] sm:$0xf] %v602_v27  ;;  %v472_v29 = vld [vmem:[#allocation2 + $0x48] sm:$0xf]  ;;  %v473_v32 = vld [vmem:[#allocation2 + $0x4c] sm:$0xf] }
  0xe8   :  { %635 = vst [vmem:[#allocation4 + $0x14c] sm:$0xf] %v603_v28  ;;  %504 = vst [vmem:[#allocation4 + $0x128] sm:$0xf] %v472_v29  ;;  %v537_v35 = vld [vmem:[#allocation2 + $0x50] sm:$0xf] }
  0xe9   :  { %505 = vst [vmem:[#allocation4 + $0x144] sm:$0xf] %v473_v32  ;;  %v538_v40 = vld [vmem:[#allocation2 + $0x54] sm:$0xf]  ;;  %v604_v41 = vld [vmem:[#allocation2 + $0x60] sm:$0xf] }
  0xea   :  { %569 = vst [vmem:[#allocation4 + $0x12c] sm:$0xf] %v537_v35  ;;  %570 = vst [vmem:[#allocation4 + $0x148] sm:$0xf] %v538_v40  ;;  %v605_v42 = vld [vmem:[#allocation2 + $0x64] sm:$0xf] }
  0xeb   :  { %636 = vst [vmem:[#allocation4 + $0x168] sm:$0xf] %v604_v41  ;;  %v474_v43 = vld [vmem:[#allocation2 + $0x50] sm:$0xf]  ;;  %v475_v44 = vld [vmem:[#allocation2 + $0x54] sm:$0xf]  ;;  %2163 = vmatmul.mubr.bf16.vlgmr.msra.gmra.mxu0 %v11358_v54 }
  0xec   :  { %v14861_v45 = vld [vmem:[#allocation4 + $0x350] ss:$28 sps:$4 sm:$0xff]   ;;  %v14864_v46 = vld [vmem:[#allocation4 + $0x18] ss:$28 sps:$4 sm:$0xff]   ;;  %637 = vst [vmem:[#allocation4 + $0x184] sm:$0xf] %v605_v42 }
  0xed   :  { %506 = vst [vmem:[#allocation4 + $0x160] sm:$0xf] %v474_v43  ;;  %507 = vst [vmem:[#allocation4 + $0x17c] sm:$0xf] %v475_v44  ;;  %v14866_v57 = vld [vmem:[#allocation4 + $0x4c] ss:$28 sps:$4 sm:$0xff]   ;;  %2122 = vmatmul.mubr.bf16.gmra.mxu1 %v14861_v45 }
  0xee   :  { %v539_v58 = vld [vmem:[#allocation2 + $0x58] sm:$0xf]  ;;  %v540_v59 = vld [vmem:[#allocation2 + $0x5c] sm:$0xf]  ;;  %v606_v60 = vld [vmem:[#allocation2 + $0x68] sm:$0xf]  ;;  %2170 = vmatprep.mubr.bf16.mxu0 %v14866_v57  ;;  %14538 = vmatprep.mubr.bf16.mxu1 %v14864_v46 }
  0xef   :  { %571 = vst [vmem:[#allocation4 + $0x164] sm:$0xf] %v539_v58  ;;  %572 = vst [vmem:[#allocation4 + $0x180] sm:$0xf] %v540_v59  ;;  %v607_v61 = vld [vmem:[#allocation2 + $0x6c] sm:$0xf] }
  0xf0   :  { %v476_v1 = vld [vmem:[#allocation2 + $0x58] sm:$0xf]  ;;  %638 = vst [vmem:[#allocation4 + $0x1a0] sm:$0xf] %v606_v60  ;;  %639 = vst [vmem:[#allocation4 + $0x1bc] sm:$0xf] %v607_v61 }
  0xf1   :  { %508 = vst [vmem:[#allocation4 + $0x198] sm:$0xf] %v476_v1  ;;  %v14865_v4 = vld [vmem:[#allocation4 + $0x50] ss:$28 sps:$4 sm:$0xff]   ;;  %v14868_v5 = vld [vmem:[#allocation4 + $0x48] ss:$28 sps:$4 sm:$0xff]  }
  0xf2   :  { %v14870_v6 = vld [vmem:[#allocation4 + $0x84] ss:$28 sps:$4 sm:$0xff]   ;;  %v477_v7 = vld [vmem:[#allocation2 + $0x5c] sm:$0xf]  ;;  %v541_v12 = vld [vmem:[#allocation2 + $0x60] sm:$0xf] }
  0xf3   :  { %509 = vst [vmem:[#allocation4 + $0x1b4] sm:$0xf] %v477_v7  ;;  %v542_v13 = vld [vmem:[#allocation2 + $0x64] sm:$0xf]  ;;  %573 = vst [vmem:[#allocation4 + $0x19c] sm:$0xf] %v541_v12  ;;  %2171 = vmatmul.mubr.bf16.gmra.mxu0 %v14868_v5 }
  0xf4   :  { %v608_v14 = vld [vmem:[#allocation2 + $0x70] sm:$0xf]  ;;  %v609_v15 = vld [vmem:[#allocation2 + $0x74] sm:$0xf]  ;;  %574 = vst [vmem:[#allocation4 + $0x1b8] sm:$0xf] %v542_v13  ;;  %2178 = vmatprep.mubr.bf16.mxu0 %v14870_v6 }
  0xf5   :  { %v14869_v20 = vld [vmem:[#allocation4 + $0x88] ss:$28 sps:$4 sm:$0xff]   ;;  %640 = vst [vmem:[#allocation4 + $0x1d8] sm:$0xf] %v608_v14  ;;  %641 = vst [vmem:[#allocation4 + $0x1f4] sm:$0xf] %v609_v15  ;;  %14539 = vmatmul.mubr.bf16.vlgmr.msra.gmra.mxu1 %v14865_v4 }
  0xf6   :  { %v478_v21 = vld [vmem:[#allocation2 + $0x60] sm:$0xf]  ;;  %v479_v24 = vld [vmem:[#allocation2 + $0x64] sm:$0xf]  ;;  %v543_v25 = vld [vmem:[#allocation2 + $0x68] sm:$0xf]  ;;  %14542 = vmatprep.mubr.bf16.mxu1 %v14869_v20 }
  0xf7   :  { %510 = vst [vmem:[#allocation4 + $0x1d0] sm:$0xf] %v478_v21  ;;  %511 = vst [vmem:[#allocation4 + $0x1ec] sm:$0xf] %v479_v24  ;;  %v544_v26 = vld [vmem:[#allocation2 + $0x6c] sm:$0xf] }
  0xf8   :  { %v610_v27 = vld [vmem:[#allocation2 + $0x78] sm:$0xf]  ;;  %v14873_v28 = vld [vmem:[#allocation4 + $0x80] ss:$28 sps:$4 sm:$0xff]   ;;  %575 = vst [vmem:[#allocation4 + $0x1d4] sm:$0xf] %v543_v25 }
  0xf9   :  { %576 = vst [vmem:[#allocation4 + $0x1f0] sm:$0xf] %v544_v26  ;;  %v611_v29 = vld [vmem:[#allocation2 + $0x7c] sm:$0xf]  ;;  %642 = vst [vmem:[#allocation4 + $0x210] sm:$0xf] %v610_v27 }
  0xfa   :  { %v480_v32 = vld [vmem:[#allocation2 + $0x68] sm:$0xf]  ;;  %v481_v35 = vld [vmem:[#allocation2 + $0x6c] sm:$0xf]  ;;  %643 = vst [vmem:[#allocation4 + $0x22c] sm:$0xf] %v611_v29 }
  0xfb   :  { %512 = vst [vmem:[#allocation4 + $0x208] sm:$0xf] %v480_v32  ;;  %513 = vst [vmem:[#allocation4 + $0x224] sm:$0xf] %v481_v35  ;;  %v545_v40 = vld [vmem:[#allocation2 + $0x70] sm:$0xf]  ;;  %2179 = vmatmul.mubr.bf16.gmra.mxu0 %v14873_v28 }
  0xfc   :  { %v546_v41 = vld [vmem:[#allocation2 + $0x74] sm:$0xf]  ;;  %v612_v42 = vld [vmem:[#allocation2 + $0x80] sm:$0xf]  ;;  %577 = vst [vmem:[#allocation4 + $0x20c] sm:$0xf] %v545_v40 }
  0xfd   :  { %578 = vst [vmem:[#allocation4 + $0x228] sm:$0xf] %v546_v41  ;;  %v613_v43 = vld [vmem:[#allocation2 + $0x84] sm:$0xf]  ;;  %644 = vst [vmem:[#allocation4 + $0x248] sm:$0xf] %v612_v42 }
  0xfe   :  { %v482_v44 = vld [vmem:[#allocation2 + $0x70] sm:$0xf]  ;;  %v14874_v46 = vld [vmem:[#allocation4 + $0xbc] ss:$28 sps:$4 sm:$0xff]   ;;  %645 = vst [vmem:[#allocation4 + $0x264] sm:$0xf] %v613_v43 }
  0xff   :  { %v14872_v45 = vld [vmem:[#allocation4 + $0xc0] ss:$28 sps:$4 sm:$0xff]   ;;  %514 = vst [vmem:[#allocation4 + $0x240] sm:$0xf] %v482_v44  ;;  %v14877_v54 = vld [vmem:[#allocation4 + $0xf8] ss:$28 sps:$4 sm:$0xff]   ;;  %2186 = vmatprep.mubr.bf16.mxu0 %v14874_v46 }
 0x100   :  { %v483_v57 = vld [vmem:[#allocation2 + $0x74] sm:$0xf]  ;;  %v547_v58 = vld [vmem:[#allocation2 + $0x78] sm:$0xf]  ;;  %v548_v59 = vld [vmem:[#allocation2 + $0x7c] sm:$0xf]  ;;  %14543 = vmatmul.mubr.bf16.gmra.mxu1 %v14872_v45 }
 0x101   :  { %515 = vst [vmem:[#allocation4 + $0x25c] sm:$0xf] %v483_v57  ;;  %579 = vst [vmem:[#allocation4 + $0x244] sm:$0xf] %v547_v58  ;;  %v614_v60 = vld [vmem:[#allocation2 + $0x88] sm:$0xf]  ;;  %14546 = vmatprep.mubr.bf16.mxu1 %v14877_v54 }
 0x102   :  { %580 = vst [vmem:[#allocation4 + $0x260] sm:$0xf] %v548_v59  ;;  %v615_v61 = vld [vmem:[#allocation2 + $0x8c] sm:$0xf]  ;;  %v484_v1 = vld [vmem:[#allocation2 + $0x78] sm:$0xf] }
 0x103   :  { %646 = vst [vmem:[#allocation4 + $0x280] sm:$0xf] %v614_v60  ;;  %647 = vst [vmem:[#allocation4 + $0x29c] sm:$0xf] %v615_v61  ;;  %v14876_v4 = vld [vmem:[#allocation4 + $0xb8] ss:$28 sps:$4 sm:$0xff]  }
 0x104   :  { %516 = vst [vmem:[#allocation4 + $0x278] sm:$0xf] %v484_v1  ;;  %v14878_v5 = vld [vmem:[#allocation4 + $0xf4] ss:$28 sps:$4 sm:$0xff]   ;;  %v14885_v7 = vld [vmem:[#allocation4 + $0x168] ss:$28 sps:$4 sm:$0xff]   ;;  %2187 = vmatmul.mubr.bf16.gmra.mxu0 %v14876_v4 }
 0x105   :  { %v14880_v6 = vld [vmem:[#allocation4 + $0x130] ss:$28 sps:$4 sm:$0xff]   ;;  %v550_v14 = vld [vmem:[#allocation2 + $0x84] sm:$0xf]  ;;  %v616_v15 = vld [vmem:[#allocation2 + $0x90] sm:$0xf]  ;;  %2194 = vmatprep.mubr.bf16.mxu0 %v14878_v5 }
 0x106   :  { %v485_v12 = vld [vmem:[#allocation2 + $0x7c] sm:$0xf]  ;;  %v549_v13 = vld [vmem:[#allocation2 + $0x80] sm:$0xf]  ;;  %582 = vst [vmem:[#allocation4 + $0x298] sm:$0xf] %v550_v14 }
 0x107   :  { %517 = vst [vmem:[#allocation4 + $0x294] sm:$0xf] %v485_v12  ;;  %581 = vst [vmem:[#allocation4 + $0x27c] sm:$0xf] %v549_v13  ;;  %v617_v20 = vld [vmem:[#allocation2 + $0x94] sm:$0xf] }
 0x108   :  { %648 = vst [vmem:[#allocation4 + $0x2b8] sm:$0xf] %v616_v15  ;;  %14547 = vmatmul.mubr.bf16.gmra.mxu1 %v14880_v6  ;;  %v486_v21 = vld [vmem:[#allocation2 + $0x80] sm:$0xf]  ;;  %649 = vst [vmem:[#allocation4 + $0x2d4] sm:$0xf] %v617_v20 }
 0x109   :  { %v14881_v24 = vld [vmem:[#allocation4 + $0xf0] ss:$28 sps:$4 sm:$0xff]   ;;  %14550 = vmatprep.mubr.bf16.mxu1 %v14885_v7  ;;  %v487_v25 = vld [vmem:[#allocation2 + $0x84] sm:$0xf]  ;;  %518 = vst [vmem:[#allocation4 + $0x2b0] sm:$0xf] %v486_v21 }
 0x10a   :  { %v551_v26 = vld [vmem:[#allocation2 + $0x88] sm:$0xf]  ;;  %v552_v27 = vld [vmem:[#allocation2 + $0x8c] sm:$0xf]  ;;  %v14882_v28 = vld [vmem:[#allocation4 + $0x12c] ss:$28 sps:$4 sm:$0xff]  }
 0x10b   :  { %v14888_v29 = vld [vmem:[#allocation4 + $0x1a0] ss:$28 sps:$4 sm:$0xff]   ;;  %519 = vst [vmem:[#allocation4 + $0x2cc] sm:$0xf] %v487_v25  ;;  %583 = vst [vmem:[#allocation4 + $0x2b4] sm:$0xf] %v551_v26 }
 0x10c   :  { %584 = vst [vmem:[#allocation4 + $0x2d0] sm:$0xf] %v552_v27  ;;  %v618_v32 = vld [vmem:[#allocation2 + $0x98] sm:$0xf]  ;;  %v619_v35 = vld [vmem:[#allocation2 + $0x9c] sm:$0xf]  ;;  %2195 = vmatmul.mubr.bf16.gmra.mxu0 %v14881_v24 }
 0x10d   :  { %v488_v40 = vld [vmem:[#allocation2 + $0x88] sm:$0xf]  ;;  %650 = vst [vmem:[#allocation4 + $0x2f0] sm:$0xf] %v618_v32  ;;  %651 = vst [vmem:[#allocation4 + $0x30c] sm:$0xf] %v619_v35  ;;  %2202 = vmatprep.mubr.bf16.mxu0 %v14882_v28 }
 0x10e   :  { %v489_v41 = vld [vmem:[#allocation2 + $0x8c] sm:$0xf]  ;;  %520 = vst [vmem:[#allocation4 + $0x2e8] sm:$0xf] %v488_v40  ;;  %v553_v42 = vld [vmem:[#allocation2 + $0x90] sm:$0xf] }
 0x10f   :  { %v554_v43 = vld [vmem:[#allocation2 + $0x94] sm:$0xf]  ;;  %521 = vst [vmem:[#allocation4 + $0x304] sm:$0xf] %v489_v41  ;;  %585 = vst [vmem:[#allocation4 + $0x2ec] sm:$0xf] %v553_v42 }
 0x110   :  { %586 = vst [vmem:[#allocation4 + $0x308] sm:$0xf] %v554_v43  ;;  %v620_v44 = vld [vmem:[#allocation2 + $0xa0] sm:$0xf]  ;;  %v621_v45 = vld [vmem:[#allocation2 + $0xa4] sm:$0xf]  ;;  %14551 = vmatmul.mubr.bf16.gmra.mxu1 %v14888_v29 }
 0x111   :  { %v14893_v46 = vld [vmem:[#allocation4 + $0x1d8] ss:$28 sps:$4 sm:$0xff]   ;;  %652 = vst [vmem:[#allocation4 + $0x328] sm:$0xf] %v620_v44  ;;  %653 = vst [vmem:[#allocation4 + $0x344] sm:$0xf] %v621_v45 }
 0x112   :  { %v14918_v54 = vld [vmem:[#allocation11 + $0xf8] sm:$0xff]   ;;  %v490_v57 = vld [vmem:[#allocation2 + $0x90] sm:$0xf]  ;;  %v491_v58 = vld [vmem:[#allocation2 + $0x94] sm:$0xf]  ;;  %14554 = vmatprep.mubr.bf16.mxu1 %v14893_v46 }
 0x113   :  { %522 = vst [vmem:[#allocation4 + $0x320] sm:$0xf] %v490_v57  ;;  %523 = vst [vmem:[#allocation4 + $0x33c] sm:$0xf] %v491_v58  ;;  %v555_v59 = vld [vmem:[#allocation2 + $0x98] sm:$0xf]  ;;  %13554 = vmatprep.subr.bf16.mxu0 %v14918_v54 }
 0x114   :  { %587 = vst [vmem:[#allocation4 + $0x324] sm:$0xf] %v555_v59  ;;  %v14884_v60 = vld [vmem:[#allocation4 + $0x128] ss:$28 sps:$4 sm:$0xff]   ;;  %v14896_v1 = vld [vmem:[#allocation4 + $0x210] ss:$28 sps:$4 sm:$0xff]  }
 0x115   :  { %v14886_v61 = vld [vmem:[#allocation4 + $0x164] ss:$28 sps:$4 sm:$0xff]   ;;  %v556_v5 = vld [vmem:[#allocation2 + $0x9c] sm:$0xf]  ;;  %v622_v6 = vld [vmem:[#allocation2 + $0xa8] sm:$0xf]  ;;  %2203 = vmatmul.mubr.bf16.gmra.mxu0 %v14884_v60 }
 0x116   :  { %v14901_v4 = vld [vmem:[#allocation4 + $0x248] ss:$28 sps:$4 sm:$0xff]   ;;  %588 = vst [vmem:[#allocation4 + $0x340] sm:$0xf] %v556_v5  ;;  %v623_v7 = vld [vmem:[#allocation2 + $0xac] sm:$0xf]  ;;  %2210 = vmatprep.mubr.bf16.mxu0 %v14886_v61 }
 0x117   :  { %654 = vst [vmem:[#allocation4 + $0x360] sm:$0xf] %v622_v6  ;;  %655 = vst [vmem:[#allocation4 + $0x37c] sm:$0xf] %v623_v7  ;;  %v14922_v12 = vld [vmem:[#allocation11 + $0xb8] sm:$0xff]   ;;  %v14927_v26 = vld [vmem:[#allocation11 + $0xf0] sm:$0xff]  }
 0x118   :  { %v492_v13 = vld [vmem:[#allocation2 + $0x98] sm:$0xf]  ;;  %14555 = vmatmul.mubr.bf16.gmra.mxu1 %v14896_v1  ;;  %v493_v14 = vld [vmem:[#allocation2 + $0x9c] sm:$0xf]  ;;  %v557_v15 = vld [vmem:[#allocation2 + $0xa0] sm:$0xf]  ;;  %13555 = vmatpush3.bf16.msra.mxu0 %v14922_v12 }
 0x119   :  { %524 = vst [vmem:[#allocation4 + $0x358] sm:$0xf] %v492_v13  ;;  %v14889_v20 = vld [vmem:[#allocation4 + $0x160] ss:$28 sps:$4 sm:$0xff]   ;;  %14558 = vmatprep.mubr.bf16.mxu1 %v14901_v4  ;;  %525 = vst [vmem:[#allocation4 + $0x374] sm:$0xf] %v493_v14  ;;  %13556 = vmatprep.subr.bf16.mxu0 %v14927_v26 }
 0x11a   :  { %v558_v21 = vld [vmem:[#allocation2 + $0xa4] sm:$0xf]  ;;  %589 = vst [vmem:[#allocation4 + $0x35c] sm:$0xf] %v557_v15  ;;  %v14890_v24 = vld [vmem:[#allocation4 + $0x19c] ss:$28 sps:$4 sm:$0xff]  }
 0x11b   :  { %v14904_v25 = vld [vmem:[#allocation4 + $0x280] ss:$28 sps:$4 sm:$0xff]   ;;  %590 = vst [vmem:[#allocation4 + $0x378] sm:$0xf] %v558_v21  ;;  %v14928_v27 = vld [vmem:[#allocation11 + $0xb0] sm:$0xff]   ;;  %v14929_v28 = vld [vmem:[#allocation11 + $0xe8] sm:$0xff]  }
 0x11c   :  { %v14909_v29 = vld [vmem:[#allocation4 + $0x2b8] ss:$28 sps:$4 sm:$0xff]   ;;  %13557 = vmatpush3.bf16.msra.mxu0 %v14928_v27  ;;  %v14930_v32 = vld [vmem:[#allocation11 + $0xa8] sm:$0xff]   ;;  %v14931_v35 = vld [vmem:[#allocation11 + $0xe0] sm:$0xff]  }
 0x11d   :  { %13558 = vmatprep.subr.bf16.mxu0 %v14929_v28  ;;  %2211 = vmatmul.mubr.bf16.gmra.mxu0 %v14889_v20  ;;  %v14892_v40 = vld [vmem:[#allocation4 + $0x198] ss:$28 sps:$4 sm:$0xff]   ;;  %v14912_v42 = vld [vmem:[#allocation4 + $0x2f0] ss:$28 sps:$4 sm:$0xff]   ;;  %v14932_v43 = vld [vmem:[#allocation11 + $0xa0] sm:$0xff]  }
 0x11e   :  { %2218 = vmatprep.mubr.bf16.mxu0 %v14890_v24  ;;  %v14894_v41 = vld [vmem:[#allocation4 + $0x1d4] ss:$28 sps:$4 sm:$0xff]   ;;  %v14917_v44 = vld [vmem:[#allocation4 + $0x328] ss:$28 sps:$4 sm:$0xff]   ;;  %v14933_v45 = vld [vmem:[#allocation11 + $0x78] sm:$0xff]   ;;  %v13098_v4 = vpop.f32.mrf.mxu0 }
 0x11f   :  { %v14934_v46 = vld [vmem:[#allocation11 + $0x38] sm:$0xff]   ;;  %13442 = vmatprep.subr.bf16.mxu1 %v14933_v45  ;;  %v14897_v54 = vld [vmem:[#allocation4 + $0x1d0] ss:$28 sps:$4 sm:$0xff]   ;;  %v14900_v6 = vld [vmem:[#allocation4 + $0x208] ss:$28 sps:$4 sm:$0xff]  }
 0x120   :  { %14559 = vmatmul.mubr.bf16.gmra.mxu1 %v14904_v25  ;;  %13559 = vmatpush3.bf16.msra.mxu0 %v14930_v32  ;;  %v14935_v57 = vld [vmem:[#allocation11 + $0xd8] sm:$0xff]   ;;  %v14898_v59 = vld [vmem:[#allocation4 + $0x20c] ss:$28 sps:$4 sm:$0xff]   ;;  %v14937_v61 = vld [vmem:[#allocation11 + $0x70] sm:$0xff]   ;;  %v13099_v5 = vpop.f32.mrf.mxu0 }
 0x121   :  { %14562 = vmatprep.mubr.bf16.mxu1 %v14909_v29  ;;  %13560 = vmatprep.subr.bf16.mxu0 %v14931_v35  ;;  %v14936_v58 = vld [vmem:[#allocation11 + $0x98] sm:$0xff]   ;;  %v14938_v1 = vld [vmem:[#allocation11 + $0x30] sm:$0xff]   ;;  %v13100_v7 = vadd.f32 %v13099_v5, %v13098_v4  ;;  %v14902_v12 = vld [vmem:[#allocation4 + $0x244] ss:$28 sps:$4 sm:$0xff]   ;;  %v13210_v25 = vpop.f32.mrf.mxu1 }
 0x122   :  { %13443 = vmatpush3.bf16.msra.mxu1 %v14934_v46  ;;  %v14921_v60 = vld [vmem:[#allocation4 + $0x360] ss:$28 sps:$4 sm:$0xff]   ;;  %v13101_v13 = vpop.f32.mrf.mxu0  ;;  %v14939_v15 = vld [vmem:[#allocation11 + $0x68] sm:$0xff]   ;;  %v14941_v28 = vld [vmem:[#allocation11 + $0xd0] sm:$0xff]  }
 0x123   :  { %13444 = vmatprep.subr.bf16.mxu1 %v14937_v61  ;;  %v14940_v20 = vld [vmem:[#allocation11 + $0x28] sm:$0xff]   ;;  %v14905_v27 = vld [vmem:[#allocation4 + $0x240] ss:$28 sps:$4 sm:$0xff]   ;;  %v14942_v29 = vld [vmem:[#allocation11 + $0x90] sm:$0xff]   ;;  %v13211_v32 = vpop.f32.mrf.mxu1 }
 0x124   :  { %13561 = vmatpush3.bf16.msra.mxu0 %v14932_v43  ;;  %v13102_v14 = vpop.f32.mrf.mxu0  ;;  %v14908_v4 = vld [vmem:[#allocation4 + $0x278] ss:$28 sps:$4 sm:$0xff]  }
 0x125   :  { %2219 = vmatmul.mubr.bf16.gmra.mxu0 %v14892_v40  ;;  %13562 = vmatprep.subr.bf16.mxu0 %v14935_v57  ;;  %v13103_v21 = vadd.f32 %v13102_v14, %v13101_v13  ;;  %v14906_v40 = vld [vmem:[#allocation4 + $0x27c] ss:$28 sps:$4 sm:$0xff]  }
 0x126   :  { %2226 = vmatprep.mubr.bf16.mxu0 %v14894_v41  ;;  %13445 = vmatpush3.bf16.msra.mxu1 %v14938_v1  ;;  %v13104_v24 = vpop.f32.mrf.mxu0  ;;  %v15564_v41 = vmov 0.0   ;;  %v14926_v50 = vld [vmem:[#allocation4 + $0x358] ss:$28 sps:$4 sm:$0xff]  }
 0x127   :  { %13446 = vmatprep.subr.bf16.mxu1 %v14939_v15  ;;  %106 = vst [vmem:[#allocation3] sm:$0xff] %v15564_v41  ;;  %107 = vst [vmem:[#allocation3 + $0x20] sm:$0xff] %v15564_v41 }
 0x128   :  { %14563 = vmatmul.mubr.bf16.gmra.mxu1 %v14912_v42  ;;  %13563 = vmatpush3.bf16.msra.mxu0 %v14936_v58  ;;  %v13105_v26 = vpop.f32.mrf.mxu0  ;;  %108 = vst [vmem:[#allocation3 + $0x40] sm:$0xff] %v15564_v41  ;;  %109 = vst [vmem:[#allocation3 + $0x60] sm:$0xff] %v15564_v41  ;;  %v13212_v42 = vadd.f32 %v13211_v32, %v13210_v25 }
 0x129   :  { %14566 = vmatprep.mubr.bf16.mxu1 %v14917_v44  ;;  %v13106_v35 = vadd.f32 %v13105_v26, %v13104_v24  ;;  %110 = vst [vmem:[#allocation3 + $0x80] sm:$0xff] %v15564_v41  ;;  %111 = vst [vmem:[#allocation3 + $0xa0] sm:$0xff] %v15564_v41  ;;  %13564 = vmatprep.subr.bf16.mxu0 %v14941_v28  ;;  %v13213_v44 = vpop.f32.mrf.mxu1 }
 0x12a   :  { %13447 = vmatpush3.bf16.msra.mxu1 %v14940_v20  ;;  %112 = vst [vmem:[#allocation3 + $0xc0] sm:$0xff] %v15564_v41  ;;  %113 = vst [vmem:[#allocation3 + $0xe0] sm:$0xff] %v15564_v41  ;;  %v13107_v43 = vpop.f32.mrf.mxu0  ;;  %v15733_v45 = vadd.f32 %v13212_v42, %v13100_v7 }
 0x12b   :  { %114 = vst [vmem:[#allocation3 + $0x100] sm:$0xff] %v15564_v41  ;;  %115 = vst [vmem:[#allocation3 + $0x120] sm:$0xff] %v15564_v41 }
 0x12c   :  { %116 = vst [vmem:[#allocation3 + $0x140] sm:$0xff] %v15564_v41  ;;  %117 = vst [vmem:[#allocation3 + $0x160] sm:$0xff] %v15564_v41  ;;  %13565 = vmatpush3.bf16.msra.mxu0 %v14942_v29  ;;  %v13108_v46 = vpop.f32.mrf.mxu0  ;;  %v14944_v29 = vld [vmem:[#allocation11 + $0x20] sm:$0xff]  }
 0x12d   :  { %2227 = vmatmul.mubr.bf16.gmra.mxu0 %v14897_v54  ;;  %118 = vst [vmem:[#allocation3 + $0x180] sm:$0xff] %v15564_v41  ;;  %119 = vst [vmem:[#allocation3 + $0x1a0] sm:$0xff] %v15564_v41  ;;  %v13214_v54 = vpop.f32.mrf.mxu1  ;;  %v13109_v57 = vadd.f32 %v13108_v46, %v13107_v43 }
 0x12e   :  { %2234 = vmatprep.mubr.bf16.mxu0 %v14898_v59  ;;  %120 = vst [vmem:[#allocation3 + $0x1c0] sm:$0xff] %v15564_v41  ;;  %121 = vst [vmem:[#allocation3 + $0x1e0] sm:$0xff] %v15564_v41  ;;  %v13215_v58 = vadd.f32 %v13214_v54, %v13213_v44  ;;  %v13110_v59 = vpop.f32.mrf.mxu0  ;;  %v14914_v44 = vld [vmem:[#allocation4 + $0x2ec] ss:$28 sps:$4 sm:$0xff]  }
 0x12f   :  { %122 = vst [vmem:[#allocation3 + $0x18] sm:$0x7] %v15564_v41  ;;  %123 = vst [vmem:[#allocation3 + $0x38] sm:$0x7] %v15564_v41 }
 0x130   :  { %14567 = vmatmul.mubr.bf16.gmra.mxu1 %v14921_v60  ;;  %124 = vst [vmem:[#allocation3 + $0x58] sm:$0x7] %v15564_v41  ;;  %125 = vst [vmem:[#allocation3 + $0x78] sm:$0x7] %v15564_v41  ;;  %v13216_v60 = vpop.f32.mrf.mxu1  ;;  %v15735_v61 = vadd.f32 %v13215_v58, %v13103_v21  ;;  %v13111_v1 = vpop.f32.mrf.mxu0 }
 0x131   :  { %126 = vst [vmem:[#allocation3 + $0x98] sm:$0x7] %v15564_v41  ;;  %127 = vst [vmem:[#allocation3 + $0xb8] sm:$0x7] %v15564_v41 }
 0x132   :  { %128 = vst [vmem:[#allocation3 + $0xd8] sm:$0x7] %v15564_v41  ;;  %129 = vst [vmem:[#allocation3 + $0xf8] sm:$0x7] %v15564_v41  ;;  %v13217_v5 = vpop.f32.mrf.mxu1  ;;  %v13113_v14 = vpop.f32.mrf.mxu0 }
 0x133   :  { %130 = vst [vmem:[#allocation3 + $0x118] sm:$0x7] %v15564_v41  ;;  %131 = vst [vmem:[#allocation3 + $0x138] sm:$0x7] %v15564_v41  ;;  %v13218_v13 = vadd.f32 %v13217_v5, %v13216_v60  ;;  %v14945_v60 = vld [vmem:[#allocation11 + $0x58] sm:$0xff]  }
 0x134   :  { %132 = vst [vmem:[#allocation3 + $0x158] sm:$0x7] %v15564_v41  ;;  %133 = vst [vmem:[#allocation3 + $0x178] sm:$0x7] %v15564_v41  ;;  %v13219_v15 = vpop.f32.mrf.mxu1  ;;  %v13114_v20 = vpop.f32.mrf.mxu0 }
 0x135   :  { %2235 = vmatmul.mubr.bf16.gmra.mxu0 %v14900_v6  ;;  %134 = vst [vmem:[#allocation3 + $0x198] sm:$0x7] %v15564_v41  ;;  %135 = vst [vmem:[#allocation3 + $0x1b8] sm:$0x7] %v15564_v41  ;;  %v13112_v6 = vadd.f32 %v13111_v1, %v13110_v59  ;;  %v15737_v7 = vadd.f32 %v13218_v13, %v13106_v35  ;;  %v13115_v25 = vadd.f32 %v13114_v20, %v13113_v14  ;;  %v14946_v1 = vld [vmem:[#allocation11 + $0x18] sm:$0xff]   ;;  %v14947_v14 = vld [vmem:[#allocation11 + $0xc8] sm:$0xff]  }
 0x136   :  { %2242 = vmatprep.mubr.bf16.mxu0 %v14902_v12  ;;  %136 = vst [vmem:[#allocation3 + $0x1d8] sm:$0x7] %v15564_v41  ;;  %137 = vst [vmem:[#allocation3 + $0x1f8] sm:$0x7] %v15564_v41  ;;  %v14910_v12 = vld [vmem:[#allocation4 + $0x2b4] ss:$28 sps:$4 sm:$0xff]   ;;  %v13220_v24 = vpop.f32.mrf.mxu1  ;;  %v13116_v28 = vpop.f32.mrf.mxu0  ;;  %13566 = vmatprep.subr.bf16.mxu0 %v14947_v14 }
 0x137   :  { %v13221_v26 = vadd.f32 %v13220_v24, %v13219_v15  ;;  %v14913_v41 = vld [vmem:[#allocation4 + $0x2b0] ss:$28 sps:$4 sm:$0xff]  }
 0x138   :  { %v13222_v21 = vpop.f32.mrf.mxu1  ;;  %v14948_v15 = vld [vmem:[#allocation11 + $0x88] sm:$0xff]  }
 0x139   :  { %v15739_v32 = vadd.f32 %v13221_v26, %v13109_v57  ;;  %v14916_v26 = vld [vmem:[#allocation4 + $0x2e8] ss:$28 sps:$4 sm:$0xff]   ;;  %13567 = vmatpush3.bf16.msra.mxu0 %v14948_v15  ;;  %v14924_v15 = vld [vmem:[#allocation4 + $0x35c] ss:$28 sps:$4 sm:$0xff]  }
 0x13a   :  { %v13223_v42 = vpop.f32.mrf.mxu1 }
 0x13b   :  { %v13224_v35 = vadd.f32 %v13223_v42, %v13222_v21  ;;  %v14950_v21 = vld [vmem:[#allocation11 + $0x10] sm:$0xff]  }
 0x13c   :  { %v13225_v54 = vpop.f32.mrf.mxu1 }
 0x13d   :  { %2243 = vmatmul.mubr.bf16.gmra.mxu0 %v14905_v27  ;;  %v14943_v27 = vld [vmem:[#allocation11 + $0x60] sm:$0xff]   ;;  %v15741_v58 = vadd.f32 %v13224_v35, %v13112_v6 }
 0x13e   :  { %2250 = vmatprep.mubr.bf16.mxu0 %v14906_v40  ;;  %v13117_v40 = vpop.f32.mrf.mxu0  ;;  %13448 = vmatprep.subr.bf16.mxu1 %v14943_v27  ;;  %v14919_v27 = vld [vmem:[#allocation4 + $0x324] ss:$28 sps:$4 sm:$0xff]  }
 0x13f   :  { %v13118_v43 = vadd.f32 %v13117_v40, %v13116_v28  ;;  %13449 = vmatpush3.bf16.msra.mxu1 %v14944_v29  ;;  %v14949_v29 = vld [vmem:[#allocation11 + $0x50] sm:$0xff]  }
 0x140   :  { %v13119_v46 = vpop.f32.mrf.mxu0  ;;  %13450 = vmatprep.subr.bf16.mxu1 %v14945_v60 }
 0x142   :  { %v13120_v59 = vpop.f32.mrf.mxu0 }
 0x143   :  { %v13121_v5 = vadd.f32 %v13120_v59, %v13119_v46  ;;  %13451 = vmatpush3.bf16.msra.mxu1 %v14946_v1  ;;  %v14951_v59 = vld [vmem:[#allocation11 + $0x48] sm:$0xff]  }
 0x144   :  { %v13122_v57 = vpop.f32.mrf.mxu0  ;;  %13452 = vmatprep.subr.bf16.mxu1 %v14949_v29  ;;  %v14952_v1 = vld [vmem:[#allocation11 + $0x8] sm:$0xff]   ;;  %v14955_v29 = vld [vmem:[#allocation11 + $0x40] sm:$0xff]  }
 0x145   :  { %2251 = vmatmul.mubr.bf16.gmra.mxu0 %v14908_v4  ;;  %v13226_v4 = vpop.f32.mrf.mxu1 }
 0x146   :  { %2258 = vmatprep.mubr.bf16.mxu0 %v14910_v12  ;;  %v13227_v12 = vadd.f32 %v13226_v4, %v13225_v54  ;;  %v13123_v24 = vpop.f32.mrf.mxu0 }
 0x147   :  { %v13228_v13 = vpop.f32.mrf.mxu1  ;;  %v13124_v28 = vadd.f32 %v13123_v24, %v13122_v57  ;;  %13453 = vmatpush3.bf16.msra.mxu1 %v14950_v21  ;;  %v14923_v57 = vld [vmem:[#allocation4 + $0x320] ss:$28 sps:$4 sm:$0xff]  }
 0x148   :  { %v15743_v20 = vadd.f32 %v13227_v12, %v13115_v25  ;;  %v13125_v42 = vpop.f32.mrf.mxu0  ;;  %13454 = vmatprep.subr.bf16.mxu1 %v14951_v59 }
 0x149   :  { %v13229_v6 = vpop.f32.mrf.mxu1 }
 0x14a   :  { %v13230_v40 = vadd.f32 %v13229_v6, %v13228_v13  ;;  %v14953_v6 = vld [vmem:[#allocation11 + $0xc0] sm:$0xff]  }
 0x14b   :  { %13455 = vmatpush3.bf16.msra.mxu1 %v14952_v1  ;;  %13568 = vmatprep.subr.bf16.mxu0 %v14953_v6 }
 0x14c   :  { %v15745_v35 = vadd.f32 %v13230_v40, %v13118_v43  ;;  %v14954_v40 = vld [vmem:[#allocation11 + $0x80] sm:$0xff]   ;;  %13456 = vmatprep.subr.bf16.mxu1 %v14955_v29 }
 0x14d   :  { %2259 = vmatmul.mubr.bf16.gmra.mxu0 %v14913_v41  ;;  %v13231_v41 = vpop.f32.mrf.mxu1 }
 0x14e   :  { %2266 = vmatprep.mubr.bf16.mxu0 %v14914_v44  ;;  %v13126_v44 = vpop.f32.mrf.mxu0  ;;  %13569 = vmatpush3.bf16.msra.mxu0 %v14954_v40 }
 0x14f   :  { %v13232_v46 = vpop.f32.mrf.mxu1 }
 0x150   :  { %v13233_v25 = vadd.f32 %v13232_v46, %v13231_v41  ;;  %v13128_v54 = vpop.f32.mrf.mxu0 }
 0x151   :  { %v13234_v60 = vpop.f32.mrf.mxu1 }
 0x152   :  { %v15747_v4 = vadd.f32 %v13233_v25, %v13121_v5  ;;  %v13129_v12 = vpop.f32.mrf.mxu0 }
 0x153   :  { %v13235_v13 = vpop.f32.mrf.mxu1  ;;  %v13130_v14 = vadd.f32 %v13129_v12, %v13128_v54 }
 0x154   :  { %v13236_v43 = vadd.f32 %v13235_v13, %v13234_v60  ;;  %v13131_v24 = vpop.f32.mrf.mxu0 }
 0x155   :  { %2267 = vmatmul.mubr.bf16.gmra.mxu0 %v14916_v26  ;;  %v13237_v21 = vpop.f32.mrf.mxu1  ;;  %v14956_v26 = vld [vmem:[#allocation11] sm:$0xff]  }
 0x156   :  { %2274 = vmatprep.mubr.bf16.mxu0 %v14919_v27  ;;  %v15749_v41 = vadd.f32 %v13236_v43, %v13124_v28  ;;  %v13127_v27 = vadd.f32 %v13126_v44, %v13125_v42  ;;  %v13132_v46 = vpop.f32.mrf.mxu0  ;;  %13457 = vmatpush3.bf16.msra.mxu1 %v14956_v26 }
 0x157   :  { %v13238_v5 = vpop.f32.mrf.mxu1  ;;  %v13133_v6 = vadd.f32 %v13132_v46, %v13131_v24 }
 0x158   :  { %v13239_v25 = vadd.f32 %v13238_v5, %v13237_v21  ;;  %v13134_v54 = vpop.f32.mrf.mxu0 }
 0x159   :  { %v13240_v59 = vpop.f32.mrf.mxu1 }
 0x15a   :  { %v15751_v60 = vadd.f32 %v13239_v25, %v13127_v27  ;;  %v13135_v1 = vpop.f32.mrf.mxu0 }
 0x15b   :  { %v13241_v12 = vpop.f32.mrf.mxu1  ;;  %v13136_v13 = vadd.f32 %v13135_v1, %v13134_v54  ;;  %v14964_v1 = vld [vmem:[#allocation11 + $0x178] sm:$0xff]  }
 0x15c   :  { %v13242_v28 = vadd.f32 %v13241_v12, %v13240_v59  ;;  %v13137_v43 = vpop.f32.mrf.mxu0  ;;  %13666 = vmatprep.subr.bf16.mxu1 %v14964_v1 }
 0x15d   :  { %2275 = vmatmul.mubr.bf16.gmra.mxu0 %v14923_v57  ;;  %v13243_v42 = vpop.f32.mrf.mxu1 }
 0x15e   :  { %2282 = vmatprep.mubr.bf16.mxu0 %v14924_v15  ;;  %v15753_v44 = vadd.f32 %v13242_v28, %v13130_v14  ;;  %v13138_v29 = vpop.f32.mrf.mxu0 }
 0x15f   :  { %v13244_v40 = vpop.f32.mrf.mxu1  ;;  %v13139_v14 = vadd.f32 %v13138_v29, %v13137_v43 }
 0x160   :  { %v13245_v26 = vadd.f32 %v13244_v40, %v13243_v42  ;;  %v13140_v21 = vpop.f32.mrf.mxu0 }
 0x161   :  { %v13246_v57 = vpop.f32.mrf.mxu1 }
 0x162   :  { %v15755_v5 = vadd.f32 %v13245_v26, %v13133_v6  ;;  %v13141_v15 = vpop.f32.mrf.mxu0  ;;  %v14966_v26 = vld [vmem:[#allocation11 + $0x1b8] sm:$0xff]  }
 0x163   :  { %v13247_v27 = vpop.f32.mrf.mxu1  ;;  %v13142_v25 = vadd.f32 %v13141_v15, %v13140_v21  ;;  %14570 = vmatprep.subr.bf16.mxu0 %v14966_v26 }
 0x164   :  { %v13248_v47 = vadd.f32 %v13247_v27, %v13246_v57  ;;  %v13143_v54 = vpop.f32.mrf.mxu0 }
 0x165   :  { %2283 = vmatmul.mubr.bf16.gmra.mxu0 %v14926_v50  ;;  %v13249_v59 = vpop.f32.mrf.mxu1 }
 0x166   :  { %v15757_v12 = vadd.f32 %v13248_v47, %v13136_v13  ;;  %v13144_v28 = vpop.f32.mrf.mxu0 }
 0x167   :  { %v13250_v24 = vpop.f32.mrf.mxu1  ;;  %v13145_v47 = vadd.f32 %v13144_v28, %v13143_v54 }
 0x168   :  { %v13251_v46 = vadd.f32 %v13250_v24, %v13249_v59  ;;  %v13146_v42 = vpop.f32.mrf.mxu0 }
 0x169   :  { %v13252_v40 = vpop.f32.mrf.mxu1 }
 0x16a   :  { %v15759_v50 = vadd.f32 %v13251_v46, %v13139_v14  ;;  %v13147_v6 = vpop.f32.mrf.mxu0 }
 0x16b   :  { %v13253_v9 = vpop.f32.mrf.mxu1  ;;  %v13148_v8 = vadd.f32 %v13147_v6, %v13146_v42 }
 0x16c   :  { %v13254_v21 = vadd.f32 %v13253_v9, %v13252_v40  ;;  %v13149_v57 = vpop.f32.mrf.mxu0 }
 0x16d   :  { %v13255_v15 = vpop.f32.mrf.mxu1 }
 0x16e   :  { %v15761_v27 = vadd.f32 %v13254_v21, %v13142_v25  ;;  %v13150_v13 = vpop.f32.mrf.mxu0 }
 0x16f   :  { %v13256_v43 = vpop.f32.mrf.mxu1  ;;  %v13151_v40 = vadd.f32 %v13150_v13, %v13149_v57 }
 0x170   :  { %v13257_v29 = vadd.f32 %v13256_v43, %v13255_v15  ;;  %v13152_v1 = vpop.f32.mrf.mxu0 }
 0x171   :  { %v13258_v59 = vpop.f32.mrf.mxu1 }
 0x172   :  { %v15763_v24 = vadd.f32 %v13257_v29, %v13145_v47  ;;  %v13153_v14 = vpop.f32.mrf.mxu0 }
 0x173   :  { %v13259_v46 = vpop.f32.mrf.mxu1  ;;  %v13154_v56 = vadd.f32 %v13153_v14, %v13152_v1 }
 0x174   :  { %v13260_v55 = vadd.f32 %v13259_v46, %v13258_v59  ;;  %v13155_v19 = vpop.f32.mrf.mxu0 }
 0x175   :  { %v13261_v42 = vpop.f32.mrf.mxu1 }
 0x176   :  { %v15765_v9 = vadd.f32 %v13260_v55, %v13148_v8  ;;  %v13156_v6 = vpop.f32.mrf.mxu0 }
 0x177   :  { %v13262_v25 = vpop.f32.mrf.mxu1  ;;  %v13157_v59 = vadd.f32 %v13156_v6, %v13155_v19 }
 0x178   :  { %v13263_v26 = vadd.f32 %v13262_v25, %v13261_v42  ;;  %v13158_v54 = vpop.f32.mrf.mxu0 }
 0x179   :  { %v13264_v28 = vpop.f32.mrf.mxu1 }
 0x17a   :  { %v15767_v21 = vadd.f32 %v13263_v26, %v13151_v40  ;;  %v13159_v15 = vpop.f32.mrf.mxu0 }
 0x17b   :  { %v13265_v43 = vpop.f32.mrf.mxu1  ;;  %v13160_v47 = vadd.f32 %v13159_v15, %v13158_v54 }
 0x17c   :  { %v13266_v29 = vadd.f32 %v13265_v43, %v13264_v28  ;;  %v13161_v16 = vpop.f32.mrf.mxu0 }
 0x17d   :  { %v13267_v3 = vpop.f32.mrf.mxu1 }
 0x17e   :  { %v15769_v1 = vadd.f32 %v13266_v29, %v13154_v56  ;;  %v13162_v14 = vpop.f32.mrf.mxu0 }
 0x17f   :  { %v13268_v55 = vpop.f32.mrf.mxu1  ;;  %v13163_v28 = vadd.f32 %v13162_v14, %v13161_v16 }
 0x180   :  { %v13269_v8 = vadd.f32 %v13268_v55, %v13267_v3  ;;  %v13164_v57 = vpop.f32.mrf.mxu0 }
 0x181   :  { %v13270_v13 = vpop.f32.mrf.mxu1 }
 0x182   :  { %v15771_v46 = vadd.f32 %v13269_v8, %v13157_v59  ;;  %v13165_v42 = vpop.f32.mrf.mxu0 }
 0x183   :  { %v13271_v25 = vpop.f32.mrf.mxu1  ;;  %v13166_v40 = vadd.f32 %v13165_v42, %v13164_v57 }
 0x184   :  { %v13272_v26 = vadd.f32 %v13271_v25, %v13270_v13  ;;  %v13167_v2 = vpop.f32.mrf.mxu0 }
 0x185   :  { %v13273_v31 = vpop.f32.mrf.mxu1 }
 0x186   :  { %v15773_v54 = vadd.f32 %v13272_v26, %v13160_v47  ;;  %v13168_v15 = vpop.f32.mrf.mxu0 }
 0x187   :  { %v13274_v56 = vpop.f32.mrf.mxu1  ;;  %v13169_v13 = vadd.f32 %v13168_v15, %v13167_v2 }
 0x188   :  { %v13275_v43 = vadd.f32 %v13274_v56, %v13273_v31  ;;  %v13170_v19 = vpop.f32.mrf.mxu0 }
 0x189   :  { %v13276_v6 = vpop.f32.mrf.mxu1 }
 0x18a   :  { %v15775_v29 = vadd.f32 %v13275_v43, %v13163_v28  ;;  %v13171_v3 = vpop.f32.mrf.mxu0 }
 0x18b   :  { %v13277_v55 = vpop.f32.mrf.mxu1  ;;  %v13172_v59 = vadd.f32 %v13171_v3, %v13170_v19 }
 0x18c   :  { %17446 = vst [vmem:[#allocation33_spill] sm:$0xff] %v15775_v29  ;;  %v13278_v8 = vadd.f32 %v13277_v55, %v13276_v6  ;;  %v13173_v30 = vpop.f32.mrf.mxu0 }
 0x18d   :  { %v13279_v18 = vpop.f32.mrf.mxu1 }
 0x18e   :  { %v15777_v57 = vadd.f32 %v13278_v8, %v13166_v40  ;;  %v13174_v42 = vpop.f32.mrf.mxu0 }
 0x18f   :  { %v13280_v47 = vpop.f32.mrf.mxu1  ;;  %v13175_v6 = vadd.f32 %v13174_v42, %v13173_v30 }
 0x190   :  { %17447 = vst [vmem:[#allocation34_spill] sm:$0xff] %v15777_v57  ;;  %v13281_v25 = vadd.f32 %v13280_v47, %v13279_v18  ;;  %v13176_v16 = vpop.f32.mrf.mxu0 }
 0x191   :  { %v13282_v14 = vpop.f32.mrf.mxu1 }
 0x192   :  { %v15779_v26 = vadd.f32 %v13281_v25, %v13169_v13  ;;  %v13177_v31 = vpop.f32.mrf.mxu0 }
 0x193   :  { %v13283_v56 = vpop.f32.mrf.mxu1  ;;  %v13178_v28 = vadd.f32 %v13177_v31, %v13176_v16 }
 0x194   :  { %17448 = vst [vmem:[#allocation35_spill] sm:$0xff] %v15779_v26  ;;  %v13284_v43 = vadd.f32 %v13283_v56, %v13282_v14  ;;  %v13179_v17 = vpop.f32.mrf.mxu0 }
 0x195   :  { %v13285_v29 = vpop.f32.mrf.mxu1 }
 0x196   :  { %v15781_v19 = vadd.f32 %v13284_v43, %v13172_v59  ;;  %v13180_v3 = vpop.f32.mrf.mxu0 }
 0x197   :  { %v13286_v40 = vpop.f32.mrf.mxu1  ;;  %v13181_v14 = vadd.f32 %v13180_v3, %v13179_v17 }
 0x198   :  { %17449 = vst [vmem:[#allocation36_spill] sm:$0xff] %v15781_v19  ;;  %v13287_v55 = vadd.f32 %v13286_v40, %v13285_v29  ;;  %v13182_v2 = vpop.f32.mrf.mxu0 }
 0x19a   :  { %v15783_v8 = vadd.f32 %v13287_v55, %v13175_v6  ;;  %v13183_v18 = vpop.f32.mrf.mxu0 }
 0x19b   :  { %v13288_v15 = vpop.f32.mrf.mxu1  ;;  %v13184_v13 = vadd.f32 %v13183_v18, %v13182_v2 }
 0x19c   :  { %17450 = vst [vmem:[#allocation37_spill] sm:$0xff] %v15783_v8  ;;  %v13185_v26 = vpop.f32.mrf.mxu0 }
 0x19d   :  { %v13289_v47 = vpop.f32.mrf.mxu1 }
 0x19e   :  { %v13290_v25 = vadd.f32 %v13289_v47, %v13288_v15  ;;  %v13186_v31 = vpop.f32.mrf.mxu0 }
 0x19f   :  { %v13291_v57 = vpop.f32.mrf.mxu1  ;;  %v13187_v15 = vadd.f32 %v13186_v31, %v13185_v26 }
 0x1a0   :  { %v15785_v16 = vadd.f32 %v13290_v25, %v13178_v28 }
 0x1a1   :  { %v13292_v59 = vpop.f32.mrf.mxu1 }
 0x1a2   :  { %17451 = vst [vmem:[#allocation38_spill] sm:$0xff] %v15785_v16  ;;  %v13293_v56 = vadd.f32 %v13292_v59, %v13291_v57 }
 0x1a3   :  { %v13188_v30 = vpop.f32.mrf.mxu0  ;;  %v13294_v42 = vpop.f32.mrf.mxu1 }
 0x1a4   :  { %v15787_v43 = vadd.f32 %v13293_v56, %v13181_v14 }
 0x1a5   :  { %v13189_v29 = vpop.f32.mrf.mxu0  ;;  %v13295_v40 = vpop.f32.mrf.mxu1 }
 0x1a6   :  { %17452 = vst [vmem:[#allocation39_spill] sm:$0xff] %v15787_v43  ;;  %v13190_v6 = vadd.f32 %v13189_v29, %v13188_v30  ;;  %v13296_v55 = vadd.f32 %v13295_v40, %v13294_v42 }
 0x1a7   :  { %v13191_v8 = vpop.f32.mrf.mxu0  ;;  %v13297_v19 = vpop.f32.mrf.mxu1 }
 0x1a8   :  { %v15789_v2 = vadd.f32 %v13296_v55, %v13184_v13 }
 0x1a9   :  { %v13192_v18 = vpop.f32.mrf.mxu0  ;;  %v13298_v28 = vpop.f32.mrf.mxu1 }
 0x1aa   :  { %v13299_v47 = vadd.f32 %v13298_v28, %v13297_v19  ;;  %v13193_v42 = vadd.f32 %v13192_v18, %v13191_v8 }
 0x1ab   :  { %v13322_v17 = vpop.f32.mrf.mxu0 }
 0x1ac   :  { %v15791_v25 = vadd.f32 %v13299_v47, %v13187_v15 }
 0x1ad   :  { %v13300_v3 = vpop.f32.mrf.mxu1  ;;  %v13323_v57 = vpop.f32.mrf.mxu0 }
 0x1ae   :  { %17453 = vst [vmem:[#allocation40_spill] sm:$0xff] %v15791_v25  ;;  %v13324_v56 = vadd.f32 %v13323_v57, %v13322_v17 }
 0x1af   :  { %v13301_v59 = vpop.f32.mrf.mxu1  ;;  %v13325_v43 = vpop.f32.mrf.mxu0 }
 0x1b0   :  { %v13302_v14 = vadd.f32 %v13301_v59, %v13300_v3  ;;  %v2165_v26 = vadd.f32 %v13324_v56, %v15733_v45 }
 0x1b1   :  { %v13303_v16 = vpop.f32.mrf.mxu1  ;;  %v13326_v29 = vpop.f32.mrf.mxu0 }
 0x1b2   :  { %v15793_v30 = vadd.f32 %v13302_v14, %v13190_v6  ;;  %v13327_v31 = vadd.f32 %v13326_v29, %v13325_v43 }
 0x1b3   :  { %v13304_v13 = vpop.f32.mrf.mxu1  ;;  %v13328_v19 = vpop.f32.mrf.mxu0 }
 0x1b4   :  { %v13305_v40 = vadd.f32 %v13304_v13, %v13303_v16  ;;  %v2168_v17 = vadd.f32 %v13327_v31, %v15735_v61 }
 0x1b5   :  { %v14540_v55 = vpop.f32.mrf.mxu1  ;;  %v13329_v15 = vpop.f32.mrf.mxu0 }
 0x1b6   :  { %v15796_v28 = vadd.f32 %v13305_v40, %v13193_v42  ;;  %v13330_v25 = vadd.f32 %v13329_v15, %v13328_v19 }
 0x1b7   :  { %v2325_v47 = vpop.f32.mrf.mxu1  ;;  %v13331_v57 = vpop.f32.mrf.mxu0 }
 0x1b8   :  { %17454 = vst [vmem:[#allocation41_spill] sm:$0xff] %v15796_v28  ;;  %v2326_v3 = vadd.f32 %v2325_v47, %v2165_v26  ;;  %v2173_v8 = vadd.f32 %v13330_v25, %v15737_v7 }
 0x1b9   :  { %v14541_v6 = vpop.f32.mrf.mxu1  ;;  %v13332_v16 = vpop.f32.mrf.mxu0 }
 0x1ba   :  { %2452 = vst [vmem:[#allocation3 + $0x8] sm:$0xff] %v2326_v3  ;;  %v12603_v18 = vpack.c.bf16 %v2326_v3, %v2326_v3  ;;  %v2334_v45 = vadd.f32 %v14540_v55, %v2173_v8  ;;  %v13333_v43 = vadd.f32 %v13332_v16, %v13331_v57 }
 0x1bb   :  { %v2328_v59 = vpop.f32.mrf.mxu1  ;;  %v13334_v56 = vpop.f32.mrf.mxu0 }
 0x1bc   :  { %3220 = vst [vmem:[#allocation4 + $0xc] sm:$0xf] %v12603_v18  ;;  %v2329_v14 = vadd.f32 %v2328_v59, %v2168_v17  ;;  %2454 = vst [vmem:[#allocation3 + $0x28] sm:$0xff] %v2334_v45  ;;  %v12605_v42 = vpack.c.bf16 %v2334_v45, %v2334_v45  ;;  %v2176_v29 = vadd.f32 %v13333_v43, %v15739_v32  ;;  %v4068_v59 = vunpack.c.l.bf16 %v15633_v37 }
 0x1bd   :  { %v13335_v40 = vpop.f32.mrf.mxu0  ;;  %v4069_v45 = vunpack.c.l.bf16 %v15635_v38 }
 0x1be   :  { %2453 = vst [vmem:[#allocation3 + $0x10] sm:$0xff] %v2329_v14  ;;  %v12604_v61 = vpack.c.bf16 %v2329_v14, %v2329_v14  ;;  %3222 = vst [vmem:[#allocation4 + $0x44] sm:$0xf] %v12605_v42  ;;  %v2337_v7 = vadd.f32 %v14541_v6, %v2176_v29  ;;  %v13336_v26 = vadd.f32 %v13335_v40, %v13334_v56 }
 0x1bf   :  { %v13337_v31 = vpop.f32.mrf.mxu0 }
 0x1c0   :  { %v15801_v13 = vpop.f32.mrf.mxu1  ;;  %3221 = vst [vmem:[#allocation4 + $0x28] sm:$0xf] %v12604_v61  ;;  %2455 = vst [vmem:[#allocation3 + $0x30] sm:$0xff] %v2337_v7  ;;  %v12606_v47 = vpack.c.bf16 %v2337_v7, %v2337_v7  ;;  %v2181_v3 = vadd.f32 %v13336_v26, %v15741_v58 }
 0x1c1   :  { %v2484_v19 = vld [vmem:[#allocation3 + $0x5] sm:$0xff]  ;;  %v13338_v8 = vpop.f32.mrf.mxu0 }
 0x1c2   :  { %v2341_v25 = vpop.f32.mrf.mxu1  ;;  %v2676_v55 = vld [vmem:[#allocation3 + $0x6] sm:$0xff]  ;;  %v12507_v17 = vpack.c.bf16 %v2484_v19, %v2484_v19  ;;  %3223 = vst [vmem:[#allocation4 + $0x60] sm:$0xf] %v12606_v47  ;;  %v13339_v6 = vadd.f32 %v13338_v8, %v13337_v31 }
 0x1c3   :  { %v2868_v15 = vld [vmem:[#allocation3 + $0x7] sm:$0xff]  ;;  %v12539_v32 = vpack.c.bf16 %v2676_v55, %v2676_v55  ;;  %v2342_v18 = vadd.f32 %v2341_v25, %v2181_v3 }
 0x1c4   :  { %v12571_v57 = vpack.c.bf16 %v2868_v15, %v2868_v15  ;;  %v15804_v16 = vpop.f32.mrf.mxu1  ;;  %2644 = vst [vmem:[#allocation4] sm:$0xf] %v12507_v17  ;;  %v2486_v58 = vld [vmem:[#allocation3 + $0x25] sm:$0xff]  ;;  %v13340_v29 = vpop.f32.mrf.mxu0  ;;  %v2184_v17 = vadd.f32 %v13339_v6, %v15743_v20 }
 0x1c5   :  { %2836 = vst [vmem:[#allocation4 + $0x4] sm:$0xf] %v12539_v32  ;;  %v2678_v56 = vld [vmem:[#allocation3 + $0x26] sm:$0xff]  ;;  %v2677_v40 = vld [vmem:[#allocation3 + $0xe] sm:$0xff]  ;;  %v12509_v25 = vpack.c.bf16 %v2486_v58, %v2486_v58  ;;  %2456 = vst [vmem:[#allocation3 + $0x48] sm:$0xff] %v2342_v18  ;;  %v12607_v37 = vpack.c.bf16 %v2342_v18, %v2342_v18 }
 0x1c6   :  { %3028 = vst [vmem:[#allocation4 + $0x8] sm:$0xf] %v12571_v57  ;;  %v2870_v42 = vld [vmem:[#allocation3 + $0x27] sm:$0xff]  ;;  %v2869_v7 = vld [vmem:[#allocation3 + $0xf] sm:$0xff]  ;;  %v12541_v26 = vpack.c.bf16 %v2678_v56, %v2678_v56  ;;  %v12540_v19 = vpack.c.bf16 %v2677_v40, %v2677_v40  ;;  %v13341_v32 = vpop.f32.mrf.mxu0  ;;  %v15811_v57 = vld [vmem:[#allocation5] ss:$0 sps:$4 sm:$0xff]   ;;  %v2344_v18 = vpop.f32.mrf.mxu1 }
 0x1c7   :  { %v2485_v61 = vld [vmem:[#allocation3 + $0xd] sm:$0xff]  ;;  %v12573_v31 = vpack.c.bf16 %v2870_v42, %v2870_v42  ;;  %v12572_v55 = vpack.c.bf16 %v2869_v7, %v2869_v7  ;;  %2646 = vst [vmem:[#allocation4 + $0x38] sm:$0xf] %v12509_v25  ;;  %3224 = vst [vmem:[#allocation4 + $0x7c] sm:$0xf] %v12607_v37  ;;  %v13342_v42 = vadd.f32 %v13341_v32, %v13340_v29 }
 0x1c8   :  { %v12508_v38 = vpack.c.bf16 %v2485_v61, %v2485_v61  ;;  %v3252_v15 = vld [vmem:[#allocation3 + $0x9] sm:$0xff]  ;;  %v3253_v47 = vld [vmem:[#allocation3 + $0x11] sm:$0xff]  ;;  %2838 = vst [vmem:[#allocation4 + $0x3c] sm:$0xf] %v12541_v26  ;;  %2837 = vst [vmem:[#allocation4 + $0x20] sm:$0xf] %v12540_v19 }
 0x1c9   :  { %v3444_v3 = vld [vmem:[#allocation3 + $0xa] sm:$0xff]  ;;  %v12635_v8 = vpack.c.bf16 %v3252_v15, %v3252_v15  ;;  %v12636_v43 = vpack.c.bf16 %v3253_v47, %v3253_v47  ;;  %v3445_v14 = vld [vmem:[#allocation3 + $0x12] sm:$0xff]  ;;  %3030 = vst [vmem:[#allocation4 + $0x40] sm:$0xf] %v12573_v31  ;;  %3029 = vst [vmem:[#allocation4 + $0x24] sm:$0xf] %v12572_v55  ;;  %v2345_v47 = vadd.f32 %v2344_v18, %v2184_v17  ;;  %v17455_v18 = vunpack.c.l.bf16 %v15644_v49 }
 0x1ca   :  { %v12667_v28 = vpack.c.bf16 %v3444_v3, %v3444_v3  ;;  %v3636_v58 = vld [vmem:[#allocation3 + $0xb] sm:$0xff]  ;;  %v3637_v56 = vld [vmem:[#allocation3 + $0x13] sm:$0xff]  ;;  %v12668_v61 = vpack.c.bf16 %v3445_v14, %v3445_v14  ;;  %2645 = vst [vmem:[#allocation4 + $0x1c] sm:$0xf] %v12508_v38  ;;  %v13343_v3 = vpop.f32.mrf.mxu0  ;;  %v2189_v14 = vadd.f32 %v13342_v42, %v15745_v35  ;;  %v17456_v35 = vunpack.c.l.bf16 %v15642_v48 }
 0x1cb   :  { %v12699_v40 = vpack.c.bf16 %v3636_v58, %v3636_v58  ;;  %v12700_v7 = vpack.c.bf16 %v3637_v56, %v3637_v56  ;;  %4101 = vst [vmem:[#allocation3 + $0x10] sm:$0xff] %v4069_v45  ;;  %4100 = vst [vmem:[#allocation3 + $0x8] sm:$0xff] %v4068_v59  ;;  %v2487_v20 = vld [vmem:[#allocation3 + $0x2d] sm:$0xff] }
 0x1cc   :  { %v2679_v6 = vld [vmem:[#allocation3 + $0x2e] sm:$0xff]  ;;  %3412 = vst [vmem:[#allocation4 + $0x10] sm:$0xf] %v12635_v8  ;;  %3413 = vst [vmem:[#allocation4 + $0x2c] sm:$0xf] %v12636_v43  ;;  %v12510_v37 = vpack.c.bf16 %v2487_v20, %v2487_v20  ;;  %v12608_v43 = vpack.c.bf16 %v2345_v47, %v2345_v47  ;;  %v2350_v42 = vadd.f32 %v15801_v13, %v2189_v14  ;;  %v2488_v20 = vld [vmem:[#allocation3 + $0x45] sm:$0xff] }
 0x1cd   :  { %v2871_v15 = vld [vmem:[#allocation3 + $0x2f] sm:$0xff]  ;;  %3604 = vst [vmem:[#allocation4 + $0x14] sm:$0xf] %v12667_v28  ;;  %v12542_v45 = vpack.c.bf16 %v2679_v6, %v2679_v6  ;;  %3605 = vst [vmem:[#allocation4 + $0x30] sm:$0xf] %v12668_v61  ;;  %v13344_v28 = vpop.f32.mrf.mxu0  ;;  %v15819_v61 = vpop.f32.mrf.mxu1  ;;  %v2680_v6 = vld [vmem:[#allocation3 + $0x46] sm:$0xff]  ;;  %v12511_v48 = vpack.c.bf16 %v2488_v20, %v2488_v20 }
 0x1ce   :  { %v12574_v25 = vpack.c.bf16 %v2871_v15, %v2871_v15  ;;  %v3254_v26 = vld [vmem:[#allocation3 + $0x29] sm:$0xff]  ;;  %v3255_v31 = vld [vmem:[#allocation3 + $0x31] sm:$0xff]  ;;  %3796 = vst [vmem:[#allocation4 + $0x18] sm:$0xf] %v12699_v40  ;;  %3797 = vst [vmem:[#allocation4 + $0x34] sm:$0xf] %v12700_v7  ;;  %v13345_v15 = vadd.f32 %v13344_v28, %v13343_v3  ;;  %v12543_v13 = vpack.c.bf16 %v2680_v6, %v2680_v6 }
 0x1cf   :  { %v3446_v29 = vld [vmem:[#allocation3 + $0x2a] sm:$0xff]  ;;  %v12637_v59 = vpack.c.bf16 %v3254_v26, %v3254_v26  ;;  %v12638_v38 = vpack.c.bf16 %v3255_v31, %v3255_v31  ;;  %v3447_v19 = vld [vmem:[#allocation3 + $0x32] sm:$0xff]  ;;  %2457 = vst [vmem:[#allocation3 + $0x50] sm:$0xff] %v2345_v47  ;;  %2647 = vst [vmem:[#allocation4 + $0x54] sm:$0xf] %v12510_v37  ;;  %v13346_v47 = vpop.f32.mrf.mxu0  ;;  %v12609_v26 = vpack.c.bf16 %v2350_v42, %v2350_v42 }
 0x1d0   :  { %v12669_v55 = vpack.c.bf16 %v3446_v29, %v3446_v29  ;;  %v3638_v17 = vld [vmem:[#allocation3 + $0x2b] sm:$0xff]  ;;  %v3639_v32 = vld [vmem:[#allocation3 + $0x33] sm:$0xff]  ;;  %v12670_v8 = vpack.c.bf16 %v3447_v19, %v3447_v19  ;;  %3031 = vst [vmem:[#allocation4 + $0x5c] sm:$0xf] %v12574_v25  ;;  %2839 = vst [vmem:[#allocation4 + $0x58] sm:$0xf] %v12542_v45  ;;  %v2192_v29 = vadd.f32 %v13345_v15, %v15747_v4  ;;  %v4072_v45 = vunpack.c.l.bf16 %v15648_v53 }
 0x1d1   :  { %v12701_v58 = vpack.c.bf16 %v3638_v17, %v3638_v17  ;;  %v12702_v56 = vpack.c.bf16 %v3639_v32, %v3639_v32  ;;  %4103 = vst [vmem:[#allocation3 + $0x30] sm:$0xff] %v17455_v18  ;;  %4102 = vst [vmem:[#allocation3 + $0x28] sm:$0xff] %v17456_v35  ;;  %v15821_v40 = vld [vmem:[#allocation4 + $0x8] sm:$0xff]  ;;  %v14960_v31 = vld [vmem:[#allocation5 + $0x4] ss:$0 sps:$4 sm:$0xff]   ;;  %v13347_v14 = vpop.f32.mrf.mxu0  ;;  %v4073_v4 = vunpack.c.l.bf16 %v15651_v63 }
 0x1d2   :  { %17457 = vst [vmem:[#allocation42_spill] sm:$0xff] %v15821_v40  ;;  %v14969_v7 = vld [vmem:[#allocation5 + $0x8] ss:$0 sps:$4 sm:$0xff]   ;;  %3414 = vst [vmem:[#allocation4 + $0x48] sm:$0xf] %v12637_v59  ;;  %v15825_v37 = vld [vmem:[#allocation4 + $0x40] sm:$0xff]  ;;  %v13348_v3 = vadd.f32 %v13347_v14, %v13346_v47  ;;  %v2353_v17 = vadd.f32 %v15804_v16, %v2192_v29 }
 0x1d3   :  { %3415 = vst [vmem:[#allocation4 + $0x64] sm:$0xf] %v12638_v38  ;;  %3606 = vst [vmem:[#allocation4 + $0x4c] sm:$0xf] %v12669_v55  ;;  %v2872_v49 = vld [vmem:[#allocation3 + $0x47] sm:$0xff]  ;;  %v15830_v38 = vld [vmem:[#allocation4 + $0x1c] sm:$0xff]  ;;  %v13349_v32 = vpop.f32.mrf.mxu0 }
 0x1d4   :  { %3225 = vst [vmem:[#allocation4 + $0x98] sm:$0xf] %v12608_v43  ;;  %4868 = vst [vmem:[#allocation4 + $0xc] sm:$0xf] %v15811_v57  ;;  %v12575_v25 = vpack.c.bf16 %v2872_v49, %v2872_v49  ;;  %v2357_v57 = vpop.f32.mrf.mxu1  ;;  %v15828_v59 = vld [vmem:[#allocation4] sm:$0xff]  ;;  %v4133_v55 = vld [vmem:[#allocation3 + $0xd] sm:$0xff]  ;;  %v12610_v47 = vpack.c.bf16 %v2353_v17, %v2353_v17 }
 0x1d5   :  { %3798 = vst [vmem:[#allocation4 + $0x50] sm:$0xf] %v12701_v58  ;;  %3799 = vst [vmem:[#allocation4 + $0x6c] sm:$0xf] %v12702_v56  ;;  %v4132_v19 = vld [vmem:[#allocation3 + $0x5] sm:$0xff]  ;;  %v12732_v53 = vpack.c.bf16 %v4133_v55, %v4133_v55 }
 0x1d6   :  { %3607 = vst [vmem:[#allocation4 + $0x68] sm:$0xf] %v12670_v8  ;;  %2458 = vst [vmem:[#allocation3 + $0x68] sm:$0xff] %v2350_v42  ;;  %v12731_v43 = vpack.c.bf16 %v4132_v19, %v4132_v19  ;;  %v4324_v28 = vld [vmem:[#allocation3 + $0x6] sm:$0xff]  ;;  %v4325_v8 = vld [vmem:[#allocation3 + $0xe] sm:$0xff]  ;;  %v2197_v42 = vadd.f32 %v13348_v3, %v15749_v41  ;;  %v15839_v55 = vpop.f32.mrf.mxu1 }
 0x1d7   :  { %17458 = vst [vmem:[#allocation43_spill] sm:$0xff] %v15825_v37  ;;  %2648 = vst [vmem:[#allocation4 + $0x70] sm:$0xf] %v12511_v48  ;;  %v15834_v58 = vld [vmem:[#allocation4 + $0x24] sm:$0xff]  ;;  %v2489_v56 = vld [vmem:[#allocation3 + $0x4d] sm:$0xff]  ;;  %v12763_v20 = vpack.c.bf16 %v4324_v28, %v4324_v28  ;;  %v12764_v6 = vpack.c.bf16 %v4325_v8, %v4325_v8  ;;  %v13350_v48 = vpop.f32.mrf.mxu0 }
 0x1d8   :  { %2840 = vst [vmem:[#allocation4 + $0x74] sm:$0xf] %v12543_v13  ;;  %3032 = vst [vmem:[#allocation4 + $0x78] sm:$0xf] %v12575_v25  ;;  %v2681_v18 = vld [vmem:[#allocation3 + $0x4e] sm:$0xff]  ;;  %v12512_v25 = vpack.c.bf16 %v2489_v56, %v2489_v56 }
 0x1d9   :  { %3226 = vst [vmem:[#allocation4 + $0xb4] sm:$0xf] %v12609_v26  ;;  %4870 = vst [vmem:[#allocation4 + $0x44] sm:$0xf] %v14969_v7  ;;  %v2873_v35 = vld [vmem:[#allocation3 + $0x4f] sm:$0xff]  ;;  %v12544_v7 = vpack.c.bf16 %v2681_v18, %v2681_v18 }
 0x1da   :  { %17459 = vst [vmem:[#allocation44_spill] sm:$0xff] %v15834_v58  ;;  %4869 = vst [vmem:[#allocation4 + $0x28] sm:$0xf] %v14960_v31  ;;  %v12576_v49 = vpack.c.bf16 %v2873_v35, %v2873_v35  ;;  %v3256_v63 = vld [vmem:[#allocation3 + $0x49] sm:$0xff]  ;;  %v3257_v15 = vld [vmem:[#allocation3 + $0x51] sm:$0xff]  ;;  %v2358_v31 = vadd.f32 %v2357_v57, %v2197_v42  ;;  %v13351_v35 = vadd.f32 %v13350_v48, %v13349_v32 }
 0x1db   :  { %v3448_v16 = vld [vmem:[#allocation3 + $0x4a] sm:$0xff]  ;;  %2459 = vst [vmem:[#allocation3 + $0x70] sm:$0xff] %v2353_v17  ;;  %4292 = vst [vmem:[#allocation4] sm:$0xf] %v12731_v43  ;;  %v12639_v26 = vpack.c.bf16 %v3256_v63, %v3256_v63  ;;  %v12640_v29 = vpack.c.bf16 %v3257_v15, %v3257_v15  ;;  %v3449_v14 = vld [vmem:[#allocation3 + $0x52] sm:$0xff]  ;;  %v13352_v63 = vpop.f32.mrf.mxu0 }
 0x1dc   :  { %4293 = vst [vmem:[#allocation4 + $0x1c] sm:$0xf] %v12732_v53  ;;  %v15837_v13 = vld [vmem:[#allocation5 + $0xc] ss:$0 sps:$4 sm:$0xff]   ;;  %v12671_v41 = vpack.c.bf16 %v3448_v16, %v3448_v16  ;;  %v3641_v19 = vld [vmem:[#allocation3 + $0x53] sm:$0xff]  ;;  %v12672_v17 = vpack.c.bf16 %v3449_v14, %v3449_v14  ;;  %2460 = vst [vmem:[#allocation3 + $0x88] sm:$0xff] %v2358_v31  ;;  %v2200_v32 = vadd.f32 %v13351_v35, %v15751_v60  ;;  %v4075_v60 = vunpack.c.l.bf16 %v15657_v23 }
 0x1dd   :  { %v3640_v3 = vld [vmem:[#allocation3 + $0x4b] sm:$0xff]  ;;  %4484 = vst [vmem:[#allocation4 + $0x4] sm:$0xf] %v12763_v20  ;;  %4485 = vst [vmem:[#allocation4 + $0x20] sm:$0xf] %v12764_v6  ;;  %v12704_v43 = vpack.c.bf16 %v3641_v19, %v3641_v19  ;;  %v12611_v6 = vpack.c.bf16 %v2358_v31, %v2358_v31 }
 0x1de   :  { %v15841_v28 = vld [vmem:[#allocation5 + $0x10] ss:$0 sps:$4 sm:$0xff]   ;;  %v12703_v8 = vpack.c.bf16 %v3640_v3, %v3640_v3  ;;  %4105 = vst [vmem:[#allocation3 + $0x50] sm:$0xff] %v4073_v4  ;;  %2841 = vst [vmem:[#allocation4 + $0x90] sm:$0xf] %v12544_v7  ;;  %v2490_v53 = vld [vmem:[#allocation3 + $0x65] sm:$0xff] }
 0x1df   :  { %3033 = vst [vmem:[#allocation4 + $0x94] sm:$0xf] %v12576_v49  ;;  %4104 = vst [vmem:[#allocation3 + $0x48] sm:$0xff] %v4072_v45  ;;  %v2682_v56 = vld [vmem:[#allocation3 + $0x66] sm:$0xff]  ;;  %v12513_v57 = vpack.c.bf16 %v2490_v53, %v2490_v53  ;;  %v4517_v4 = vld [vmem:[#allocation3 + $0xf] sm:$0xff] }
 0x1e0   :  { %v2874_v18 = vld [vmem:[#allocation3 + $0x67] sm:$0xff]  ;;  %3227 = vst [vmem:[#allocation4 + $0xd0] sm:$0xf] %v12610_v47  ;;  %2649 = vst [vmem:[#allocation4 + $0x8c] sm:$0xf] %v12512_v25  ;;  %v12545_v42 = vpack.c.bf16 %v2682_v56, %v2682_v56  ;;  %v15843_v7 = vld [vmem:[#allocation4 + $0x54] sm:$0xff]  ;;  %v12796_v16 = vpack.c.bf16 %v4517_v4, %v4517_v4  ;;  %v13353_v47 = vpop.f32.mrf.mxu0 }
 0x1e1   :  { %3416 = vst [vmem:[#allocation4 + $0x80] sm:$0xf] %v12639_v26  ;;  %3417 = vst [vmem:[#allocation4 + $0x9c] sm:$0xf] %v12640_v29  ;;  %v12577_v20 = vpack.c.bf16 %v2874_v18, %v2874_v18  ;;  %v4516_v15 = vld [vmem:[#allocation3 + $0x7] sm:$0xff]  ;;  %v2360_v29 = vpop.f32.mrf.mxu1  ;;  %v13354_v14 = vadd.f32 %v13353_v47, %v13352_v63  ;;  %v15850_v56 = vld [vmem:[#allocation4 + $0x38] sm:$0xff] }
 0x1e2   :  { %3608 = vst [vmem:[#allocation4 + $0x84] sm:$0xf] %v12671_v41  ;;  %3609 = vst [vmem:[#allocation4 + $0xa0] sm:$0xf] %v12672_v17  ;;  %v12795_v49 = vpack.c.bf16 %v4516_v15, %v4516_v15  ;;  %v4134_v48 = vld [vmem:[#allocation3 + $0x25] sm:$0xff]  ;;  %v4135_v25 = vld [vmem:[#allocation3 + $0x2d] sm:$0xff]  ;;  %v13355_v53 = vpop.f32.mrf.mxu0 }
 0x1e3   :  { %3800 = vst [vmem:[#allocation4 + $0x88] sm:$0xf] %v12703_v8  ;;  %3801 = vst [vmem:[#allocation4 + $0xa4] sm:$0xf] %v12704_v43  ;;  %v4326_v26 = vld [vmem:[#allocation3 + $0x26] sm:$0xff]  ;;  %v12733_v41 = vpack.c.bf16 %v4134_v48, %v4134_v48  ;;  %v12734_v3 = vpack.c.bf16 %v4135_v25, %v4135_v25  ;;  %v4327_v19 = vld [vmem:[#allocation3 + $0x2e] sm:$0xff]  ;;  %v2361_v43 = vadd.f32 %v2360_v29, %v2200_v32 }
 0x1e4   :  { %2650 = vst [vmem:[#allocation4 + $0xa8] sm:$0xf] %v12513_v57  ;;  %2842 = vst [vmem:[#allocation4 + $0xac] sm:$0xf] %v12545_v42  ;;  %v12765_v31 = vpack.c.bf16 %v4326_v26, %v4326_v26  ;;  %v15847_v17 = vld [vmem:[#allocation4 + $0x5c] sm:$0xff]  ;;  %v4518_v8 = vld [vmem:[#allocation3 + $0x27] sm:$0xff]  ;;  %v12766_v18 = vpack.c.bf16 %v4327_v19, %v4327_v19  ;;  %v2205_v32 = vadd.f32 %v13354_v14, %v15753_v44 }
 0x1e5   :  { %3034 = vst [vmem:[#allocation4 + $0xb0] sm:$0xf] %v12577_v20  ;;  %3228 = vst [vmem:[#allocation4 + $0xec] sm:$0xf] %v12611_v6  ;;  %v4519_v35 = vld [vmem:[#allocation3 + $0x2f] sm:$0xff]  ;;  %v12797_v57 = vpack.c.bf16 %v4518_v8, %v4518_v8  ;;  %v15853_v63 = vld [vmem:[#allocation4 + $0x78] sm:$0xff]  ;;  %v12612_v19 = vpack.c.bf16 %v2361_v43, %v2361_v43  ;;  %v13356_v8 = vpop.f32.mrf.mxu0 }
 0x1e6   :  { %17460 = vst [vmem:[#allocation45_spill] sm:$0xff] %v15847_v17  ;;  %4676 = vst [vmem:[#allocation4 + $0x8] sm:$0xf] %v12795_v49  ;;  %v2491_v42 = vld [vmem:[#allocation3 + $0x6d] sm:$0xff]  ;;  %v7496_v47 = vld [vmem:[#allocation2 + $0x8] sm:$0xf]  ;;  %v12798_v49 = vpack.c.bf16 %v4519_v35, %v4519_v35 }
 0x1e7   :  { %4677 = vst [vmem:[#allocation4 + $0x24] sm:$0xf] %v12796_v16  ;;  %4871 = vst [vmem:[#allocation4 + $0x60] sm:$0xf] %v15837_v13  ;;  %v2683_v20 = vld [vmem:[#allocation3 + $0x6e] sm:$0xff]  ;;  %v12514_v16 = vpack.c.bf16 %v2491_v42, %v2491_v42  ;;  %v15858_v42 = vld [vmem:[#allocation11 + $0x138] sm:$0xff]  }
 0x1e8   :  { %17461 = vst [vmem:[#allocation46_spill] sm:$0xff] %v15853_v63  ;;  %v2875_v6 = vld [vmem:[#allocation3 + $0x6f] sm:$0xff]  ;;  %v7497_v23 = vld [vmem:[#allocation2 + $0xc] sm:$0xf]  ;;  %4294 = vst [vmem:[#allocation4 + $0x38] sm:$0xf] %v12733_v41  ;;  %v12546_v48 = vpack.c.bf16 %v2683_v20, %v2683_v20  ;;  %v15860_v20 = vpop.f32.mrf.mxu1 }
 0x1e9   :  { %v7432_v15 = vld [vmem:[#allocation2] sm:$0xf]  ;;  %v7433_v4 = vld [vmem:[#allocation2 + $0x4] sm:$0xf]  ;;  %4295 = vst [vmem:[#allocation4 + $0x54] sm:$0xf] %v12734_v3  ;;  %v12578_v13 = vpack.c.bf16 %v2875_v6, %v2875_v6 }
 0x1ea   :  { %4486 = vst [vmem:[#allocation4 + $0x3c] sm:$0xf] %v12765_v31  ;;  %4872 = vst [vmem:[#allocation4 + $0x7c] sm:$0xf] %v15841_v28  ;;  %v3258_v25 = vld [vmem:[#allocation3 + $0x69] sm:$0xff]  ;;  %v3259_v26 = vld [vmem:[#allocation3 + $0x71] sm:$0xff]  ;;  %v2366_v28 = vadd.f32 %v15819_v61, %v2205_v32  ;;  %v13357_v61 = vadd.f32 %v13356_v8, %v13355_v53  ;;  %v13358_v32 = vpop.f32.mrf.mxu0  ;;  %v2373_v8 = vpop.f32.mrf.mxu1 }
 0x1eb   :  { %v3450_v29 = vld [vmem:[#allocation3 + $0x6a] sm:$0xff]  ;;  %2461 = vst [vmem:[#allocation3 + $0x90] sm:$0xff] %v2361_v43  ;;  %4487 = vst [vmem:[#allocation4 + $0x58] sm:$0xf] %v12766_v18  ;;  %v12641_v45 = vpack.c.bf16 %v3258_v25, %v3258_v25  ;;  %v12642_v63 = vpack.c.bf16 %v3259_v26, %v3259_v26  ;;  %v3451_v44 = vld [vmem:[#allocation3 + $0x72] sm:$0xff]  ;;  %v17462_v18 = vunpack.c.l.bf16 %v15654_v22 }
 0x1ec   :  { %4678 = vst [vmem:[#allocation4 + $0x40] sm:$0xf] %v12797_v57  ;;  %v12673_v14 = vpack.c.bf16 %v3450_v29, %v3450_v29  ;;  %v3642_v41 = vld [vmem:[#allocation3 + $0x6b] sm:$0xff]  ;;  %v3643_v3 = vld [vmem:[#allocation3 + $0x73] sm:$0xff]  ;;  %v7560_v31 = vld [vmem:[#allocation2 + $0x10] sm:$0xf]  ;;  %v12674_v6 = vpack.c.bf16 %v3451_v44, %v3451_v44 }
 0x1ed   :  { %v7561_v35 = vld [vmem:[#allocation2 + $0x14] sm:$0xf]  ;;  %4679 = vst [vmem:[#allocation4 + $0x5c] sm:$0xf] %v12798_v49  ;;  %v12705_v43 = vpack.c.bf16 %v3642_v41, %v3642_v41  ;;  %v12706_v37 = vpack.c.bf16 %v3643_v3, %v3643_v3  ;;  %4106 = vst [vmem:[#allocation3 + $0x68] sm:$0xff] %v17462_v18  ;;  %v5480_v3 = vld [vmem:[#allocation4 + $0x1c] sm:$0xff] }
 0x1ee   :  { %4107 = vst [vmem:[#allocation3 + $0x70] sm:$0xff] %v4075_v60  ;;  %2651 = vst [vmem:[#allocation4 + $0xc4] sm:$0xf] %v12514_v16  ;;  %v2492_v57 = vld [vmem:[#allocation3 + $0x85] sm:$0xff]  ;;  %v12613_v60 = vpack.c.bf16 %v2366_v28, %v2366_v28 }
 0x1ef   :  { %2843 = vst [vmem:[#allocation4 + $0xc8] sm:$0xf] %v12546_v48  ;;  %3035 = vst [vmem:[#allocation4 + $0xcc] sm:$0xf] %v12578_v13  ;;  %v2684_v25 = vld [vmem:[#allocation3 + $0x86] sm:$0xff]  ;;  %v12515_v49 = vpack.c.bf16 %v2492_v57, %v2492_v57  ;;  %v15874_v57 = vld [vmem:[#allocation11 + $0x130] sm:$0xff]  }
 0x1f0   :  { %v2876_v26 = vld [vmem:[#allocation3 + $0x87] sm:$0xff]  ;;  %3229 = vst [vmem:[#allocation4 + $0x108] sm:$0xf] %v12612_v19  ;;  %3418 = vst [vmem:[#allocation4 + $0xb8] sm:$0xf] %v12641_v45  ;;  %v12547_v29 = vpack.c.bf16 %v2684_v25, %v2684_v25  ;;  %v2208_v45 = vadd.f32 %v13357_v61, %v15755_v5  ;;  %v4077_v5 = vunpack.c.l.bf16 %v15663_v34  ;;  %v15876_v25 = vld [vmem:[#allocation11 + $0x1b0] sm:$0xff]  }
 0x1f1   :  { %3419 = vst [vmem:[#allocation4 + $0xd4] sm:$0xf] %v12642_v63  ;;  %3610 = vst [vmem:[#allocation4 + $0xbc] sm:$0xf] %v12673_v14  ;;  %v12579_v44 = vpack.c.bf16 %v2876_v26, %v2876_v26  ;;  %v5476_v41 = vld [vmem:[#allocation4] sm:$0xff]  ;;  %v13359_v63 = vpop.f32.mrf.mxu0  ;;  %v15865_v16 = vld [vmem:[#allocation4 + $0x8c] sm:$0xff] }
 0x1f2   :  { %v14957_v22 = vld [vmem:[#allocation4 + $0x4] ss:$28 sps:$4 sm:$0xff]   ;;  %2462 = vst [vmem:[#allocation3 + $0xa8] sm:$0xff] %v2366_v28  ;;  %3611 = vst [vmem:[#allocation4 + $0xd8] sm:$0xf] %v12674_v6  ;;  %v11970_v53 = vcombine.low %v5476_v41, %v5480_v3  ;;  %v4137_v13 = vld [vmem:[#allocation3 + $0x4d] sm:$0xff]  ;;  %v2369_v28 = vadd.f32 %v15839_v55, %v2208_v45 }
 0x1f3   :  { %3802 = vst [vmem:[#allocation4 + $0xc0] sm:$0xf] %v12705_v43  ;;  %3803 = vst [vmem:[#allocation4 + $0xdc] sm:$0xf] %v12706_v37  ;;  %v4136_v48 = vld [vmem:[#allocation3 + $0x45] sm:$0xff]  ;;  %6660 = vmatprep.mubr.bf16.mxu1 %v14957_v22  ;;  %v13360_v37 = vadd.f32 %v13359_v63, %v13358_v32  ;;  %v13361_v6 = vpop.f32.mrf.mxu0  ;;  %v15872_v43 = vld [vmem:[#allocation4 + $0x70] sm:$0xff] }
 0x1f4   :  { %7464 = vst [vmem:[#allocation4] sm:$0xf] %v7432_v15  ;;  %7465 = vst [vmem:[#allocation4 + $0x1c] sm:$0xf] %v7433_v4  ;;  %v14961_v19 = vld [vmem:[#allocation4 + $0x8] ss:$28 sps:$4 sm:$0xff]   ;;  %v12735_v15 = vpack.c.bf16 %v4136_v48, %v4136_v48  ;;  %v12736_v4 = vpack.c.bf16 %v4137_v13, %v4137_v13  ;;  %6661 = vmatmul.mubr.bf16.vlgmr.msra.gmra.mxu1 %v11970_v53 }
 0x1f5   :  { %7528 = vst [vmem:[#allocation4 + $0x4] sm:$0xf] %v7496_v47  ;;  %7529 = vst [vmem:[#allocation4 + $0x20] sm:$0xf] %v7497_v23  ;;  %v15867_v47 = vld [vmem:[#allocation11 + $0x170] sm:$0xff]   ;;  %v4076_v23 = vunpack.c.l.bf16 %v15661_v33  ;;  %v4328_v18 = vld [vmem:[#allocation3 + $0x46] sm:$0xff]  ;;  %13667 = vmatpush3.bf16.msra.mxu1 %v15858_v42  ;;  %v2213_v55 = vadd.f32 %v13360_v37, %v15757_v12  ;;  %v12614_v42 = vpack.c.bf16 %v2369_v28, %v2369_v28  ;;  %v13362_v63 = vpop.f32.mrf.mxu0 }
 0x1f6   :  { %2652 = vst [vmem:[#allocation4 + $0xe0] sm:$0xf] %v12515_v49  ;;  %2844 = vst [vmem:[#allocation4 + $0xe4] sm:$0xf] %v12547_v29  ;;  %v14963_v14 = vld [vmem:[#allocation4 + $0xc] ss:$28 sps:$4 sm:$0xff]   ;;  %v12767_v29 = vpack.c.bf16 %v4328_v18, %v4328_v18  ;;  %13668 = vmatprep.subr.bf16.mxu1 %v15867_v47  ;;  %v4078_v47 = vunpack.c.l.bf16 %v15667_v62 }
 0x1f7   :  { %3036 = vst [vmem:[#allocation4 + $0xe8] sm:$0xf] %v12579_v44  ;;  %3230 = vst [vmem:[#allocation4 + $0x124] sm:$0xf] %v12613_v60  ;;  %v2493_v26 = vld [vmem:[#allocation3 + $0x8d] sm:$0xff]  ;;  %v15879_v33 = vld [vmem:[#allocation4 + $0x38] sm:$0xff]  ;;  %6821 = vmatprep.mubr.bf16.mxu0 %v14963_v14  ;;  %v2374_v18 = vadd.f32 %v2373_v8, %v2213_v55 }
 0x1f8   :  { %7592 = vst [vmem:[#allocation4 + $0x8] sm:$0xf] %v7560_v31  ;;  %7593 = vst [vmem:[#allocation4 + $0x24] sm:$0xf] %v7561_v35  ;;  %v2685_v61 = vld [vmem:[#allocation3 + $0x8e] sm:$0xff]  ;;  %v12516_v41 = vpack.c.bf16 %v2493_v26, %v2493_v26  ;;  %6822 = vmatmul.mubr.bf16.vlgmr.msra.gmra.mxu0 %v14961_v19  ;;  %v15886_v26 = vpop.f32.mrf.mxu1  ;;  %v13364_v19 = vpop.f32.mrf.mxu0 }
 0x1f9   :  { %v2877_v32 = vld [vmem:[#allocation3 + $0x8f] sm:$0xff]  ;;  %v7434_v34 = vld [vmem:[#allocation2 + $0x8] sm:$0xf]  ;;  %v7435_v31 = vld [vmem:[#allocation2 + $0xc] sm:$0xf]  ;;  %v12548_v3 = vpack.c.bf16 %v2685_v61, %v2685_v61  ;;  %2463 = vst [vmem:[#allocation3 + $0xb0] sm:$0xff] %v2369_v28  ;;  %13669 = vmatpush3.bf16.msra.mxu1 %v15874_v57 }
 0x1fa   :  { %v7498_v35 = vld [vmem:[#allocation2 + $0x10] sm:$0xf]  ;;  %v7499_v49 = vld [vmem:[#allocation2 + $0x14] sm:$0xf]  ;;  %4296 = vst [vmem:[#allocation4 + $0x70] sm:$0xf] %v12735_v15  ;;  %v12580_v22 = vpack.c.bf16 %v2877_v32, %v2877_v32 }
 0x1fb   :  { %4297 = vst [vmem:[#allocation4 + $0x8c] sm:$0xf] %v12736_v4  ;;  %v15882_v44 = vld [vmem:[#allocation11 + $0x168] sm:$0xff]   ;;  %v3261_v53 = vld [vmem:[#allocation3 + $0x91] sm:$0xff]  ;;  %4488 = vst [vmem:[#allocation4 + $0x74] sm:$0xf] %v12767_v29 }
 0x1fc   :  { %v3260_v60 = vld [vmem:[#allocation3 + $0x89] sm:$0xff]  ;;  %v15884_v48 = vld [vmem:[#allocation5 + $0x14] ss:$0 sps:$4 sm:$0xff]   ;;  %v12644_v17 = vpack.c.bf16 %v3261_v53, %v3261_v53  ;;  %2653 = vst [vmem:[#allocation4 + $0xfc] sm:$0xf] %v12516_v41  ;;  %v15427_v53 = vld [vmem:[#allocation11 + $0x1b8] sm:$0xff]   ;;  %13670 = vmatprep.subr.bf16.mxu1 %v15882_v44  ;;  %v4080_v44 = vunpack.c.l.bf16 %v15673_v10 }
 0x1fd   :  { %v3452_v45 = vld [vmem:[#allocation3 + $0x8a] sm:$0xff]  ;;  %v12643_v13 = vpack.c.bf16 %v3260_v60, %v3260_v60  ;;  %v3453_v12 = vld [vmem:[#allocation3 + $0x92] sm:$0xff]  ;;  %2845 = vst [vmem:[#allocation4 + $0x100] sm:$0xf] %v12548_v3  ;;  %3037 = vst [vmem:[#allocation4 + $0x104] sm:$0xf] %v12580_v22  ;;  %14571 = vmatpush3.bf16.msra.mxu0 %v15427_v53  ;;  %v12615_v3 = vpack.c.bf16 %v2374_v18, %v2374_v18 }
 0x1fe   :  { %v12675_v37 = vpack.c.bf16 %v3452_v45, %v3452_v45  ;;  %v3644_v15 = vld [vmem:[#allocation3 + $0x8b] sm:$0xff]  ;;  %v3645_v4 = vld [vmem:[#allocation3 + $0x93] sm:$0xff]  ;;  %v12676_v61 = vpack.c.bf16 %v3453_v12, %v3453_v12  ;;  %3231 = vst [vmem:[#allocation4 + $0x140] sm:$0xf] %v12614_v42  ;;  %v13363_v45 = vadd.f32 %v13362_v63, %v13361_v6  ;;  %3421 = vst [vmem:[#allocation4 + $0x10c] sm:$0xf] %v12644_v17  ;;  %v13365_v63 = vpop.f32.mrf.mxu0  ;;  %14572 = vmatprep.subr.bf16.mxu0 %v15876_v25 }
 0x1ff   :  { %v12707_v32 = vpack.c.bf16 %v3644_v15, %v3644_v15  ;;  %v12708_v40 = vpack.c.bf16 %v3645_v4, %v3645_v4  ;;  %4108 = vst [vmem:[#allocation3 + $0x88] sm:$0xff] %v4076_v23  ;;  %4109 = vst [vmem:[#allocation3 + $0x90] sm:$0xff] %v4077_v5  ;;  %v2494_v14 = vld [vmem:[#allocation3 + $0xa5] sm:$0xff]  ;;  %v5488_v5 = vld [vmem:[#allocation4 + $0x54] sm:$0xff]  ;;  %v13366_v57 = vadd.f32 %v13365_v63, %v13364_v19 }
 0x200   :  { %v2686_v28 = vld [vmem:[#allocation3 + $0xa6] sm:$0xff]  ;;  %3420 = vst [vmem:[#allocation4 + $0xf0] sm:$0xf] %v12643_v13  ;;  %3612 = vst [vmem:[#allocation4 + $0xf4] sm:$0xf] %v12675_v37  ;;  %v12517_v55 = vpack.c.bf16 %v2494_v14, %v2494_v14  ;;  %v11977_v17 = vcombine.low %v15879_v33, %v5488_v5  ;;  %v2216_v42 = vadd.f32 %v13363_v45, %v15759_v50  ;;  %v2376_v33 = vpop.f32.mrf.mxu1  ;;  %v15900_v50 = vld [vmem:[#allocation4 + $0x94] sm:$0xff]  ;;  %v13367_v4 = vpop.f32.mrf.mxu0 }
 0x201   :  { %v2878_v60 = vld [vmem:[#allocation3 + $0xa7] sm:$0xff]  ;;  %v12549_v29 = vpack.c.bf16 %v2686_v28, %v2686_v28  ;;  %v14967_v41 = vld [vmem:[#allocation4 + $0x3c] ss:$28 sps:$4 sm:$0xff]   ;;  %2464 = vst [vmem:[#allocation3 + $0xc8] sm:$0xff] %v2374_v18  ;;  %3613 = vst [vmem:[#allocation4 + $0x110] sm:$0xf] %v12676_v61  ;;  %14573 = vmatpush3.bf16.msra.mxu0 %v15876_v25 }
 0x202   :  { %v15888_v8 = vld [vmem:[#allocation11 + $0x128] sm:$0xff]   ;;  %v12581_v23 = vpack.c.bf16 %v2878_v60, %v2878_v60  ;;  %3804 = vst [vmem:[#allocation4 + $0xf8] sm:$0xf] %v12707_v32  ;;  %3805 = vst [vmem:[#allocation4 + $0x114] sm:$0xf] %v12708_v40  ;;  %6668 = vmatprep.mubr.bf16.mxu1 %v14967_v41  ;;  %v2377_v62 = vadd.f32 %v2376_v33, %v2216_v42  ;;  %v15907_v18 = vld [vmem:[#allocation11 + $0x160] sm:$0xff]  }
 0x203   :  { %7466 = vst [vmem:[#allocation4 + $0x38] sm:$0xf] %v7434_v34  ;;  %7467 = vst [vmem:[#allocation4 + $0x54] sm:$0xf] %v7435_v31  ;;  %v14971_v6 = vld [vmem:[#allocation4 + $0x44] ss:$28 sps:$4 sm:$0xff]   ;;  %6669 = vmatmul.mubr.bf16.gmra.mxu1 %v11977_v17 }
 0x204   :  { %7530 = vst [vmem:[#allocation4 + $0x3c] sm:$0xf] %v7498_v35  ;;  %7531 = vst [vmem:[#allocation4 + $0x58] sm:$0xf] %v7499_v49  ;;  %v14973_v22 = vld [vmem:[#allocation4 + $0x40] ss:$28 sps:$4 sm:$0xff]   ;;  %v4079_v49 = vunpack.c.l.bf16 %v15669_v0  ;;  %6829 = vmatprep.mubr.bf16.mxu0 %v14971_v6  ;;  %v2221_v0 = vadd.f32 %v13366_v57, %v15761_v27  ;;  %v12616_v41 = vpack.c.bf16 %v2377_v62, %v2377_v62  ;;  %13671 = vmatpush3.bf16.msra.mxu1 %v15888_v8  ;;  %v15924_v57 = vpop.f32.mrf.mxu1 }
 0x205   :  { %v15895_v13 = vld [vmem:[#allocation11 + $0x1a8] sm:$0xff]   ;;  %2654 = vst [vmem:[#allocation4 + $0x118] sm:$0xf] %v12517_v55  ;;  %2846 = vst [vmem:[#allocation4 + $0x11c] sm:$0xf] %v12549_v29  ;;  %v15909_v61 = vld [vmem:[#allocation11 + $0x1a0] sm:$0xff]   ;;  %6830 = vmatmul.mubr.bf16.gmra.mxu0 %v14973_v22  ;;  %13672 = vmatprep.subr.bf16.mxu1 %v15907_v18 }
 0x206   :  { %3038 = vst [vmem:[#allocation4 + $0x120] sm:$0xf] %v12581_v23  ;;  %3232 = vst [vmem:[#allocation4 + $0x15c] sm:$0xf] %v12615_v3  ;;  %v4329_v34 = vld [vmem:[#allocation3 + $0x4e] sm:$0xff]  ;;  %v15916_v45 = vld [vmem:[#allocation11 + $0x120] sm:$0xff]   ;;  %v13368_v3 = vpop.f32.mrf.mxu0  ;;  %14574 = vmatprep.subr.bf16.mxu0 %v15895_v13 }
 0x207   :  { %17463 = vst [vmem:[#allocation47_spill] sm:$0xff] %v15900_v50  ;;  %v4520_v31 = vld [vmem:[#allocation3 + $0x47] sm:$0xff]  ;;  %v12768_v12 = vpack.c.bf16 %v4329_v34, %v4329_v34  ;;  %v4521_v37 = vld [vmem:[#allocation3 + $0x4f] sm:$0xff]  ;;  %4873 = vst [vmem:[#allocation4 + $0x98] sm:$0xf] %v15884_v48  ;;  %14575 = vmatpush3.bf16.msra.mxu0 %v15895_v13 }
 0x208   :  { %v12799_v15 = vpack.c.bf16 %v4520_v31, %v4520_v31  ;;  %v2495_v32 = vld [vmem:[#allocation3 + $0xad] sm:$0xff]  ;;  %v12800_v60 = vpack.c.bf16 %v4521_v37, %v4521_v37  ;;  %v15914_v53 = vld [vmem:[#allocation5 + $0x18] ss:$0 sps:$4 sm:$0xff]   ;;  %2465 = vst [vmem:[#allocation3 + $0xd0] sm:$0xff] %v2377_v62  ;;  %v15918_v6 = vld [vmem:[#allocation5 + $0x1c] ss:$0 sps:$4 sm:$0xff]   ;;  %v2382_v31 = vadd.f32 %v15860_v20, %v2221_v0  ;;  %14576 = vmatprep.subr.bf16.mxu0 %v15909_v61 }
 0x209   :  { %v2687_v14 = vld [vmem:[#allocation3 + $0xae] sm:$0xff]  ;;  %v12518_v48 = vpack.c.bf16 %v2495_v32, %v2495_v32  ;;  %4489 = vst [vmem:[#allocation4 + $0x90] sm:$0xf] %v12768_v12  ;;  %v15921_v27 = vld [vmem:[#allocation11 + $0x158] sm:$0xff]   ;;  %v2496_v8 = vld [vmem:[#allocation3 + $0xc5] sm:$0xff]  ;;  %13673 = vmatpush3.bf16.msra.mxu1 %v15916_v45 }
 0x20a   :  { %v2879_v28 = vld [vmem:[#allocation3 + $0xaf] sm:$0xff]  ;;  %v12550_v19 = vpack.c.bf16 %v2687_v14, %v2687_v14  ;;  %4680 = vst [vmem:[#allocation4 + $0x78] sm:$0xf] %v12799_v15  ;;  %4681 = vst [vmem:[#allocation4 + $0x94] sm:$0xf] %v12800_v60  ;;  %v2688_v15 = vld [vmem:[#allocation3 + $0xc6] sm:$0xff]  ;;  %v13369_v14 = vadd.f32 %v13368_v3, %v13367_v4  ;;  %v12519_v20 = vpack.c.bf16 %v2496_v8, %v2496_v8  ;;  %13674 = vmatprep.subr.bf16.mxu1 %v15921_v27 }
 0x20b   :  { %v12582_v55 = vpack.c.bf16 %v2879_v28, %v2879_v28  ;;  %v3262_v29 = vld [vmem:[#allocation3 + $0xa9] sm:$0xff]  ;;  %v3263_v23 = vld [vmem:[#allocation3 + $0xb1] sm:$0xff]  ;;  %2655 = vst [vmem:[#allocation4 + $0x134] sm:$0xf] %v12518_v48  ;;  %3233 = vst [vmem:[#allocation4 + $0x178] sm:$0xf] %v12616_v41  ;;  %v13370_v28 = vpop.f32.mrf.mxu0  ;;  %v12551_v60 = vpack.c.bf16 %v2688_v15, %v2688_v15  ;;  %14577 = vmatpush3.bf16.msra.mxu0 %v15909_v61 }
 0x20c   :  { %v3454_v5 = vld [vmem:[#allocation3 + $0xaa] sm:$0xff]  ;;  %v12645_v25 = vpack.c.bf16 %v3262_v29, %v3262_v29  ;;  %v12646_v17 = vpack.c.bf16 %v3263_v23, %v3263_v23  ;;  %v3455_v42 = vld [vmem:[#allocation3 + $0xb2] sm:$0xff]  ;;  %2847 = vst [vmem:[#allocation4 + $0x138] sm:$0xf] %v12550_v19  ;;  %2466 = vst [vmem:[#allocation3 + $0xe8] sm:$0xff] %v2382_v31  ;;  %v4081_v29 = vunpack.c.l.bf16 %v15675_v11  ;;  %v2224_v23 = vadd.f32 %v13369_v14, %v15763_v24 }
 0x20d   :  { %v12677_v63 = vpack.c.bf16 %v3454_v5, %v3454_v5  ;;  %v3646_v33 = vld [vmem:[#allocation3 + $0xab] sm:$0xff]  ;;  %v3647_v34 = vld [vmem:[#allocation3 + $0xb3] sm:$0xff]  ;;  %v12678_v62 = vpack.c.bf16 %v3455_v42, %v3455_v42  ;;  %3039 = vst [vmem:[#allocation4 + $0x13c] sm:$0xf] %v12582_v55  ;;  %v13371_v42 = vpop.f32.mrf.mxu0  ;;  %2656 = vst [vmem:[#allocation4 + $0x150] sm:$0xf] %v12519_v20 }
 0x20e   :  { %v12709_v12 = vpack.c.bf16 %v3646_v33, %v3646_v33  ;;  %v12710_v37 = vpack.c.bf16 %v3647_v34, %v3647_v34  ;;  %4110 = vst [vmem:[#allocation3 + $0xa8] sm:$0xff] %v4078_v47  ;;  %4111 = vst [vmem:[#allocation3 + $0xb0] sm:$0xff] %v4079_v49  ;;  %v2880_v32 = vld [vmem:[#allocation3 + $0xc7] sm:$0xff]  ;;  %v15927_v22 = vld [vmem:[#allocation11 + $0x198] sm:$0xff]   ;;  %v12617_v49 = vpack.c.bf16 %v2382_v31, %v2382_v31 }
 0x20f   :  { %3422 = vst [vmem:[#allocation4 + $0x128] sm:$0xf] %v12645_v25  ;;  %3423 = vst [vmem:[#allocation4 + $0x144] sm:$0xf] %v12646_v17  ;;  %v12583_v47 = vpack.c.bf16 %v2880_v32, %v2880_v32  ;;  %v15929_v0 = vld [vmem:[#allocation4 + $0xa8] sm:$0xff]  ;;  %v15934_v4 = vld [vmem:[#allocation11 + $0x118] sm:$0xff]   ;;  %v2385_v32 = vadd.f32 %v15886_v26, %v2224_v23  ;;  %14578 = vmatprep.subr.bf16.mxu0 %v15927_v22 }
 0x210   :  { %3614 = vst [vmem:[#allocation4 + $0x12c] sm:$0xf] %v12677_v63  ;;  %v15931_v48 = vld [vmem:[#allocation4 + $0xc4] sm:$0xff]  ;;  %v4139_v55 = vld [vmem:[#allocation3 + $0x6d] sm:$0xff]  ;;  %3615 = vst [vmem:[#allocation4 + $0x148] sm:$0xf] %v12678_v62  ;;  %v2389_v63 = vpop.f32.mrf.mxu1  ;;  %13675 = vmatpush3.bf16.msra.mxu1 %v15934_v4  ;;  %14579 = vmatpush3.bf16.msra.mxu0 %v15927_v22 }
 0x211   :  { %v4138_v19 = vld [vmem:[#allocation3 + $0x65] sm:$0xff]  ;;  %3806 = vst [vmem:[#allocation4 + $0x130] sm:$0xf] %v12709_v12  ;;  %3807 = vst [vmem:[#allocation4 + $0x14c] sm:$0xf] %v12710_v37  ;;  %v12738_v41 = vpack.c.bf16 %v4139_v55, %v4139_v55  ;;  %v4331_v25 = vld [vmem:[#allocation3 + $0x6e] sm:$0xff]  ;;  %v13372_v12 = vadd.f32 %v13371_v42, %v13370_v28  ;;  %v12618_v42 = vpack.c.bf16 %v2385_v32, %v2385_v32 }
 0x212   :  { %v12737_v5 = vpack.c.bf16 %v4138_v19, %v4138_v19  ;;  %v4330_v3 = vld [vmem:[#allocation3 + $0x66] sm:$0xff]  ;;  %v15938_v17 = vld [vmem:[#allocation4 + $0xb0] sm:$0xff]  ;;  %2848 = vst [vmem:[#allocation4 + $0x154] sm:$0xf] %v12551_v60  ;;  %3040 = vst [vmem:[#allocation4 + $0x158] sm:$0xf] %v12583_v47  ;;  %v12770_v24 = vpack.c.bf16 %v4331_v25, %v4331_v25  ;;  %v13373_v60 = vpop.f32.mrf.mxu0 }
 0x213   :  { %17464 = vst [vmem:[#allocation48_spill] sm:$0xff] %v15938_v17  ;;  %v15942_v13 = vld [vmem:[#allocation11 + $0x150] sm:$0xff]   ;;  %3234 = vst [vmem:[#allocation4 + $0x194] sm:$0xf] %v12617_v49  ;;  %v12769_v33 = vpack.c.bf16 %v4330_v3, %v4330_v3  ;;  %v4522_v31 = vld [vmem:[#allocation3 + $0x67] sm:$0xff]  ;;  %v2229_v55 = vadd.f32 %v13372_v12, %v15765_v9 }
 0x214   :  { %v15944_v34 = vld [vmem:[#allocation4 + $0xcc] sm:$0xff]  ;;  %4874 = vst [vmem:[#allocation4 + $0xb4] sm:$0xf] %v15914_v53  ;;  %v7436_v8 = vld [vmem:[#allocation2 + $0x10] sm:$0xf]  ;;  %v12801_v14 = vpack.c.bf16 %v4522_v31, %v4522_v31  ;;  %2467 = vst [vmem:[#allocation3 + $0xf0] sm:$0xff] %v2385_v32  ;;  %v13374_v31 = vpop.f32.mrf.mxu0  ;;  %13676 = vmatprep.subr.bf16.mxu1 %v15942_v13 }
 0x215   :  { %17465 = vst [vmem:[#allocation49_spill] sm:$0xff] %v15944_v34  ;;  %v4523_v62 = vld [vmem:[#allocation3 + $0x6f] sm:$0xff]  ;;  %v7437_v15 = vld [vmem:[#allocation2 + $0x14] sm:$0xf]  ;;  %4298 = vst [vmem:[#allocation4 + $0xa8] sm:$0xf] %v12737_v5  ;;  %v2390_v61 = vadd.f32 %v2389_v63, %v2229_v55  ;;  %v13375_v55 = vadd.f32 %v13374_v31, %v13373_v60  ;;  %v4082_v60 = vunpack.c.l.bf16 %v15679_v36 }
 0x216   :  { %v15950_v37 = vld [vmem:[#allocation4 + $0x70] sm:$0xff]  ;;  %4299 = vst [vmem:[#allocation4 + $0xc4] sm:$0xf] %v12738_v41  ;;  %v12802_v20 = vpack.c.bf16 %v4523_v62, %v4523_v62  ;;  %4875 = vst [vmem:[#allocation4 + $0xd0] sm:$0xf] %v15918_v6  ;;  %v15954_v53 = vld [vmem:[#allocation4 + $0xe0] sm:$0xff] }
 0x217   :  { %17466 = vst [vmem:[#allocation50_spill] sm:$0xff] %v15954_v53  ;;  %v4140_v28 = vld [vmem:[#allocation3 + $0x85] sm:$0xff]  ;;  %v15957_v45 = vld [vmem:[#allocation11 + $0x190] sm:$0xff]   ;;  %4490 = vst [vmem:[#allocation4 + $0xac] sm:$0xf] %v12769_v33  ;;  %v12619_v4 = vpack.c.bf16 %v2390_v61, %v2390_v61 }
 0x218   :  { %v2497_v49 = vld [vmem:[#allocation3 + $0xcd] sm:$0xff]  ;;  %4491 = vst [vmem:[#allocation4 + $0xc8] sm:$0xf] %v12770_v24  ;;  %v12739_v23 = vpack.c.bf16 %v4140_v28, %v4140_v28  ;;  %4682 = vst [vmem:[#allocation4 + $0xb0] sm:$0xf] %v12801_v14  ;;  %14580 = vmatprep.subr.bf16.mxu0 %v15957_v45  ;;  %v17514_v40 = vld [vmem:[#allocation31_spill] sm:$0xff] }
 0x219   :  { %v2689_v19 = vld [vmem:[#allocation3 + $0xce] sm:$0xff]  ;;  %v12520_v6 = vpack.c.bf16 %v2497_v49, %v2497_v49  ;;  %4683 = vst [vmem:[#allocation4 + $0xcc] sm:$0xf] %v12802_v20  ;;  %v15964_v49 = vpop.f32.mrf.mxu1  ;;  %3235 = vst [vmem:[#allocation4 + $0x1b0] sm:$0xf] %v12618_v42  ;;  %v4332_v42 = vld [vmem:[#allocation3 + $0x86] sm:$0xff]  ;;  %14581 = vmatpush3.bf16.msra.mxu0 %v15957_v45 }
 0x21a   :  { %v2881_v26 = vld [vmem:[#allocation3 + $0xcf] sm:$0xff]  ;;  %v12552_v5 = vpack.c.bf16 %v2689_v19, %v2689_v19  ;;  %4300 = vst [vmem:[#allocation4 + $0xe0] sm:$0xf] %v12739_v23  ;;  %v13376_v23 = vpop.f32.mrf.mxu0  ;;  %7468 = vst [vmem:[#allocation4 + $0x70] sm:$0xf] %v7436_v8  ;;  %v2882_v8 = vld [vmem:[#allocation3 + $0xe7] sm:$0xff] }
 0x21b   :  { %v12584_v41 = vpack.c.bf16 %v2881_v26, %v2881_v26  ;;  %v3264_v3 = vld [vmem:[#allocation3 + $0xc9] sm:$0xff]  ;;  %v3265_v27 = vld [vmem:[#allocation3 + $0xd1] sm:$0xff]  ;;  %2657 = vst [vmem:[#allocation4 + $0x16c] sm:$0xf] %v12520_v6  ;;  %2468 = vst [vmem:[#allocation3 + $0x108] sm:$0xff] %v2390_v61  ;;  %v12585_v22 = vpack.c.bf16 %v2882_v8, %v2882_v8 }
 0x21c   :  { %v3456_v25 = vld [vmem:[#allocation3 + $0xca] sm:$0xff]  ;;  %v12647_v33 = vpack.c.bf16 %v3264_v3, %v3264_v3  ;;  %v12648_v24 = vpack.c.bf16 %v3265_v27, %v3265_v27  ;;  %v3457_v62 = vld [vmem:[#allocation3 + $0xd2] sm:$0xff]  ;;  %2849 = vst [vmem:[#allocation4 + $0x170] sm:$0xf] %v12552_v5  ;;  %v2232_v5 = vadd.f32 %v13375_v55, %v15767_v21  ;;  %3236 = vst [vmem:[#allocation4 + $0x1cc] sm:$0xf] %v12619_v4  ;;  %v2392_v27 = vpop.f32.mrf.mxu1 }
 0x21d   :  { %v12679_v9 = vpack.c.bf16 %v3456_v25, %v3456_v25  ;;  %v3648_v12 = vld [vmem:[#allocation3 + $0xcb] sm:$0xff]  ;;  %v3649_v28 = vld [vmem:[#allocation3 + $0xd3] sm:$0xff]  ;;  %v12680_v32 = vpack.c.bf16 %v3457_v62, %v3457_v62  ;;  %3041 = vst [vmem:[#allocation4 + $0x174] sm:$0xf] %v12584_v41  ;;  %v13377_v41 = vpop.f32.mrf.mxu0  ;;  %3042 = vst [vmem:[#allocation4 + $0x190] sm:$0xf] %v12585_v22 }
 0x21e   :  { %v15967_v19 = vld [vmem:[#allocation11 + $0x110] sm:$0xff]   ;;  %v12711_v14 = vpack.c.bf16 %v3648_v12, %v3648_v12  ;;  %v12712_v20 = vpack.c.bf16 %v3649_v28, %v3649_v28  ;;  %4112 = vst [vmem:[#allocation3 + $0xc8] sm:$0xff] %v4080_v44  ;;  %4113 = vst [vmem:[#allocation3 + $0xd0] sm:$0xff] %v4081_v29  ;;  %v14978_v10 = vld [vmem:[#allocation4 + $0x7c] ss:$28 sps:$4 sm:$0xff]  }
 0x21f   :  { %v5496_v63 = vld [vmem:[#allocation4 + $0x8c] sm:$0xff]  ;;  %3424 = vst [vmem:[#allocation4 + $0x160] sm:$0xf] %v12647_v33  ;;  %3425 = vst [vmem:[#allocation4 + $0x17c] sm:$0xf] %v12648_v24  ;;  %v15975_v29 = vld [vmem:[#allocation4 + $0xfc] sm:$0xff]  ;;  %6837 = vmatprep.mubr.bf16.mxu0 %v14978_v10  ;;  %v13378_v33 = vadd.f32 %v13377_v41, %v13376_v23  ;;  %v13379_v61 = vpop.f32.mrf.mxu0  ;;  %13677 = vmatpush3.bf16.msra.mxu1 %v15967_v19 }
 0x220   :  { %v14974_v26 = vld [vmem:[#allocation4 + $0x74] ss:$28 sps:$4 sm:$0xff]   ;;  %3616 = vst [vmem:[#allocation4 + $0x164] sm:$0xf] %v12679_v9  ;;  %7469 = vst [vmem:[#allocation4 + $0x8c] sm:$0xf] %v7437_v15  ;;  %v11984_v11 = vcombine.low %v15950_v37, %v5496_v63  ;;  %v4083_v37 = vunpack.c.l.bf16 %v15681_v39  ;;  %v2393_v9 = vadd.f32 %v2392_v27, %v2232_v5  ;;  %v12771_v39 = vpack.c.bf16 %v4332_v42, %v4332_v42  ;;  %v15992_v27 = vpop.f32.mrf.mxu1 }
 0x221   :  { %v2498_v44 = vld [vmem:[#allocation3 + $0xe5] sm:$0xff]  ;;  %3617 = vst [vmem:[#allocation4 + $0x180] sm:$0xf] %v12680_v32  ;;  %3808 = vst [vmem:[#allocation4 + $0x168] sm:$0xf] %v12711_v14  ;;  %6676 = vmatprep.mubr.bf16.mxu1 %v14974_v26  ;;  %v4141_v25 = vld [vmem:[#allocation3 + $0x8d] sm:$0xff]  ;;  %v2237_v23 = vadd.f32 %v13378_v33, %v15769_v1 }
 0x222   :  { %3809 = vst [vmem:[#allocation4 + $0x184] sm:$0xf] %v12712_v20  ;;  %v12521_v13 = vpack.c.bf16 %v2498_v44, %v2498_v44  ;;  %v2690_v6 = vld [vmem:[#allocation3 + $0xe6] sm:$0xff]  ;;  %v14980_v15 = vld [vmem:[#allocation4 + $0x78] ss:$28 sps:$4 sm:$0xff]   ;;  %6677 = vmatmul.mubr.bf16.gmra.mxu1 %v11984_v11  ;;  %v12740_v12 = vpack.c.bf16 %v4141_v25, %v4141_v25  ;;  %2469 = vst [vmem:[#allocation3 + $0x110] sm:$0xff] %v2393_v9  ;;  %v12620_v8 = vpack.c.bf16 %v2393_v9, %v2393_v9 }
 0x223   :  { %v12553_v3 = vpack.c.bf16 %v2690_v6, %v2690_v6  ;;  %v4333_v31 = vld [vmem:[#allocation3 + $0x8e] sm:$0xff]  ;;  %6838 = vmatmul.mubr.bf16.gmra.mxu0 %v14980_v15  ;;  %v15984_v21 = vld [vmem:[#allocation4 + $0xc4] sm:$0xff]  ;;  %v14993_v26 = vld [vmem:[#allocation5 + $0x20] ss:$0 sps:$4 sm:$0xff]   ;;  %4492 = vst [vmem:[#allocation4 + $0xe4] sm:$0xf] %v12771_v39  ;;  %v13380_v15 = vpop.f32.mrf.mxu0  ;;  %v2398_v45 = vadd.f32 %v15924_v57, %v2237_v23 }
 0x224   :  { %2658 = vst [vmem:[#allocation4 + $0x188] sm:$0xf] %v12521_v13  ;;  %v15982_v24 = vld [vmem:[#allocation4 + $0xa8] sm:$0xff]  ;;  %v12772_v28 = vpack.c.bf16 %v4333_v31, %v4333_v31  ;;  %v14994_v55 = vld [vmem:[#allocation5 + $0x24] ss:$0 sps:$4 sm:$0xff]   ;;  %v3267_v13 = vld [vmem:[#allocation3 + $0xf1] sm:$0xff] }
 0x225   :  { %v14984_v62 = vld [vmem:[#allocation4 + $0xac] ss:$28 sps:$4 sm:$0xff]   ;;  %2850 = vst [vmem:[#allocation4 + $0x18c] sm:$0xf] %v12553_v3  ;;  %v11991_v63 = vcombine.low %v15982_v24, %v15984_v21  ;;  %4301 = vst [vmem:[#allocation4 + $0xfc] sm:$0xf] %v12740_v12  ;;  %v12650_v41 = vpack.c.bf16 %v3267_v13, %v3267_v13  ;;  %v13381_v24 = vadd.f32 %v13380_v15, %v13379_v61  ;;  %v13382_v21 = vpop.f32.mrf.mxu0 }
 0x226   :  { %v2499_v32 = vld [vmem:[#allocation3 + $0xed] sm:$0xff]  ;;  %6684 = vmatprep.mubr.bf16.mxu1 %v14984_v62  ;;  %4493 = vst [vmem:[#allocation4 + $0x100] sm:$0xf] %v12772_v28  ;;  %3237 = vst [vmem:[#allocation4 + $0x1e8] sm:$0xf] %v12620_v8  ;;  %v2500_v57 = vld [vmem:[#allocation3 + $0x105] sm:$0xff]  ;;  %v12621_v12 = vpack.c.bf16 %v2398_v45, %v2398_v45 }
 0x227   :  { %v2691_v14 = vld [vmem:[#allocation3 + $0xee] sm:$0xff]  ;;  %v12522_v10 = vpack.c.bf16 %v2499_v32, %v2499_v32  ;;  %3427 = vst [vmem:[#allocation4 + $0x1b4] sm:$0xf] %v12650_v41  ;;  %v2692_v62 = vld [vmem:[#allocation3 + $0x106] sm:$0xff]  ;;  %2470 = vst [vmem:[#allocation3 + $0x128] sm:$0xff] %v2398_v45  ;;  %v12523_v36 = vpack.c.bf16 %v2500_v57, %v2500_v57  ;;  %v2240_v32 = vadd.f32 %v13381_v24, %v15771_v46 }
 0x228   :  { %v2883_v20 = vld [vmem:[#allocation3 + $0xef] sm:$0xff]  ;;  %v12554_v44 = vpack.c.bf16 %v2691_v14, %v2691_v14  ;;  %v2884_v9 = vld [vmem:[#allocation3 + $0x107] sm:$0xff]  ;;  %v13383_v14 = vpop.f32.mrf.mxu0  ;;  %3238 = vst [vmem:[#allocation4 + $0x204] sm:$0xf] %v12621_v12  ;;  %v16004_v8 = vld [vmem:[#allocation4 + $0x118] sm:$0xff] }
 0x229   :  { %v12586_v11 = vpack.c.bf16 %v2883_v20, %v2883_v20  ;;  %v3266_v4 = vld [vmem:[#allocation3 + $0xe9] sm:$0xff]  ;;  %v3459_v1 = vld [vmem:[#allocation3 + $0xf2] sm:$0xff]  ;;  %2659 = vst [vmem:[#allocation4 + $0x1a4] sm:$0xf] %v12522_v10  ;;  %v4084_v20 = vunpack.c.l.bf16 %v15685_v51  ;;  %2660 = vst [vmem:[#allocation4 + $0x1c0] sm:$0xf] %v12523_v36  ;;  %v2401_v46 = vadd.f32 %v15964_v49, %v2240_v32 }
 0x22a   :  { %v3458_v6 = vld [vmem:[#allocation3 + $0xea] sm:$0xff]  ;;  %v12649_v5 = vpack.c.bf16 %v3266_v4, %v3266_v4  ;;  %v3651_v22 = vld [vmem:[#allocation3 + $0xf3] sm:$0xff]  ;;  %v12682_v25 = vpack.c.bf16 %v3459_v1, %v3459_v1  ;;  %2851 = vst [vmem:[#allocation4 + $0x1a8] sm:$0xf] %v12554_v44  ;;  %6685 = vmatmul.mubr.bf16.gmra.mxu1 %v11991_v63  ;;  %v2405_v44 = vpop.f32.mrf.mxu1  ;;  %v4085_v4 = vunpack.c.l.bf16 %v15687_v52  ;;  %17469 = vst [vmem:[#allocation53_spill] sm:$0xff] %v16004_v8 }
 0x22b   :  { %v12681_v3 = vpack.c.bf16 %v3458_v6, %v3458_v6  ;;  %v3650_v19 = vld [vmem:[#allocation3 + $0xeb] sm:$0xff]  ;;  %v12714_v31 = vpack.c.bf16 %v3651_v22, %v3651_v22  ;;  %3043 = vst [vmem:[#allocation4 + $0x1ac] sm:$0xf] %v12586_v11  ;;  %v13384_v11 = vadd.f32 %v13383_v14, %v13382_v21  ;;  %v16006_v51 = vld [vmem:[#allocation4 + $0x134] sm:$0xff]  ;;  %2471 = vst [vmem:[#allocation3 + $0x130] sm:$0xff] %v2401_v46 }
 0x22c   :  { %v12713_v42 = vpack.c.bf16 %v3650_v19, %v3650_v19  ;;  %4114 = vst [vmem:[#allocation3 + $0xe8] sm:$0xff] %v4082_v60  ;;  %4115 = vst [vmem:[#allocation3 + $0xf0] sm:$0xff] %v4083_v37  ;;  %v14988_v33 = vld [vmem:[#allocation4 + $0xb4] ss:$28 sps:$4 sm:$0xff]   ;;  %v12555_v60 = vpack.c.bf16 %v2692_v62, %v2692_v62  ;;  %v12587_v37 = vpack.c.bf16 %v2884_v9, %v2884_v9  ;;  %v15996_v28 = vld [vmem:[#allocation4 + $0xe8] sm:$0xff] }
 0x22d   :  { %3426 = vst [vmem:[#allocation4 + $0x198] sm:$0xf] %v12649_v5  ;;  %3618 = vst [vmem:[#allocation4 + $0x19c] sm:$0xf] %v12681_v3  ;;  %6845 = vmatprep.mubr.bf16.mxu0 %v14988_v33  ;;  %v14990_v39 = vld [vmem:[#allocation4 + $0xb0] ss:$28 sps:$4 sm:$0xff]   ;;  %v2245_v19 = vadd.f32 %v13384_v11, %v15773_v54  ;;  %v12622_v33 = vpack.c.bf16 %v2401_v46, %v2401_v46 }
 0x22e   :  { %3619 = vst [vmem:[#allocation4 + $0x1b8] sm:$0xf] %v12682_v25  ;;  %3810 = vst [vmem:[#allocation4 + $0x1a0] sm:$0xf] %v12713_v42  ;;  %v15998_v61 = vld [vmem:[#allocation4 + $0x104] sm:$0xff]  ;;  %v4525_v10 = vld [vmem:[#allocation3 + $0x8f] sm:$0xff]  ;;  %6846 = vmatmul.mubr.bf16.gmra.mxu0 %v14990_v39 }
 0x22f   :  { %3811 = vst [vmem:[#allocation4 + $0x1bc] sm:$0xf] %v12714_v31  ;;  %17467 = vst [vmem:[#allocation51_spill] sm:$0xff] %v15996_v28  ;;  %v4524_v23 = vld [vmem:[#allocation3 + $0x87] sm:$0xff]  ;;  %v12804_v6 = vpack.c.bf16 %v4525_v10, %v4525_v10  ;;  %v2885_v41 = vld [vmem:[#allocation3 + $0x10f] sm:$0xff]  ;;  %v2406_v54 = vadd.f32 %v2405_v44, %v2245_v19 }
 0x230   :  { %17468 = vst [vmem:[#allocation52_spill] sm:$0xff] %v15998_v61  ;;  %4876 = vst [vmem:[#allocation4 + $0xec] sm:$0xf] %v14993_v26  ;;  %v12803_v13 = vpack.c.bf16 %v4524_v23, %v4524_v23  ;;  %v4142_v63 = vld [vmem:[#allocation3 + $0xa5] sm:$0xff]  ;;  %v4143_v26 = vld [vmem:[#allocation3 + $0xad] sm:$0xff]  ;;  %v12588_v25 = vpack.c.bf16 %v2885_v41, %v2885_v41 }
 0x231   :  { %4877 = vst [vmem:[#allocation4 + $0x108] sm:$0xf] %v14994_v55  ;;  %2852 = vst [vmem:[#allocation4 + $0x1c4] sm:$0xf] %v12555_v60  ;;  %v13385_v55 = vpop.f32.mrf.mxu0  ;;  %v2501_v15 = vld [vmem:[#allocation3 + $0x10d] sm:$0xff]  ;;  %v12741_v1 = vpack.c.bf16 %v4142_v63, %v4142_v63  ;;  %v12742_v52 = vpack.c.bf16 %v4143_v26, %v4143_v26  ;;  %v5508_v23 = vld [vmem:[#allocation4 + $0xe0] sm:$0xff] }
 0x232   :  { %3044 = vst [vmem:[#allocation4 + $0x1c8] sm:$0xf] %v12587_v37  ;;  %17470 = vst [vmem:[#allocation54_spill] sm:$0xff] %v16006_v51  ;;  %v2693_v5 = vld [vmem:[#allocation3 + $0x10e] sm:$0xff]  ;;  %v16008_v3 = vld [vmem:[#allocation5 + $0x28] ss:$0 sps:$4 sm:$0xff]   ;;  %v12524_v22 = vpack.c.bf16 %v2501_v15, %v2501_v15  ;;  %v16011_v37 = vpop.f32.mrf.mxu1  ;;  %v12623_v15 = vpack.c.bf16 %v2406_v54, %v2406_v54 }
 0x233   :  { %v12556_v45 = vpack.c.bf16 %v2693_v5, %v2693_v5  ;;  %v3268_v49 = vld [vmem:[#allocation3 + $0x109] sm:$0xff]  ;;  %v3269_v42 = vld [vmem:[#allocation3 + $0x111] sm:$0xff]  ;;  %4684 = vst [vmem:[#allocation4 + $0xe8] sm:$0xf] %v12803_v13  ;;  %4685 = vst [vmem:[#allocation4 + $0x104] sm:$0xf] %v12804_v6  ;;  %v13386_v21 = vpop.f32.mrf.mxu0 }
 0x234   :  { %v3460_v31 = vld [vmem:[#allocation3 + $0x10a] sm:$0xff]  ;;  %v12651_v57 = vpack.c.bf16 %v3268_v49, %v3268_v49  ;;  %v12652_v62 = vpack.c.bf16 %v3269_v42, %v3269_v42  ;;  %v3461_v9 = vld [vmem:[#allocation3 + $0x112] sm:$0xff]  ;;  %4302 = vst [vmem:[#allocation4 + $0x118] sm:$0xf] %v12741_v1  ;;  %4303 = vst [vmem:[#allocation4 + $0x134] sm:$0xf] %v12742_v52  ;;  %v13387_v13 = vadd.f32 %v13386_v21, %v13385_v55 }
 0x235   :  { %v15004_v24 = vld [vmem:[#allocation5 + $0x2c] ss:$0 sps:$4 sm:$0xff]   ;;  %v12683_v12 = vpack.c.bf16 %v3460_v31, %v3460_v31  ;;  %v3653_v60 = vld [vmem:[#allocation3 + $0x113] sm:$0xff]  ;;  %v12684_v39 = vpack.c.bf16 %v3461_v9, %v3461_v9  ;;  %2661 = vst [vmem:[#allocation4 + $0x1dc] sm:$0xf] %v12524_v22  ;;  %v5512_v10 = vld [vmem:[#allocation4 + $0xfc] sm:$0xff]  ;;  %v13388_v6 = vpop.f32.mrf.mxu0 }
 0x236   :  { %v3652_v36 = vld [vmem:[#allocation3 + $0x10b] sm:$0xff]  ;;  %v12716_v14 = vpack.c.bf16 %v3653_v60, %v3653_v60  ;;  %2853 = vst [vmem:[#allocation4 + $0x1e0] sm:$0xf] %v12556_v45  ;;  %3045 = vst [vmem:[#allocation4 + $0x1e4] sm:$0xf] %v12588_v25  ;;  %v11998_v26 = vcombine.low %v5508_v23, %v5512_v10  ;;  %v16013_v55 = vld [vmem:[#allocation4 + $0x120] sm:$0xff] }
 0x237   :  { %v12715_v32 = vpack.c.bf16 %v3652_v36, %v3652_v36  ;;  %4116 = vst [vmem:[#allocation3 + $0x108] sm:$0xff] %v4084_v20  ;;  %4117 = vst [vmem:[#allocation3 + $0x110] sm:$0xff] %v4085_v4  ;;  %v14991_v11 = vld [vmem:[#allocation4 + $0xe4] ss:$28 sps:$4 sm:$0xff]   ;;  %v4335_v1 = vld [vmem:[#allocation3 + $0xae] sm:$0xff]  ;;  %v13389_v22 = vpop.f32.mrf.mxu0 }
 0x238   :  { %3239 = vst [vmem:[#allocation4 + $0x220] sm:$0xf] %v12622_v33  ;;  %3428 = vst [vmem:[#allocation4 + $0x1d0] sm:$0xf] %v12651_v57  ;;  %v2502_v44 = vld [vmem:[#allocation3 + $0x125] sm:$0xff]  ;;  %6692 = vmatprep.mubr.bf16.mxu1 %v14991_v11  ;;  %v17472_v52 = vld [vmem:[#allocation33_spill] sm:$0xff]  ;;  %v12774_v25 = vpack.c.bf16 %v4335_v1, %v4335_v1  ;;  %v2408_v33 = vpop.f32.mrf.mxu1  ;;  %v13390_v21 = vadd.f32 %v13389_v22, %v13388_v6 }
 0x239   :  { %3429 = vst [vmem:[#allocation4 + $0x1ec] sm:$0xf] %v12652_v62  ;;  %3620 = vst [vmem:[#allocation4 + $0x1d4] sm:$0xf] %v12683_v12  ;;  %v2694_v46 = vld [vmem:[#allocation3 + $0x126] sm:$0xff]  ;;  %v12525_v20 = vpack.c.bf16 %v2502_v44, %v2502_v44  ;;  %v2248_v19 = vadd.f32 %v13387_v13, %v17472_v52  ;;  %6693 = vmatmul.mubr.bf16.gmra.mxu1 %v11998_v26  ;;  %v16016_v49 = vld [vmem:[#allocation4 + $0x13c] sm:$0xff]  ;;  %v13391_v60 = vpop.f32.mrf.mxu0 }
 0x23a   :  { %v2886_v63 = vld [vmem:[#allocation3 + $0x127] sm:$0xff]  ;;  %2472 = vst [vmem:[#allocation3 + $0x148] sm:$0xff] %v2406_v54  ;;  %3621 = vst [vmem:[#allocation4 + $0x1f0] sm:$0xf] %v12684_v39  ;;  %v12557_v4 = vpack.c.bf16 %v2694_v46, %v2694_v46  ;;  %v4527_v31 = vld [vmem:[#allocation3 + $0xaf] sm:$0xff] }
 0x23b   :  { %3812 = vst [vmem:[#allocation4 + $0x1d8] sm:$0xf] %v12715_v32  ;;  %3813 = vst [vmem:[#allocation4 + $0x1f4] sm:$0xf] %v12716_v14  ;;  %v12589_v5 = vpack.c.bf16 %v2886_v63, %v2886_v63  ;;  %v4334_v41 = vld [vmem:[#allocation3 + $0xa6] sm:$0xff]  ;;  %v12806_v62 = vpack.c.bf16 %v4527_v31, %v4527_v31  ;;  %v2409_v9 = vadd.f32 %v2408_v33, %v2248_v19  ;;  %v16019_v12 = vld [vmem:[#allocation4 + $0x150] sm:$0xff]  ;;  %v13392_v26 = vpop.f32.mrf.mxu0  ;;  %v16029_v19 = vpop.f32.mrf.mxu1 }
 0x23c   :  { %17471 = vst [vmem:[#allocation55_spill] sm:$0xff] %v16013_v55  ;;  %v12773_v45 = vpack.c.bf16 %v4334_v41, %v4334_v41  ;;  %17473 = vst [vmem:[#allocation33_spill] sm:$0xff] %v16016_v49  ;;  %v4526_v42 = vld [vmem:[#allocation3 + $0xa7] sm:$0xff]  ;;  %v17476_v14 = vld [vmem:[#allocation34_spill] sm:$0xff]  ;;  %v13393_v52 = vadd.f32 %v13392_v26, %v13391_v60 }
 0x23d   :  { %4878 = vst [vmem:[#allocation4 + $0x124] sm:$0xf] %v16008_v3  ;;  %3240 = vst [vmem:[#allocation4 + $0x23c] sm:$0xf] %v12623_v15  ;;  %v12805_v57 = vpack.c.bf16 %v4526_v42, %v4526_v42  ;;  %v4144_v36 = vld [vmem:[#allocation3 + $0xc5] sm:$0xff]  ;;  %v2253_v23 = vadd.f32 %v13390_v21, %v17476_v14  ;;  %v2503_v6 = vld [vmem:[#allocation3 + $0x12d] sm:$0xff] }
 0x23e   :  { %2662 = vst [vmem:[#allocation4 + $0x1f8] sm:$0xf] %v12525_v20  ;;  %2854 = vst [vmem:[#allocation4 + $0x1fc] sm:$0xf] %v12557_v4  ;;  %v17475_v54 = vld [vmem:[#allocation19_spill] sm:$0xff]  ;;  %v12743_v3 = vpack.c.bf16 %v4144_v36, %v4144_v36  ;;  %v17477_v10 = vld [vmem:[#allocation20_spill] sm:$0xff]  ;;  %v12526_v15 = vpack.c.bf16 %v2503_v6, %v2503_v6 }
 0x23f   :  { %3046 = vst [vmem:[#allocation4 + $0x200] sm:$0xf] %v12589_v5  ;;  %4879 = vst [vmem:[#allocation4 + $0x140] sm:$0xf] %v15004_v24  ;;  %v4086_v39 = vunpack.c.l.bf16 %v17475_v54  ;;  %v14995_v32 = vld [vmem:[#allocation4 + $0xec] ss:$28 sps:$4 sm:$0xff]   ;;  %v4087_v11 = vunpack.c.l.bf16 %v17477_v10  ;;  %v12624_v24 = vpack.c.bf16 %v2409_v9, %v2409_v9  ;;  %v2414_v1 = vadd.f32 %v15992_v27, %v2253_v23 }
 0x240   :  { %17474 = vst [vmem:[#allocation56_spill] sm:$0xff] %v16019_v12  ;;  %4494 = vst [vmem:[#allocation4 + $0x11c] sm:$0xf] %v12773_v45  ;;  %v14997_v13 = vld [vmem:[#allocation4 + $0xe8] ss:$28 sps:$4 sm:$0xff]   ;;  %v2695_v44 = vld [vmem:[#allocation3 + $0x12e] sm:$0xff]  ;;  %6853 = vmatprep.mubr.bf16.mxu0 %v14995_v32 }
 0x241   :  { %4495 = vst [vmem:[#allocation4 + $0x138] sm:$0xf] %v12774_v25  ;;  %4686 = vst [vmem:[#allocation4 + $0x120] sm:$0xf] %v12805_v57  ;;  %v16024_v46 = vld [vmem:[#allocation5 + $0x30] ss:$0 sps:$4 sm:$0xff]   ;;  %v12558_v20 = vpack.c.bf16 %v2695_v44, %v2695_v44  ;;  %6854 = vmatmul.mubr.bf16.gmra.mxu0 %v14997_v13  ;;  %v13394_v57 = vpop.f32.mrf.mxu0  ;;  %v12625_v32 = vpack.c.bf16 %v2414_v1, %v2414_v1 }
 0x242   :  { %4687 = vst [vmem:[#allocation4 + $0x13c] sm:$0xf] %v12806_v62  ;;  %2473 = vst [vmem:[#allocation3 + $0x150] sm:$0xff] %v2409_v9  ;;  %v16026_v63 = vld [vmem:[#allocation5 + $0x34] ss:$0 sps:$4 sm:$0xff]   ;;  %v3270_v5 = vld [vmem:[#allocation3 + $0x129] sm:$0xff] }
 0x243   :  { %v2887_v4 = vld [vmem:[#allocation3 + $0x12f] sm:$0xff]  ;;  %4304 = vst [vmem:[#allocation4 + $0x150] sm:$0xf] %v12743_v3  ;;  %v12653_v45 = vpack.c.bf16 %v3270_v5, %v3270_v5  ;;  %3241 = vst [vmem:[#allocation4 + $0x258] sm:$0xf] %v12624_v24  ;;  %v2504_v27 = vld [vmem:[#allocation3 + $0x145] sm:$0xff]  ;;  %v13395_v26 = vpop.f32.mrf.mxu0 }
 0x244   :  { %v3271_v41 = vld [vmem:[#allocation3 + $0x131] sm:$0xff]  ;;  %v12590_v22 = vpack.c.bf16 %v2887_v4, %v2887_v4  ;;  %2663 = vst [vmem:[#allocation4 + $0x214] sm:$0xf] %v12526_v15  ;;  %2855 = vst [vmem:[#allocation4 + $0x218] sm:$0xf] %v12558_v20  ;;  %v2696_v60 = vld [vmem:[#allocation3 + $0x146] sm:$0xff]  ;;  %v12527_v14 = vpack.c.bf16 %v2504_v27, %v2504_v27 }
 0x245   :  { %v12654_v25 = vpack.c.bf16 %v3271_v41, %v3271_v41  ;;  %v3462_v42 = vld [vmem:[#allocation3 + $0x12a] sm:$0xff]  ;;  %v3463_v31 = vld [vmem:[#allocation3 + $0x132] sm:$0xff]  ;;  %2474 = vst [vmem:[#allocation3 + $0x168] sm:$0xff] %v2414_v1  ;;  %3430 = vst [vmem:[#allocation4 + $0x208] sm:$0xf] %v12653_v45  ;;  %v12559_v23 = vpack.c.bf16 %v2696_v60, %v2696_v60  ;;  %v2421_v41 = vpop.f32.mrf.mxu1  ;;  %v13396_v1 = vadd.f32 %v13395_v26, %v13394_v57 }
 0x246   :  { %v3654_v33 = vld [vmem:[#allocation3 + $0x12b] sm:$0xff]  ;;  %v12685_v62 = vpack.c.bf16 %v3462_v42, %v3462_v42  ;;  %v12686_v9 = vpack.c.bf16 %v3463_v31, %v3463_v31  ;;  %v3655_v36 = vld [vmem:[#allocation3 + $0x133] sm:$0xff]  ;;  %3047 = vst [vmem:[#allocation4 + $0x21c] sm:$0xf] %v12590_v22  ;;  %v17479_v44 = vld [vmem:[#allocation35_spill] sm:$0xff]  ;;  %v13397_v31 = vpop.f32.mrf.mxu0 }
 0x247   :  { %v16031_v21 = vld [vmem:[#allocation4 + $0x16c] sm:$0xff]  ;;  %v12717_v54 = vpack.c.bf16 %v3654_v33, %v3654_v33  ;;  %4118 = vst [vmem:[#allocation3 + $0x128] sm:$0xff] %v4086_v39  ;;  %v12718_v3 = vpack.c.bf16 %v3655_v36, %v3655_v36  ;;  %4119 = vst [vmem:[#allocation3 + $0x130] sm:$0xff] %v4087_v11  ;;  %v2256_v24 = vadd.f32 %v13393_v52, %v17479_v44  ;;  %v16034_v5 = vld [vmem:[#allocation4 + $0x158] sm:$0xff] }
 0x248   :  { %17478 = vst [vmem:[#allocation19_spill] sm:$0xff] %v16031_v21  ;;  %3431 = vst [vmem:[#allocation4 + $0x224] sm:$0xf] %v12654_v25  ;;  %v2888_v10 = vld [vmem:[#allocation3 + $0x147] sm:$0xff]  ;;  %v16036_v11 = vld [vmem:[#allocation4 + $0x174] sm:$0xff] }
 0x249   :  { %v4145_v13 = vld [vmem:[#allocation3 + $0xcd] sm:$0xff]  ;;  %3622 = vst [vmem:[#allocation4 + $0x20c] sm:$0xf] %v12685_v62  ;;  %3623 = vst [vmem:[#allocation4 + $0x228] sm:$0xf] %v12686_v9  ;;  %v12591_v39 = vpack.c.bf16 %v2888_v10, %v2888_v10  ;;  %v5516_v22 = vld [vmem:[#allocation4 + $0x118] sm:$0xff]  ;;  %v2417_v42 = vadd.f32 %v16011_v37, %v2256_v24  ;;  %v13398_v37 = vpop.f32.mrf.mxu0  ;;  %v16044_v24 = vpop.f32.mrf.mxu1 }
 0x24a   :  { %v4336_v6 = vld [vmem:[#allocation3 + $0xc6] sm:$0xff]  ;;  %3814 = vst [vmem:[#allocation4 + $0x210] sm:$0xf] %v12717_v54  ;;  %v12744_v15 = vpack.c.bf16 %v4145_v13, %v4145_v13  ;;  %v4337_v20 = vld [vmem:[#allocation3 + $0xce] sm:$0xff]  ;;  %17480 = vst [vmem:[#allocation34_spill] sm:$0xff] %v16034_v5 }
 0x24b   :  { %v12775_v4 = vpack.c.bf16 %v4336_v6, %v4336_v6  ;;  %17481 = vst [vmem:[#allocation20_spill] sm:$0xff] %v16036_v11  ;;  %3242 = vst [vmem:[#allocation4 + $0x274] sm:$0xf] %v12625_v32  ;;  %v5520_v45 = vld [vmem:[#allocation4 + $0x134] sm:$0xff]  ;;  %v12776_v52 = vpack.c.bf16 %v4337_v20, %v4337_v20  ;;  %v15005_v9 = vld [vmem:[#allocation4 + $0x124] ss:$28 sps:$4 sm:$0xff]  }
 0x24c   :  { %3815 = vst [vmem:[#allocation4 + $0x22c] sm:$0xf] %v12718_v3  ;;  %v15001_v25 = vld [vmem:[#allocation4 + $0x11c] ss:$28 sps:$4 sm:$0xff]   ;;  %2664 = vst [vmem:[#allocation4 + $0x230] sm:$0xf] %v12527_v14  ;;  %v12005_v36 = vcombine.low %v5516_v22, %v5520_v45  ;;  %6861 = vmatprep.mubr.bf16.mxu0 %v15005_v9  ;;  %v13399_v22 = vadd.f32 %v13398_v37, %v13397_v31  ;;  %v13400_v45 = vpop.f32.mrf.mxu0 }
 0x24d   :  { %2856 = vst [vmem:[#allocation4 + $0x234] sm:$0xf] %v12559_v23  ;;  %4880 = vst [vmem:[#allocation4 + $0x15c] sm:$0xf] %v16024_v46  ;;  %v17482_v33 = vld [vmem:[#allocation21_spill] sm:$0xff]  ;;  %v17483_v57 = vld [vmem:[#allocation36_spill] sm:$0xff]  ;;  %6700 = vmatprep.mubr.bf16.mxu1 %v15001_v25 }
 0x24e   :  { %4881 = vst [vmem:[#allocation4 + $0x178] sm:$0xf] %v16026_v63  ;;  %v4088_v62 = vunpack.c.l.bf16 %v17482_v33  ;;  %3048 = vst [vmem:[#allocation4 + $0x238] sm:$0xf] %v12591_v39  ;;  %v2261_v54 = vadd.f32 %v13396_v1, %v17483_v57  ;;  %v17484_v27 = vld [vmem:[#allocation22_spill] sm:$0xff]  ;;  %v2505_v3 = vld [vmem:[#allocation3 + $0x14d] sm:$0xff]  ;;  %v12626_v63 = vpack.c.bf16 %v2417_v42, %v2417_v42  ;;  %6701 = vmatmul.mubr.bf16.gmra.mxu1 %v12005_v36  ;;  %v13401_v37 = vpop.f32.mrf.mxu0 }
 0x24f   :  { %4305 = vst [vmem:[#allocation4 + $0x16c] sm:$0xf] %v12744_v15  ;;  %4496 = vst [vmem:[#allocation4 + $0x154] sm:$0xf] %v12775_v4  ;;  %v4089_v60 = vunpack.c.l.bf16 %v17484_v27  ;;  %v15007_v32 = vld [vmem:[#allocation4 + $0x120] ss:$28 sps:$4 sm:$0xff]   ;;  %v12528_v14 = vpack.c.bf16 %v2505_v3, %v2505_v3 }
 0x250   :  { %v2697_v46 = vld [vmem:[#allocation3 + $0x14e] sm:$0xff]  ;;  %4497 = vst [vmem:[#allocation4 + $0x170] sm:$0xf] %v12776_v52  ;;  %2475 = vst [vmem:[#allocation3 + $0x170] sm:$0xff] %v2417_v42  ;;  %v2422_v44 = vadd.f32 %v2421_v41, %v2261_v54  ;;  %6862 = vmatmul.mubr.bf16.gmra.mxu0 %v15007_v32  ;;  %v2506_v31 = vld [vmem:[#allocation3 + $0x165] sm:$0xff] }
 0x251   :  { %v12560_v23 = vpack.c.bf16 %v2697_v46, %v2697_v46  ;;  %v2889_v10 = vld [vmem:[#allocation3 + $0x14f] sm:$0xff]  ;;  %3243 = vst [vmem:[#allocation4 + $0x290] sm:$0xf] %v12626_v63  ;;  %2665 = vst [vmem:[#allocation4 + $0x24c] sm:$0xf] %v12528_v14  ;;  %v4528_v41 = vld [vmem:[#allocation3 + $0xc7] sm:$0xff] }
 0x252   :  { %v3272_v13 = vld [vmem:[#allocation3 + $0x149] sm:$0xff]  ;;  %v3273_v6 = vld [vmem:[#allocation3 + $0x151] sm:$0xff]  ;;  %v12592_v26 = vpack.c.bf16 %v2889_v10, %v2889_v10  ;;  %2476 = vst [vmem:[#allocation3 + $0x188] sm:$0xff] %v2422_v44  ;;  %v12627_v36 = vpack.c.bf16 %v2422_v44, %v2422_v44  ;;  %v12807_v54 = vpack.c.bf16 %v4528_v41, %v4528_v41  ;;  %v13402_v44 = vadd.f32 %v13401_v37, %v13400_v45  ;;  %v15037_v18 = vld [vmem:[#allocation5 + $0x48] ss:$0 sps:$4 sm:$0xff]  }
 0x253   :  { %v12655_v39 = vpack.c.bf16 %v3272_v13, %v3272_v13  ;;  %v12656_v15 = vpack.c.bf16 %v3273_v6, %v3273_v6  ;;  %v3464_v20 = vld [vmem:[#allocation3 + $0x14a] sm:$0xff]  ;;  %v3465_v4 = vld [vmem:[#allocation3 + $0x152] sm:$0xff]  ;;  %2857 = vst [vmem:[#allocation4 + $0x250] sm:$0xf] %v12560_v23  ;;  %v2424_v6 = vpop.f32.mrf.mxu1  ;;  %v15245_v17 = vld [vmem:[#allocation13 + $0x160] sm:$0xff]  }
 0x254   :  { %v3656_v1 = vld [vmem:[#allocation3 + $0x14b] sm:$0xff]  ;;  %v12687_v25 = vpack.c.bf16 %v3464_v20, %v3464_v20  ;;  %v12688_v52 = vpack.c.bf16 %v3465_v4, %v3465_v4  ;;  %v3657_v42 = vld [vmem:[#allocation3 + $0x153] sm:$0xff]  ;;  %3049 = vst [vmem:[#allocation4 + $0x254] sm:$0xf] %v12592_v26  ;;  %3244 = vst [vmem:[#allocation4 + $0x2ac] sm:$0xf] %v12627_v36 }
 0x255   :  { %v12719_v33 = vpack.c.bf16 %v3656_v1, %v3656_v1  ;;  %4120 = vst [vmem:[#allocation3 + $0x148] sm:$0xff] %v4088_v62  ;;  %v4529_v9 = vld [vmem:[#allocation3 + $0xcf] sm:$0xff]  ;;  %v12720_v57 = vpack.c.bf16 %v3657_v42, %v3657_v42  ;;  %4121 = vst [vmem:[#allocation3 + $0x150] sm:$0xff] %v4089_v60  ;;  %v2698_v32 = vld [vmem:[#allocation3 + $0x166] sm:$0xff]  ;;  %v12529_v62 = vpack.c.bf16 %v2506_v31, %v2506_v31  ;;  %v13403_v42 = vpop.f32.mrf.mxu0 }
 0x256   :  { %3432 = vst [vmem:[#allocation4 + $0x240] sm:$0xf] %v12655_v39  ;;  %3433 = vst [vmem:[#allocation4 + $0x25c] sm:$0xf] %v12656_v15  ;;  %v12808_v27 = vpack.c.bf16 %v4529_v9, %v4529_v9  ;;  %v2890_v3 = vld [vmem:[#allocation3 + $0x167] sm:$0xff]  ;;  %v17485_v46 = vld [vmem:[#allocation37_spill] sm:$0xff]  ;;  %v12561_v14 = vpack.c.bf16 %v2698_v32, %v2698_v32 }
 0x257   :  { %v2264_v63 = vadd.f32 %v13399_v22, %v17485_v46  ;;  %3624 = vst [vmem:[#allocation4 + $0x244] sm:$0xf] %v12687_v25  ;;  %3625 = vst [vmem:[#allocation4 + $0x260] sm:$0xf] %v12688_v52  ;;  %v12593_v23 = vpack.c.bf16 %v2890_v3, %v2890_v3  ;;  %v16047_v10 = vld [vmem:[#allocation4 + $0x188] sm:$0xff]  ;;  %v17488_v26 = vld [vmem:[#allocation23_spill] sm:$0xff] }
 0x258   :  { %3816 = vst [vmem:[#allocation4 + $0x248] sm:$0xf] %v12719_v33  ;;  %17486 = vst [vmem:[#allocation35_spill] sm:$0xff] %v16047_v10  ;;  %v16049_v60 = vld [vmem:[#allocation4 + $0x1a4] sm:$0xff]  ;;  %v4090_v39 = vunpack.c.l.bf16 %v17488_v26  ;;  %v5524_v15 = vld [vmem:[#allocation4 + $0x150] sm:$0xff]  ;;  %v16056_v26 = vpop.f32.mrf.mxu1 }
 0x259   :  { %17487 = vst [vmem:[#allocation21_spill] sm:$0xff] %v16049_v60  ;;  %v4146_v13 = vld [vmem:[#allocation3 + $0xe5] sm:$0xff]  ;;  %3817 = vst [vmem:[#allocation4 + $0x264] sm:$0xf] %v12720_v57  ;;  %v4147_v20 = vld [vmem:[#allocation3 + $0xed] sm:$0xff]  ;;  %v2425_v52 = vadd.f32 %v2424_v6, %v2264_v63  ;;  %v13404_v6 = vpop.f32.mrf.mxu0 }
 0x25a   :  { %4688 = vst [vmem:[#allocation4 + $0x158] sm:$0xf] %v12807_v54  ;;  %4689 = vst [vmem:[#allocation4 + $0x174] sm:$0xf] %v12808_v27  ;;  %v12745_v4 = vpack.c.bf16 %v4146_v13, %v4146_v13  ;;  %v4338_v1 = vld [vmem:[#allocation3 + $0xe6] sm:$0xff]  ;;  %v12746_v57 = vpack.c.bf16 %v4147_v20, %v4147_v20  ;;  %v17490_v54 = vld [vmem:[#allocation38_spill] sm:$0xff] }
 0x25b   :  { %v16052_v22 = vld [vmem:[#allocation5 + $0x38] ss:$0 sps:$4 sm:$0xff]   ;;  %v15021_v25 = vld [vmem:[#allocation5 + $0x3c] ss:$0 sps:$4 sm:$0xff]   ;;  %v17489_v33 = vld [vmem:[#allocation24_spill] sm:$0xff]  ;;  %v12777_v31 = vpack.c.bf16 %v4338_v1, %v4338_v1  ;;  %v2269_v27 = vadd.f32 %v13402_v44, %v17490_v54  ;;  %2477 = vst [vmem:[#allocation3 + $0x190] sm:$0xff] %v2425_v52  ;;  %v12628_v63 = vpack.c.bf16 %v2425_v52, %v2425_v52 }
 0x25c   :  { %v4091_v41 = vunpack.c.l.bf16 %v17489_v33  ;;  %v5528_v9 = vld [vmem:[#allocation4 + $0x16c] sm:$0xff]  ;;  %2666 = vst [vmem:[#allocation4 + $0x268] sm:$0xf] %v12529_v62  ;;  %2858 = vst [vmem:[#allocation4 + $0x26c] sm:$0xf] %v12561_v14  ;;  %v15260_v50 = vld [vmem:[#allocation13 + $0x158] sm:$0xff]  }
 0x25d   :  { %v15008_v36 = vld [vmem:[#allocation4 + $0x154] ss:$28 sps:$4 sm:$0xff]   ;;  %3050 = vst [vmem:[#allocation4 + $0x270] sm:$0xf] %v12593_v23  ;;  %v12012_v32 = vcombine.low %v5524_v15, %v5528_v9  ;;  %4306 = vst [vmem:[#allocation4 + $0x188] sm:$0xf] %v12745_v4  ;;  %v2430_v44 = vadd.f32 %v16029_v19, %v2269_v27 }
 0x25e   :  { %v2507_v45 = vld [vmem:[#allocation3 + $0x16d] sm:$0xff]  ;;  %6708 = vmatprep.mubr.bf16.mxu1 %v15008_v36  ;;  %4307 = vst [vmem:[#allocation4 + $0x1a4] sm:$0xf] %v12746_v57  ;;  %4498 = vst [vmem:[#allocation4 + $0x18c] sm:$0xf] %v12777_v31  ;;  %v13405_v36 = vadd.f32 %v13404_v6, %v13403_v42  ;;  %v2437_v6 = vpop.f32.mrf.mxu1 }
 0x25f   :  { %v12530_v3 = vpack.c.bf16 %v2507_v45, %v2507_v45  ;;  %v2699_v46 = vld [vmem:[#allocation3 + $0x16e] sm:$0xff]  ;;  %6709 = vmatmul.mubr.bf16.gmra.mxu1 %v12012_v32  ;;  %3245 = vst [vmem:[#allocation4 + $0x2c8] sm:$0xf] %v12628_v63  ;;  %2478 = vst [vmem:[#allocation3 + $0x1a8] sm:$0xff] %v2430_v44  ;;  %v12629_v32 = vpack.c.bf16 %v2430_v44, %v2430_v44 }
 0x260   :  { %v2891_v37 = vld [vmem:[#allocation3 + $0x16f] sm:$0xff]  ;;  %v12562_v62 = vpack.c.bf16 %v2699_v46, %v2699_v46  ;;  %v13406_v46 = vpop.f32.mrf.mxu0  ;;  %v4530_v27 = vld [vmem:[#allocation3 + $0xe7] sm:$0xff] }
 0x261   :  { %v3274_v13 = vld [vmem:[#allocation3 + $0x169] sm:$0xff]  ;;  %v12594_v14 = vpack.c.bf16 %v2891_v37, %v2891_v37  ;;  %v3275_v23 = vld [vmem:[#allocation3 + $0x171] sm:$0xff]  ;;  %2667 = vst [vmem:[#allocation4 + $0x284] sm:$0xf] %v12530_v3  ;;  %v12809_v3 = vpack.c.bf16 %v4530_v27, %v4530_v27  ;;  %3246 = vst [vmem:[#allocation4 + $0x2e4] sm:$0xf] %v12629_v32 }
 0x262   :  { %v12657_v33 = vpack.c.bf16 %v3274_v13, %v3274_v13  ;;  %v3466_v20 = vld [vmem:[#allocation3 + $0x16a] sm:$0xff]  ;;  %v3467_v1 = vld [vmem:[#allocation3 + $0x172] sm:$0xff]  ;;  %v12658_v15 = vpack.c.bf16 %v3275_v23, %v3275_v23  ;;  %2859 = vst [vmem:[#allocation4 + $0x288] sm:$0xf] %v12562_v62  ;;  %v17493_v13 = vld [vmem:[#allocation39_spill] sm:$0xff]  ;;  %v13407_v62 = vpop.f32.mrf.mxu0 }
 0x263   :  { %v12689_v9 = vpack.c.bf16 %v3466_v20, %v3466_v20  ;;  %v12690_v4 = vpack.c.bf16 %v3467_v1, %v3467_v1  ;;  %v3658_v45 = vld [vmem:[#allocation3 + $0x16b] sm:$0xff]  ;;  %v3659_v52 = vld [vmem:[#allocation3 + $0x173] sm:$0xff]  ;;  %3051 = vst [vmem:[#allocation4 + $0x28c] sm:$0xf] %v12594_v14  ;;  %v2272_v63 = vadd.f32 %v13405_v36, %v17493_v13  ;;  %v13408_v1 = vadd.f32 %v13407_v62, %v13406_v46 }
 0x264   :  { %v4339_v54 = vld [vmem:[#allocation3 + $0xee] sm:$0xff]  ;;  %v12721_v37 = vpack.c.bf16 %v3658_v45, %v3658_v45  ;;  %v12722_v47 = vpack.c.bf16 %v3659_v52, %v3659_v52  ;;  %4122 = vst [vmem:[#allocation3 + $0x168] sm:$0xff] %v4090_v39  ;;  %4123 = vst [vmem:[#allocation3 + $0x170] sm:$0xff] %v4091_v41  ;;  %v2508_v39 = vld [vmem:[#allocation3 + $0x185] sm:$0xff] }
 0x265   :  { %3434 = vst [vmem:[#allocation4 + $0x278] sm:$0xf] %v12657_v33  ;;  %v12778_v57 = vpack.c.bf16 %v4339_v54, %v4339_v54  ;;  %v16059_v19 = vld [vmem:[#allocation4 + $0x190] sm:$0xff]  ;;  %3435 = vst [vmem:[#allocation4 + $0x294] sm:$0xf] %v12658_v15  ;;  %v2700_v41 = vld [vmem:[#allocation3 + $0x186] sm:$0xff]  ;;  %v12531_v33 = vpack.c.bf16 %v2508_v39, %v2508_v39  ;;  %v2277_v46 = vadd.f32 %v13408_v1, %v15789_v2 }
 0x266   :  { %17491 = vst [vmem:[#allocation36_spill] sm:$0xff] %v16059_v19  ;;  %v16061_v31 = vld [vmem:[#allocation4 + $0x1ac] sm:$0xff]  ;;  %3626 = vst [vmem:[#allocation4 + $0x27c] sm:$0xf] %v12689_v9  ;;  %v15012_v14 = vld [vmem:[#allocation4 + $0x15c] ss:$28 sps:$4 sm:$0xff]   ;;  %v12563_v20 = vpack.c.bf16 %v2700_v41, %v2700_v41 }
 0x267   :  { %17492 = vst [vmem:[#allocation22_spill] sm:$0xff] %v16061_v31  ;;  %3627 = vst [vmem:[#allocation4 + $0x298] sm:$0xf] %v12690_v4  ;;  %v4531_v42 = vld [vmem:[#allocation3 + $0xef] sm:$0xff]  ;;  %v13409_v4 = vpop.f32.mrf.mxu0  ;;  %v17495_v45 = vld [vmem:[#allocation26_spill] sm:$0xff]  ;;  %6869 = vmatprep.mubr.bf16.mxu0 %v15012_v14  ;;  %v2438_v1 = vadd.f32 %v2437_v6, %v2277_v46 }
 0x268   :  { %4882 = vst [vmem:[#allocation4 + $0x194] sm:$0xf] %v16052_v22  ;;  %4883 = vst [vmem:[#allocation4 + $0x1b0] sm:$0xf] %v15021_v25  ;;  %v12810_v23 = vpack.c.bf16 %v4531_v42, %v4531_v42  ;;  %v17494_v44 = vld [vmem:[#allocation25_spill] sm:$0xff]  ;;  %v2892_v22 = vld [vmem:[#allocation3 + $0x187] sm:$0xff]  ;;  %v2433_v25 = vadd.f32 %v16044_v24, %v2272_v63  ;;  %v4093_v52 = vunpack.c.l.bf16 %v17495_v45  ;;  %v16073_v63 = vpop.f32.mrf.mxu1 }
 0x269   :  { %3818 = vst [vmem:[#allocation4 + $0x280] sm:$0xf] %v12721_v37  ;;  %3819 = vst [vmem:[#allocation4 + $0x29c] sm:$0xf] %v12722_v47  ;;  %v4092_v15 = vunpack.c.l.bf16 %v17494_v44  ;;  %v15014_v9 = vld [vmem:[#allocation4 + $0x158] ss:$28 sps:$4 sm:$0xff]   ;;  %v12595_v54 = vpack.c.bf16 %v2892_v22, %v2892_v22  ;;  %v13410_v62 = vpop.f32.mrf.mxu0 }
 0x26a   :  { %4499 = vst [vmem:[#allocation4 + $0x1a8] sm:$0xf] %v12778_v57  ;;  %4690 = vst [vmem:[#allocation4 + $0x190] sm:$0xf] %v12809_v3  ;;  %v2509_v47 = vld [vmem:[#allocation3 + $0x18d] sm:$0xff]  ;;  %6870 = vmatmul.mubr.bf16.gmra.mxu0 %v15014_v9  ;;  %v12630_v13 = vpack.c.bf16 %v2433_v25, %v2433_v25  ;;  %v13411_v44 = vadd.f32 %v13410_v62, %v13409_v4 }
 0x26b   :  { %4691 = vst [vmem:[#allocation4 + $0x1ac] sm:$0xf] %v12810_v23  ;;  %2668 = vst [vmem:[#allocation4 + $0x2a0] sm:$0xf] %v12531_v33  ;;  %v2701_v36 = vld [vmem:[#allocation3 + $0x18e] sm:$0xff]  ;;  %v12532_v32 = vpack.c.bf16 %v2509_v47, %v2509_v47  ;;  %v4340_v46 = vld [vmem:[#allocation3 + $0x106] sm:$0xff] }
 0x26c   :  { %2860 = vst [vmem:[#allocation4 + $0x2a4] sm:$0xf] %v12563_v20  ;;  %v2893_v37 = vld [vmem:[#allocation3 + $0x18f] sm:$0xff]  ;;  %v15027_v57 = vld [vmem:[#allocation5 + $0x40] ss:$0 sps:$4 sm:$0xff]   ;;  %v12564_v42 = vpack.c.bf16 %v2701_v36, %v2701_v36  ;;  %2479 = vst [vmem:[#allocation3 + $0x1b0] sm:$0xff] %v2433_v25 }
 0x26d   :  { %v16069_v27 = vld [vmem:[#allocation4 + $0x188] sm:$0xff]  ;;  %v12596_v24 = vpack.c.bf16 %v2893_v37, %v2893_v37  ;;  %v3277_v39 = vld [vmem:[#allocation3 + $0x191] sm:$0xff]  ;;  %v16071_v41 = vld [vmem:[#allocation5 + $0x44] ss:$0 sps:$4 sm:$0xff]   ;;  %3052 = vst [vmem:[#allocation4 + $0x2a8] sm:$0xf] %v12595_v54  ;;  %v13412_v37 = vpop.f32.mrf.mxu0 }
 0x26e   :  { %v3276_v3 = vld [vmem:[#allocation3 + $0x189] sm:$0xff]  ;;  %v12660_v23 = vpack.c.bf16 %v3277_v39, %v3277_v39  ;;  %v3469_v2 = vld [vmem:[#allocation3 + $0x192] sm:$0xff]  ;;  %2669 = vst [vmem:[#allocation4 + $0x2bc] sm:$0xf] %v12532_v32  ;;  %2861 = vst [vmem:[#allocation4 + $0x2c0] sm:$0xf] %v12564_v42 }
 0x26f   :  { %v12659_v14 = vpack.c.bf16 %v3276_v3, %v3276_v3  ;;  %v3468_v33 = vld [vmem:[#allocation3 + $0x18a] sm:$0xff]  ;;  %v12692_v22 = vpack.c.bf16 %v3469_v2, %v3469_v2  ;;  %v3661_v45 = vld [vmem:[#allocation3 + $0x193] sm:$0xff]  ;;  %3053 = vst [vmem:[#allocation4 + $0x2c4] sm:$0xf] %v12596_v24  ;;  %v16075_v25 = vld [vmem:[#allocation4 + $0x1c0] sm:$0xff] }
 0x270   :  { %v3660_v20 = vld [vmem:[#allocation3 + $0x18b] sm:$0xff]  ;;  %v12691_v9 = vpack.c.bf16 %v3468_v33, %v3468_v33  ;;  %17496 = vst [vmem:[#allocation37_spill] sm:$0xff] %v16075_v25  ;;  %v16077_v36 = vld [vmem:[#allocation4 + $0x1dc] sm:$0xff]  ;;  %3247 = vst [vmem:[#allocation4 + $0x300] sm:$0xf] %v12630_v13  ;;  %v12724_v3 = vpack.c.bf16 %v3661_v45, %v3661_v45  ;;  %v12779_v13 = vpack.c.bf16 %v4340_v46, %v4340_v46 }
 0x271   :  { %v12723_v47 = vpack.c.bf16 %v3660_v20, %v3660_v20  ;;  %4124 = vst [vmem:[#allocation3 + $0x188] sm:$0xff] %v4092_v15  ;;  %17497 = vst [vmem:[#allocation23_spill] sm:$0xff] %v16077_v36  ;;  %v4148_v54 = vld [vmem:[#allocation3 + $0x105] sm:$0xff]  ;;  %v4149_v6 = vld [vmem:[#allocation3 + $0x10d] sm:$0xff]  ;;  %v12631_v15 = vpack.c.bf16 %v2438_v1, %v2438_v1 }
 0x272   :  { %4125 = vst [vmem:[#allocation3 + $0x190] sm:$0xff] %v4093_v52  ;;  %3436 = vst [vmem:[#allocation4 + $0x2b0] sm:$0xf] %v12659_v14  ;;  %v12747_v4 = vpack.c.bf16 %v4148_v54, %v4148_v54  ;;  %v4341_v39 = vld [vmem:[#allocation3 + $0x10e] sm:$0xff]  ;;  %v5536_v24 = vld [vmem:[#allocation4 + $0x1a4] sm:$0xff]  ;;  %v12748_v33 = vpack.c.bf16 %v4149_v6, %v4149_v6  ;;  %v2440_v52 = vpop.f32.mrf.mxu1  ;;  %v13413_v14 = vpop.f32.mrf.mxu0 }
 0x273   :  { %3437 = vst [vmem:[#allocation4 + $0x2cc] sm:$0xf] %v12660_v23  ;;  %2480 = vst [vmem:[#allocation3 + $0x1c8] sm:$0xff] %v2438_v1  ;;  %v17498_v32 = vld [vmem:[#allocation40_spill] sm:$0xff]  ;;  %v12780_v2 = vpack.c.bf16 %v4341_v39, %v4341_v39  ;;  %v12019_v23 = vcombine.low %v16069_v27, %v5536_v24  ;;  %v17501_v27 = vld [vmem:[#allocation27_spill] sm:$0xff] }
 0x274   :  { %v2280_v42 = vadd.f32 %v13411_v44, %v17498_v32  ;;  %v15018_v62 = vld [vmem:[#allocation4 + $0x18c] ss:$28 sps:$4 sm:$0xff]   ;;  %3628 = vst [vmem:[#allocation4 + $0x2b4] sm:$0xf] %v12691_v9  ;;  %3629 = vst [vmem:[#allocation4 + $0x2d0] sm:$0xf] %v12692_v22  ;;  %v13414_v9 = vadd.f32 %v13413_v14, %v13412_v37  ;;  %v13415_v6 = vpop.f32.mrf.mxu0 }
 0x275   :  { %3820 = vst [vmem:[#allocation4 + $0x2b8] sm:$0xf] %v12723_v47  ;;  %v16080_v20 = vld [vmem:[#allocation4 + $0x1c8] sm:$0xff]  ;;  %3821 = vst [vmem:[#allocation4 + $0x2d4] sm:$0xf] %v12724_v3  ;;  %6716 = vmatprep.mubr.bf16.mxu1 %v15018_v62  ;;  %v4094_v3 = vunpack.c.l.bf16 %v17501_v27  ;;  %v16140_v31 = vld [vmem:[#allocation4 + $0x270] sm:$0xff] }
 0x276   :  { %17499 = vst [vmem:[#allocation24_spill] sm:$0xff] %v16080_v20  ;;  %4308 = vst [vmem:[#allocation4 + $0x1c0] sm:$0xf] %v12747_v4  ;;  %v16083_v45 = vld [vmem:[#allocation4 + $0x1e4] sm:$0xff]  ;;  %v2441_v44 = vadd.f32 %v2440_v52, %v2280_v42  ;;  %v15022_v22 = vld [vmem:[#allocation4 + $0x194] ss:$28 sps:$4 sm:$0xff]   ;;  %6717 = vmatmul.mubr.bf16.gmra.mxu1 %v12019_v23  ;;  %v2285_v37 = vadd.f32 %v13414_v9, %v15793_v30 }
 0x277   :  { %17500 = vst [vmem:[#allocation38_spill] sm:$0xff] %v16083_v45  ;;  %v4532_v1 = vld [vmem:[#allocation3 + $0x107] sm:$0xff]  ;;  %4884 = vst [vmem:[#allocation4 + $0x1cc] sm:$0xf] %v15027_v57  ;;  %v4533_v4 = vld [vmem:[#allocation3 + $0x10f] sm:$0xff]  ;;  %6877 = vmatprep.mubr.bf16.mxu0 %v15022_v22 }
 0x278   :  { %3248 = vst [vmem:[#allocation4 + $0x31c] sm:$0xf] %v12631_v15  ;;  %v15024_v47 = vld [vmem:[#allocation4 + $0x190] ss:$28 sps:$4 sm:$0xff]   ;;  %4309 = vst [vmem:[#allocation4 + $0x1dc] sm:$0xf] %v12748_v33  ;;  %v12811_v54 = vpack.c.bf16 %v4532_v1, %v4532_v1  ;;  %v12632_v57 = vpack.c.bf16 %v2441_v44, %v2441_v44  ;;  %v12812_v42 = vpack.c.bf16 %v4533_v4, %v4533_v4 }
 0x279   :  { %4500 = vst [vmem:[#allocation4 + $0x1c4] sm:$0xf] %v12779_v13  ;;  %4501 = vst [vmem:[#allocation4 + $0x1e0] sm:$0xf] %v12780_v2  ;;  %v2510_v46 = vld [vmem:[#allocation3 + $0x1a5] sm:$0xff]  ;;  %v2703_v13 = vld [vmem:[#allocation3 + $0x1ae] sm:$0xff]  ;;  %v13416_v2 = vpop.f32.mrf.mxu0  ;;  %6878 = vmatmul.mubr.bf16.gmra.mxu0 %v15024_v47  ;;  %v2446_v30 = vadd.f32 %v16056_v26, %v2285_v37 }
 0x27a   :  { %4885 = vst [vmem:[#allocation4 + $0x1e8] sm:$0xf] %v16071_v41  ;;  %v2702_v39 = vld [vmem:[#allocation3 + $0x1a6] sm:$0xff]  ;;  %2481 = vst [vmem:[#allocation3 + $0x1d0] sm:$0xff] %v2441_v44  ;;  %v12533_v24 = vpack.c.bf16 %v2510_v46, %v2510_v46  ;;  %v12566_v23 = vpack.c.bf16 %v2703_v13, %v2703_v13  ;;  %v2895_v1 = vld [vmem:[#allocation3 + $0x1af] sm:$0xff]  ;;  %v13417_v47 = vadd.f32 %v13416_v2, %v13415_v6 }
 0x27b   :  { %v17502_v15 = vld [vmem:[#allocation28_spill] sm:$0xff]  ;;  %4692 = vst [vmem:[#allocation4 + $0x1c8] sm:$0xf] %v12811_v54  ;;  %v12565_v62 = vpack.c.bf16 %v2702_v39, %v2702_v39  ;;  %v3279_v44 = vld [vmem:[#allocation3 + $0x1b1] sm:$0xff]  ;;  %3249 = vst [vmem:[#allocation4 + $0x338] sm:$0xf] %v12632_v57  ;;  %v12598_v9 = vpack.c.bf16 %v2895_v1, %v2895_v1  ;;  %v12633_v37 = vpack.c.bf16 %v2446_v30, %v2446_v30 }
 0x27c   :  { %v4095_v32 = vunpack.c.l.bf16 %v17502_v15  ;;  %v2894_v33 = vld [vmem:[#allocation3 + $0x1a7] sm:$0xff]  ;;  %4693 = vst [vmem:[#allocation4 + $0x1e4] sm:$0xf] %v12812_v42  ;;  %2670 = vst [vmem:[#allocation4 + $0x2d8] sm:$0xf] %v12533_v24  ;;  %v12662_v54 = vpack.c.bf16 %v3279_v44, %v3279_v44  ;;  %v3471_v46 = vld [vmem:[#allocation3 + $0x1b2] sm:$0xff] }
 0x27d   :  { %v2511_v41 = vld [vmem:[#allocation3 + $0x1ad] sm:$0xff]  ;;  %v12597_v52 = vpack.c.bf16 %v2894_v33, %v2894_v33  ;;  %2862 = vst [vmem:[#allocation4 + $0x2dc] sm:$0xf] %v12565_v62  ;;  %v12694_v33 = vpack.c.bf16 %v3471_v46, %v3471_v46  ;;  %2863 = vst [vmem:[#allocation4 + $0x2f8] sm:$0xf] %v12566_v23  ;;  %v16096_v42 = vld [vmem:[#allocation4 + $0x1f8] sm:$0xff] }
 0x27e   :  { %v12534_v14 = vpack.c.bf16 %v2511_v41, %v2511_v41  ;;  %v3278_v27 = vld [vmem:[#allocation3 + $0x1a9] sm:$0xff]  ;;  %v16092_v41 = vld [vmem:[#allocation3 + $0x1b3] sm:$0xff]  ;;  %2482 = vst [vmem:[#allocation3 + $0x1e8] sm:$0xff] %v2446_v30  ;;  %3055 = vst [vmem:[#allocation4 + $0x2fc] sm:$0xf] %v12598_v9 }
 0x27f   :  { %v12661_v22 = vpack.c.bf16 %v3278_v27, %v3278_v27  ;;  %v3470_v4 = vld [vmem:[#allocation3 + $0x1aa] sm:$0xff]  ;;  %3054 = vst [vmem:[#allocation4 + $0x2e0] sm:$0xf] %v12597_v52  ;;  %v16094_v26 = vld [vmem:[#allocation4 + $0x214] sm:$0xff]  ;;  %3439 = vst [vmem:[#allocation4 + $0x304] sm:$0xf] %v12662_v54 }
 0x280   :  { %v16090_v39 = vld [vmem:[#allocation3 + $0x1ab] sm:$0xff]  ;;  %v12693_v15 = vpack.c.bf16 %v3470_v4, %v3470_v4  ;;  %2671 = vst [vmem:[#allocation4 + $0x2f4] sm:$0xf] %v12534_v14  ;;  %17503 = vst [vmem:[#allocation39_spill] sm:$0xff] %v16094_v26  ;;  %v5540_v52 = vld [vmem:[#allocation4 + $0x1c0] sm:$0xff] }
 0x281   :  { %4126 = vst [vmem:[#allocation3 + $0x1a8] sm:$0xff] %v4094_v3  ;;  %v15038_v57 = vld [vmem:[#allocation5 + $0x4c] ss:$0 sps:$4 sm:$0xff]   ;;  %4127 = vst [vmem:[#allocation3 + $0x1b0] sm:$0xff] %v4095_v32  ;;  %v4151_v24 = vld [vmem:[#allocation3 + $0x12d] sm:$0xff] }
 0x282   :  { %3438 = vst [vmem:[#allocation4 + $0x2e8] sm:$0xf] %v12661_v22  ;;  %17504 = vst [vmem:[#allocation25_spill] sm:$0xff] %v16096_v42  ;;  %v4150_v6 = vld [vmem:[#allocation3 + $0x125] sm:$0xff]  ;;  %v17505_v13 = vld [vmem:[#allocation41_spill] sm:$0xff]  ;;  %v12750_v1 = vpack.c.bf16 %v4151_v24, %v4151_v24 }
 0x283   :  { %v4342_v62 = vld [vmem:[#allocation3 + $0x126] sm:$0xff]  ;;  %v2288_v2 = vadd.f32 %v13417_v47, %v17505_v13  ;;  %v5544_v3 = vld [vmem:[#allocation4 + $0x1dc] sm:$0xff]  ;;  %3630 = vst [vmem:[#allocation4 + $0x2ec] sm:$0xf] %v12693_v15  ;;  %3631 = vst [vmem:[#allocation4 + $0x308] sm:$0xf] %v12694_v33  ;;  %v12749_v23 = vpack.c.bf16 %v4150_v6, %v4150_v6 }
 0x284   :  { %v15025_v14 = vld [vmem:[#allocation4 + $0x1c4] ss:$28 sps:$4 sm:$0xff]   ;;  %v12781_v27 = vpack.c.bf16 %v4342_v62, %v4342_v62  ;;  %3250 = vst [vmem:[#allocation4 + $0x354] sm:$0xf] %v12633_v37  ;;  %v12026_v32 = vcombine.low %v5540_v52, %v5544_v3  ;;  %v4343_v44 = vld [vmem:[#allocation3 + $0x12e] sm:$0xff] }
 0x285   :  { %v16099_v30 = vld [vmem:[#allocation4 + $0x200] sm:$0xff]  ;;  %v2449_v22 = vadd.f32 %v16073_v63, %v2288_v2  ;;  %6724 = vmatprep.mubr.bf16.mxu1 %v15025_v14  ;;  %4310 = vst [vmem:[#allocation4 + $0x1f8] sm:$0xf] %v12749_v23  ;;  %4311 = vst [vmem:[#allocation4 + $0x214] sm:$0xf] %v12750_v1  ;;  %v12782_v54 = vpack.c.bf16 %v4343_v44, %v4343_v44  ;;  %v4535_v46 = vld [vmem:[#allocation3 + $0x12f] sm:$0xff] }
 0x286   :  { %17506 = vst [vmem:[#allocation26_spill] sm:$0xff] %v16099_v30  ;;  %v16101_v9 = vld [vmem:[#allocation4 + $0x21c] sm:$0xff]  ;;  %4502 = vst [vmem:[#allocation4 + $0x1fc] sm:$0xf] %v12781_v27  ;;  %v4534_v4 = vld [vmem:[#allocation3 + $0x127] sm:$0xff]  ;;  %6725 = vmatmul.mubr.bf16.gmra.mxu1 %v12026_v32  ;;  %v12814_v37 = vpack.c.bf16 %v4535_v46, %v4535_v46 }
 0x287   :  { %17507 = vst [vmem:[#allocation40_spill] sm:$0xff] %v16101_v9  ;;  %4886 = vst [vmem:[#allocation4 + $0x204] sm:$0xf] %v15037_v18  ;;  %v17508_v47 = vld [vmem:[#allocation29_spill] sm:$0xff]  ;;  %v12813_v33 = vpack.c.bf16 %v4534_v4, %v4534_v4  ;;  %v2512_v6 = vld [vmem:[#allocation3 + $0x1c5] sm:$0xff]  ;;  %v12634_v13 = vpack.c.bf16 %v2449_v22, %v2449_v22 }
 0x288   :  { %4887 = vst [vmem:[#allocation4 + $0x220] sm:$0xf] %v15038_v57  ;;  %v4096_v15 = vunpack.c.l.bf16 %v17508_v47  ;;  %v2704_v24 = vld [vmem:[#allocation3 + $0x1c6] sm:$0xff]  ;;  %2483 = vst [vmem:[#allocation3 + $0x1f0] sm:$0xff] %v2449_v22  ;;  %v17509_v63 = vld [vmem:[#allocation30_spill] sm:$0xff]  ;;  %v12535_v14 = vpack.c.bf16 %v2512_v6, %v2512_v6 }
 0x289   :  { %v2896_v62 = vld [vmem:[#allocation3 + $0x1c7] sm:$0xff]  ;;  %v4097_v2 = vunpack.c.l.bf16 %v17509_v63  ;;  %4503 = vst [vmem:[#allocation4 + $0x218] sm:$0xf] %v12782_v54  ;;  %v12567_v23 = vpack.c.bf16 %v2704_v24, %v2704_v24  ;;  %4694 = vst [vmem:[#allocation4 + $0x200] sm:$0xf] %v12813_v33  ;;  %v2897_v27 = vld [vmem:[#allocation3 + $0x1cf] sm:$0xff] }
 0x28a   :  { %v15029_v52 = vld [vmem:[#allocation4 + $0x1cc] ss:$28 sps:$4 sm:$0xff]   ;;  %v12599_v1 = vpack.c.bf16 %v2896_v62, %v2896_v62  ;;  %4695 = vst [vmem:[#allocation4 + $0x21c] sm:$0xf] %v12814_v37  ;;  %v15044_v32 = vld [vmem:[#allocation5 + $0x50] ss:$0 sps:$4 sm:$0xff]   ;;  %v12600_v46 = vpack.c.bf16 %v2897_v27, %v2897_v27 }
 0x28b   :  { %v15031_v3 = vld [vmem:[#allocation4 + $0x1c8] ss:$28 sps:$4 sm:$0xff]   ;;  %v2513_v18 = vld [vmem:[#allocation3 + $0x1cd] sm:$0xff]  ;;  %3251 = vst [vmem:[#allocation4 + $0x370] sm:$0xf] %v12634_v13  ;;  %6885 = vmatprep.mubr.bf16.mxu0 %v15029_v52 }
 0x28c   :  { %v2705_v57 = vld [vmem:[#allocation3 + $0x1ce] sm:$0xff]  ;;  %2672 = vst [vmem:[#allocation4 + $0x310] sm:$0xf] %v12535_v14  ;;  %2864 = vst [vmem:[#allocation4 + $0x314] sm:$0xf] %v12567_v23  ;;  %v12536_v22 = vpack.c.bf16 %v2513_v18, %v2513_v18  ;;  %6886 = vmatmul.mubr.bf16.gmra.mxu0 %v15031_v3  ;;  %v4152_v14 = vld [vmem:[#allocation3 + $0x145] sm:$0xff] }
 0x28d   :  { %v15045_v44 = vld [vmem:[#allocation5 + $0x54] ss:$0 sps:$4 sm:$0xff]   ;;  %3056 = vst [vmem:[#allocation4 + $0x318] sm:$0xf] %v12599_v1  ;;  %v12568_v4 = vpack.c.bf16 %v2705_v57, %v2705_v57  ;;  %v3280_v47 = vld [vmem:[#allocation3 + $0x1c9] sm:$0xff]  ;;  %v5548_v23 = vld [vmem:[#allocation4 + $0x1f8] sm:$0xff]  ;;  %v12751_v1 = vpack.c.bf16 %v4152_v14, %v4152_v14 }
 0x28e   :  { %v3281_v54 = vld [vmem:[#allocation3 + $0x1d1] sm:$0xff]  ;;  %v12663_v33 = vpack.c.bf16 %v3280_v47, %v3280_v47  ;;  %2673 = vst [vmem:[#allocation4 + $0x32c] sm:$0xf] %v12536_v22  ;;  %3057 = vst [vmem:[#allocation4 + $0x334] sm:$0xf] %v12600_v46  ;;  %v4344_v18 = vld [vmem:[#allocation3 + $0x146] sm:$0xff] }
 0x28f   :  { %v16106_v6 = vld [vmem:[#allocation3 + $0x1ca] sm:$0xff]  ;;  %v12664_v37 = vpack.c.bf16 %v3281_v54, %v3281_v54  ;;  %v16108_v24 = vld [vmem:[#allocation3 + $0x1d2] sm:$0xff]  ;;  %2865 = vst [vmem:[#allocation4 + $0x330] sm:$0xf] %v12568_v4  ;;  %v12783_v47 = vpack.c.bf16 %v4344_v18, %v4344_v18  ;;  %v15039_v35 = vld [vmem:[#allocation4 + $0x204] ss:$28 sps:$4 sm:$0xff]  }
 0x290   :  { %v16110_v62 = vld [vmem:[#allocation3 + $0x1cb] sm:$0xff]  ;;  %v16112_v63 = vld [vmem:[#allocation3 + $0x1d3] sm:$0xff]  ;;  %3440 = vst [vmem:[#allocation4 + $0x320] sm:$0xf] %v12663_v33  ;;  %6893 = vmatprep.mubr.bf16.mxu0 %v15039_v35 }
 0x291   :  { %4128 = vst [vmem:[#allocation3 + $0x1c8] sm:$0xff] %v4096_v15  ;;  %4129 = vst [vmem:[#allocation3 + $0x1d0] sm:$0xff] %v4097_v2  ;;  %v16114_v13 = vld [vmem:[#allocation4 + $0x230] sm:$0xff]  ;;  %v16118_v54 = vld [vmem:[#allocation4 + $0x238] sm:$0xff] }
 0x292   :  { %17510 = vst [vmem:[#allocation27_spill] sm:$0xff] %v16114_v13  ;;  %v16116_v52 = vld [vmem:[#allocation4 + $0x24c] sm:$0xff]  ;;  %3441 = vst [vmem:[#allocation4 + $0x33c] sm:$0xf] %v12664_v37  ;;  %v16120_v15 = vld [vmem:[#allocation4 + $0x254] sm:$0xff] }
 0x293   :  { %17511 = vst [vmem:[#allocation28_spill] sm:$0xff] %v16116_v52  ;;  %v4153_v3 = vld [vmem:[#allocation3 + $0x14d] sm:$0xff]  ;;  %17512 = vst [vmem:[#allocation41_spill] sm:$0xff] %v16118_v54  ;;  %v15035_v22 = vld [vmem:[#allocation4 + $0x1fc] ss:$28 sps:$4 sm:$0xff]   ;;  %v4098_v54 = vunpack.c.l.bf16 %v17514_v40 }
 0x294   :  { %v12752_v57 = vpack.c.bf16 %v4153_v3, %v4153_v3  ;;  %v4345_v27 = vld [vmem:[#allocation3 + $0x14e] sm:$0xff]  ;;  %17513 = vst [vmem:[#allocation29_spill] sm:$0xff] %v16120_v15  ;;  %4312 = vst [vmem:[#allocation4 + $0x230] sm:$0xf] %v12751_v1  ;;  %6732 = vmatprep.mubr.bf16.mxu1 %v15035_v22  ;;  %v15041_v14 = vld [vmem:[#allocation4 + $0x200] ss:$28 sps:$4 sm:$0xff]  }
 0x295   :  { %v5552_v2 = vld [vmem:[#allocation4 + $0x214] sm:$0xff]  ;;  %v12784_v4 = vpack.c.bf16 %v4345_v27, %v4345_v27  ;;  %v4536_v46 = vld [vmem:[#allocation3 + $0x147] sm:$0xff]  ;;  %4888 = vst [vmem:[#allocation4 + $0x23c] sm:$0xf] %v15044_v32  ;;  %4889 = vst [vmem:[#allocation4 + $0x258] sm:$0xf] %v15045_v44  ;;  %6894 = vmatmul.mubr.bf16.gmra.mxu0 %v15041_v14 }
 0x296   :  { %v12033_v33 = vcombine.low %v5548_v23, %v5552_v2  ;;  %4313 = vst [vmem:[#allocation4 + $0x24c] sm:$0xf] %v12752_v57  ;;  %4504 = vst [vmem:[#allocation4 + $0x234] sm:$0xf] %v12783_v47  ;;  %v12815_v37 = vpack.c.bf16 %v4536_v46, %v4536_v46  ;;  %v4537_v3 = vld [vmem:[#allocation3 + $0x14f] sm:$0xff]  ;;  %v2514_v18 = vld [vmem:[#allocation3 + $0x1e5] sm:$0xff] }
 0x297   :  { %4505 = vst [vmem:[#allocation4 + $0x250] sm:$0xf] %v12784_v4  ;;  %v17515_v15 = vld [vmem:[#allocation32_spill] sm:$0xff]  ;;  %v12816_v1 = vpack.c.bf16 %v4537_v3, %v4537_v3  ;;  %v12537_v32 = vpack.c.bf16 %v2514_v18, %v2514_v18  ;;  %v15054_v9 = vld [vmem:[#allocation5 + $0x58] ss:$0 sps:$4 sm:$0xff]   ;;  %v15275_v21 = vld [vmem:[#allocation13 + $0x150] sm:$0xff]  }
 0x298   :  { %v4099_v30 = vunpack.c.l.bf16 %v17515_v15  ;;  %6733 = vmatmul.mubr.bf16.gmra.mxu1 %v12033_v33  ;;  %4696 = vst [vmem:[#allocation4 + $0x238] sm:$0xf] %v12815_v37  ;;  %v2706_v44 = vld [vmem:[#allocation3 + $0x1e6] sm:$0xff]  ;;  %v2707_v22 = vld [vmem:[#allocation3 + $0x1ee] sm:$0xff]  ;;  %v15055_v18 = vld [vmem:[#allocation5 + $0x5c] ss:$0 sps:$4 sm:$0xff]  }
 0x299   :  { %v2898_v27 = vld [vmem:[#allocation3 + $0x1e7] sm:$0xff]  ;;  %v12569_v57 = vpack.c.bf16 %v2706_v44, %v2706_v44  ;;  %v2899_v4 = vld [vmem:[#allocation3 + $0x1ef] sm:$0xff]  ;;  %4697 = vst [vmem:[#allocation4 + $0x254] sm:$0xf] %v12816_v1  ;;  %2674 = vst [vmem:[#allocation4 + $0x348] sm:$0xf] %v12537_v32  ;;  %v12570_v40 = vpack.c.bf16 %v2707_v22, %v2707_v22 }
 0x29a   :  { %v2515_v23 = vld [vmem:[#allocation3 + $0x1ed] sm:$0xff]  ;;  %v12601_v47 = vpack.c.bf16 %v2898_v27, %v2898_v27  ;;  %v12602_v35 = vpack.c.bf16 %v2899_v4, %v2899_v4  ;;  %v16138_v32 = vld [vmem:[#allocation4 + $0x284] sm:$0xff]  ;;  %17518 = vst [vmem:[#allocation32_spill] sm:$0xff] %v16140_v31  ;;  %4890 = vst [vmem:[#allocation4 + $0x274] sm:$0xf] %v15054_v9 }
 0x29b   :  { %v12538_v2 = vpack.c.bf16 %v2515_v23, %v2515_v23  ;;  %v16124_v46 = vld [vmem:[#allocation3 + $0x1e9] sm:$0xff]  ;;  %v16126_v15 = vld [vmem:[#allocation3 + $0x1f1] sm:$0xff]  ;;  %2866 = vst [vmem:[#allocation4 + $0x34c] sm:$0xf] %v12569_v57  ;;  %2867 = vst [vmem:[#allocation4 + $0x368] sm:$0xf] %v12570_v40 }
 0x29c   :  { %v16128_v33 = vld [vmem:[#allocation3 + $0x1ea] sm:$0xff]  ;;  %v16130_v37 = vld [vmem:[#allocation3 + $0x1f2] sm:$0xff]  ;;  %3058 = vst [vmem:[#allocation4 + $0x350] sm:$0xf] %v12601_v47  ;;  %3059 = vst [vmem:[#allocation4 + $0x36c] sm:$0xf] %v12602_v35 }
 0x29d   :  { %v16132_v14 = vld [vmem:[#allocation3 + $0x1eb] sm:$0xff]  ;;  %v16134_v3 = vld [vmem:[#allocation3 + $0x1f3] sm:$0xff]  ;;  %2675 = vst [vmem:[#allocation4 + $0x364] sm:$0xf] %v12538_v2  ;;  %17517 = vst [vmem:[#allocation31_spill] sm:$0xff] %v16138_v32 }
 0x29e   :  { %4130 = vst [vmem:[#allocation3 + $0x1e8] sm:$0xff] %v4098_v54  ;;  %4131 = vst [vmem:[#allocation3 + $0x1f0] sm:$0xff] %v4099_v30  ;;  %v16136_v1 = vld [vmem:[#allocation4 + $0x268] sm:$0xff]  ;;  %v5556_v23 = vld [vmem:[#allocation4 + $0x230] sm:$0xff]  ;;  %v12725_v30 = vpack.c.bf16 %v16090_v39, %v16090_v39  ;;  %v12726_v54 = vpack.c.bf16 %v16092_v41, %v16092_v41 }
 0x29f   :  { %17516 = vst [vmem:[#allocation30_spill] sm:$0xff] %v16136_v1  ;;  %v4154_v44 = vld [vmem:[#allocation3 + $0x165] sm:$0xff]  ;;  %v4155_v27 = vld [vmem:[#allocation3 + $0x16d] sm:$0xff]  ;;  %v15046_v39 = vld [vmem:[#allocation4 + $0x23c] ss:$28 sps:$4 sm:$0xff]  }
 0x2a0   :  { %v12753_v22 = vpack.c.bf16 %v4154_v44, %v4154_v44  ;;  %v12754_v57 = vpack.c.bf16 %v4155_v27, %v4155_v27  ;;  %v4346_v47 = vld [vmem:[#allocation3 + $0x166] sm:$0xff]  ;;  %v4347_v4 = vld [vmem:[#allocation3 + $0x16e] sm:$0xff]  ;;  %3822 = vst [vmem:[#allocation4 + $0x2f0] sm:$0xf] %v12725_v30  ;;  %3823 = vst [vmem:[#allocation4 + $0x30c] sm:$0xf] %v12726_v54  ;;  %6901 = vmatprep.mubr.bf16.mxu0 %v15046_v39 }
 0x2a1   :  { %v5560_v20 = vld [vmem:[#allocation4 + $0x24c] sm:$0xff]  ;;  %v12785_v19 = vpack.c.bf16 %v4346_v47, %v4346_v47  ;;  %v12786_v2 = vpack.c.bf16 %v4347_v4, %v4347_v4  ;;  %v16148_v4 = vld [vmem:[#allocation4 + $0x2bc] sm:$0xff]  ;;  %v15048_v41 = vld [vmem:[#allocation4 + $0x238] ss:$28 sps:$4 sm:$0xff]  }
 0x2a2   :  { %v15042_v45 = vld [vmem:[#allocation4 + $0x234] ss:$28 sps:$4 sm:$0xff]   ;;  %v12040_v40 = vcombine.low %v5556_v23, %v5560_v20  ;;  %4314 = vst [vmem:[#allocation4 + $0x268] sm:$0xf] %v12753_v22  ;;  %4315 = vst [vmem:[#allocation4 + $0x284] sm:$0xf] %v12754_v57  ;;  %6902 = vmatmul.mubr.bf16.gmra.mxu0 %v15048_v41  ;;  %v12727_v41 = vpack.c.bf16 %v16110_v62, %v16110_v62 }
 0x2a3   :  { %v16146_v35 = vld [vmem:[#allocation4 + $0x28c] sm:$0xff]  ;;  %6740 = vmatprep.mubr.bf16.mxu1 %v15042_v45  ;;  %4506 = vst [vmem:[#allocation4 + $0x26c] sm:$0xf] %v12785_v19  ;;  %4507 = vst [vmem:[#allocation4 + $0x288] sm:$0xf] %v12786_v2  ;;  %v16150_v23 = vld [vmem:[#allocation4 + $0x2a0] sm:$0xff] }
 0x2a4   :  { %17519 = vst [vmem:[#allocation57_spill] sm:$0xff] %v16146_v35  ;;  %v4538_v44 = vld [vmem:[#allocation3 + $0x167] sm:$0xff]  ;;  %v4539_v27 = vld [vmem:[#allocation3 + $0x16f] sm:$0xff]  ;;  %4891 = vst [vmem:[#allocation4 + $0x290] sm:$0xf] %v15055_v18  ;;  %6741 = vmatmul.mubr.bf16.gmra.mxu1 %v12040_v40 }
 0x2a5   :  { %v12817_v47 = vpack.c.bf16 %v4538_v44, %v4538_v44  ;;  %17520 = vst [vmem:[#allocation58_spill] sm:$0xff] %v16148_v4  ;;  %v12818_v20 = vpack.c.bf16 %v4539_v27, %v4539_v27  ;;  %17521 = vst [vmem:[#allocation59_spill] sm:$0xff] %v16150_v23  ;;  %v4156_v22 = vld [vmem:[#allocation3 + $0x185] sm:$0xff]  ;;  %v4157_v57 = vld [vmem:[#allocation3 + $0x18d] sm:$0xff] }
 0x2a6   :  { %v4348_v9 = vld [vmem:[#allocation3 + $0x186] sm:$0xff]  ;;  %v12755_v19 = vpack.c.bf16 %v4156_v22, %v4156_v22  ;;  %v12756_v45 = vpack.c.bf16 %v4157_v57, %v4157_v57  ;;  %v4349_v2 = vld [vmem:[#allocation3 + $0x18e] sm:$0xff]  ;;  %v15062_v39 = vld [vmem:[#allocation5 + $0x64] ss:$0 sps:$4 sm:$0xff]   ;;  %3824 = vst [vmem:[#allocation4 + $0x328] sm:$0xf] %v12727_v41 }
 0x2a7   :  { %4698 = vst [vmem:[#allocation4 + $0x270] sm:$0xf] %v12817_v47  ;;  %4699 = vst [vmem:[#allocation4 + $0x28c] sm:$0xf] %v12818_v20  ;;  %v12787_v18 = vpack.c.bf16 %v4348_v9, %v4348_v9  ;;  %v16152_v44 = vld [vmem:[#allocation4 + $0x2a8] sm:$0xff]  ;;  %v12788_v54 = vpack.c.bf16 %v4349_v2, %v4349_v2  ;;  %v16156_v9 = vld [vmem:[#allocation4 + $0x2f4] sm:$0xff]  ;;  %v12728_v2 = vpack.c.bf16 %v16112_v63, %v16112_v63 }
 0x2a8   :  { %17522 = vst [vmem:[#allocation60_spill] sm:$0xff] %v16152_v44  ;;  %v16154_v30 = vld [vmem:[#allocation4 + $0x2c4] sm:$0xff]  ;;  %v4541_v27 = vld [vmem:[#allocation3 + $0x18f] sm:$0xff]  ;;  %v15061_v47 = vld [vmem:[#allocation5 + $0x60] ss:$0 sps:$4 sm:$0xff]  }
 0x2a9   :  { %17523 = vst [vmem:[#allocation61_spill] sm:$0xff] %v16154_v30  ;;  %v4540_v40 = vld [vmem:[#allocation3 + $0x187] sm:$0xff]  ;;  %4316 = vst [vmem:[#allocation4 + $0x2a0] sm:$0xf] %v12755_v19  ;;  %v12820_v35 = vpack.c.bf16 %v4541_v27, %v4541_v27  ;;  %v12695_v19 = vpack.c.bf16 %v16106_v6, %v16106_v6  ;;  %v16166_v6 = vld [vmem:[#allocation4 + $0x2d8] sm:$0xff] }
 0x2aa   :  { %4317 = vst [vmem:[#allocation4 + $0x2bc] sm:$0xf] %v12756_v45  ;;  %4508 = vst [vmem:[#allocation4 + $0x2a4] sm:$0xf] %v12787_v18  ;;  %v12819_v31 = vpack.c.bf16 %v4540_v40, %v4540_v40  ;;  %v15066_v20 = vld [vmem:[#allocation11 + $0x148] sm:$0xff]   ;;  %v12696_v45 = vpack.c.bf16 %v16108_v24, %v16108_v24 }
 0x2ab   :  { %v15067_v22 = vld [vmem:[#allocation11 + $0x108] sm:$0xff]   ;;  %4509 = vst [vmem:[#allocation4 + $0x2c0] sm:$0xf] %v12788_v54  ;;  %4892 = vst [vmem:[#allocation4 + $0x2ac] sm:$0xf] %v15061_v47  ;;  %13678 = vmatprep.subr.bf16.mxu1 %v15066_v20 }
 0x2ac   :  { %v15068_v57 = vld [vmem:[#allocation11 + $0x188] sm:$0xff]   ;;  %17524 = vst [vmem:[#allocation62_spill] sm:$0xff] %v16156_v9  ;;  %4700 = vst [vmem:[#allocation4 + $0x2a8] sm:$0xf] %v12819_v31  ;;  %13679 = vmatpush3.bf16.msra.mxu1 %v15067_v22  ;;  %v15156_v9 = vld [vmem:[#allocation13 + $0xb0] sm:$0xff]  }
 0x2ad   :  { %v5564_v18 = vld [vmem:[#allocation4 + $0x268] sm:$0xff]  ;;  %4701 = vst [vmem:[#allocation4 + $0x2c4] sm:$0xf] %v12820_v35  ;;  %4893 = vst [vmem:[#allocation4 + $0x2c8] sm:$0xf] %v15062_v39  ;;  %14582 = vmatprep.subr.bf16.mxu0 %v15068_v57 }
 0x2ae   :  { %v5568_v40 = vld [vmem:[#allocation4 + $0x284] sm:$0xff]  ;;  %v4159_v47 = vld [vmem:[#allocation3 + $0x1ad] sm:$0xff]  ;;  %3825 = vst [vmem:[#allocation4 + $0x344] sm:$0xf] %v12728_v2  ;;  %3632 = vst [vmem:[#allocation4 + $0x324] sm:$0xf] %v12695_v19  ;;  %14583 = vmatpush3.bf16.msra.mxu0 %v15068_v57 }
 0x2af   :  { %v15052_v27 = vld [vmem:[#allocation4 + $0x26c] ss:$28 sps:$4 sm:$0xff]   ;;  %v12047_v54 = vcombine.low %v5564_v18, %v5568_v40  ;;  %3633 = vst [vmem:[#allocation4 + $0x340] sm:$0xf] %v12696_v45  ;;  %17525 = vst [vmem:[#allocation63_spill] sm:$0xff] %v16166_v6  ;;  %v12758_v63 = vpack.c.bf16 %v4159_v47, %v4159_v47  ;;  %v16168_v18 = vld [vmem:[#allocation4 + $0x2fc] sm:$0xff] }
 0x2b0   :  { %v4158_v62 = vld [vmem:[#allocation3 + $0x1a5] sm:$0xff]  ;;  %6748 = vmatprep.mubr.bf16.mxu1 %v15052_v27  ;;  %v4351_v31 = vld [vmem:[#allocation3 + $0x1ae] sm:$0xff]  ;;  %17526 = vst [vmem:[#allocation64_spill] sm:$0xff] %v16168_v18 }
 0x2b1   :  { %v4350_v44 = vld [vmem:[#allocation3 + $0x1a6] sm:$0xff]  ;;  %v12757_v24 = vpack.c.bf16 %v4158_v62, %v4158_v62  ;;  %v15056_v39 = vld [vmem:[#allocation4 + $0x274] ss:$28 sps:$4 sm:$0xff]   ;;  %6749 = vmatmul.mubr.bf16.gmra.mxu1 %v12047_v54  ;;  %v12790_v22 = vpack.c.bf16 %v4351_v31, %v4351_v31  ;;  %4319 = vst [vmem:[#allocation4 + $0x2f4] sm:$0xf] %v12758_v63  ;;  %v12729_v63 = vpack.c.bf16 %v16132_v14, %v16132_v14 }
 0x2b2   :  { %v12789_v35 = vpack.c.bf16 %v4350_v44, %v4350_v44  ;;  %v15058_v20 = vld [vmem:[#allocation4 + $0x270] ss:$28 sps:$4 sm:$0xff]   ;;  %6909 = vmatprep.mubr.bf16.mxu0 %v15056_v39  ;;  %v5572_v19 = vld [vmem:[#allocation4 + $0x2a0] sm:$0xff]  ;;  %v15071_v40 = vld [vmem:[#allocation5 + $0x68] ss:$0 sps:$4 sm:$0xff]   ;;  %v12730_v31 = vpack.c.bf16 %v16134_v3, %v16134_v3  ;;  %v12698_v14 = vpack.c.bf16 %v16130_v37, %v16130_v37 }
 0x2b3   :  { %4318 = vst [vmem:[#allocation4 + $0x2d8] sm:$0xf] %v12757_v24  ;;  %v4542_v41 = vld [vmem:[#allocation3 + $0x1a7] sm:$0xff]  ;;  %v4543_v2 = vld [vmem:[#allocation3 + $0x1af] sm:$0xff]  ;;  %4511 = vst [vmem:[#allocation4 + $0x2f8] sm:$0xf] %v12790_v22  ;;  %6910 = vmatmul.mubr.bf16.gmra.mxu0 %v15058_v20 }
 0x2b4   :  { %4510 = vst [vmem:[#allocation4 + $0x2dc] sm:$0xf] %v12789_v35  ;;  %v12821_v57 = vpack.c.bf16 %v4542_v41, %v4542_v41  ;;  %v12822_v45 = vpack.c.bf16 %v4543_v2, %v4543_v2  ;;  %v15072_v27 = vld [vmem:[#allocation5 + $0x6c] ss:$0 sps:$4 sm:$0xff]   ;;  %v5576_v44 = vld [vmem:[#allocation4 + $0x2bc] sm:$0xff]  ;;  %v12665_v35 = vpack.c.bf16 %v16124_v46, %v16124_v46  ;;  %v16178_v20 = vld [vmem:[#allocation4 + $0x310] sm:$0xff]  ;;  %v12666_v2 = vpack.c.bf16 %v16126_v15, %v16126_v15 }
 0x2b5   :  { %v15059_v62 = vld [vmem:[#allocation4 + $0x2a4] ss:$28 sps:$4 sm:$0xff]   ;;  %v15063_v47 = vld [vmem:[#allocation4 + $0x2ac] ss:$28 sps:$4 sm:$0xff]   ;;  %v12054_v24 = vcombine.low %v5572_v19, %v5576_v44  ;;  %4895 = vst [vmem:[#allocation4 + $0x300] sm:$0xf] %v15072_v27  ;;  %v12697_v19 = vpack.c.bf16 %v16128_v33, %v16128_v33 }
 0x2b6   :  { %v16170_v54 = vld [vmem:[#allocation4 + $0x2e0] sm:$0xff]  ;;  %4703 = vst [vmem:[#allocation4 + $0x2fc] sm:$0xf] %v12822_v45  ;;  %6756 = vmatprep.mubr.bf16.mxu1 %v15059_v62  ;;  %17528 = vst [vmem:[#allocation66_spill] sm:$0xff] %v16178_v20  ;;  %v16180_v22 = vld [vmem:[#allocation4 + $0x32c] sm:$0xff]  ;;  %6917 = vmatprep.mubr.bf16.mxu0 %v15063_v47 }
 0x2b7   :  { %17527 = vst [vmem:[#allocation65_spill] sm:$0xff] %v16170_v54  ;;  %4702 = vst [vmem:[#allocation4 + $0x2e0] sm:$0xf] %v12821_v57  ;;  %v15065_v39 = vld [vmem:[#allocation4 + $0x2a8] ss:$28 sps:$4 sm:$0xff]   ;;  %v4161_v3 = vld [vmem:[#allocation3 + $0x1cd] sm:$0xff] }
 0x2b8   :  { %4894 = vst [vmem:[#allocation4 + $0x2e4] sm:$0xf] %v15071_v40  ;;  %17529 = vst [vmem:[#allocation67_spill] sm:$0xff] %v16180_v22  ;;  %v4160_v41 = vld [vmem:[#allocation3 + $0x1c5] sm:$0xff]  ;;  %v4353_v45 = vld [vmem:[#allocation3 + $0x1ce] sm:$0xff]  ;;  %v12760_v40 = vpack.c.bf16 %v4161_v3, %v4161_v3 }
 0x2b9   :  { %v12759_v57 = vpack.c.bf16 %v4160_v41, %v4160_v41  ;;  %v4352_v46 = vld [vmem:[#allocation3 + $0x1c6] sm:$0xff]  ;;  %3826 = vst [vmem:[#allocation4 + $0x360] sm:$0xf] %v12729_v63  ;;  %3827 = vst [vmem:[#allocation4 + $0x37c] sm:$0xf] %v12730_v31  ;;  %v12792_v44 = vpack.c.bf16 %v4353_v45, %v4353_v45  ;;  %v16188_v62 = vld [vmem:[#allocation4 + $0x318] sm:$0xff]  ;;  %6757 = vmatmul.mubr.bf16.gmra.mxu1 %v12054_v24 }
 0x2ba   :  { %3442 = vst [vmem:[#allocation4 + $0x358] sm:$0xf] %v12665_v35  ;;  %v12791_v27 = vpack.c.bf16 %v4352_v46, %v4352_v46  ;;  %17530 = vst [vmem:[#allocation68_spill] sm:$0xff] %v16188_v62  ;;  %v16190_v15 = vld [vmem:[#allocation4 + $0x334] sm:$0xff]  ;;  %v4544_v54 = vld [vmem:[#allocation3 + $0x1c7] sm:$0xff] }
 0x2bb   :  { %17531 = vst [vmem:[#allocation69_spill] sm:$0xff] %v16190_v15  ;;  %3443 = vst [vmem:[#allocation4 + $0x374] sm:$0xf] %v12666_v2  ;;  %v5580_v33 = vld [vmem:[#allocation4 + $0x2d8] sm:$0xff]  ;;  %v4545_v37 = vld [vmem:[#allocation3 + $0x1cf] sm:$0xff]  ;;  %v12823_v47 = vpack.c.bf16 %v4544_v54, %v4544_v54  ;;  %6918 = vmatmul.mubr.bf16.gmra.mxu0 %v15065_v39 }
 0x2bc   :  { %3634 = vst [vmem:[#allocation4 + $0x35c] sm:$0xf] %v12697_v19  ;;  %3635 = vst [vmem:[#allocation4 + $0x378] sm:$0xf] %v12698_v14  ;;  %v15078_v41 = vld [vmem:[#allocation5 + $0x70] ss:$0 sps:$4 sm:$0xff]   ;;  %v12824_v35 = vpack.c.bf16 %v4545_v37, %v4545_v37 }
 0x2bd   :  { %4320 = vst [vmem:[#allocation4 + $0x310] sm:$0xf] %v12759_v57  ;;  %v5584_v63 = vld [vmem:[#allocation4 + $0x2f4] sm:$0xff]  ;;  %4321 = vst [vmem:[#allocation4 + $0x32c] sm:$0xf] %v12760_v40  ;;  %v15083_v46 = vld [vmem:[#allocation11 + $0x140] sm:$0xff]  }
 0x2be   :  { %v15069_v31 = vld [vmem:[#allocation4 + $0x2dc] ss:$28 sps:$4 sm:$0xff]   ;;  %4512 = vst [vmem:[#allocation4 + $0x314] sm:$0xf] %v12791_v27  ;;  %4513 = vst [vmem:[#allocation4 + $0x330] sm:$0xf] %v12792_v44  ;;  %v12061_v19 = vcombine.low %v5580_v33, %v5584_v63  ;;  %13680 = vmatprep.subr.bf16.mxu1 %v15083_v46 }
 0x2bf   :  { %v15079_v3 = vld [vmem:[#allocation5 + $0x74] ss:$0 sps:$4 sm:$0xff]   ;;  %4704 = vst [vmem:[#allocation4 + $0x318] sm:$0xf] %v12823_v47  ;;  %4896 = vst [vmem:[#allocation4 + $0x31c] sm:$0xf] %v15078_v41  ;;  %6764 = vmatprep.mubr.bf16.mxu1 %v15069_v31 }
 0x2c0   :  { %v15084_v45 = vld [vmem:[#allocation11 + $0x100] sm:$0xff]   ;;  %4705 = vst [vmem:[#allocation4 + $0x334] sm:$0xf] %v12824_v35  ;;  %4897 = vst [vmem:[#allocation4 + $0x338] sm:$0xf] %v15079_v3  ;;  %v4163_v40 = vld [vmem:[#allocation3 + $0x1ed] sm:$0xff] }
 0x2c1   :  { %v15085_v2 = vld [vmem:[#allocation11 + $0x180] sm:$0xff]   ;;  %13681 = vmatpush3.bf16.msra.mxu1 %v15084_v45  ;;  %v16194_v44 = vld [vmem:[#allocation4 + $0x348] sm:$0xff]  ;;  %v12762_v39 = vpack.c.bf16 %v4163_v40, %v4163_v40  ;;  %v15088_v3 = vld [vmem:[#allocation5 + $0x78] ss:$0 sps:$4 sm:$0xff]  }
 0x2c2   :  { %v15073_v24 = vld [vmem:[#allocation4 + $0x2e4] ss:$28 sps:$4 sm:$0xff]   ;;  %14584 = vmatprep.subr.bf16.mxu0 %v15085_v2  ;;  %17533 = vst [vmem:[#allocation71_spill] sm:$0xff] %v16194_v44  ;;  %v4355_v47 = vld [vmem:[#allocation3 + $0x1ee] sm:$0xff]  ;;  %6765 = vmatmul.mubr.bf16.gmra.mxu1 %v12061_v19  ;;  %v15089_v40 = vld [vmem:[#allocation5 + $0x7c] ss:$0 sps:$4 sm:$0xff]  }
 0x2c3   :  { %v16192_v54 = vld [vmem:[#allocation4 + $0x364] sm:$0xff]  ;;  %6925 = vmatprep.mubr.bf16.mxu0 %v15073_v24  ;;  %v15075_v14 = vld [vmem:[#allocation4 + $0x2e0] ss:$28 sps:$4 sm:$0xff]   ;;  %14585 = vmatpush3.bf16.msra.mxu0 %v15085_v2  ;;  %v16196_v31 = vld [vmem:[#allocation4 + $0x36c] sm:$0xff]  ;;  %v12794_v33 = vpack.c.bf16 %v4355_v47, %v4355_v47 }
 0x2c4   :  { %17532 = vst [vmem:[#allocation70_spill] sm:$0xff] %v16192_v54  ;;  %v4162_v57 = vld [vmem:[#allocation3 + $0x1e5] sm:$0xff]  ;;  %17534 = vst [vmem:[#allocation72_spill] sm:$0xff] %v16196_v31  ;;  %v4547_v35 = vld [vmem:[#allocation3 + $0x1ef] sm:$0xff]  ;;  %6926 = vmatmul.mubr.bf16.gmra.mxu0 %v15075_v14 }
 0x2c5   :  { %v4354_v27 = vld [vmem:[#allocation3 + $0x1e6] sm:$0xff]  ;;  %v12761_v37 = vpack.c.bf16 %v4162_v57, %v4162_v57  ;;  %v5588_v46 = vld [vmem:[#allocation4 + $0x310] sm:$0xff]  ;;  %4323 = vst [vmem:[#allocation4 + $0x364] sm:$0xf] %v12762_v39  ;;  %v12826_v62 = vpack.c.bf16 %v4547_v35, %v4547_v35  ;;  %4515 = vst [vmem:[#allocation4 + $0x368] sm:$0xf] %v12794_v33 }
 0x2c6   :  { %v12793_v41 = vpack.c.bf16 %v4354_v27, %v4354_v27  ;;  %v4546_v63 = vld [vmem:[#allocation3 + $0x1e7] sm:$0xff]  ;;  %v15076_v24 = vld [vmem:[#allocation4 + $0x314] ss:$28 sps:$4 sm:$0xff]   ;;  %4899 = vst [vmem:[#allocation4 + $0x370] sm:$0xf] %v15089_v40 }
 0x2c7   :  { %4322 = vst [vmem:[#allocation4 + $0x348] sm:$0xf] %v12761_v37  ;;  %v16198_v45 = vld [vmem:[#allocation4 + $0x350] sm:$0xff]  ;;  %v12825_v2 = vpack.c.bf16 %v4546_v63, %v4546_v63  ;;  %6772 = vmatprep.mubr.bf16.mxu1 %v15076_v24  ;;  %v15080_v27 = vld [vmem:[#allocation4 + $0x31c] ss:$28 sps:$4 sm:$0xff]   ;;  %v16314_v20 = vld [vmem:[#allocation4 + $0x2e8] sm:$0xff] }
 0x2c8   :  { %4514 = vst [vmem:[#allocation4 + $0x34c] sm:$0xf] %v12793_v41  ;;  %17535 = vst [vmem:[#allocation73_spill] sm:$0xff] %v16198_v45  ;;  %v5592_v57 = vld [vmem:[#allocation4 + $0x32c] sm:$0xff]  ;;  %6933 = vmatprep.mubr.bf16.mxu0 %v15080_v27  ;;  %v15082_v31 = vld [vmem:[#allocation4 + $0x318] ss:$28 sps:$4 sm:$0xff]  }
 0x2c9   :  { %4898 = vst [vmem:[#allocation4 + $0x354] sm:$0xf] %v15088_v3  ;;  %4706 = vst [vmem:[#allocation4 + $0x350] sm:$0xf] %v12825_v2  ;;  %v4900_v19 = vld [vmem:[#allocation3 + $0x9] sm:$0xff]  ;;  %v4901_v47 = vld [vmem:[#allocation3 + $0x11] sm:$0xff]  ;;  %v12068_v37 = vcombine.low %v5588_v46, %v5592_v57 }
 0x2ca   :  { %4707 = vst [vmem:[#allocation4 + $0x36c] sm:$0xf] %v12826_v62  ;;  %v16200_v39 = vld [vmem:[#allocation4 + $0x10] sm:$0xff]  ;;  %v12859_v41 = vpack.c.bf16 %v4900_v19, %v4900_v19  ;;  %v12860_v45 = vpack.c.bf16 %v4901_v47, %v4901_v47  ;;  %v16204_v62 = vld [vmem:[#allocation4 + $0x18] sm:$0xf]  ;;  %17590 = vst [vmem:[#allocation128_spill] sm:$0xff] %v16314_v20 }
 0x2cb   :  { %17536 = vst [vmem:[#allocation74_spill] sm:$0xff] %v16200_v39  ;;  %v5092_v63 = vld [vmem:[#allocation3 + $0xa] sm:$0xff]  ;;  %v5093_v35 = vld [vmem:[#allocation3 + $0x12] sm:$0xff]  ;;  %17538 = vst [vmem:[#allocation76_spill] sm:$0xff] %v16204_v62  ;;  %6773 = vmatmul.mubr.bf16.gmra.mxu1 %v12068_v37 }
 0x2cc   :  { %v16202_v33 = vld [vmem:[#allocation4 + $0x2c] sm:$0xff]  ;;  %v12891_v3 = vpack.c.bf16 %v5092_v63, %v5092_v63  ;;  %v12892_v24 = vpack.c.bf16 %v5093_v35, %v5093_v35  ;;  %5060 = vst [vmem:[#allocation4 + $0x10] sm:$0xf] %v12859_v41  ;;  %v16206_v14 = vld [vmem:[#allocation4 + $0x34] sm:$0xf]  ;;  %v5600_v18 = vld [vmem:[#allocation4 + $0x364] sm:$0xff]  ;;  %6934 = vmatmul.mubr.bf16.gmra.mxu0 %v15082_v31 }
 0x2cd   :  { %17537 = vst [vmem:[#allocation75_spill] sm:$0xff] %v16202_v33  ;;  %v5284_v15 = vld [vmem:[#allocation3 + $0xb] sm:$0xff]  ;;  %v5285_v2 = vld [vmem:[#allocation3 + $0x13] sm:$0xff]  ;;  %5061 = vst [vmem:[#allocation4 + $0x2c] sm:$0xf] %v12860_v45 }
 0x2ce   :  { %17539 = vst [vmem:[#allocation77_spill] sm:$0xff] %v16206_v14  ;;  %v12923_v46 = vpack.c.bf16 %v5284_v15, %v5284_v15  ;;  %v12924_v57 = vpack.c.bf16 %v5285_v2, %v5285_v2  ;;  %v5286_v40 = vld [vmem:[#allocation3 + $0x2b] sm:$0xff]  ;;  %5252 = vst [vmem:[#allocation4 + $0x14] sm:$0xf] %v12891_v3  ;;  %v5287_v47 = vld [vmem:[#allocation3 + $0x33] sm:$0xff] }
 0x2cf   :  { %5253 = vst [vmem:[#allocation4 + $0x30] sm:$0xf] %v12892_v24  ;;  %v16208_v27 = vld [vmem:[#allocation4 + $0x50] sm:$0xf]  ;;  %v16210_v19 = vld [vmem:[#allocation4 + $0x6c] sm:$0xf]  ;;  %v12925_v63 = vpack.c.bf16 %v5286_v40, %v5286_v40  ;;  %v12926_v45 = vpack.c.bf16 %v5287_v47, %v5287_v47 }
 0x2d0   :  { %17540 = vst [vmem:[#allocation78_spill] sm:$0xff] %v16208_v27  ;;  %17541 = vst [vmem:[#allocation79_spill] sm:$0xff] %v16210_v19  ;;  %v5596_v35 = vld [vmem:[#allocation4 + $0x348] sm:$0xff]  ;;  %v4903_v15 = vld [vmem:[#allocation3 + $0x31] sm:$0xff] }
 0x2d1   :  { %v15086_v41 = vld [vmem:[#allocation4 + $0x34c] ss:$28 sps:$4 sm:$0xff]   ;;  %5444 = vst [vmem:[#allocation4 + $0x18] sm:$0xf] %v12923_v46  ;;  %5445 = vst [vmem:[#allocation4 + $0x34] sm:$0xf] %v12924_v57  ;;  %v12862_v27 = vpack.c.bf16 %v4903_v15, %v4903_v15  ;;  %v12075_v14 = vcombine.low %v5596_v35, %v5600_v18 }
 0x2d2   :  { %5446 = vst [vmem:[#allocation4 + $0x50] sm:$0xf] %v12925_v63  ;;  %v4902_v62 = vld [vmem:[#allocation3 + $0x29] sm:$0xff]  ;;  %6780 = vmatprep.mubr.bf16.mxu1 %v15086_v41  ;;  %5447 = vst [vmem:[#allocation4 + $0x6c] sm:$0xf] %v12926_v45  ;;  %v5095_v40 = vld [vmem:[#allocation3 + $0x32] sm:$0xff] }
 0x2d3   :  { %v15090_v2 = vld [vmem:[#allocation4 + $0x354] ss:$28 sps:$4 sm:$0xff]   ;;  %v16212_v3 = vld [vmem:[#allocation4 + $0x48] sm:$0xff]  ;;  %v12861_v24 = vpack.c.bf16 %v4902_v62, %v4902_v62  ;;  %v12894_v57 = vpack.c.bf16 %v5095_v40, %v5095_v40  ;;  %v16218_v45 = vld [vmem:[#allocation4 + $0xa4] sm:$0xf]  ;;  %6781 = vmatmul.mubr.bf16.gmra.mxu1 %v12075_v14 }
 0x2d4   :  { %17542 = vst [vmem:[#allocation80_spill] sm:$0xff] %v16212_v3  ;;  %v16214_v19 = vld [vmem:[#allocation4 + $0x64] sm:$0xff]  ;;  %6941 = vmatprep.mubr.bf16.mxu0 %v15090_v2  ;;  %v5289_v63 = vld [vmem:[#allocation3 + $0x53] sm:$0xff]  ;;  %17545 = vst [vmem:[#allocation83_spill] sm:$0xff] %v16218_v45 }
 0x2d5   :  { %17543 = vst [vmem:[#allocation81_spill] sm:$0xff] %v16214_v19  ;;  %v5094_v37 = vld [vmem:[#allocation3 + $0x2a] sm:$0xff]  ;;  %5062 = vst [vmem:[#allocation4 + $0x48] sm:$0xf] %v12861_v24  ;;  %v12928_v15 = vpack.c.bf16 %v5289_v63, %v5289_v63  ;;  %v16220_v3 = vld [vmem:[#allocation4 + $0x80] sm:$0xff] }
 0x2d6   :  { %5063 = vst [vmem:[#allocation4 + $0x64] sm:$0xf] %v12862_v27  ;;  %v12893_v46 = vpack.c.bf16 %v5094_v37, %v5094_v37  ;;  %v5288_v47 = vld [vmem:[#allocation3 + $0x4b] sm:$0xff]  ;;  %5255 = vst [vmem:[#allocation4 + $0x68] sm:$0xf] %v12894_v57  ;;  %v5291_v14 = vld [vmem:[#allocation3 + $0x73] sm:$0xff] }
 0x2d7   :  { %v15092_v41 = vld [vmem:[#allocation4 + $0x350] ss:$28 sps:$4 sm:$0xff]   ;;  %v16216_v30 = vld [vmem:[#allocation4 + $0x88] sm:$0xf]  ;;  %v12927_v62 = vpack.c.bf16 %v5288_v47, %v5288_v47  ;;  %17546 = vst [vmem:[#allocation84_spill] sm:$0xff] %v16220_v3 }
 0x2d8   :  { %17544 = vst [vmem:[#allocation82_spill] sm:$0xff] %v16216_v30  ;;  %v4904_v31 = vld [vmem:[#allocation3 + $0x49] sm:$0xff]  ;;  %5254 = vst [vmem:[#allocation4 + $0x4c] sm:$0xf] %v12893_v46  ;;  %v15096_v27 = vld [vmem:[#allocation4 + $0x18] ss:$28 sps:$4 sm:$0xff]   ;;  %6942 = vmatmul.mubr.bf16.gmra.mxu0 %v15092_v41 }
 0x2d9   :  { %v12863_v2 = vpack.c.bf16 %v4904_v31, %v4904_v31  ;;  %v15095_v18 = vld [vmem:[#allocation4 + $0x14] ss:$28 sps:$4 sm:$0xff]   ;;  %5448 = vst [vmem:[#allocation4 + $0x88] sm:$0xf] %v12927_v62  ;;  %5449 = vst [vmem:[#allocation4 + $0xa4] sm:$0xf] %v12928_v15  ;;  %14586 = vmatprep.mubr.bf16.mxu0 %v15096_v27 }
 0x2da   :  { %v4905_v35 = vld [vmem:[#allocation3 + $0x51] sm:$0xff]  ;;  %6982 = vmatprep.mubr.bf16.mxu1 %v15095_v18  ;;  %v16222_v30 = vld [vmem:[#allocation4 + $0x9c] sm:$0xff] }
 0x2db   :  { %5064 = vst [vmem:[#allocation4 + $0x80] sm:$0xf] %v12863_v2  ;;  %v12864_v24 = vpack.c.bf16 %v4905_v35, %v4905_v35  ;;  %v5096_v37 = vld [vmem:[#allocation3 + $0x4a] sm:$0xff]  ;;  %17547 = vst [vmem:[#allocation85_spill] sm:$0xff] %v16222_v30  ;;  %v5097_v47 = vld [vmem:[#allocation3 + $0x52] sm:$0xff]  ;;  %v12930_v2 = vpack.c.bf16 %v5291_v14, %v5291_v14 }
 0x2dc   :  { %v15093_v40 = vld [vmem:[#allocation4 + $0x10] ss:$28 sps:$4 sm:$0xff]   ;;  %v12895_v63 = vpack.c.bf16 %v5096_v37, %v5096_v37  ;;  %v12896_v46 = vpack.c.bf16 %v5097_v47, %v5097_v47  ;;  %v16224_v57 = vld [vmem:[#allocation4 + $0xc0] sm:$0xf]  ;;  %v16226_v31 = vld [vmem:[#allocation4 + $0xdc] sm:$0xf] }
 0x2dd   :  { %5065 = vst [vmem:[#allocation4 + $0x9c] sm:$0xf] %v12864_v24  ;;  %17548 = vst [vmem:[#allocation86_spill] sm:$0xff] %v16224_v57  ;;  %v5290_v62 = vld [vmem:[#allocation3 + $0x6b] sm:$0xff]  ;;  %v16228_v18 = vld [vmem:[#allocation4 + $0xb8] sm:$0xff]  ;;  %6983 = vmatmul.mubr.bf16.vlgmr.msra.gmra.mxu1 %v15093_v40 }
 0x2de   :  { %17549 = vst [vmem:[#allocation87_spill] sm:$0xff] %v16226_v31  ;;  %5256 = vst [vmem:[#allocation4 + $0x84] sm:$0xf] %v12895_v63  ;;  %v12929_v15 = vpack.c.bf16 %v5290_v62, %v5290_v62  ;;  %v4906_v35 = vld [vmem:[#allocation3 + $0x69] sm:$0xff]  ;;  %v4907_v45 = vld [vmem:[#allocation3 + $0x71] sm:$0xff] }
 0x2df   :  { %17550 = vst [vmem:[#allocation88_spill] sm:$0xff] %v16228_v18  ;;  %v15098_v3 = vld [vmem:[#allocation4 + $0x4c] ss:$28 sps:$4 sm:$0xff]   ;;  %5257 = vst [vmem:[#allocation4 + $0xa0] sm:$0xf] %v12896_v46  ;;  %v12865_v37 = vpack.c.bf16 %v4906_v35, %v4906_v35  ;;  %v12866_v41 = vpack.c.bf16 %v4907_v45, %v4907_v45  ;;  %v16230_v24 = vld [vmem:[#allocation4 + $0xd4] sm:$0xff] }
 0x2e0   :  { %5450 = vst [vmem:[#allocation4 + $0xc0] sm:$0xf] %v12929_v15  ;;  %5451 = vst [vmem:[#allocation4 + $0xdc] sm:$0xf] %v12930_v2  ;;  %v15097_v47 = vld [vmem:[#allocation4 + $0x50] ss:$28 sps:$4 sm:$0xff]   ;;  %6990 = vmatprep.mubr.bf16.mxu1 %v15098_v3 }
 0x2e1   :  { %17551 = vst [vmem:[#allocation89_spill] sm:$0xff] %v16230_v24  ;;  %5066 = vst [vmem:[#allocation4 + $0xb8] sm:$0xf] %v12865_v37  ;;  %v5098_v57 = vld [vmem:[#allocation3 + $0x6a] sm:$0xff]  ;;  %v5099_v27 = vld [vmem:[#allocation3 + $0x72] sm:$0xff]  ;;  %14587 = vmatmul.mubr.bf16.vlgmr.msra.gmra.mxu0 %v15097_v47 }
 0x2e2   :  { %5067 = vst [vmem:[#allocation4 + $0xd4] sm:$0xf] %v12866_v41  ;;  %v15101_v63 = vld [vmem:[#allocation4 + $0x88] ss:$28 sps:$4 sm:$0xff]   ;;  %v12897_v62 = vpack.c.bf16 %v5098_v57, %v5098_v57  ;;  %v12898_v14 = vpack.c.bf16 %v5099_v27, %v5099_v27  ;;  %v16232_v18 = vld [vmem:[#allocation4 + $0xf8] sm:$0xf] }
 0x2e3   :  { %v5292_v31 = vld [vmem:[#allocation3 + $0x8b] sm:$0xff]  ;;  %17552 = vst [vmem:[#allocation90_spill] sm:$0xff] %v16232_v18  ;;  %v5293_v46 = vld [vmem:[#allocation3 + $0x93] sm:$0xff]  ;;  %14590 = vmatprep.mubr.bf16.mxu0 %v15101_v63 }
 0x2e4   :  { %v12931_v35 = vpack.c.bf16 %v5292_v31, %v5292_v31  ;;  %v15100_v45 = vld [vmem:[#allocation4 + $0x48] ss:$28 sps:$4 sm:$0xff]   ;;  %5258 = vst [vmem:[#allocation4 + $0xbc] sm:$0xf] %v12897_v62  ;;  %5259 = vst [vmem:[#allocation4 + $0xd8] sm:$0xf] %v12898_v14  ;;  %v12932_v15 = vpack.c.bf16 %v5293_v46, %v5293_v46 }
 0x2e5   :  { %v4908_v2 = vld [vmem:[#allocation3 + $0x89] sm:$0xff]  ;;  %v4909_v24 = vld [vmem:[#allocation3 + $0x91] sm:$0xff]  ;;  %6991 = vmatmul.mubr.bf16.gmra.mxu1 %v15100_v45 }
 0x2e6   :  { %v5100_v37 = vld [vmem:[#allocation3 + $0x8a] sm:$0xff]  ;;  %v16234_v41 = vld [vmem:[#allocation4 + $0x114] sm:$0xf]  ;;  %5452 = vst [vmem:[#allocation4 + $0xf8] sm:$0xf] %v12931_v35  ;;  %v12867_v40 = vpack.c.bf16 %v4908_v2, %v4908_v2  ;;  %v12868_v57 = vpack.c.bf16 %v4909_v24, %v4909_v24 }
 0x2e7   :  { %17553 = vst [vmem:[#allocation91_spill] sm:$0xff] %v16234_v41  ;;  %v5101_v27 = vld [vmem:[#allocation3 + $0x92] sm:$0xff]  ;;  %v12899_v30 = vpack.c.bf16 %v5100_v37, %v5100_v37  ;;  %5453 = vst [vmem:[#allocation4 + $0x114] sm:$0xf] %v12932_v15  ;;  %v15102_v14 = vld [vmem:[#allocation4 + $0x84] ss:$28 sps:$4 sm:$0xff]  }
 0x2e8   :  { %v16236_v3 = vld [vmem:[#allocation4 + $0xf0] sm:$0xff]  ;;  %v12900_v62 = vpack.c.bf16 %v5101_v27, %v5101_v27  ;;  %v15104_v2 = vld [vmem:[#allocation4 + $0xc0] ss:$28 sps:$4 sm:$0xff]   ;;  %v16242_v24 = vld [vmem:[#allocation4 + $0x14c] sm:$0xf]  ;;  %6998 = vmatprep.mubr.bf16.mxu1 %v15102_v14 }
 0x2e9   :  { %17554 = vst [vmem:[#allocation92_spill] sm:$0xff] %v16236_v3  ;;  %v16238_v31 = vld [vmem:[#allocation4 + $0x10c] sm:$0xff]  ;;  %5068 = vst [vmem:[#allocation4 + $0xf0] sm:$0xf] %v12867_v40  ;;  %14591 = vmatmul.mubr.bf16.gmra.mxu0 %v15104_v2  ;;  %v16248_v14 = vld [vmem:[#allocation4 + $0x168] sm:$0xf] }
 0x2ea   :  { %17555 = vst [vmem:[#allocation93_spill] sm:$0xff] %v16238_v31  ;;  %5069 = vst [vmem:[#allocation4 + $0x10c] sm:$0xf] %v12868_v57  ;;  %v16240_v47 = vld [vmem:[#allocation4 + $0x130] sm:$0xf] }
 0x2eb   :  { %5260 = vst [vmem:[#allocation4 + $0xf4] sm:$0xf] %v12899_v30  ;;  %5261 = vst [vmem:[#allocation4 + $0x110] sm:$0xf] %v12900_v62  ;;  %v5294_v46 = vld [vmem:[#allocation3 + $0xab] sm:$0xff]  ;;  %v5295_v35 = vld [vmem:[#allocation3 + $0xb3] sm:$0xff] }
 0x2ec   :  { %17556 = vst [vmem:[#allocation94_spill] sm:$0xff] %v16240_v47  ;;  %17557 = vst [vmem:[#allocation95_spill] sm:$0xff] %v16242_v24  ;;  %v12933_v37 = vpack.c.bf16 %v5294_v46, %v5294_v46  ;;  %v12934_v63 = vpack.c.bf16 %v5295_v35, %v5295_v35  ;;  %v4910_v15 = vld [vmem:[#allocation3 + $0xa9] sm:$0xff]  ;;  %v4911_v18 = vld [vmem:[#allocation3 + $0xb1] sm:$0xff] }
 0x2ed   :  { %v12869_v41 = vpack.c.bf16 %v4910_v15, %v4910_v15  ;;  %v5102_v3 = vld [vmem:[#allocation3 + $0xaa] sm:$0xff]  ;;  %v5103_v27 = vld [vmem:[#allocation3 + $0xb2] sm:$0xff]  ;;  %v12870_v40 = vpack.c.bf16 %v4911_v18, %v4911_v18  ;;  %v15105_v46 = vld [vmem:[#allocation4 + $0x80] ss:$28 sps:$4 sm:$0xff]   ;;  %17560 = vst [vmem:[#allocation98_spill] sm:$0xff] %v16248_v14 }
 0x2ee   :  { %5454 = vst [vmem:[#allocation4 + $0x130] sm:$0xf] %v12933_v37  ;;  %5455 = vst [vmem:[#allocation4 + $0x14c] sm:$0xf] %v12934_v63  ;;  %v16244_v30 = vld [vmem:[#allocation4 + $0x128] sm:$0xff]  ;;  %v12901_v57 = vpack.c.bf16 %v5102_v3, %v5102_v3  ;;  %v12902_v62 = vpack.c.bf16 %v5103_v27, %v5103_v27  ;;  %v5297_v15 = vld [vmem:[#allocation3 + $0xd3] sm:$0xff]  ;;  %6999 = vmatmul.mubr.bf16.gmra.mxu1 %v15105_v46 }
 0x2ef   :  { %17558 = vst [vmem:[#allocation96_spill] sm:$0xff] %v16244_v30  ;;  %v16246_v47 = vld [vmem:[#allocation4 + $0x144] sm:$0xff]  ;;  %5070 = vst [vmem:[#allocation4 + $0x128] sm:$0xf] %v12869_v41  ;;  %v15109_v35 = vld [vmem:[#allocation4 + $0xf8] ss:$28 sps:$4 sm:$0xff]   ;;  %v12936_v63 = vpack.c.bf16 %v5297_v15, %v5297_v15 }
 0x2f0   :  { %17559 = vst [vmem:[#allocation97_spill] sm:$0xff] %v16246_v47  ;;  %5071 = vst [vmem:[#allocation4 + $0x144] sm:$0xf] %v12870_v40  ;;  %v5296_v45 = vld [vmem:[#allocation3 + $0xcb] sm:$0xff]  ;;  %v15106_v24 = vld [vmem:[#allocation4 + $0xbc] ss:$28 sps:$4 sm:$0xff]   ;;  %14594 = vmatprep.mubr.bf16.mxu0 %v15109_v35 }
 0x2f1   :  { %5262 = vst [vmem:[#allocation4 + $0x12c] sm:$0xf] %v12901_v57  ;;  %5263 = vst [vmem:[#allocation4 + $0x148] sm:$0xf] %v12902_v62  ;;  %v12935_v37 = vpack.c.bf16 %v5296_v45, %v5296_v45  ;;  %v16250_v18 = vld [vmem:[#allocation4 + $0x184] sm:$0xf]  ;;  %7006 = vmatprep.mubr.bf16.mxu1 %v15106_v24 }
 0x2f2   :  { %17561 = vst [vmem:[#allocation99_spill] sm:$0xff] %v16250_v18  ;;  %v16252_v3 = vld [vmem:[#allocation4 + $0x160] sm:$0xff]  ;;  %v4912_v27 = vld [vmem:[#allocation3 + $0xc9] sm:$0xff]  ;;  %5457 = vst [vmem:[#allocation4 + $0x184] sm:$0xf] %v12936_v63 }
 0x2f3   :  { %17562 = vst [vmem:[#allocation100_spill] sm:$0xff] %v16252_v3  ;;  %5456 = vst [vmem:[#allocation4 + $0x168] sm:$0xf] %v12935_v37  ;;  %v4913_v41 = vld [vmem:[#allocation3 + $0xd1] sm:$0xff]  ;;  %v12871_v2 = vpack.c.bf16 %v4912_v27, %v4912_v27  ;;  %v16254_v14 = vld [vmem:[#allocation4 + $0x17c] sm:$0xff] }
 0x2f4   :  { %v5104_v40 = vld [vmem:[#allocation3 + $0xca] sm:$0xff]  ;;  %v5105_v57 = vld [vmem:[#allocation3 + $0xd2] sm:$0xff]  ;;  %v12872_v30 = vpack.c.bf16 %v4913_v41, %v4913_v41  ;;  %17563 = vst [vmem:[#allocation101_spill] sm:$0xff] %v16254_v14  ;;  %v16256_v27 = vld [vmem:[#allocation4 + $0x1a0] sm:$0xf] }
 0x2f5   :  { %v15112_v62 = vld [vmem:[#allocation4 + $0x130] ss:$28 sps:$4 sm:$0xff]   ;;  %v12903_v47 = vpack.c.bf16 %v5104_v40, %v5104_v40  ;;  %v12904_v35 = vpack.c.bf16 %v5105_v57, %v5105_v57  ;;  %5072 = vst [vmem:[#allocation4 + $0x160] sm:$0xf] %v12871_v2  ;;  %v15108_v15 = vld [vmem:[#allocation4 + $0xb8] ss:$28 sps:$4 sm:$0xff]  }
 0x2f6   :  { %v5298_v45 = vld [vmem:[#allocation3 + $0xeb] sm:$0xff]  ;;  %5073 = vst [vmem:[#allocation4 + $0x17c] sm:$0xf] %v12872_v30  ;;  %14595 = vmatmul.mubr.bf16.gmra.mxu0 %v15112_v62  ;;  %17564 = vst [vmem:[#allocation102_spill] sm:$0xff] %v16256_v27  ;;  %v16258_v18 = vld [vmem:[#allocation4 + $0x1bc] sm:$0xf]  ;;  %7007 = vmatmul.mubr.bf16.gmra.mxu1 %v15108_v15 }
 0x2f7   :  { %5264 = vst [vmem:[#allocation4 + $0x164] sm:$0xf] %v12903_v47  ;;  %5265 = vst [vmem:[#allocation4 + $0x180] sm:$0xf] %v12904_v35  ;;  %v12937_v37 = vpack.c.bf16 %v5298_v45, %v5298_v45  ;;  %v15110_v63 = vld [vmem:[#allocation4 + $0xf4] ss:$28 sps:$4 sm:$0xff]  }
 0x2f8   :  { %17565 = vst [vmem:[#allocation103_spill] sm:$0xff] %v16258_v18  ;;  %v5299_v46 = vld [vmem:[#allocation3 + $0xf3] sm:$0xff]  ;;  %v4914_v24 = vld [vmem:[#allocation3 + $0xe9] sm:$0xff]  ;;  %7014 = vmatprep.mubr.bf16.mxu1 %v15110_v63 }
 0x2f9   :  { %v12938_v41 = vpack.c.bf16 %v5299_v46, %v5299_v46  ;;  %5458 = vst [vmem:[#allocation4 + $0x1a0] sm:$0xf] %v12937_v37  ;;  %v16260_v40 = vld [vmem:[#allocation4 + $0x198] sm:$0xff]  ;;  %v12873_v3 = vpack.c.bf16 %v4914_v24, %v4914_v24  ;;  %v5106_v47 = vld [vmem:[#allocation3 + $0xea] sm:$0xff]  ;;  %v7845_v22 = vld [vmem:[#allocation2 + $0xa4] sm:$0xf] }
 0x2fa   :  { %17566 = vst [vmem:[#allocation104_spill] sm:$0xff] %v16260_v40  ;;  %v4915_v57 = vld [vmem:[#allocation3 + $0xf1] sm:$0xff]  ;;  %v15117_v45 = vld [vmem:[#allocation4 + $0x168] ss:$28 sps:$4 sm:$0xff]   ;;  %v12905_v62 = vpack.c.bf16 %v5106_v47, %v5106_v47 }
 0x2fb   :  { %v16262_v2 = vld [vmem:[#allocation4 + $0x1b4] sm:$0xff]  ;;  %v12874_v30 = vpack.c.bf16 %v4915_v57, %v4915_v57  ;;  %5459 = vst [vmem:[#allocation4 + $0x1bc] sm:$0xf] %v12938_v41  ;;  %5074 = vst [vmem:[#allocation4 + $0x198] sm:$0xf] %v12873_v3  ;;  %v5300_v27 = vld [vmem:[#allocation3 + $0x10b] sm:$0xff]  ;;  %14598 = vmatprep.mubr.bf16.mxu0 %v15117_v45 }
 0x2fc   :  { %17567 = vst [vmem:[#allocation105_spill] sm:$0xff] %v16262_v2  ;;  %v5107_v35 = vld [vmem:[#allocation3 + $0xf2] sm:$0xff]  ;;  %5266 = vst [vmem:[#allocation4 + $0x19c] sm:$0xf] %v12905_v62  ;;  %v12939_v46 = vpack.c.bf16 %v5300_v27, %v5300_v27  ;;  %v4916_v24 = vld [vmem:[#allocation3 + $0x109] sm:$0xff] }
 0x2fd   :  { %v12906_v14 = vpack.c.bf16 %v5107_v35, %v5107_v35  ;;  %5075 = vst [vmem:[#allocation4 + $0x1b4] sm:$0xf] %v12874_v30  ;;  %v5301_v18 = vld [vmem:[#allocation3 + $0x113] sm:$0xff]  ;;  %v12875_v2 = vpack.c.bf16 %v4916_v24, %v4916_v24  ;;  %v5108_v47 = vld [vmem:[#allocation3 + $0x10a] sm:$0xff] }
 0x2fe   :  { %v16264_v37 = vld [vmem:[#allocation4 + $0x1d8] sm:$0xf]  ;;  %v12940_v40 = vpack.c.bf16 %v5301_v18, %v5301_v18  ;;  %v16266_v57 = vld [vmem:[#allocation4 + $0x1f4] sm:$0xf]  ;;  %v15113_v41 = vld [vmem:[#allocation4 + $0xf0] ss:$28 sps:$4 sm:$0xff]   ;;  %v12907_v45 = vpack.c.bf16 %v5108_v47, %v5108_v47 }
 0x2ff   :  { %5267 = vst [vmem:[#allocation4 + $0x1b8] sm:$0xf] %v12906_v14  ;;  %17568 = vst [vmem:[#allocation106_spill] sm:$0xff] %v16264_v37  ;;  %v16268_v3 = vld [vmem:[#allocation4 + $0x1d0] sm:$0xff]  ;;  %v15114_v15 = vld [vmem:[#allocation4 + $0x12c] ss:$28 sps:$4 sm:$0xff]   ;;  %7015 = vmatmul.mubr.bf16.gmra.mxu1 %v15113_v41 }
 0x300   :  { %17569 = vst [vmem:[#allocation107_spill] sm:$0xff] %v16266_v57  ;;  %5460 = vst [vmem:[#allocation4 + $0x1d8] sm:$0xf] %v12939_v46  ;;  %v4917_v30 = vld [vmem:[#allocation3 + $0x111] sm:$0xff]  ;;  %v16274_v57 = vld [vmem:[#allocation4 + $0x22c] sm:$0xf]  ;;  %7022 = vmatprep.mubr.bf16.mxu1 %v15114_v15 }
 0x301   :  { %5461 = vst [vmem:[#allocation4 + $0x1f4] sm:$0xf] %v12940_v40  ;;  %17570 = vst [vmem:[#allocation108_spill] sm:$0xff] %v16268_v3  ;;  %v12876_v35 = vpack.c.bf16 %v4917_v30, %v4917_v30  ;;  %v5109_v14 = vld [vmem:[#allocation3 + $0x112] sm:$0xff]  ;;  %v4918_v3 = vld [vmem:[#allocation3 + $0x129] sm:$0xff] }
 0x302   :  { %5076 = vst [vmem:[#allocation4 + $0x1d0] sm:$0xf] %v12875_v2  ;;  %v16270_v62 = vld [vmem:[#allocation4 + $0x1ec] sm:$0xff]  ;;  %v12908_v18 = vpack.c.bf16 %v5109_v14, %v5109_v14  ;;  %v15120_v37 = vld [vmem:[#allocation4 + $0x1a0] ss:$28 sps:$4 sm:$0xff]   ;;  %17573 = vst [vmem:[#allocation111_spill] sm:$0xff] %v16274_v57  ;;  %v12877_v47 = vpack.c.bf16 %v4918_v3, %v4918_v3 }
 0x303   :  { %17571 = vst [vmem:[#allocation109_spill] sm:$0xff] %v16270_v62  ;;  %v5302_v27 = vld [vmem:[#allocation3 + $0x12b] sm:$0xff]  ;;  %v5303_v63 = vld [vmem:[#allocation3 + $0x133] sm:$0xff]  ;;  %5077 = vst [vmem:[#allocation4 + $0x1ec] sm:$0xf] %v12876_v35  ;;  %14599 = vmatmul.mubr.bf16.gmra.mxu0 %v15120_v37 }
 0x304   :  { %5268 = vst [vmem:[#allocation4 + $0x1d4] sm:$0xf] %v12907_v45  ;;  %v16272_v24 = vld [vmem:[#allocation4 + $0x210] sm:$0xf]  ;;  %v12941_v40 = vpack.c.bf16 %v5302_v27, %v5302_v27  ;;  %v12942_v46 = vpack.c.bf16 %v5303_v63, %v5303_v63  ;;  %5269 = vst [vmem:[#allocation4 + $0x1f0] sm:$0xf] %v12908_v18 }
 0x305   :  { %17572 = vst [vmem:[#allocation110_spill] sm:$0xff] %v16272_v24  ;;  %v4919_v30 = vld [vmem:[#allocation3 + $0x131] sm:$0xff]  ;;  %v16276_v2 = vld [vmem:[#allocation4 + $0x208] sm:$0xff]  ;;  %v15118_v37 = vld [vmem:[#allocation4 + $0x164] ss:$28 sps:$4 sm:$0xff]  }
 0x306   :  { %5462 = vst [vmem:[#allocation4 + $0x210] sm:$0xf] %v12941_v40  ;;  %5463 = vst [vmem:[#allocation4 + $0x22c] sm:$0xf] %v12942_v46  ;;  %v12878_v14 = vpack.c.bf16 %v4919_v30, %v4919_v30  ;;  %v16278_v62 = vld [vmem:[#allocation4 + $0x224] sm:$0xff]  ;;  %v5111_v45 = vld [vmem:[#allocation3 + $0x132] sm:$0xff] }
 0x307   :  { %17574 = vst [vmem:[#allocation112_spill] sm:$0xff] %v16276_v2  ;;  %17575 = vst [vmem:[#allocation113_spill] sm:$0xff] %v16278_v62  ;;  %v5110_v35 = vld [vmem:[#allocation3 + $0x12a] sm:$0xff]  ;;  %v12910_v63 = vpack.c.bf16 %v5111_v45, %v5111_v45  ;;  %v16282_v3 = vld [vmem:[#allocation4 + $0x264] sm:$0xf] }
 0x308   :  { %v15125_v27 = vld [vmem:[#allocation4 + $0x1d8] ss:$28 sps:$4 sm:$0xff]   ;;  %5078 = vst [vmem:[#allocation4 + $0x208] sm:$0xf] %v12877_v47  ;;  %5079 = vst [vmem:[#allocation4 + $0x224] sm:$0xf] %v12878_v14  ;;  %v12909_v18 = vpack.c.bf16 %v5110_v35, %v5110_v35 }
 0x309   :  { %v15116_v24 = vld [vmem:[#allocation4 + $0x128] ss:$28 sps:$4 sm:$0xff]   ;;  %14602 = vmatprep.mubr.bf16.mxu0 %v15125_v27  ;;  %5271 = vst [vmem:[#allocation4 + $0x228] sm:$0xf] %v12910_v63  ;;  %17577 = vst [vmem:[#allocation115_spill] sm:$0xff] %v16282_v3  ;;  %v5305_v41 = vld [vmem:[#allocation3 + $0x153] sm:$0xff] }
 0x30a   :  { %v5304_v57 = vld [vmem:[#allocation3 + $0x14b] sm:$0xff]  ;;  %5270 = vst [vmem:[#allocation4 + $0x20c] sm:$0xf] %v12909_v18  ;;  %v12944_v30 = vpack.c.bf16 %v5305_v41, %v5305_v41  ;;  %v16284_v47 = vld [vmem:[#allocation4 + $0x240] sm:$0xff]  ;;  %7023 = vmatmul.mubr.bf16.gmra.mxu1 %v15116_v24  ;;  %v5309_v39 = vld [vmem:[#allocation3 + $0x193] sm:$0xff] }
 0x30b   :  { %v16280_v40 = vld [vmem:[#allocation4 + $0x248] sm:$0xf]  ;;  %v12943_v46 = vpack.c.bf16 %v5304_v57, %v5304_v57  ;;  %v4921_v15 = vld [vmem:[#allocation3 + $0x151] sm:$0xff]  ;;  %17578 = vst [vmem:[#allocation116_spill] sm:$0xff] %v16284_v47  ;;  %v16286_v14 = vld [vmem:[#allocation4 + $0x25c] sm:$0xff]  ;;  %7030 = vmatprep.mubr.bf16.mxu1 %v15118_v37 }
 0x30c   :  { %17576 = vst [vmem:[#allocation114_spill] sm:$0xff] %v16280_v40  ;;  %v4920_v2 = vld [vmem:[#allocation3 + $0x149] sm:$0xff]  ;;  %17579 = vst [vmem:[#allocation117_spill] sm:$0xff] %v16286_v14  ;;  %v12880_v45 = vpack.c.bf16 %v4921_v15, %v4921_v15  ;;  %v5113_v18 = vld [vmem:[#allocation3 + $0x152] sm:$0xff] }
 0x30d   :  { %5464 = vst [vmem:[#allocation4 + $0x248] sm:$0xf] %v12943_v46  ;;  %v12879_v35 = vpack.c.bf16 %v4920_v2, %v4920_v2  ;;  %v15128_v62 = vld [vmem:[#allocation4 + $0x210] ss:$28 sps:$4 sm:$0xff]   ;;  %5465 = vst [vmem:[#allocation4 + $0x264] sm:$0xf] %v12944_v30  ;;  %v12912_v57 = vpack.c.bf16 %v5113_v18, %v5113_v18  ;;  %v13458_v46 = vpop.f32.mrf.mxu1  ;;  %v13570_v18 = vpop.f32.mrf.mxu0 }
 0x30e   :  { %5081 = vst [vmem:[#allocation4 + $0x25c] sm:$0xf] %v12880_v45  ;;  %v5112_v27 = vld [vmem:[#allocation3 + $0x14a] sm:$0xff]  ;;  %14603 = vmatmul.mubr.bf16.gmra.mxu0 %v15128_v62  ;;  %v5307_v40 = vld [vmem:[#allocation3 + $0x173] sm:$0xff]  ;;  %v16288_v3 = vld [vmem:[#allocation4 + $0x280] sm:$0xf] }
 0x30f   :  { %5080 = vst [vmem:[#allocation4 + $0x240] sm:$0xf] %v12879_v35  ;;  %v12911_v63 = vpack.c.bf16 %v5112_v27, %v5112_v27  ;;  %v5306_v41 = vld [vmem:[#allocation3 + $0x16b] sm:$0xff]  ;;  %17580 = vst [vmem:[#allocation118_spill] sm:$0xff] %v16288_v3  ;;  %v12946_v14 = vpack.c.bf16 %v5307_v40, %v5307_v40  ;;  %v15121_v15 = vld [vmem:[#allocation4 + $0x160] ss:$28 sps:$4 sm:$0xff]   ;;  %v13459_v45 = vpop.f32.mrf.mxu1 }
 0x310   :  { %v12945_v47 = vpack.c.bf16 %v5306_v41, %v5306_v41  ;;  %v4922_v2 = vld [vmem:[#allocation3 + $0x169] sm:$0xff]  ;;  %5273 = vst [vmem:[#allocation4 + $0x260] sm:$0xf] %v12912_v57  ;;  %v16290_v30 = vld [vmem:[#allocation4 + $0x29c] sm:$0xf]  ;;  %v4923_v24 = vld [vmem:[#allocation3 + $0x171] sm:$0xff]  ;;  %v13460_v31 = vadd.f32 %v13459_v45, %v13458_v46  ;;  %v12948_v45 = vpack.c.bf16 %v5309_v39, %v5309_v39 }
 0x311   :  { %5272 = vst [vmem:[#allocation4 + $0x244] sm:$0xf] %v12911_v63  ;;  %17581 = vst [vmem:[#allocation119_spill] sm:$0xff] %v16290_v30  ;;  %v12881_v35 = vpack.c.bf16 %v4922_v2, %v4922_v2  ;;  %v16292_v62 = vld [vmem:[#allocation4 + $0x278] sm:$0xff]  ;;  %v5114_v27 = vld [vmem:[#allocation3 + $0x16a] sm:$0xff]  ;;  %v12882_v3 = vpack.c.bf16 %v4923_v24, %v4923_v24  ;;  %v13461_v19 = vpop.f32.mrf.mxu1  ;;  %v13571_v2 = vpop.f32.mrf.mxu0 }
 0x312   :  { %5466 = vst [vmem:[#allocation4 + $0x280] sm:$0xf] %v12945_v47  ;;  %5467 = vst [vmem:[#allocation4 + $0x29c] sm:$0xf] %v12946_v14  ;;  %v15122_v37 = vld [vmem:[#allocation4 + $0x19c] ss:$28 sps:$4 sm:$0xff]   ;;  %v12913_v41 = vpack.c.bf16 %v5114_v27, %v5114_v27  ;;  %v13572_v33 = vadd.f32 %v13571_v2, %v13570_v18  ;;  %7031 = vmatmul.mubr.bf16.gmra.mxu1 %v15121_v15 }
 0x313   :  { %17582 = vst [vmem:[#allocation120_spill] sm:$0xff] %v16292_v62  ;;  %5082 = vst [vmem:[#allocation4 + $0x278] sm:$0xf] %v12881_v35  ;;  %v5115_v40 = vld [vmem:[#allocation3 + $0x172] sm:$0xff]  ;;  %v13462_v46 = vpop.f32.mrf.mxu1  ;;  %v4924_v27 = vld [vmem:[#allocation3 + $0x189] sm:$0xff]  ;;  %7038 = vmatprep.mubr.bf16.mxu1 %v15122_v37 }
 0x314   :  { %v15133_v63 = vld [vmem:[#allocation4 + $0x248] ss:$28 sps:$4 sm:$0xff]   ;;  %v16294_v57 = vld [vmem:[#allocation4 + $0x294] sm:$0xff]  ;;  %v12914_v30 = vpack.c.bf16 %v5115_v40, %v5115_v40  ;;  %5274 = vst [vmem:[#allocation4 + $0x27c] sm:$0xf] %v12913_v41  ;;  %v13573_v40 = vpop.f32.mrf.mxu0  ;;  %v16302_v41 = vld [vmem:[#allocation4 + $0x2cc] sm:$0xff]  ;;  %v16304_v18 = vadd.f32 %v13572_v33, %v13460_v31 }
 0x315   :  { %17583 = vst [vmem:[#allocation121_spill] sm:$0xff] %v16294_v57  ;;  %5083 = vst [vmem:[#allocation4 + $0x294] sm:$0xf] %v12882_v3  ;;  %v16296_v47 = vld [vmem:[#allocation4 + $0x2b8] sm:$0xf]  ;;  %v5308_v62 = vld [vmem:[#allocation3 + $0x18b] sm:$0xff]  ;;  %14606 = vmatprep.mubr.bf16.mxu0 %v15133_v63  ;;  %v13463_v3 = vadd.f32 %v13462_v46, %v13461_v19  ;;  %v13464_v63 = vpop.f32.mrf.mxu1 }
 0x316   :  { %17584 = vst [vmem:[#allocation122_spill] sm:$0xff] %v16296_v47  ;;  %v16298_v14 = vld [vmem:[#allocation4 + $0x2d4] sm:$0xf]  ;;  %5275 = vst [vmem:[#allocation4 + $0x298] sm:$0xf] %v12914_v30  ;;  %v12947_v35 = vpack.c.bf16 %v5308_v62, %v5308_v62  ;;  %v12883_v47 = vpack.c.bf16 %v4924_v27, %v4924_v27  ;;  %v13574_v2 = vpop.f32.mrf.mxu0  ;;  %v5310_v37 = vld [vmem:[#allocation3 + $0x1ab] sm:$0xff] }
 0x317   :  { %17585 = vst [vmem:[#allocation123_spill] sm:$0xff] %v16298_v14  ;;  %v16300_v24 = vld [vmem:[#allocation4 + $0x2b0] sm:$0xff]  ;;  %17587 = vst [vmem:[#allocation125_spill] sm:$0xff] %v16302_v41  ;;  %v13575_v19 = vadd.f32 %v13574_v2, %v13573_v40  ;;  %v13465_v46 = vpop.f32.mrf.mxu1  ;;  %v15146_v40 = vld [vmem:[#allocation13 + $0xf8] sm:$0xff]  }
 0x318   :  { %17586 = vst [vmem:[#allocation124_spill] sm:$0xff] %v16300_v24  ;;  %v4925_v57 = vld [vmem:[#allocation3 + $0x191] sm:$0xff]  ;;  %5468 = vst [vmem:[#allocation4 + $0x2b8] sm:$0xf] %v12947_v35  ;;  %v13576_v27 = vpop.f32.mrf.mxu0  ;;  %v13466_v35 = vadd.f32 %v13465_v46, %v13464_v63  ;;  %13914 = vmatprep.subr.bf16.mxu1 %v15146_v40  ;;  %v4926_v63 = vld [vmem:[#allocation3 + $0x1a9] sm:$0xff] }
 0x319   :  { %v12884_v44 = vpack.c.bf16 %v4925_v57, %v4925_v57  ;;  %v5116_v14 = vld [vmem:[#allocation3 + $0x18a] sm:$0xff]  ;;  %v5117_v54 = vld [vmem:[#allocation3 + $0x192] sm:$0xff]  ;;  %5469 = vst [vmem:[#allocation4 + $0x2d4] sm:$0xf] %v12948_v45  ;;  %v15136_v15 = vld [vmem:[#allocation4 + $0x280] ss:$28 sps:$4 sm:$0xff]   ;;  %v16312_v24 = vadd.f32 %v13575_v19, %v13463_v3  ;;  %v12885_v45 = vpack.c.bf16 %v4926_v63, %v4926_v63 }
 0x31a   :  { %v12915_v39 = vpack.c.bf16 %v5116_v14, %v5116_v14  ;;  %v12916_v30 = vpack.c.bf16 %v5117_v54, %v5117_v54  ;;  %v16306_v62 = vld [vmem:[#allocation4 + $0x2f0] sm:$0xf]  ;;  %5084 = vst [vmem:[#allocation4 + $0x2b0] sm:$0xf] %v12883_v47  ;;  %v16308_v57 = vld [vmem:[#allocation4 + $0x30c] sm:$0xf]  ;;  %14607 = vmatmul.mubr.bf16.gmra.mxu0 %v15136_v15  ;;  %v12949_v54 = vpack.c.bf16 %v5310_v37, %v5310_v37 }
 0x31b   :  { %17588 = vst [vmem:[#allocation126_spill] sm:$0xff] %v16306_v62  ;;  %5085 = vst [vmem:[#allocation4 + $0x2cc] sm:$0xf] %v12884_v44  ;;  %v15124_v33 = vld [vmem:[#allocation4 + $0x198] ss:$28 sps:$4 sm:$0xff]   ;;  %v13467_v44 = vpop.f32.mrf.mxu1  ;;  %v16318_v62 = vld [vmem:[#allocation4 + $0x304] sm:$0xff] }
 0x31c   :  { %5276 = vst [vmem:[#allocation4 + $0x2b4] sm:$0xf] %v12915_v39  ;;  %5277 = vst [vmem:[#allocation4 + $0x2d0] sm:$0xf] %v12916_v30  ;;  %v15126_v31 = vld [vmem:[#allocation4 + $0x1d4] ss:$28 sps:$4 sm:$0xff]   ;;  %v13577_v30 = vpop.f32.mrf.mxu0  ;;  %7039 = vmatmul.mubr.bf16.gmra.mxu1 %v15124_v33 }
 0x31d   :  { %17589 = vst [vmem:[#allocation127_spill] sm:$0xff] %v16308_v57  ;;  %v5311_v14 = vld [vmem:[#allocation3 + $0x1b3] sm:$0xff]  ;;  %5470 = vst [vmem:[#allocation4 + $0x2f0] sm:$0xf] %v12949_v54  ;;  %v13578_v2 = vadd.f32 %v13577_v30, %v13576_v27  ;;  %v13468_v41 = vpop.f32.mrf.mxu1  ;;  %7046 = vmatprep.mubr.bf16.mxu1 %v15126_v31  ;;  %v16322_v31 = vld [vmem:[#allocation4 + $0x344] sm:$0xf] }
 0x31e   :  { %v12950_v47 = vpack.c.bf16 %v5311_v14, %v5311_v14  ;;  %v15147_v39 = vld [vmem:[#allocation13 + $0xb8] sm:$0xff]   ;;  %v13579_v15 = vpop.f32.mrf.mxu0  ;;  %v13469_v46 = vadd.f32 %v13468_v41, %v13467_v44  ;;  %v5118_v14 = vld [vmem:[#allocation3 + $0x1aa] sm:$0xff]  ;;  %5086 = vst [vmem:[#allocation4 + $0x2e8] sm:$0xf] %v12885_v45  ;;  %17591 = vst [vmem:[#allocation129_spill] sm:$0xff] %v16318_v62 }
 0x31f   :  { %v16316_v3 = vadd.f32 %v13578_v2, %v13466_v35  ;;  %13915 = vmatpush3.bf16.msra.mxu1 %v15147_v39  ;;  %v4927_v19 = vld [vmem:[#allocation3 + $0x1b1] sm:$0xff]  ;;  %v12917_v30 = vpack.c.bf16 %v5118_v14, %v5118_v14  ;;  %v16320_v41 = vld [vmem:[#allocation4 + $0x328] sm:$0xf]  ;;  %17593 = vst [vmem:[#allocation131_spill] sm:$0xff] %v16322_v31  ;;  %v7843_v35 = vld [vmem:[#allocation2 + $0x9c] sm:$0xf] }
 0x320   :  { %5471 = vst [vmem:[#allocation4 + $0x30c] sm:$0xf] %v12950_v47  ;;  %v15141_v37 = vld [vmem:[#allocation4 + $0x2b8] ss:$28 sps:$4 sm:$0xff]   ;;  %v15129_v54 = vld [vmem:[#allocation4 + $0x1d0] ss:$28 sps:$4 sm:$0xff]   ;;  %v13580_v27 = vpop.f32.mrf.mxu0  ;;  %v12886_v40 = vpack.c.bf16 %v4927_v19, %v4927_v19 }
 0x321   :  { %v5119_v57 = vld [vmem:[#allocation3 + $0x1b2] sm:$0xff]  ;;  %14610 = vmatprep.mubr.bf16.mxu0 %v15141_v37  ;;  %v7842_v47 = vld [vmem:[#allocation2 + $0x98] sm:$0xf]  ;;  %v13581_v33 = vadd.f32 %v13580_v27, %v13579_v15  ;;  %17592 = vst [vmem:[#allocation130_spill] sm:$0xff] %v16320_v41  ;;  %5278 = vst [vmem:[#allocation4 + $0x2ec] sm:$0xf] %v12917_v30 }
 0x322   :  { %v12918_v20 = vpack.c.bf16 %v5119_v57, %v5119_v57  ;;  %5087 = vst [vmem:[#allocation4 + $0x304] sm:$0xf] %v12886_v40  ;;  %v5312_v44 = vld [vmem:[#allocation3 + $0x1cb] sm:$0xff]  ;;  %v5313_v39 = vld [vmem:[#allocation3 + $0x1d3] sm:$0xff]  ;;  %v16328_v40 = vld [vmem:[#allocation4 + $0x320] sm:$0xff] }
 0x323   :  { %v15130_v63 = vld [vmem:[#allocation4 + $0x20c] ss:$28 sps:$4 sm:$0xff]   ;;  %v16326_v45 = vadd.f32 %v13581_v33, %v13469_v46  ;;  %v12951_v57 = vpack.c.bf16 %v5312_v44, %v5312_v44  ;;  %v12952_v15 = vpack.c.bf16 %v5313_v39, %v5313_v39  ;;  %v4929_v14 = vld [vmem:[#allocation3 + $0x1d1] sm:$0xff]  ;;  %17594 = vst [vmem:[#allocation132_spill] sm:$0xff] %v16328_v40  ;;  %v16330_v30 = vld [vmem:[#allocation4 + $0x33c] sm:$0xff]  ;;  %v13582_v39 = vpop.f32.mrf.mxu0 }
 0x324   :  { %5279 = vst [vmem:[#allocation4 + $0x308] sm:$0xf] %v12918_v20  ;;  %v4928_v19 = vld [vmem:[#allocation3 + $0x1c9] sm:$0xff]  ;;  %7047 = vmatmul.mubr.bf16.gmra.mxu1 %v15129_v54  ;;  %v13470_v20 = vpop.f32.mrf.mxu1  ;;  %17595 = vst [vmem:[#allocation133_spill] sm:$0xff] %v16330_v30  ;;  %v12888_v46 = vpack.c.bf16 %v4929_v14, %v4929_v14  ;;  %v5121_v33 = vld [vmem:[#allocation3 + $0x1d2] sm:$0xff] }
 0x325   :  { %5472 = vst [vmem:[#allocation4 + $0x328] sm:$0xf] %v12951_v57  ;;  %5473 = vst [vmem:[#allocation4 + $0x344] sm:$0xf] %v12952_v15  ;;  %v5120_v27 = vld [vmem:[#allocation3 + $0x1ca] sm:$0xff]  ;;  %v12887_v2 = vpack.c.bf16 %v4928_v19, %v4928_v19  ;;  %7054 = vmatprep.mubr.bf16.mxu1 %v15130_v63  ;;  %v13583_v63 = vpop.f32.mrf.mxu0 }
 0x326   :  { %v12919_v44 = vpack.c.bf16 %v5120_v27, %v5120_v27  ;;  %v16334_v57 = vld [vmem:[#allocation4 + $0x37c] sm:$0xf]  ;;  %v5314_v15 = vld [vmem:[#allocation3 + $0x1eb] sm:$0xff]  ;;  %v13471_v54 = vpop.f32.mrf.mxu1  ;;  %5089 = vst [vmem:[#allocation4 + $0x33c] sm:$0xf] %v12888_v46  ;;  %v13584_v41 = vadd.f32 %v13583_v63, %v13582_v39 }
 0x327   :  { %v15144_v37 = vld [vmem:[#allocation4 + $0x2f0] ss:$28 sps:$4 sm:$0xff]   ;;  %17597 = vst [vmem:[#allocation135_spill] sm:$0xff] %v16334_v57  ;;  %v15132_v31 = vld [vmem:[#allocation4 + $0x208] ss:$28 sps:$4 sm:$0xff]   ;;  %v12953_v40 = vpack.c.bf16 %v5314_v15, %v5314_v15  ;;  %v13472_v27 = vadd.f32 %v13471_v54, %v13470_v20  ;;  %v16338_v46 = vld [vmem:[#allocation4 + $0x358] sm:$0xff] }
 0x328   :  { %7874 = vst [vmem:[#allocation4 + $0x2f0] sm:$0xf] %v7842_v47  ;;  %7875 = vst [vmem:[#allocation4 + $0x30c] sm:$0xf] %v7843_v35  ;;  %14611 = vmatmul.mubr.bf16.gmra.mxu0 %v15144_v37  ;;  %v12920_v47 = vpack.c.bf16 %v5121_v33, %v5121_v33  ;;  %v16332_v35 = vld [vmem:[#allocation4 + $0x360] sm:$0xf]  ;;  %v13473_v62 = vpop.f32.mrf.mxu1 }
 0x329   :  { %17596 = vst [vmem:[#allocation134_spill] sm:$0xff] %v16332_v35  ;;  %5088 = vst [vmem:[#allocation4 + $0x320] sm:$0xf] %v12887_v2  ;;  %v5315_v37 = vld [vmem:[#allocation3 + $0x1f3] sm:$0xff]  ;;  %v15134_v14 = vld [vmem:[#allocation4 + $0x244] ss:$28 sps:$4 sm:$0xff]   ;;  %v13585_v2 = vpop.f32.mrf.mxu0  ;;  %v16342_v19 = vadd.f32 %v13584_v41, %v13472_v27 }
 0x32a   :  { %5280 = vst [vmem:[#allocation4 + $0x324] sm:$0xf] %v12919_v44  ;;  %v7844_v30 = vld [vmem:[#allocation2 + $0xa0] sm:$0xf]  ;;  %5281 = vst [vmem:[#allocation4 + $0x340] sm:$0xf] %v12920_v47  ;;  %v12954_v33 = vpack.c.bf16 %v5315_v37, %v5315_v37  ;;  %v13474_v20 = vpop.f32.mrf.mxu1 }
 0x32b   :  { %5474 = vst [vmem:[#allocation4 + $0x360] sm:$0xf] %v12953_v40  ;;  %v15155_v6 = vld [vmem:[#allocation13 + $0xf0] sm:$0xff]   ;;  %17598 = vst [vmem:[#allocation136_spill] sm:$0xff] %v16338_v46  ;;  %v13475_v37 = vadd.f32 %v13474_v20, %v13473_v62  ;;  %v13586_v63 = vpop.f32.mrf.mxu0  ;;  %v7846_v40 = vld [vmem:[#allocation2 + $0xa8] sm:$0xf] }
 0x32c   :  { %5475 = vst [vmem:[#allocation4 + $0x37c] sm:$0xf] %v12954_v33  ;;  %v16340_v44 = vld [vmem:[#allocation4 + $0x374] sm:$0xff]  ;;  %v4930_v15 = vld [vmem:[#allocation3 + $0x1e9] sm:$0xff]  ;;  %13916 = vmatprep.subr.bf16.mxu1 %v15155_v6  ;;  %7055 = vmatmul.mubr.bf16.gmra.mxu1 %v15132_v31  ;;  %v13587_v41 = vadd.f32 %v13586_v63, %v13585_v2  ;;  %v13476_v27 = vpop.f32.mrf.mxu1  ;;  %v15137_v2 = vld [vmem:[#allocation4 + $0x240] ss:$28 sps:$4 sm:$0xff]  }
 0x32d   :  { %17599 = vst [vmem:[#allocation137_spill] sm:$0xff] %v16340_v44  ;;  %v15151_v54 = vld [vmem:[#allocation4 + $0x328] ss:$28 sps:$4 sm:$0xff]   ;;  %v12889_v47 = vpack.c.bf16 %v4930_v15, %v4930_v15  ;;  %13917 = vmatpush3.bf16.msra.mxu1 %v15156_v9  ;;  %v4931_v33 = vld [vmem:[#allocation3 + $0x1f1] sm:$0xff]  ;;  %v7781_v15 = vld [vmem:[#allocation2 + $0x9c] sm:$0xf]  ;;  %7062 = vmatprep.mubr.bf16.mxu1 %v15134_v14  ;;  %v13588_v4 = vpop.f32.mrf.mxu0 }
 0x32e   :  { %7876 = vst [vmem:[#allocation4 + $0x328] sm:$0xf] %v7844_v30  ;;  %7877 = vst [vmem:[#allocation4 + $0x344] sm:$0xf] %v7845_v22  ;;  %v5122_v57 = vld [vmem:[#allocation3 + $0x1ea] sm:$0xff]  ;;  %v5123_v35 = vld [vmem:[#allocation3 + $0x1f2] sm:$0xff]  ;;  %14614 = vmatprep.mubr.bf16.mxu0 %v15151_v54  ;;  %v12890_v23 = vpack.c.bf16 %v4931_v33, %v4931_v33  ;;  %v16348_v30 = vadd.f32 %v13587_v41, %v13475_v37  ;;  %v13477_v9 = vpop.f32.mrf.mxu1 }
 0x32f   :  { %v7780_v6 = vld [vmem:[#allocation2 + $0x98] sm:$0xf]  ;;  %5090 = vst [vmem:[#allocation4 + $0x358] sm:$0xf] %v12889_v47  ;;  %v12921_v39 = vpack.c.bf16 %v5122_v57, %v5122_v57  ;;  %v12922_v62 = vpack.c.bf16 %v5123_v35, %v5123_v35  ;;  %v7847_v44 = vld [vmem:[#allocation2 + $0xac] sm:$0xf]  ;;  %v13478_v54 = vadd.f32 %v13477_v9, %v13476_v27  ;;  %v13589_v63 = vpop.f32.mrf.mxu0 }
 0x330   :  { %v15159_v20 = vld [vmem:[#allocation13 + $0xe8] sm:$0xff]   ;;  %5091 = vst [vmem:[#allocation4 + $0x374] sm:$0xf] %v12890_v23  ;;  %v15161_v57 = vld [vmem:[#allocation13 + $0xe0] sm:$0xff]   ;;  %v15138_v14 = vld [vmem:[#allocation4 + $0x27c] ss:$28 sps:$4 sm:$0xff]   ;;  %v13590_v35 = vadd.f32 %v13589_v63, %v13588_v4  ;;  %v13479_v47 = vpop.f32.mrf.mxu1 }
 0x331   :  { %v16350_v22 = vld [vmem:[#allocation4 + $0x324] ss:$28 sps:$4 sm:$0xff]   ;;  %5282 = vst [vmem:[#allocation4 + $0x35c] sm:$0xf] %v12921_v39  ;;  %v15160_v31 = vld [vmem:[#allocation13 + $0xa8] sm:$0xff]   ;;  %13918 = vmatprep.subr.bf16.mxu1 %v15159_v20  ;;  %v13591_v33 = vpop.f32.mrf.mxu0  ;;  %v15165_v39 = vld [vmem:[#allocation13 + $0x78] sm:$0xff]  }
 0x332   :  { %7812 = vst [vmem:[#allocation4 + $0x324] sm:$0xf] %v7780_v6  ;;  %7813 = vst [vmem:[#allocation4 + $0x340] sm:$0xf] %v7781_v15  ;;  %13919 = vmatpush3.bf16.msra.mxu1 %v15160_v31  ;;  %v15162_v23 = vld [vmem:[#allocation13 + $0xa0] sm:$0xff]   ;;  %v15166_v41 = vld [vmem:[#allocation13 + $0x38] sm:$0xff]   ;;  %v16352_v46 = vadd.f32 %v13590_v35, %v13478_v54  ;;  %v13480_v27 = vpop.f32.mrf.mxu1  ;;  %13802 = vmatprep.subr.bf16.mxu0 %v15165_v39 }
 0x333   :  { %5283 = vst [vmem:[#allocation4 + $0x378] sm:$0xf] %v12922_v62  ;;  %v15154_v37 = vld [vmem:[#allocation4 + $0x360] ss:$28 sps:$4 sm:$0xff]   ;;  %13920 = vmatprep.subr.bf16.mxu1 %v15161_v57  ;;  %v15167_v15 = vld [vmem:[#allocation13 + $0x70] sm:$0xff]   ;;  %v13481_v62 = vadd.f32 %v13480_v27, %v13479_v47  ;;  %v13592_v20 = vpop.f32.mrf.mxu0  ;;  %13803 = vmatpush3.bf16.msra.mxu0 %v15166_v41  ;;  %v15171_v35 = vld [vmem:[#allocation13 + $0x68] sm:$0xff]  }
 0x334   :  { %7878 = vst [vmem:[#allocation4 + $0x360] sm:$0xf] %v7846_v40  ;;  %7879 = vst [vmem:[#allocation4 + $0x37c] sm:$0xf] %v7847_v44  ;;  %14615 = vmatmul.mubr.bf16.gmra.mxu0 %v15154_v37  ;;  %v15163_v6 = vld [vmem:[#allocation13 + $0xd8] sm:$0xff]   ;;  %7063 = vmatmul.mubr.bf16.gmra.mxu1 %v15137_v2  ;;  %v13593_v31 = vadd.f32 %v13592_v20, %v13591_v33  ;;  %v13482_v63 = vpop.f32.mrf.mxu1  ;;  %v15168_v57 = vld [vmem:[#allocation13 + $0x30] sm:$0xff]  }
 0x335   :  { %v7718_v9 = vld [vmem:[#allocation2 + $0x98] sm:$0xf]  ;;  %v7719_v4 = vld [vmem:[#allocation2 + $0x9c] sm:$0xf]  ;;  %v7782_v40 = vld [vmem:[#allocation2 + $0xa0] sm:$0xf]  ;;  %7070 = vmatprep.mubr.bf16.mxu1 %v15138_v14  ;;  %13804 = vmatprep.subr.bf16.mxu0 %v15167_v15 }
 0x336   :  { %v7783_v44 = vld [vmem:[#allocation2 + $0xa4] sm:$0xf]  ;;  %13921 = vmatpush3.bf16.msra.mxu1 %v15162_v23  ;;  %v15164_v54 = vld [vmem:[#allocation13 + $0x98] sm:$0xff]   ;;  %v16354_v37 = vadd.f32 %v13593_v31, %v13481_v62  ;;  %v13483_v11 = vpop.f32.mrf.mxu1  ;;  %7750 = vst [vmem:[#allocation4 + $0x358] sm:$0xf] %v7718_v9  ;;  %v15172_v14 = vld [vmem:[#allocation13 + $0x28] sm:$0xff]   ;;  %v13594_v62 = vpop.f32.mrf.mxu0 }
 0x337   :  { %v15140_v5 = vld [vmem:[#allocation4 + $0x278] ss:$28 sps:$4 sm:$0xff]   ;;  %13922 = vmatprep.subr.bf16.mxu1 %v15163_v6  ;;  %v13484_v33 = vadd.f32 %v13483_v11, %v13482_v63  ;;  %7751 = vst [vmem:[#allocation4 + $0x374] sm:$0xf] %v7719_v4  ;;  %13805 = vmatpush3.bf16.msra.mxu0 %v15168_v57  ;;  %v15173_v27 = vld [vmem:[#allocation13 + $0x60] sm:$0xff]   ;;  %v15176_v20 = vld [vmem:[#allocation13 + $0xc8] sm:$0xff]  }
 0x338   :  { %v15169_v39 = vld [vmem:[#allocation13 + $0xd0] sm:$0xff]   ;;  %v13485_v23 = vpop.f32.mrf.mxu1  ;;  %13806 = vmatprep.subr.bf16.mxu0 %v15171_v35  ;;  %v13595_v31 = vpop.f32.mrf.mxu0  ;;  %v15174_v11 = vld [vmem:[#allocation13 + $0x20] sm:$0xff]   ;;  %v15175_v9 = vld [vmem:[#allocation13 + $0x58] sm:$0xff]  }
 0x339   :  { %v15142_v2 = vld [vmem:[#allocation4 + $0x2b4] ss:$28 sps:$4 sm:$0xff]   ;;  %v13596_v15 = vadd.f32 %v13595_v31, %v13594_v62  ;;  %v15187_v4 = vld [vmem:[#allocation4 + $0x4] ss:$28 sps:$4 sm:$0xff]   ;;  %v15148_v62 = vld [vmem:[#allocation4 + $0x2ec] ss:$28 sps:$4 sm:$0xff]  }
 0x33a   :  { %v16356_v47 = vld [vmem:[#allocation4 + $0x35c] ss:$28 sps:$4 sm:$0xff]   ;;  %v15170_v41 = vld [vmem:[#allocation13 + $0x90] sm:$0xff]   ;;  %13923 = vmatpush3.bf16.msra.mxu1 %v15164_v54  ;;  %v13486_v6 = vpop.f32.mrf.mxu1  ;;  %v13597_v63 = vpop.f32.mrf.mxu0  ;;  %v15188_v54 = vld [vmem:[#allocation13 + $0xc0] sm:$0xff]   ;;  %9064 = vmatprep.mubr.bf16.mxu0 %v15187_v4 }
 0x33b   :  { %7814 = vst [vmem:[#allocation4 + $0x35c] sm:$0xf] %v7782_v40  ;;  %7815 = vst [vmem:[#allocation4 + $0x378] sm:$0xf] %v7783_v44  ;;  %13924 = vmatprep.subr.bf16.mxu1 %v15169_v39  ;;  %13807 = vmatpush3.bf16.msra.mxu0 %v15172_v14  ;;  %v15178_v40 = vld [vmem:[#allocation13 + $0x88] sm:$0xff]   ;;  %v16358_v44 = vadd.f32 %v13596_v15, %v13484_v33  ;;  %v13487_v57 = vadd.f32 %v13486_v6, %v13485_v23  ;;  %v15177_v14 = vld [vmem:[#allocation13 + $0x18] sm:$0xff]  }
 0x33c   :  { %7071 = vmatmul.mubr.bf16.gmra.mxu1 %v15140_v5  ;;  %13808 = vmatprep.subr.bf16.mxu0 %v15173_v27  ;;  %v13598_v35 = vpop.f32.mrf.mxu0  ;;  %v15145_v39 = vld [vmem:[#allocation4 + $0x2b0] ss:$28 sps:$4 sm:$0xff]   ;;  %v13488_v5 = vpop.f32.mrf.mxu1  ;;  %v15189_v23 = vld [vmem:[#allocation13 + $0x80] sm:$0xff]  }
 0x33d   :  { %7078 = vmatprep.mubr.bf16.mxu1 %v15142_v2  ;;  %v13599_v1 = vadd.f32 %v13598_v35, %v13597_v63  ;;  %v15179_v2 = vld [vmem:[#allocation13 + $0x50] sm:$0xff]   ;;  %v15181_v63 = vld [vmem:[#allocation13 + $0x48] sm:$0xff]  }
 0x33e   :  { %13925 = vmatpush3.bf16.msra.mxu1 %v15170_v41  ;;  %v13600_v31 = vpop.f32.mrf.mxu0  ;;  %v13489_v33 = vpop.f32.mrf.mxu1  ;;  %v15180_v4 = vld [vmem:[#allocation13 + $0x10] sm:$0xff]  }
 0x33f   :  { %13926 = vmatprep.subr.bf16.mxu1 %v15176_v20  ;;  %13809 = vmatpush3.bf16.msra.mxu0 %v15174_v11  ;;  %v16360_v41 = vadd.f32 %v13599_v1, %v13487_v57  ;;  %v13490_v27 = vadd.f32 %v13489_v33, %v13488_v5  ;;  %v15150_v57 = vld [vmem:[#allocation4 + $0x2e8] ss:$28 sps:$4 sm:$0xff]  }
 0x340   :  { %13810 = vmatprep.subr.bf16.mxu0 %v15175_v9  ;;  %v13601_v20 = vpop.f32.mrf.mxu0  ;;  %v13491_v15 = vpop.f32.mrf.mxu1  ;;  %v15182_v5 = vld [vmem:[#allocation13 + $0x8] sm:$0xff]  }
 0x341   :  { %v13602_v6 = vadd.f32 %v13601_v20, %v13600_v31  ;;  %v5590_v20 = vld [vmem:[#allocation4 + $0x320] sm:$0xff] }
 0x342   :  { %13927 = vmatpush3.bf16.msra.mxu1 %v15178_v40  ;;  %v13603_v11 = vpop.f32.mrf.mxu0  ;;  %v13492_v9 = vpop.f32.mrf.mxu1  ;;  %v5602_v32 = vld [vmem:[#allocation4 + $0x374] sm:$0xff] }
 0x343   :  { %13928 = vmatprep.subr.bf16.mxu1 %v15188_v54  ;;  %13811 = vmatpush3.bf16.msra.mxu0 %v15177_v14  ;;  %v16362_v35 = vadd.f32 %v13602_v6, %v13490_v27  ;;  %v13493_v1 = vadd.f32 %v13492_v9, %v13491_v15  ;;  %v15184_v27 = vld [vmem:[#allocation13] sm:$0xff]  }
 0x344   :  { %7079 = vmatmul.mubr.bf16.gmra.mxu1 %v15145_v39  ;;  %13812 = vmatprep.subr.bf16.mxu0 %v15179_v2  ;;  %v13604_v40 = vpop.f32.mrf.mxu0  ;;  %v13494_v33 = vpop.f32.mrf.mxu1  ;;  %v15183_v39 = vld [vmem:[#allocation13 + $0x40] sm:$0xff]  }
 0x345   :  { %7086 = vmatprep.mubr.bf16.mxu1 %v15148_v62  ;;  %v13605_v54 = vadd.f32 %v13604_v40, %v13603_v11  ;;  %v16366_v62 = vld [vmem:[#allocation13 + $0x1b8] sm:$0xff]  }
 0x346   :  { %13929 = vmatpush3.bf16.msra.mxu1 %v15189_v23  ;;  %v13495_v14 = vpop.f32.mrf.mxu1  ;;  %v5594_v23 = vld [vmem:[#allocation4 + $0x33c] sm:$0xff]  ;;  %v13606_v15 = vpop.f32.mrf.mxu0 }
 0x347   :  { %13813 = vmatpush3.bf16.msra.mxu0 %v15180_v4  ;;  %v16364_v31 = vadd.f32 %v13605_v54, %v13493_v1  ;;  %v13496_v2 = vadd.f32 %v13495_v14, %v13494_v33  ;;  %14618 = vmatprep.subr.bf16.mxu1 %v16366_v62  ;;  %v15185_v4 = vld [vmem:[#allocation4] ss:$28 sps:$4 sm:$0xff]   ;;  %v12072_v11 = vcombine.low %v5590_v20, %v5594_v23  ;;  %v15190_v23 = vld [vmem:[#allocation4 + $0x38] ss:$28 sps:$4 sm:$0xff]  }
 0x348   :  { %13814 = vmatprep.subr.bf16.mxu0 %v15181_v63  ;;  %v13497_v6 = vpop.f32.mrf.mxu1  ;;  %v15192_v63 = vld [vmem:[#allocation4 + $0x3c] ss:$28 sps:$4 sm:$0xff]   ;;  %v13607_v9 = vpop.f32.mrf.mxu0 }
 0x349   :  { %v13608_v40 = vadd.f32 %v13607_v9, %v13606_v15  ;;  %v15200_v54 = vld [vmem:[#allocation13 + $0x178] sm:$0xff]  }
 0x34a   :  { %v13498_v1 = vpop.f32.mrf.mxu1  ;;  %v5598_v14 = vld [vmem:[#allocation4 + $0x358] sm:$0xff] }
 0x34b   :  { %13815 = vmatpush3.bf16.msra.mxu0 %v15182_v5  ;;  %v15201_v5 = vld [vmem:[#allocation13 + $0x138] sm:$0xff]   ;;  %v16370_v33 = vadd.f32 %v13608_v40, %v13496_v2  ;;  %v12079_v9 = vcombine.low %v5598_v14, %v5602_v32 }
 0x34c   :  { %7087 = vmatmul.mubr.bf16.gmra.mxu1 %v15150_v57  ;;  %13816 = vmatprep.subr.bf16.mxu0 %v15183_v39  ;;  %v13609_v57 = vpop.f32.mrf.mxu0  ;;  %v13500_v20 = vpop.f32.mrf.mxu1 }
 0x34d   :  { %7094 = vmatprep.mubr.bf16.mxu1 %v16350_v22  ;;  %v13499_v22 = vadd.f32 %v13498_v1, %v13497_v6 }
 0x34e   :  { %v13610_v39 = vpop.f32.mrf.mxu0  ;;  %v13501_v55 = vpop.f32.mrf.mxu1 }
 0x34f   :  { %13817 = vmatpush3.bf16.msra.mxu0 %v15184_v27  ;;  %v13611_v27 = vadd.f32 %v13610_v39, %v13609_v57 }
 0x350   :  { %14026 = vmatprep.subr.bf16.mxu0 %v15200_v54  ;;  %v13503_v40 = vpop.f32.mrf.mxu1 }
 0x351   :  { %v16373_v15 = vadd.f32 %v13611_v27, %v13499_v22 }
 0x352   :  { %9065 = vmatmul.mubr.bf16.vlgmr.msra.gmra.mxu0 %v15185_v4  ;;  %v13612_v4 = vpop.f32.mrf.mxu0  ;;  %v13504_v1 = vpop.f32.mrf.mxu1 }
 0x353   :  { %9072 = vmatprep.mubr.bf16.mxu0 %v15192_v63  ;;  %14027 = vmatpush3.bf16.msra.mxu0 %v15201_v5 }
 0x354   :  { %7095 = vmatmul.mubr.bf16.gmra.mxu1 %v12072_v11  ;;  %v13502_v11 = vadd.f32 %v13501_v55, %v13500_v20  ;;  %v13613_v2 = vpop.f32.mrf.mxu0  ;;  %v13506_v5 = vpop.f32.mrf.mxu1  ;;  %v15215_v55 = vld [vmem:[#allocation13 + $0x170] sm:$0xff]  }
 0x355   :  { %7102 = vmatprep.mubr.bf16.mxu1 %v16356_v47  ;;  %v13614_v6 = vadd.f32 %v13613_v2, %v13612_v4  ;;  %v13505_v47 = vadd.f32 %v13504_v1, %v13503_v40  ;;  %v15216_v20 = vld [vmem:[#allocation13 + $0x130] sm:$0xff]   ;;  %14028 = vmatprep.subr.bf16.mxu0 %v15215_v55 }
 0x356   :  { %v13615_v63 = vpop.f32.mrf.mxu0  ;;  %v13507_v22 = vpop.f32.mrf.mxu1 }
 0x357   :  { %v16375_v49 = vadd.f32 %v13614_v6, %v13502_v11  ;;  %v13508_v27 = vadd.f32 %v13507_v22, %v13506_v5  ;;  %14029 = vmatpush3.bf16.msra.mxu0 %v15216_v20 }
 0x358   :  { %v13616_v57 = vpop.f32.mrf.mxu0  ;;  %v13509_v14 = vpop.f32.mrf.mxu1 }
 0x359   :  { %v13617_v54 = vadd.f32 %v13616_v57, %v13615_v63 }
 0x35a   :  { %9073 = vmatmul.mubr.bf16.gmra.mxu0 %v15190_v23  ;;  %v13618_v32 = vpop.f32.mrf.mxu0  ;;  %v13510_v4 = vpop.f32.mrf.mxu1 }
 0x35b   :  { %v16377_v39 = vadd.f32 %v13617_v54, %v13505_v47  ;;  %v13511_v2 = vadd.f32 %v13510_v4, %v13509_v14  ;;  %v15230_v14 = vld [vmem:[#allocation13 + $0x168] sm:$0xff]  }
 0x35c   :  { %7103 = vmatmul.mubr.bf16.gmra.mxu1 %v12079_v9  ;;  %v13619_v13 = vpop.f32.mrf.mxu0  ;;  %v13512_v63 = vpop.f32.mrf.mxu1  ;;  %v15231_v4 = vld [vmem:[#allocation13 + $0x128] sm:$0xff]   ;;  %14030 = vmatprep.subr.bf16.mxu0 %v15230_v14 }
 0x35d   :  { %v13620_v23 = vadd.f32 %v13619_v13, %v13618_v32  ;;  %14031 = vmatpush3.bf16.msra.mxu0 %v15231_v4 }
 0x35e   :  { %v13621_v9 = vpop.f32.mrf.mxu0  ;;  %v13513_v57 = vpop.f32.mrf.mxu1  ;;  %14032 = vmatprep.subr.bf16.mxu0 %v15245_v17 }
 0x35f   :  { %v16379_v11 = vadd.f32 %v13620_v23, %v13508_v27  ;;  %v13514_v54 = vadd.f32 %v13513_v57, %v13512_v63 }
 0x360   :  { %v13622_v40 = vpop.f32.mrf.mxu0  ;;  %v13515_v52 = vpop.f32.mrf.mxu1 }
 0x361   :  { %v13623_v6 = vadd.f32 %v13622_v40, %v13621_v9 }
 0x362   :  { %v13624_v1 = vpop.f32.mrf.mxu0  ;;  %v13516_v13 = vpop.f32.mrf.mxu1 }
 0x363   :  { %v16381_v47 = vadd.f32 %v13623_v6, %v13511_v2  ;;  %v13517_v32 = vadd.f32 %v13516_v13, %v13515_v52 }
 0x364   :  { %v13625_v5 = vpop.f32.mrf.mxu0  ;;  %v13518_v20 = vpop.f32.mrf.mxu1 }
 0x365   :  { %v13626_v22 = vadd.f32 %v13625_v5, %v13624_v1 }
 0x366   :  { %v13627_v28 = vpop.f32.mrf.mxu0  ;;  %v13519_v9 = vpop.f32.mrf.mxu1 }
 0x367   :  { %v16383_v61 = vadd.f32 %v13626_v22, %v13514_v54  ;;  %v13520_v40 = vadd.f32 %v13519_v9, %v13518_v20 }
 0x368   :  { %v13628_v55 = vpop.f32.mrf.mxu0  ;;  %v13521_v6 = vpop.f32.mrf.mxu1 }
 0x369   :  { %v13629_v27 = vadd.f32 %v13628_v55, %v13627_v28 }
 0x36a   :  { %v13630_v2 = vpop.f32.mrf.mxu0  ;;  %v13522_v57 = vpop.f32.mrf.mxu1 }
 0x36b   :  { %v16385_v23 = vadd.f32 %v13629_v27, %v13517_v32  ;;  %v13523_v52 = vadd.f32 %v13522_v57, %v13521_v6 }
 0x36c   :  { %v13631_v63 = vpop.f32.mrf.mxu0 }
 0x36d   :  { %v13632_v1 = vadd.f32 %v13631_v63, %v13630_v2  ;;  %v15246_v2 = vld [vmem:[#allocation13 + $0x120] sm:$0xff]  }
 0x36e   :  { %v13633_v54 = vpop.f32.mrf.mxu0  ;;  %14033 = vmatpush3.bf16.msra.mxu0 %v15246_v2 }
 0x36f   :  { %v16387_v5 = vadd.f32 %v13632_v1, %v13520_v40  ;;  %14034 = vmatprep.subr.bf16.mxu0 %v15260_v50 }
 0x370   :  { %v13634_v22 = vpop.f32.mrf.mxu0 }
 0x371   :  { %v13524_v28 = vpop.f32.mrf.mxu1  ;;  %v13635_v13 = vadd.f32 %v13634_v22, %v13633_v54 }
 0x373   :  { %v13525_v55 = vpop.f32.mrf.mxu1  ;;  %v16389_v42 = vadd.f32 %v13635_v13, %v13523_v52  ;;  %v13636_v32 = vpop.f32.mrf.mxu0 }
 0x374   :  { %v13526_v27 = vadd.f32 %v13525_v55, %v13524_v28 }
 0x375   :  { %v13527_v14 = vpop.f32.mrf.mxu1  ;;  %v13637_v26 = vpop.f32.mrf.mxu0 }
 0x376   :  { %v13638_v20 = vadd.f32 %v13637_v26, %v13636_v32 }
 0x377   :  { %v13528_v4 = vpop.f32.mrf.mxu1  ;;  %v13639_v9 = vpop.f32.mrf.mxu0 }
 0x378   :  { %v16391_v63 = vadd.f32 %v13638_v20, %v13526_v27  ;;  %v13529_v40 = vadd.f32 %v13528_v4, %v13527_v14 }
 0x379   :  { %v13530_v1 = vpop.f32.mrf.mxu1  ;;  %v13640_v6 = vpop.f32.mrf.mxu0 }
 0x37a   :  { %v13641_v57 = vadd.f32 %v13640_v6, %v13639_v9 }
 0x37b   :  { %v13531_v54 = vpop.f32.mrf.mxu1  ;;  %v13642_v52 = vpop.f32.mrf.mxu0 }
 0x37c   :  { %v13532_v22 = vadd.f32 %v13531_v54, %v13530_v1  ;;  %v16393_v13 = vadd.f32 %v13641_v57, %v13529_v40 }
 0x37d   :  { %v13533_v28 = vpop.f32.mrf.mxu1  ;;  %v13643_v55 = vpop.f32.mrf.mxu0 }
 0x37e   :  { %v13644_v26 = vadd.f32 %v13643_v55, %v13642_v52  ;;  %v15261_v52 = vld [vmem:[#allocation13 + $0x118] sm:$0xff]  }
 0x37f   :  { %v13534_v32 = vpop.f32.mrf.mxu1  ;;  %v13645_v34 = vpop.f32.mrf.mxu0  ;;  %14035 = vmatpush3.bf16.msra.mxu0 %v15261_v52 }
 0x380   :  { %v16395_v25 = vadd.f32 %v13644_v26, %v13532_v22  ;;  %v13535_v27 = vadd.f32 %v13534_v32, %v13533_v28  ;;  %14036 = vmatprep.subr.bf16.mxu0 %v15275_v21 }
 0x381   :  { %v13646_v14 = vpop.f32.mrf.mxu0 }
 0x382   :  { %v13536_v20 = vpop.f32.mrf.mxu1  ;;  %v13647_v4 = vadd.f32 %v13646_v14, %v13645_v34 }
 0x384   :  { %v13537_v36 = vpop.f32.mrf.mxu1  ;;  %v13648_v17 = vpop.f32.mrf.mxu0  ;;  %v16397_v6 = vadd.f32 %v13647_v4, %v13535_v27 }
 0x385   :  { %v13538_v9 = vadd.f32 %v13537_v36, %v13536_v20 }
 0x386   :  { %v13539_v2 = vpop.f32.mrf.mxu1  ;;  %v13649_v1 = vpop.f32.mrf.mxu0 }
 0x387   :  { %v13650_v40 = vadd.f32 %v13649_v1, %v13648_v17 }
 0x388   :  { %v13540_v57 = vpop.f32.mrf.mxu1  ;;  %v13651_v54 = vpop.f32.mrf.mxu0 }
 0x389   :  { %v16399_v55 = vadd.f32 %v13650_v40, %v13538_v9  ;;  %v13541_v22 = vadd.f32 %v13540_v57, %v13539_v2 }
 0x38a   :  { %v13652_v28 = vpop.f32.mrf.mxu0 }
 0x38b   :  { %v13542_v26 = vpop.f32.mrf.mxu1  ;;  %v13653_v32 = vadd.f32 %v13652_v28, %v13651_v54 }
 0x38c   :  { %v13654_v14 = vpop.f32.mrf.mxu0 }
 0x38d   :  { %v13543_v34 = vpop.f32.mrf.mxu1  ;;  %v16401_v27 = vadd.f32 %v13653_v32, %v13541_v22 }
 0x38e   :  { %v13544_v36 = vadd.f32 %v13543_v34, %v13542_v26  ;;  %v13655_v4 = vpop.f32.mrf.mxu0 }
 0x38f   :  { %v13545_v20 = vpop.f32.mrf.mxu1  ;;  %v13656_v17 = vadd.f32 %v13655_v4, %v13654_v14  ;;  %v15276_v14 = vld [vmem:[#allocation13 + $0x110] sm:$0xff]  }
 0x390   :  { %v13657_v10 = vpop.f32.mrf.mxu0  ;;  %14037 = vmatpush3.bf16.msra.mxu0 %v15276_v14 }
 0x391   :  { %v13546_v1 = vpop.f32.mrf.mxu1  ;;  %v16403_v60 = vadd.f32 %v13656_v17, %v13544_v36 }
 0x392   :  { %v13547_v9 = vadd.f32 %v13546_v1, %v13545_v20  ;;  %v13658_v2 = vpop.f32.mrf.mxu0 }
 0x393   :  { %v13548_v40 = vpop.f32.mrf.mxu1  ;;  %v13659_v57 = vadd.f32 %v13658_v2, %v13657_v10 }
 0x395   :  { %v13549_v12 = vpop.f32.mrf.mxu1  ;;  %v16405_v28 = vadd.f32 %v13659_v57, %v13547_v9 }
 0x396   :  { %v13550_v54 = vadd.f32 %v13549_v12, %v13548_v40 }
 0x397   :  { %v13551_v52 = vpop.f32.mrf.mxu1 }
 0x398   :  { %v13660_v50 = vpop.f32.mrf.mxu0 }
 0x399   :  { %v13552_v32 = vpop.f32.mrf.mxu1 }
 0x39a   :  { %v13661_v26 = vpop.f32.mrf.mxu0  ;;  %v13553_v36 = vadd.f32 %v13552_v32, %v13551_v52 }
 0x39b   :  { %v13662_v22 = vadd.f32 %v13661_v26, %v13660_v50 }
 0x39c   :  { %v13663_v34 = vpop.f32.mrf.mxu0 }
 0x39d   :  { %v16407_v4 = vadd.f32 %v13662_v22, %v13550_v54  ;;  %v13682_v17 = vpop.f32.mrf.mxu1  ;;  %v15290_v54 = vld [vmem:[#allocation13 + $0x148] sm:$0xff]  }
 0x39e   :  { %v13664_v20 = vpop.f32.mrf.mxu0  ;;  %v15291_v22 = vld [vmem:[#allocation13 + $0x108] sm:$0xff]   ;;  %14038 = vmatprep.subr.bf16.mxu0 %v15290_v54 }
 0x39f   :  { %v13665_v1 = vadd.f32 %v13664_v20, %v13663_v34  ;;  %v13683_v10 = vpop.f32.mrf.mxu1  ;;  %14039 = vmatpush3.bf16.msra.mxu0 %v15291_v22 }
 0x3a0   :  { %v13684_v12 = vadd.f32 %v13683_v10, %v13682_v17 }
 0x3a1   :  { %v14588_v2 = vpop.f32.mrf.mxu0  ;;  %v16409_v9 = vadd.f32 %v13665_v1, %v13553_v36  ;;  %v13685_v40 = vpop.f32.mrf.mxu1 }
 0x3a2   :  { %v6985_v26 = vadd.f32 %v13684_v12, %v16304_v18  ;;  %v15301_v18 = vld [vmem:[#allocation13 + $0x140] sm:$0xff]  }
 0x3a3   :  { %v7145_v57 = vpop.f32.mrf.mxu0  ;;  %v13686_v50 = vpop.f32.mrf.mxu1  ;;  %v15302_v12 = vld [vmem:[#allocation13 + $0x100] sm:$0xff]   ;;  %14040 = vmatprep.subr.bf16.mxu0 %v15301_v18 }
 0x3a4   :  { %v13687_v8 = vadd.f32 %v13686_v50, %v13685_v40  ;;  %v7146_v14 = vadd.f32 %v7145_v57, %v6985_v26  ;;  %14041 = vmatpush3.bf16.msra.mxu0 %v15302_v12 }
 0x3a5   :  { %v14589_v58 = vpop.f32.mrf.mxu0  ;;  %v13688_v52 = vpop.f32.mrf.mxu1 }
 0x3a6   :  { %v6988_v32 = vadd.f32 %v13687_v8, %v16312_v24 }
 0x3a7   :  { %v7148_v21 = vpop.f32.mrf.mxu0  ;;  %v13689_v34 = vpop.f32.mrf.mxu1 }
 0x3a8   :  { %v7149_v17 = vadd.f32 %v7148_v21, %v6988_v32  ;;  %v13690_v36 = vadd.f32 %v13689_v34, %v13688_v52 }
 0x3a9   :  { %v13691_v20 = vpop.f32.mrf.mxu1  ;;  %v16413_v10 = vpop.f32.mrf.mxu0 }
 0x3aa   :  { %v12990_v1 = vpack.c.bf16 %v7149_v17, %v7146_v14  ;;  %v6993_v40 = vadd.f32 %v13690_v36, %v16316_v3 }
 0x3ab   :  { %v13692_v51 = vpop.f32.mrf.mxu1  ;;  %v7161_v24 = vpop.f32.mrf.mxu0 }
 0x3ac   :  { %12991 = vst [vmem:[#allocation2 + $0x18] sm:$0xff] %v12990_v1   ;;  %v13693_v50 = vadd.f32 %v13692_v51, %v13691_v20  ;;  %v7154_v26 = vadd.f32 %v14588_v2, %v6993_v40 }
 0x3ad   :  { %v14593_v21 = vpop.f32.mrf.mxu0 }
 0x3ae   :  { %v13694_v53 = vpop.f32.mrf.mxu1  ;;  %v6996_v8 = vadd.f32 %v13693_v50, %v16326_v45 }
 0x3af   :  { %v7164_v18 = vpop.f32.mrf.mxu0 }
 0x3b0   :  { %v13695_v57 = vpop.f32.mrf.mxu1  ;;  %v7157_v54 = vadd.f32 %v14589_v58, %v6996_v8 }
 0x3b1   :  { %v13696_v22 = vadd.f32 %v13695_v57, %v13694_v53 }
 0x3b2   :  { %v13697_v52 = vpop.f32.mrf.mxu1  ;;  %v12995_v32 = vpack.c.bf16 %v7157_v54, %v7154_v26 }
 0x3b3   :  { %v7500_v14 = vld [vmem:[#allocation2 + $0x18] sm:$0xf]  ;;  %v7501_v17 = vld [vmem:[#allocation2 + $0x1c] sm:$0xf]  ;;  %v7001_v51 = vadd.f32 %v13696_v22, %v16342_v19 }
 0x3b4   :  { %v13698_v34 = vpop.f32.mrf.mxu1  ;;  %v7624_v1 = vld [vmem:[#allocation2 + $0x18] sm:$0xf]  ;;  %13067 = vst [vmem:[#allocation2 + $0x20] sm:$0xff] %v12995_v32   ;;  %7532 = vst [vmem:[#allocation4 + $0x74] sm:$0xf] %v7500_v14 }
 0x3b5   :  { %v13699_v3 = vadd.f32 %v13698_v34, %v13697_v52  ;;  %7533 = vst [vmem:[#allocation4 + $0x90] sm:$0xf] %v7501_v17  ;;  %v7625_v45 = vld [vmem:[#allocation2 + $0x1c] sm:$0xf]  ;;  %7656 = vst [vmem:[#allocation4 + $0xc] sm:$0xf] %v7624_v1  ;;  %v7162_v19 = vadd.f32 %v7161_v24, %v7001_v51 }
 0x3b6   :  { %v7438_v36 = vld [vmem:[#allocation2 + $0x18] sm:$0xf]  ;;  %v7439_v20 = vld [vmem:[#allocation2 + $0x1c] sm:$0xf]  ;;  %v13700_v2 = vpop.f32.mrf.mxu1  ;;  %7657 = vst [vmem:[#allocation4 + $0x28] sm:$0xf] %v7625_v45  ;;  %v16419_v57 = vpop.f32.mrf.mxu0 }
 0x3b7   :  { %7470 = vst [vmem:[#allocation4 + $0xa8] sm:$0xf] %v7438_v36  ;;  %7471 = vst [vmem:[#allocation4 + $0xc4] sm:$0xf] %v7439_v20  ;;  %v7562_v58 = vld [vmem:[#allocation2 + $0x18] sm:$0xf]  ;;  %v7004_v12 = vadd.f32 %v13699_v3, %v16348_v30 }
 0x3b8   :  { %v7563_v53 = vld [vmem:[#allocation2 + $0x1c] sm:$0xf]  ;;  %7594 = vst [vmem:[#allocation4 + $0x40] sm:$0xf] %v7562_v58  ;;  %v13701_v40 = vpop.f32.mrf.mxu1  ;;  %v16422_v14 = vpop.f32.mrf.mxu0  ;;  %v15214_v30 = vld [vmem:[#allocation13 + $0x1b0] sm:$0xff]  }
 0x3b9   :  { %7595 = vst [vmem:[#allocation4 + $0x5c] sm:$0xf] %v7563_v53  ;;  %v7165_v50 = vadd.f32 %v7164_v18, %v7004_v12  ;;  %v13702_v8 = vadd.f32 %v13701_v40, %v13700_v2  ;;  %v15193_v52 = vld [vmem:[#allocation4 + $0x70] ss:$28 sps:$4 sm:$0xff]   ;;  %v15196_v3 = vld [vmem:[#allocation4 + $0x8] ss:$28 sps:$4 sm:$0xff]  }
 0x3ba   :  { %v13703_v26 = vpop.f32.mrf.mxu1 }
 0x3bb   :  { %v13000_v54 = vpack.c.bf16 %v7165_v50, %v7162_v19  ;;  %v7009_v32 = vadd.f32 %v13702_v8, %v16352_v46  ;;  %v7502_v24 = vld [vmem:[#allocation2 + $0x20] sm:$0xf]  ;;  %v7503_v36 = vld [vmem:[#allocation2 + $0x24] sm:$0xf] }
 0x3bc   :  { %v13704_v22 = vpop.f32.mrf.mxu1  ;;  %v15195_v17 = vld [vmem:[#allocation4 + $0x74] ss:$28 sps:$4 sm:$0xff]   ;;  %7534 = vst [vmem:[#allocation4 + $0xac] sm:$0xf] %v7502_v24  ;;  %7535 = vst [vmem:[#allocation4 + $0xc8] sm:$0xf] %v7503_v36 }
 0x3bd   :  { %13068 = vst [vmem:[#allocation2 + $0x28] sm:$0xff] %v13000_v54   ;;  %v13705_v34 = vadd.f32 %v13704_v22, %v13703_v26  ;;  %v15198_v45 = vld [vmem:[#allocation4 + $0xc] ss:$28 sps:$4 sm:$0xff]   ;;  %9080 = vmatprep.mubr.bf16.mxu0 %v15195_v17  ;;  %v7626_v20 = vld [vmem:[#allocation2 + $0x20] sm:$0xf]  ;;  %v7170_v12 = vadd.f32 %v16413_v10, %v7009_v32 }
 0x3be   :  { %v7627_v2 = vld [vmem:[#allocation2 + $0x24] sm:$0xf]  ;;  %9225 = vmatprep.mubr.bf16.mxu1 %v15198_v45  ;;  %9081 = vmatmul.mubr.bf16.gmra.mxu0 %v15193_v52  ;;  %7658 = vst [vmem:[#allocation4 + $0x44] sm:$0xf] %v7626_v20  ;;  %v7440_v46 = vld [vmem:[#allocation2 + $0x20] sm:$0xf] }
 0x3bf   :  { %v13706_v1 = vpop.f32.mrf.mxu1  ;;  %v7012_v51 = vadd.f32 %v13705_v34, %v16354_v37  ;;  %7659 = vst [vmem:[#allocation4 + $0x60] sm:$0xf] %v7627_v2  ;;  %v7441_v53 = vld [vmem:[#allocation2 + $0x24] sm:$0xf]  ;;  %v7564_v18 = vld [vmem:[#allocation2 + $0x20] sm:$0xf]  ;;  %9226 = vmatmul.mubr.bf16.vlgmr.msra.gmra.mxu1 %v15196_v3  ;;  %v16426_v37 = vpop.f32.mrf.mxu0 }
 0x3c0   :  { %7472 = vst [vmem:[#allocation4 + $0xe0] sm:$0xf] %v7440_v46  ;;  %7473 = vst [vmem:[#allocation4 + $0xfc] sm:$0xf] %v7441_v53  ;;  %v7565_v50 = vld [vmem:[#allocation2 + $0x24] sm:$0xf]  ;;  %14619 = vmatpush3.bf16.msra.mxu1 %v16366_v62 }
 0x3c1   :  { %v13707_v58 = vpop.f32.mrf.mxu1  ;;  %v7173_v40 = vadd.f32 %v14593_v21, %v7012_v51  ;;  %7596 = vst [vmem:[#allocation4 + $0x78] sm:$0xf] %v7564_v18  ;;  %v7688_v8 = vld [vmem:[#allocation2 + $0x20] sm:$0xf]  ;;  %v7689_v26 = vld [vmem:[#allocation2 + $0x24] sm:$0xf]  ;;  %14620 = vmatprep.subr.bf16.mxu1 %v15214_v30 }
 0x3c2   :  { %v13708_v19 = vadd.f32 %v13707_v58, %v13706_v1  ;;  %7597 = vst [vmem:[#allocation4 + $0x94] sm:$0xf] %v7565_v50  ;;  %7720 = vst [vmem:[#allocation4 + $0x10] sm:$0xf] %v7688_v8  ;;  %v15229_v10 = vld [vmem:[#allocation13 + $0x1a8] sm:$0xff]   ;;  %v7180_v1 = vpop.f32.mrf.mxu0  ;;  %v15244_v51 = vld [vmem:[#allocation13 + $0x1a0] sm:$0xff]  }
 0x3c3   :  { %v13709_v54 = vpop.f32.mrf.mxu1  ;;  %7721 = vst [vmem:[#allocation4 + $0x2c] sm:$0xf] %v7689_v26  ;;  %v13005_v22 = vpack.c.bf16 %v7173_v40, %v7170_v12  ;;  %v15202_v46 = vld [vmem:[#allocation4 + $0xa8] ss:$28 sps:$4 sm:$0xff]   ;;  %v15205_v18 = vld [vmem:[#allocation4 + $0x40] ss:$28 sps:$4 sm:$0xff]  }
 0x3c4   :  { %v7504_v52 = vld [vmem:[#allocation2 + $0x28] sm:$0xf]  ;;  %v7505_v32 = vld [vmem:[#allocation2 + $0x2c] sm:$0xf]  ;;  %v7017_v17 = vadd.f32 %v13708_v19, %v16358_v44  ;;  %14621 = vmatpush3.bf16.msra.mxu1 %v15214_v30  ;;  %v15204_v44 = vld [vmem:[#allocation4 + $0xac] ss:$28 sps:$4 sm:$0xff]   ;;  %v16431_v53 = vpop.f32.mrf.mxu0 }
 0x3c5   :  { %v13710_v21 = vpop.f32.mrf.mxu1  ;;  %v7628_v34 = vld [vmem:[#allocation2 + $0x28] sm:$0xf]  ;;  %13069 = vst [vmem:[#allocation2 + $0x30] sm:$0xff] %v13005_v22   ;;  %7536 = vst [vmem:[#allocation4 + $0xe4] sm:$0xf] %v7504_v52  ;;  %14622 = vmatprep.subr.bf16.mxu1 %v15229_v10  ;;  %9088 = vmatprep.mubr.bf16.mxu0 %v15204_v44 }
 0x3c6   :  { %v13711_v3 = vadd.f32 %v13710_v21, %v13709_v54  ;;  %7537 = vst [vmem:[#allocation4 + $0x100] sm:$0xf] %v7505_v32  ;;  %v7629_v45 = vld [vmem:[#allocation2 + $0x2c] sm:$0xf]  ;;  %7660 = vst [vmem:[#allocation4 + $0x7c] sm:$0xf] %v7628_v34  ;;  %v7178_v40 = vadd.f32 %v16422_v14, %v7017_v17  ;;  %9089 = vmatmul.mubr.bf16.gmra.mxu0 %v15202_v46  ;;  %v16434_v52 = vpop.f32.mrf.mxu0 }
 0x3c7   :  { %v7442_v62 = vld [vmem:[#allocation2 + $0x28] sm:$0xf]  ;;  %v7443_v24 = vld [vmem:[#allocation2 + $0x2c] sm:$0xf]  ;;  %7661 = vst [vmem:[#allocation4 + $0x98] sm:$0xf] %v7629_v45 }
 0x3c8   :  { %7474 = vst [vmem:[#allocation4 + $0x118] sm:$0xf] %v7442_v62  ;;  %7475 = vst [vmem:[#allocation4 + $0x134] sm:$0xf] %v7443_v24  ;;  %v7566_v20 = vld [vmem:[#allocation2 + $0x28] sm:$0xf]  ;;  %v7020_v58 = vadd.f32 %v13711_v3, %v16360_v41  ;;  %14623 = vmatpush3.bf16.msra.mxu1 %v15229_v10 }
 0x3c9   :  { %v7567_v2 = vld [vmem:[#allocation2 + $0x2c] sm:$0xf]  ;;  %7598 = vst [vmem:[#allocation4 + $0xb0] sm:$0xf] %v7566_v20  ;;  %v15207_v30 = vld [vmem:[#allocation4 + $0x44] ss:$28 sps:$4 sm:$0xff]   ;;  %14624 = vmatprep.subr.bf16.mxu1 %v15244_v51 }
 0x3ca   :  { %v13712_v36 = vpop.f32.mrf.mxu1  ;;  %7599 = vst [vmem:[#allocation4 + $0xcc] sm:$0xf] %v7567_v2  ;;  %v7181_v19 = vadd.f32 %v7180_v1, %v7020_v58  ;;  %v7752_v8 = vld [vmem:[#allocation2 + $0x28] sm:$0xf]  ;;  %v7753_v26 = vld [vmem:[#allocation2 + $0x2c] sm:$0xf]  ;;  %9233 = vmatprep.mubr.bf16.mxu1 %v15207_v30  ;;  %v16440_v58 = vpop.f32.mrf.mxu0 }
 0x3cb   :  { %7784 = vst [vmem:[#allocation4 + $0x14] sm:$0xf] %v7752_v8  ;;  %7785 = vst [vmem:[#allocation4 + $0x30] sm:$0xf] %v7753_v26  ;;  %v7690_v41 = vld [vmem:[#allocation2 + $0x28] sm:$0xf]  ;;  %9234 = vmatmul.mubr.bf16.gmra.mxu1 %v15205_v18 }
 0x3cc   :  { %v13713_v12 = vpop.f32.mrf.mxu1  ;;  %v7691_v22 = vld [vmem:[#allocation2 + $0x2c] sm:$0xf]  ;;  %v13010_v21 = vpack.c.bf16 %v7181_v19, %v7178_v40  ;;  %7722 = vst [vmem:[#allocation4 + $0x48] sm:$0xf] %v7690_v41  ;;  %v16437_v45 = vld [vmem:[#allocation13 + $0x190] sm:$0xff]   ;;  %14625 = vmatpush3.bf16.msra.mxu1 %v15244_v51  ;;  %v15289_v26 = vld [vmem:[#allocation13 + $0x188] sm:$0xff]  }
 0x3cd   :  { %v13714_v50 = vadd.f32 %v13713_v12, %v13712_v36  ;;  %v15259_v32 = vld [vmem:[#allocation13 + $0x198] sm:$0xff]   ;;  %7723 = vst [vmem:[#allocation4 + $0x64] sm:$0xf] %v7691_v22  ;;  %v15210_v3 = vld [vmem:[#allocation4 + $0xe4] ss:$28 sps:$4 sm:$0xff]   ;;  %v7196_v22 = vpop.f32.mrf.mxu0 }
 0x3ce   :  { %v13715_v54 = vpop.f32.mrf.mxu1  ;;  %v15324_v14 = vld [vmem:[#allocation10 + $0xf8] sm:$0xff]   ;;  %13070 = vst [vmem:[#allocation2 + $0x38] sm:$0xff] %v13010_v21   ;;  %v7506_v20 = vld [vmem:[#allocation2 + $0x30] sm:$0xf]  ;;  %9096 = vmatprep.mubr.bf16.mxu0 %v15210_v3  ;;  %v7507_v46 = vld [vmem:[#allocation2 + $0x34] sm:$0xf]  ;;  %14626 = vmatprep.subr.bf16.mxu1 %v15259_v32 }
 0x3cf   :  { %v15208_v17 = vld [vmem:[#allocation4 + $0xe0] ss:$28 sps:$4 sm:$0xff]   ;;  %v7025_v1 = vadd.f32 %v13714_v50, %v16362_v35  ;;  %14274 = vmatprep.subr.bf16.mxu0 %v15324_v14  ;;  %v15211_v24 = vld [vmem:[#allocation4 + $0x78] ss:$28 sps:$4 sm:$0xff]   ;;  %7538 = vst [vmem:[#allocation4 + $0x11c] sm:$0xf] %v7506_v20  ;;  %v16446_v3 = vpop.f32.mrf.mxu0 }
 0x3d0   :  { %v13716_v34 = vpop.f32.mrf.mxu1  ;;  %v15213_v36 = vld [vmem:[#allocation4 + $0x7c] ss:$28 sps:$4 sm:$0xff]   ;;  %v7630_v44 = vld [vmem:[#allocation2 + $0x30] sm:$0xf]  ;;  %v7631_v18 = vld [vmem:[#allocation2 + $0x34] sm:$0xf]  ;;  %9097 = vmatmul.mubr.bf16.gmra.mxu0 %v15208_v17  ;;  %14627 = vmatpush3.bf16.msra.mxu1 %v15259_v32 }
 0x3d1   :  { %v13717_v10 = vadd.f32 %v13716_v34, %v13715_v54  ;;  %9241 = vmatprep.mubr.bf16.mxu1 %v15213_v36  ;;  %7539 = vst [vmem:[#allocation4 + $0x138] sm:$0xf] %v7507_v46  ;;  %7662 = vst [vmem:[#allocation4 + $0xb4] sm:$0xf] %v7630_v44  ;;  %v7444_v12 = vld [vmem:[#allocation2 + $0x30] sm:$0xf]  ;;  %v7186_v51 = vadd.f32 %v16419_v57, %v7025_v1  ;;  %14628 = vmatprep.subr.bf16.mxu1 %v16437_v45 }
 0x3d2   :  { %v13718_v62 = vpop.f32.mrf.mxu1  ;;  %7663 = vst [vmem:[#allocation4 + $0xd0] sm:$0xf] %v7631_v18  ;;  %v7445_v40 = vld [vmem:[#allocation2 + $0x34] sm:$0xf]  ;;  %v7568_v19 = vld [vmem:[#allocation2 + $0x30] sm:$0xf] }
 0x3d3   :  { %v7028_v2 = vadd.f32 %v13717_v10, %v16364_v31  ;;  %7476 = vst [vmem:[#allocation4 + $0x150] sm:$0xf] %v7444_v12  ;;  %7477 = vst [vmem:[#allocation4 + $0x16c] sm:$0xf] %v7445_v40  ;;  %v7569_v50 = vld [vmem:[#allocation2 + $0x34] sm:$0xf]  ;;  %9242 = vmatmul.mubr.bf16.gmra.mxu1 %v15211_v24 }
 0x3d4   :  { %v13719_v35 = vpop.f32.mrf.mxu1  ;;  %7600 = vst [vmem:[#allocation4 + $0xe8] sm:$0xf] %v7568_v19  ;;  %7601 = vst [vmem:[#allocation4 + $0x104] sm:$0xf] %v7569_v50  ;;  %v7754_v54 = vld [vmem:[#allocation2 + $0x30] sm:$0xf]  ;;  %14629 = vmatpush3.bf16.msra.mxu1 %v16437_v45  ;;  %v16451_v50 = vpop.f32.mrf.mxu0 }
 0x3d5   :  { %v7189_v31 = vadd.f32 %v16426_v37, %v7028_v2  ;;  %v13720_v30 = vadd.f32 %v13719_v35, %v13718_v62  ;;  %v7755_v21 = vld [vmem:[#allocation2 + $0x34] sm:$0xf]  ;;  %7786 = vst [vmem:[#allocation4 + $0x4c] sm:$0xf] %v7754_v54  ;;  %v7692_v57 = vld [vmem:[#allocation2 + $0x30] sm:$0xf]  ;;  %14630 = vmatprep.subr.bf16.mxu1 %v15289_v26 }
 0x3d6   :  { %v13721_v8 = vpop.f32.mrf.mxu1  ;;  %v7693_v14 = vld [vmem:[#allocation2 + $0x34] sm:$0xf]  ;;  %v7508_v34 = vld [vmem:[#allocation2 + $0x38] sm:$0xf]  ;;  %v7509_v1 = vld [vmem:[#allocation2 + $0x3c] sm:$0xf] }
 0x3d7   :  { %v13015_v41 = vpack.c.bf16 %v7189_v31, %v7186_v51  ;;  %v7632_v10 = vld [vmem:[#allocation2 + $0x38] sm:$0xf]  ;;  %7787 = vst [vmem:[#allocation4 + $0x68] sm:$0xf] %v7755_v21  ;;  %7724 = vst [vmem:[#allocation4 + $0x80] sm:$0xf] %v7692_v57  ;;  %v7033_v32 = vadd.f32 %v13720_v30, %v16370_v33 }
 0x3d8   :  { %v13722_v37 = vpop.f32.mrf.mxu1  ;;  %7725 = vst [vmem:[#allocation4 + $0x9c] sm:$0xf] %v7693_v14  ;;  %7540 = vst [vmem:[#allocation4 + $0x154] sm:$0xf] %v7508_v34  ;;  %v7633_v62 = vld [vmem:[#allocation2 + $0x3c] sm:$0xf]  ;;  %14631 = vmatpush3.bf16.msra.mxu1 %v15289_v26 }
 0x3d9   :  { %13071 = vst [vmem:[#allocation2 + $0x40] sm:$0xff] %v13015_v41   ;;  %v13723_v17 = vadd.f32 %v13722_v37, %v13721_v8  ;;  %7541 = vst [vmem:[#allocation4 + $0x170] sm:$0xf] %v7509_v1  ;;  %v7446_v36 = vld [vmem:[#allocation2 + $0x38] sm:$0xf]  ;;  %v15306_v24 = vld [vmem:[#allocation13 + $0x180] sm:$0xff]   ;;  %v7194_v19 = vadd.f32 %v16434_v52, %v7033_v32  ;;  %v16454_v1 = vpop.f32.mrf.mxu0 }
 0x3da   :  { %7664 = vst [vmem:[#allocation4 + $0xec] sm:$0xf] %v7632_v10  ;;  %v7447_v20 = vld [vmem:[#allocation2 + $0x3c] sm:$0xf]  ;;  %7665 = vst [vmem:[#allocation4 + $0x108] sm:$0xf] %v7633_v62  ;;  %14632 = vmatprep.subr.bf16.mxu1 %v15306_v24 }
 0x3db   :  { %7478 = vst [vmem:[#allocation4 + $0x188] sm:$0xf] %v7446_v36  ;;  %7479 = vst [vmem:[#allocation4 + $0x1a4] sm:$0xf] %v7447_v20  ;;  %v7570_v46 = vld [vmem:[#allocation2 + $0x38] sm:$0xf]  ;;  %v7036_v33 = vadd.f32 %v13723_v17, %v16373_v15 }
 0x3dc   :  { %v13724_v2 = vpop.f32.mrf.mxu1  ;;  %v7571_v44 = vld [vmem:[#allocation2 + $0x3c] sm:$0xf]  ;;  %v15217_v18 = vld [vmem:[#allocation4 + $0x118] ss:$28 sps:$4 sm:$0xff]   ;;  %7602 = vst [vmem:[#allocation4 + $0x120] sm:$0xf] %v7570_v46  ;;  %14633 = vmatpush3.bf16.msra.mxu1 %v15306_v24 }
 0x3dd   :  { %v15219_v35 = vld [vmem:[#allocation4 + $0x11c] ss:$28 sps:$4 sm:$0xff]   ;;  %7603 = vst [vmem:[#allocation4 + $0x13c] sm:$0xf] %v7571_v44  ;;  %v15220_v12 = vld [vmem:[#allocation4 + $0xb0] ss:$28 sps:$4 sm:$0xff]   ;;  %v7197_v51 = vadd.f32 %v7196_v22, %v7036_v33 }
 0x3de   :  { %v13725_v40 = vpop.f32.mrf.mxu1  ;;  %9104 = vmatprep.mubr.bf16.mxu0 %v15219_v35  ;;  %v15222_v31 = vld [vmem:[#allocation4 + $0xb4] ss:$28 sps:$4 sm:$0xff]   ;;  %v7756_v8 = vld [vmem:[#allocation2 + $0x38] sm:$0xf]  ;;  %v7757_v54 = vld [vmem:[#allocation2 + $0x3c] sm:$0xf] }
 0x3df   :  { %v13726_v30 = vadd.f32 %v13725_v40, %v13724_v2  ;;  %9105 = vmatmul.mubr.bf16.gmra.mxu0 %v15217_v18  ;;  %7788 = vst [vmem:[#allocation4 + $0x84] sm:$0xf] %v7756_v8  ;;  %7789 = vst [vmem:[#allocation4 + $0xa0] sm:$0xf] %v7757_v54  ;;  %v7816_v15 = vld [vmem:[#allocation2 + $0x30] sm:$0xf]  ;;  %v13020_v21 = vpack.c.bf16 %v7197_v51, %v7194_v19  ;;  %9249 = vmatprep.mubr.bf16.mxu1 %v15222_v31 }
 0x3e0   :  { %v13727_v45 = vpop.f32.mrf.mxu1  ;;  %v7817_v41 = vld [vmem:[#allocation2 + $0x34] sm:$0xf]  ;;  %7848 = vst [vmem:[#allocation4 + $0x18] sm:$0xf] %v7816_v15  ;;  %v15318_v52 = vld [vmem:[#allocation10 + $0x78] sm:$0xff]   ;;  %9250 = vmatmul.mubr.bf16.gmra.mxu1 %v15220_v12 }
 0x3e1   :  { %7849 = vst [vmem:[#allocation4 + $0x34] sm:$0xf] %v7817_v41  ;;  %v15223_v57 = vld [vmem:[#allocation4 + $0x150] ss:$28 sps:$4 sm:$0xff]   ;;  %13072 = vst [vmem:[#allocation2 + $0x48] sm:$0xff] %v13020_v21   ;;  %v7041_v14 = vadd.f32 %v13726_v30, %v16375_v49  ;;  %14162 = vmatprep.subr.bf16.mxu1 %v15318_v52 }
 0x3e2   :  { %v13728_v22 = vpop.f32.mrf.mxu1  ;;  %v15225_v34 = vld [vmem:[#allocation4 + $0x154] ss:$28 sps:$4 sm:$0xff]   ;;  %v15226_v10 = vld [vmem:[#allocation4 + $0xe8] ss:$28 sps:$4 sm:$0xff]  }
 0x3e3   :  { %v13729_v37 = vadd.f32 %v13728_v22, %v13727_v45  ;;  %v15228_v32 = vld [vmem:[#allocation4 + $0xec] ss:$28 sps:$4 sm:$0xff]   ;;  %v7510_v17 = vld [vmem:[#allocation2 + $0x40] sm:$0xf]  ;;  %9112 = vmatprep.mubr.bf16.mxu0 %v15225_v34  ;;  %v7511_v36 = vld [vmem:[#allocation2 + $0x44] sm:$0xf]  ;;  %v7202_v18 = vadd.f32 %v16431_v53, %v7041_v14 }
 0x3e4   :  { %v13730_v26 = vpop.f32.mrf.mxu1  ;;  %7542 = vst [vmem:[#allocation4 + $0x18c] sm:$0xf] %v7510_v17  ;;  %v7634_v20 = vld [vmem:[#allocation2 + $0x40] sm:$0xf]  ;;  %v7635_v2 = vld [vmem:[#allocation2 + $0x44] sm:$0xf]  ;;  %9257 = vmatprep.mubr.bf16.mxu1 %v15228_v32 }
 0x3e5   :  { %v7044_v62 = vadd.f32 %v13729_v37, %v16377_v39  ;;  %7543 = vst [vmem:[#allocation4 + $0x1a8] sm:$0xf] %v7511_v36  ;;  %7666 = vst [vmem:[#allocation4 + $0x124] sm:$0xf] %v7634_v20  ;;  %v7448_v49 = vld [vmem:[#allocation2 + $0x40] sm:$0xf]  ;;  %v7212_v39 = vpop.f32.mrf.mxu0 }
 0x3e6   :  { %v13731_v46 = vpop.f32.mrf.mxu1  ;;  %7667 = vst [vmem:[#allocation4 + $0x140] sm:$0xf] %v7635_v2  ;;  %v7449_v44 = vld [vmem:[#allocation2 + $0x44] sm:$0xf]  ;;  %v7572_v33 = vld [vmem:[#allocation2 + $0x40] sm:$0xf] }
 0x3e7   :  { %v7205_v24 = vadd.f32 %v16440_v58, %v7044_v62  ;;  %v13732_v35 = vadd.f32 %v13731_v46, %v13730_v26  ;;  %7480 = vst [vmem:[#allocation4 + $0x1c0] sm:$0xf] %v7448_v49  ;;  %7481 = vst [vmem:[#allocation4 + $0x1dc] sm:$0xf] %v7449_v44  ;;  %v7573_v12 = vld [vmem:[#allocation2 + $0x44] sm:$0xf]  ;;  %9113 = vmatmul.mubr.bf16.gmra.mxu0 %v15223_v57  ;;  %v16459_v51 = vpop.f32.mrf.mxu0 }
 0x3e8   :  { %7604 = vst [vmem:[#allocation4 + $0x158] sm:$0xf] %v7572_v33  ;;  %v13733_v40 = vpop.f32.mrf.mxu1  ;;  %7605 = vst [vmem:[#allocation4 + $0x174] sm:$0xf] %v7573_v12  ;;  %v7818_v31 = vld [vmem:[#allocation2 + $0x38] sm:$0xf]  ;;  %9258 = vmatmul.mubr.bf16.gmra.mxu1 %v15226_v10 }
 0x3e9   :  { %v13025_v19 = vpack.c.bf16 %v7205_v24, %v7202_v18  ;;  %v7512_v8 = vld [vmem:[#allocation2 + $0x48] sm:$0xf]  ;;  %v7513_v54 = vld [vmem:[#allocation2 + $0x4c] sm:$0xf]  ;;  %7850 = vst [vmem:[#allocation4 + $0x50] sm:$0xf] %v7818_v31  ;;  %v7049_v58 = vadd.f32 %v13732_v35, %v16379_v11  ;;  %v16463_v26 = vpop.f32.mrf.mxu0 }
 0x3ea   :  { %v13734_v30 = vpop.f32.mrf.mxu1  ;;  %v7636_v53 = vld [vmem:[#allocation2 + $0x48] sm:$0xf]  ;;  %7544 = vst [vmem:[#allocation4 + $0x1c4] sm:$0xf] %v7512_v8  ;;  %7545 = vst [vmem:[#allocation4 + $0x1e0] sm:$0xf] %v7513_v54 }
 0x3eb   :  { %13073 = vst [vmem:[#allocation2 + $0x50] sm:$0xff] %v13025_v19   ;;  %v13735_v45 = vadd.f32 %v13734_v30, %v13733_v40  ;;  %v7637_v15 = vld [vmem:[#allocation2 + $0x4c] sm:$0xf]  ;;  %7668 = vst [vmem:[#allocation4 + $0x15c] sm:$0xf] %v7636_v53  ;;  %v7210_v32 = vadd.f32 %v16451_v50, %v7049_v58  ;;  %v16466_v18 = vpop.f32.mrf.mxu0 }
 0x3ec   :  { %v7450_v41 = vld [vmem:[#allocation2 + $0x48] sm:$0xf]  ;;  %v7451_v21 = vld [vmem:[#allocation2 + $0x4c] sm:$0xf]  ;;  %v13736_v52 = vpop.f32.mrf.mxu1  ;;  %7669 = vst [vmem:[#allocation4 + $0x178] sm:$0xf] %v7637_v15 }
 0x3ed   :  { %7482 = vst [vmem:[#allocation4 + $0x1f8] sm:$0xf] %v7450_v41  ;;  %7483 = vst [vmem:[#allocation4 + $0x214] sm:$0xf] %v7451_v21  ;;  %v7574_v22 = vld [vmem:[#allocation2 + $0x48] sm:$0xf]  ;;  %v7052_v14 = vadd.f32 %v13735_v45, %v16381_v47  ;;  %v7228_v58 = vpop.f32.mrf.mxu0 }
 0x3ee   :  { %v7575_v57 = vld [vmem:[#allocation2 + $0x4c] sm:$0xf]  ;;  %v15232_v37 = vld [vmem:[#allocation4 + $0x188] ss:$28 sps:$4 sm:$0xff]   ;;  %7606 = vst [vmem:[#allocation4 + $0x190] sm:$0xf] %v7574_v22  ;;  %v13737_v10 = vpop.f32.mrf.mxu1 }
 0x3ef   :  { %v15234_v34 = vld [vmem:[#allocation4 + $0x18c] ss:$28 sps:$4 sm:$0xff]   ;;  %7607 = vst [vmem:[#allocation4 + $0x1ac] sm:$0xf] %v7575_v57  ;;  %v15235_v11 = vld [vmem:[#allocation4 + $0x120] ss:$28 sps:$4 sm:$0xff]   ;;  %v7213_v17 = vadd.f32 %v7212_v39, %v7052_v14  ;;  %v13738_v36 = vadd.f32 %v13737_v10, %v13736_v52 }
 0x3f0   :  { %9120 = vmatprep.mubr.bf16.mxu0 %v15234_v34  ;;  %v15237_v62 = vld [vmem:[#allocation4 + $0x124] ss:$28 sps:$4 sm:$0xff]   ;;  %v7819_v20 = vld [vmem:[#allocation2 + $0x3c] sm:$0xf]  ;;  %v7694_v2 = vld [vmem:[#allocation2 + $0x38] sm:$0xf]  ;;  %v13739_v46 = vpop.f32.mrf.mxu1 }
 0x3f1   :  { %9121 = vmatmul.mubr.bf16.gmra.mxu0 %v15232_v37  ;;  %7851 = vst [vmem:[#allocation4 + $0x6c] sm:$0xf] %v7819_v20  ;;  %v7695_v47 = vld [vmem:[#allocation2 + $0x3c] sm:$0xf]  ;;  %7726 = vst [vmem:[#allocation4 + $0xb8] sm:$0xf] %v7694_v2  ;;  %v13030_v33 = vpack.c.bf16 %v7213_v17, %v7210_v32  ;;  %9265 = vmatprep.mubr.bf16.mxu1 %v15237_v62  ;;  %v7057_v12 = vadd.f32 %v13738_v36, %v16383_v61 }
 0x3f2   :  { %v7758_v49 = vld [vmem:[#allocation2 + $0x40] sm:$0xf]  ;;  %v7759_v44 = vld [vmem:[#allocation2 + $0x44] sm:$0xf]  ;;  %7727 = vst [vmem:[#allocation4 + $0xd4] sm:$0xf] %v7695_v47  ;;  %9266 = vmatmul.mubr.bf16.gmra.mxu1 %v15235_v11  ;;  %v13740_v35 = vpop.f32.mrf.mxu1 }
 0x3f3   :  { %7790 = vst [vmem:[#allocation4 + $0xbc] sm:$0xf] %v7758_v49  ;;  %7791 = vst [vmem:[#allocation4 + $0xd8] sm:$0xf] %v7759_v44  ;;  %v7820_v50 = vld [vmem:[#allocation2 + $0x40] sm:$0xf]  ;;  %v13741_v40 = vadd.f32 %v13740_v35, %v13739_v46  ;;  %v7218_v57 = vadd.f32 %v16446_v3, %v7057_v12 }
 0x3f4   :  { %v7821_v24 = vld [vmem:[#allocation2 + $0x44] sm:$0xf]  ;;  %v15238_v39 = vld [vmem:[#allocation4 + $0x1c0] ss:$28 sps:$4 sm:$0xff]   ;;  %7852 = vst [vmem:[#allocation4 + $0x88] sm:$0xf] %v7820_v50  ;;  %v13742_v31 = vpop.f32.mrf.mxu1 }
 0x3f5   :  { %7853 = vst [vmem:[#allocation4 + $0xa4] sm:$0xf] %v7821_v24  ;;  %13074 = vst [vmem:[#allocation2 + $0x58] sm:$0xff] %v13030_v33   ;;  %v15240_v19 = vld [vmem:[#allocation4 + $0x1c4] ss:$28 sps:$4 sm:$0xff]   ;;  %v7060_v53 = vadd.f32 %v13741_v40, %v16385_v23  ;;  %v16472_v23 = vpop.f32.mrf.mxu0 }
 0x3f6   :  { %v15241_v30 = vld [vmem:[#allocation4 + $0x158] ss:$28 sps:$4 sm:$0xff]   ;;  %v7514_v54 = vld [vmem:[#allocation2 + $0x50] sm:$0xf]  ;;  %9128 = vmatprep.mubr.bf16.mxu0 %v15240_v19  ;;  %v7515_v45 = vld [vmem:[#allocation2 + $0x54] sm:$0xf]  ;;  %v13743_v21 = vpop.f32.mrf.mxu1 }
 0x3f7   :  { %v15243_v8 = vld [vmem:[#allocation4 + $0x15c] ss:$28 sps:$4 sm:$0xff]   ;;  %7546 = vst [vmem:[#allocation4 + $0x1fc] sm:$0xf] %v7514_v54  ;;  %v7638_v15 = vld [vmem:[#allocation2 + $0x50] sm:$0xf]  ;;  %v7221_v14 = vadd.f32 %v16454_v1, %v7060_v53  ;;  %v13744_v37 = vadd.f32 %v13743_v21, %v13742_v31  ;;  %v16475_v20 = vpop.f32.mrf.mxu0 }
 0x3f8   :  { %v7639_v41 = vld [vmem:[#allocation2 + $0x54] sm:$0xf]  ;;  %9273 = vmatprep.mubr.bf16.mxu1 %v15243_v8  ;;  %7547 = vst [vmem:[#allocation4 + $0x218] sm:$0xf] %v7515_v45  ;;  %7670 = vst [vmem:[#allocation4 + $0x194] sm:$0xf] %v7638_v15  ;;  %v13745_v11 = vpop.f32.mrf.mxu1 }
 0x3f9   :  { %7671 = vst [vmem:[#allocation4 + $0x1b0] sm:$0xf] %v7639_v41  ;;  %v7452_v61 = vld [vmem:[#allocation2 + $0x50] sm:$0xf]  ;;  %v7453_v52 = vld [vmem:[#allocation2 + $0x54] sm:$0xf]  ;;  %9129 = vmatmul.mubr.bf16.gmra.mxu0 %v15238_v39  ;;  %v13035_v10 = vpack.c.bf16 %v7221_v14, %v7218_v57  ;;  %v7065_v3 = vadd.f32 %v13744_v37, %v16387_v5 }
 0x3fa   :  { %v7576_v22 = vld [vmem:[#allocation2 + $0x50] sm:$0xf]  ;;  %7484 = vst [vmem:[#allocation4 + $0x230] sm:$0xf] %v7452_v61  ;;  %7485 = vst [vmem:[#allocation4 + $0x24c] sm:$0xf] %v7453_v52  ;;  %9274 = vmatmul.mubr.bf16.gmra.mxu1 %v15241_v30  ;;  %v13746_v32 = vpop.f32.mrf.mxu1  ;;  %v16479_v30 = vpop.f32.mrf.mxu0 }
 0x3fb   :  { %v7577_v34 = vld [vmem:[#allocation2 + $0x54] sm:$0xf]  ;;  %7608 = vst [vmem:[#allocation4 + $0x1c8] sm:$0xf] %v7576_v22  ;;  %13075 = vst [vmem:[#allocation2 + $0x60] sm:$0xff] %v13035_v10   ;;  %v13747_v1 = vadd.f32 %v13746_v32, %v13745_v11  ;;  %v7226_v12 = vadd.f32 %v16463_v26, %v7065_v3 }
 0x3fc   :  { %7609 = vst [vmem:[#allocation4 + $0x1e4] sm:$0xf] %v7577_v34  ;;  %v7516_v17 = vld [vmem:[#allocation2 + $0x58] sm:$0xf]  ;;  %v7517_v62 = vld [vmem:[#allocation2 + $0x5c] sm:$0xf]  ;;  %v13748_v49 = vpop.f32.mrf.mxu1  ;;  %v16482_v57 = vpop.f32.mrf.mxu0 }
 0x3fd   :  { %v7640_v36 = vld [vmem:[#allocation2 + $0x58] sm:$0xf]  ;;  %7548 = vst [vmem:[#allocation4 + $0x234] sm:$0xf] %v7516_v17  ;;  %7549 = vst [vmem:[#allocation4 + $0x250] sm:$0xf] %v7517_v62  ;;  %v7068_v50 = vadd.f32 %v13747_v1, %v16389_v42 }
 0x3fe   :  { %v7641_v2 = vld [vmem:[#allocation2 + $0x5c] sm:$0xf]  ;;  %7672 = vst [vmem:[#allocation4 + $0x1cc] sm:$0xf] %v7640_v36  ;;  %v7454_v46 = vld [vmem:[#allocation2 + $0x58] sm:$0xf]  ;;  %v13749_v39 = vpop.f32.mrf.mxu1  ;;  %v16485_v36 = vpop.f32.mrf.mxu0 }
 0x3ff   :  { %v7455_v47 = vld [vmem:[#allocation2 + $0x5c] sm:$0xf]  ;;  %7673 = vst [vmem:[#allocation4 + $0x1e8] sm:$0xf] %v7641_v2  ;;  %7486 = vst [vmem:[#allocation4 + $0x268] sm:$0xf] %v7454_v46  ;;  %v7229_v40 = vadd.f32 %v7228_v58, %v7068_v50  ;;  %v13750_v31 = vadd.f32 %v13749_v39, %v13748_v49 }
 0x400   :  { %7487 = vst [vmem:[#allocation4 + $0x284] sm:$0xf] %v7455_v47  ;;  %v7578_v44 = vld [vmem:[#allocation2 + $0x58] sm:$0xf]  ;;  %v7579_v33 = vld [vmem:[#allocation2 + $0x5c] sm:$0xf]  ;;  %v13751_v54 = vpop.f32.mrf.mxu1 }
 0x401   :  { %v15247_v24 = vld [vmem:[#allocation4 + $0x1f8] ss:$28 sps:$4 sm:$0xff]   ;;  %7610 = vst [vmem:[#allocation4 + $0x200] sm:$0xf] %v7578_v44  ;;  %7611 = vst [vmem:[#allocation4 + $0x21c] sm:$0xf] %v7579_v33  ;;  %v13040_v45 = vpack.c.bf16 %v7229_v40, %v7226_v12  ;;  %v7073_v61 = vadd.f32 %v13750_v31, %v16391_v63 }
 0x402   :  { %v15249_v35 = vld [vmem:[#allocation4 + $0x1fc] ss:$28 sps:$4 sm:$0xff]   ;;  %v15250_v5 = vld [vmem:[#allocation4 + $0x190] ss:$28 sps:$4 sm:$0xff]   ;;  %v7697_v15 = vld [vmem:[#allocation2 + $0x44] sm:$0xf]  ;;  %v13752_v26 = vpop.f32.mrf.mxu1 }
 0x403   :  { %9136 = vmatprep.mubr.bf16.mxu0 %v15249_v35  ;;  %v15252_v19 = vld [vmem:[#allocation4 + $0x194] ss:$28 sps:$4 sm:$0xff]   ;;  %v7822_v8 = vld [vmem:[#allocation2 + $0x48] sm:$0xf]  ;;  %v7823_v53 = vld [vmem:[#allocation2 + $0x4c] sm:$0xf]  ;;  %v13753_v52 = vadd.f32 %v13752_v26, %v13751_v54  ;;  %v7234_v46 = vadd.f32 %v16459_v51, %v7073_v61  ;;  %v16489_v35 = vpop.f32.mrf.mxu0 }
 0x404   :  { %9137 = vmatmul.mubr.bf16.gmra.mxu0 %v15247_v24  ;;  %7854 = vst [vmem:[#allocation4 + $0xc0] sm:$0xf] %v7822_v8  ;;  %v7696_v42 = vld [vmem:[#allocation2 + $0x40] sm:$0xf]  ;;  %9281 = vmatprep.mubr.bf16.mxu1 %v15252_v19  ;;  %7855 = vst [vmem:[#allocation4 + $0xdc] sm:$0xf] %v7823_v53  ;;  %v13754_v14 = vpop.f32.mrf.mxu1 }
 0x405   :  { %7728 = vst [vmem:[#allocation4 + $0xf0] sm:$0xf] %v7696_v42  ;;  %v7760_v41 = vld [vmem:[#allocation2 + $0x48] sm:$0xf]  ;;  %v7761_v21 = vld [vmem:[#allocation2 + $0x4c] sm:$0xf]  ;;  %9282 = vmatmul.mubr.bf16.gmra.mxu1 %v15250_v5  ;;  %v7076_v10 = vadd.f32 %v13753_v52, %v16393_v13 }
 0x406   :  { %v15253_v58 = vld [vmem:[#allocation4 + $0x230] ss:$28 sps:$4 sm:$0xff]   ;;  %7729 = vst [vmem:[#allocation4 + $0x10c] sm:$0xf] %v7697_v15  ;;  %7792 = vst [vmem:[#allocation4 + $0xf4] sm:$0xf] %v7760_v41  ;;  %v13755_v3 = vpop.f32.mrf.mxu1 }
 0x407   :  { %7793 = vst [vmem:[#allocation4 + $0x110] sm:$0xf] %v7761_v21  ;;  %13076 = vst [vmem:[#allocation2 + $0x68] sm:$0xff] %v13040_v45   ;;  %v15255_v22 = vld [vmem:[#allocation4 + $0x234] ss:$28 sps:$4 sm:$0xff]   ;;  %v7237_v47 = vadd.f32 %v16466_v18, %v7076_v10  ;;  %v13756_v13 = vadd.f32 %v13755_v3, %v13754_v14  ;;  %v16493_v21 = vpop.f32.mrf.mxu0 }
 0x408   :  { %v15256_v37 = vld [vmem:[#allocation4 + $0x1c8] ss:$28 sps:$4 sm:$0xff]   ;;  %v7518_v11 = vld [vmem:[#allocation2 + $0x60] sm:$0xf]  ;;  %9144 = vmatprep.mubr.bf16.mxu0 %v15255_v22  ;;  %v7519_v32 = vld [vmem:[#allocation2 + $0x64] sm:$0xf]  ;;  %v13757_v33 = vpop.f32.mrf.mxu1 }
 0x409   :  { %v15258_v34 = vld [vmem:[#allocation4 + $0x1cc] ss:$28 sps:$4 sm:$0xff]   ;;  %7550 = vst [vmem:[#allocation4 + $0x26c] sm:$0xf] %v7518_v11  ;;  %v7642_v17 = vld [vmem:[#allocation2 + $0x60] sm:$0xf]  ;;  %v13045_v24 = vpack.c.bf16 %v7237_v47, %v7234_v46  ;;  %v7081_v12 = vadd.f32 %v13756_v13, %v16395_v25 }
 0x40a   :  { %v7643_v62 = vld [vmem:[#allocation2 + $0x64] sm:$0xf]  ;;  %9289 = vmatprep.mubr.bf16.mxu1 %v15258_v34  ;;  %7551 = vst [vmem:[#allocation4 + $0x288] sm:$0xf] %v7519_v32  ;;  %7674 = vst [vmem:[#allocation4 + $0x204] sm:$0xf] %v7642_v17  ;;  %v13758_v5 = vpop.f32.mrf.mxu1 }
 0x40b   :  { %7675 = vst [vmem:[#allocation4 + $0x220] sm:$0xf] %v7643_v62  ;;  %v7456_v63 = vld [vmem:[#allocation2 + $0x60] sm:$0xf]  ;;  %v7457_v1 = vld [vmem:[#allocation2 + $0x64] sm:$0xf]  ;;  %v13759_v40 = vadd.f32 %v13758_v5, %v13757_v33 }
 0x40c   :  { %v7580_v2 = vld [vmem:[#allocation2 + $0x60] sm:$0xf]  ;;  %7488 = vst [vmem:[#allocation4 + $0x2a0] sm:$0xf] %v7456_v63  ;;  %7489 = vst [vmem:[#allocation4 + $0x2bc] sm:$0xf] %v7457_v1  ;;  %9145 = vmatmul.mubr.bf16.gmra.mxu0 %v15253_v58  ;;  %v13760_v54 = vpop.f32.mrf.mxu1  ;;  %v7242_v58 = vadd.f32 %v16475_v20, %v7081_v12 }
 0x40d   :  { %v7581_v49 = vld [vmem:[#allocation2 + $0x64] sm:$0xf]  ;;  %7612 = vst [vmem:[#allocation4 + $0x238] sm:$0xf] %v7580_v2  ;;  %v7824_v44 = vld [vmem:[#allocation2 + $0x50] sm:$0xf]  ;;  %9290 = vmatmul.mubr.bf16.gmra.mxu1 %v15256_v37  ;;  %v7084_v45 = vadd.f32 %v13759_v40, %v16397_v6  ;;  %v16497_v6 = vpop.f32.mrf.mxu0 }
 0x40e   :  { %7613 = vst [vmem:[#allocation4 + $0x254] sm:$0xf] %v7581_v49  ;;  %v7825_v50 = vld [vmem:[#allocation2 + $0x54] sm:$0xf]  ;;  %7856 = vst [vmem:[#allocation4 + $0xf8] sm:$0xf] %v7824_v44  ;;  %v13761_v26 = vpop.f32.mrf.mxu1 }
 0x40f   :  { %7857 = vst [vmem:[#allocation4 + $0x114] sm:$0xf] %v7825_v50  ;;  %v7520_v51 = vld [vmem:[#allocation2 + $0x68] sm:$0xf]  ;;  %v7521_v39 = vld [vmem:[#allocation2 + $0x6c] sm:$0xf]  ;;  %v7245_v61 = vadd.f32 %v16482_v57, %v7084_v45  ;;  %v13762_v22 = vadd.f32 %v13761_v26, %v13760_v54 }
 0x410   :  { %v7644_v18 = vld [vmem:[#allocation2 + $0x68] sm:$0xf]  ;;  %13077 = vst [vmem:[#allocation2 + $0x70] sm:$0xff] %v13045_v24   ;;  %7552 = vst [vmem:[#allocation4 + $0x2a4] sm:$0xf] %v7520_v51  ;;  %v13763_v14 = vpop.f32.mrf.mxu1 }
 0x411   :  { %7553 = vst [vmem:[#allocation4 + $0x2c0] sm:$0xf] %v7521_v39  ;;  %v7645_v19 = vld [vmem:[#allocation2 + $0x6c] sm:$0xf]  ;;  %7676 = vst [vmem:[#allocation4 + $0x23c] sm:$0xf] %v7644_v18  ;;  %v13050_v37 = vpack.c.bf16 %v7245_v61, %v7242_v58  ;;  %v7089_v20 = vadd.f32 %v13762_v22, %v16399_v55 }
 0x412   :  { %v7458_v31 = vld [vmem:[#allocation2 + $0x68] sm:$0xf]  ;;  %v7459_v8 = vld [vmem:[#allocation2 + $0x6c] sm:$0xf]  ;;  %7677 = vst [vmem:[#allocation4 + $0x258] sm:$0xf] %v7645_v19  ;;  %v13764_v10 = vpop.f32.mrf.mxu1  ;;  %v13818_v62 = vpop.f32.mrf.mxu0 }
 0x413   :  { %7490 = vst [vmem:[#allocation4 + $0x2d8] sm:$0xf] %v7458_v31  ;;  %7491 = vst [vmem:[#allocation4 + $0x2f4] sm:$0xf] %v7459_v8  ;;  %v7582_v53 = vld [vmem:[#allocation2 + $0x68] sm:$0xf]  ;;  %v13765_v57 = vadd.f32 %v13764_v10, %v13763_v14  ;;  %v7250_v51 = vadd.f32 %v16472_v23, %v7089_v20 }
 0x414   :  { %v7583_v42 = vld [vmem:[#allocation2 + $0x6c] sm:$0xf]  ;;  %v15262_v15 = vld [vmem:[#allocation4 + $0x268] ss:$28 sps:$4 sm:$0xff]   ;;  %7614 = vst [vmem:[#allocation4 + $0x270] sm:$0xf] %v7582_v53  ;;  %v13766_v3 = vpop.f32.mrf.mxu1  ;;  %v13819_v44 = vpop.f32.mrf.mxu0 }
 0x415   :  { %v15264_v41 = vld [vmem:[#allocation4 + $0x26c] ss:$28 sps:$4 sm:$0xff]   ;;  %7615 = vst [vmem:[#allocation4 + $0x28c] sm:$0xf] %v7583_v42  ;;  %v15265_v25 = vld [vmem:[#allocation4 + $0x200] ss:$28 sps:$4 sm:$0xff]   ;;  %v7092_v46 = vadd.f32 %v13765_v57, %v16401_v27  ;;  %v16501_v5 = vadd.f32 %v13819_v44, %v13818_v62 }
 0x416   :  { %9152 = vmatprep.mubr.bf16.mxu0 %v15264_v41  ;;  %v15267_v52 = vld [vmem:[#allocation4 + $0x204] ss:$28 sps:$4 sm:$0xff]   ;;  %v7826_v34 = vld [vmem:[#allocation2 + $0x58] sm:$0xf]  ;;  %v7827_v11 = vld [vmem:[#allocation2 + $0x5c] sm:$0xf]  ;;  %v13767_v33 = vpop.f32.mrf.mxu1  ;;  %v16505_v19 = vpop.f32.mrf.mxu0 }
 0x417   :  { %9153 = vmatmul.mubr.bf16.gmra.mxu0 %v15262_v15  ;;  %9297 = vmatprep.mubr.bf16.mxu1 %v15267_v52  ;;  %v15268_v32 = vld [vmem:[#allocation4 + $0x2a0] ss:$28 sps:$4 sm:$0xff]   ;;  %7858 = vst [vmem:[#allocation4 + $0x130] sm:$0xf] %v7826_v34  ;;  %7859 = vst [vmem:[#allocation4 + $0x14c] sm:$0xf] %v7827_v11  ;;  %v7253_v27 = vadd.f32 %v16479_v30, %v7092_v46  ;;  %v13768_v39 = vadd.f32 %v13767_v33, %v13766_v3 }
 0x418   :  { %9298 = vmatmul.mubr.bf16.gmra.mxu1 %v15265_v25  ;;  %13078 = vst [vmem:[#allocation2 + $0x78] sm:$0xff] %v13050_v37   ;;  %v15270_v17 = vld [vmem:[#allocation4 + $0x2a4] ss:$28 sps:$4 sm:$0xff]   ;;  %v15271_v63 = vld [vmem:[#allocation4 + $0x238] ss:$28 sps:$4 sm:$0xff]   ;;  %v13769_v31 = vpop.f32.mrf.mxu1  ;;  %v16507_v30 = vpop.f32.mrf.mxu0 }
 0x419   :  { %v15273_v1 = vld [vmem:[#allocation4 + $0x23c] ss:$28 sps:$4 sm:$0xff]   ;;  %v7522_v2 = vld [vmem:[#allocation2 + $0x70] sm:$0xf]  ;;  %9160 = vmatprep.mubr.bf16.mxu0 %v15270_v17  ;;  %v7523_v47 = vld [vmem:[#allocation2 + $0x74] sm:$0xf]  ;;  %v13055_v23 = vpack.c.bf16 %v7253_v27, %v7250_v51  ;;  %v7097_v25 = vadd.f32 %v13768_v39, %v16403_v60 }
 0x41a   :  { %7554 = vst [vmem:[#allocation4 + $0x2dc] sm:$0xf] %v7522_v2  ;;  %v7646_v13 = vld [vmem:[#allocation2 + $0x70] sm:$0xf]  ;;  %v7647_v49 = vld [vmem:[#allocation2 + $0x74] sm:$0xf]  ;;  %9305 = vmatprep.mubr.bf16.mxu1 %v15273_v1  ;;  %v13770_v42 = vpop.f32.mrf.mxu1  ;;  %v13824_v22 = vpop.f32.mrf.mxu0 }
 0x41b   :  { %7555 = vst [vmem:[#allocation4 + $0x2f8] sm:$0xf] %v7523_v47  ;;  %7678 = vst [vmem:[#allocation4 + $0x274] sm:$0xf] %v7646_v13  ;;  %v7460_v55 = vld [vmem:[#allocation2 + $0x70] sm:$0xf]  ;;  %v13771_v26 = vadd.f32 %v13770_v42, %v13769_v31  ;;  %v7258_v62 = vadd.f32 %v16489_v35, %v7097_v25 }
 0x41c   :  { %7679 = vst [vmem:[#allocation4 + $0x290] sm:$0xf] %v7647_v49  ;;  %v7461_v50 = vld [vmem:[#allocation2 + $0x74] sm:$0xf]  ;;  %v7584_v24 = vld [vmem:[#allocation2 + $0x70] sm:$0xf]  ;;  %v13772_v14 = vpop.f32.mrf.mxu1  ;;  %v13825_v60 = vpop.f32.mrf.mxu0 }
 0x41d   :  { %7492 = vst [vmem:[#allocation4 + $0x310] sm:$0xf] %v7460_v55  ;;  %7493 = vst [vmem:[#allocation4 + $0x32c] sm:$0xf] %v7461_v50  ;;  %v7585_v18 = vld [vmem:[#allocation2 + $0x74] sm:$0xf]  ;;  %v7100_v11 = vadd.f32 %v13771_v26, %v16405_v28  ;;  %v16511_v17 = vadd.f32 %v13825_v60, %v13824_v22 }
 0x41e   :  { %7616 = vst [vmem:[#allocation4 + $0x2a8] sm:$0xf] %v7584_v24  ;;  %v7698_v12 = vld [vmem:[#allocation2 + $0x48] sm:$0xf]  ;;  %v7699_v40 = vld [vmem:[#allocation2 + $0x4c] sm:$0xf]  ;;  %v13773_v57 = vpop.f32.mrf.mxu1 }
 0x41f   :  { %9161 = vmatmul.mubr.bf16.gmra.mxu0 %v15268_v32  ;;  %7617 = vst [vmem:[#allocation4 + $0x2c4] sm:$0xf] %v7585_v18  ;;  %7730 = vst [vmem:[#allocation4 + $0x128] sm:$0xf] %v7698_v12  ;;  %v7762_v8 = vld [vmem:[#allocation2 + $0x50] sm:$0xf]  ;;  %v7261_v3 = vadd.f32 %v16497_v6, %v7100_v11  ;;  %v13774_v1 = vadd.f32 %v13773_v57, %v13772_v14 }
 0x420   :  { %7731 = vst [vmem:[#allocation4 + $0x144] sm:$0xf] %v7699_v40  ;;  %v7763_v54 = vld [vmem:[#allocation2 + $0x54] sm:$0xf]  ;;  %v7828_v53 = vld [vmem:[#allocation2 + $0x60] sm:$0xf]  ;;  %9306 = vmatmul.mubr.bf16.gmra.mxu1 %v15271_v63  ;;  %v13775_v46 = vpop.f32.mrf.mxu1 }
 0x421   :  { %7794 = vst [vmem:[#allocation4 + $0x12c] sm:$0xf] %v7762_v8  ;;  %7795 = vst [vmem:[#allocation4 + $0x148] sm:$0xf] %v7763_v54  ;;  %v7524_v45 = vld [vmem:[#allocation2 + $0x78] sm:$0xf]  ;;  %v13060_v28 = vpack.c.bf16 %v7261_v3, %v7258_v62  ;;  %v7105_v13 = vadd.f32 %v13774_v1, %v16407_v4 }
 0x422   :  { %7860 = vst [vmem:[#allocation4 + $0x168] sm:$0xf] %v7828_v53  ;;  %v7525_v15 = vld [vmem:[#allocation2 + $0x7c] sm:$0xf]  ;;  %v7648_v41 = vld [vmem:[#allocation2 + $0x78] sm:$0xf]  ;;  %v13776_v47 = vpop.f32.mrf.mxu1 }
 0x423   :  { %13079 = vst [vmem:[#allocation2 + $0x80] sm:$0xff] %v13055_v23   ;;  %7556 = vst [vmem:[#allocation4 + $0x314] sm:$0xf] %v7524_v45  ;;  %v7649_v58 = vld [vmem:[#allocation2 + $0x7c] sm:$0xf]  ;;  %v13777_v49 = vadd.f32 %v13776_v47, %v13775_v46  ;;  %v7266_v4 = vadd.f32 %v16485_v36, %v7105_v13  ;;  %v15340_v60 = vld [vmem:[#allocation10 + $0xf0] sm:$0xff]  }
 0x424   :  { %7557 = vst [vmem:[#allocation4 + $0x330] sm:$0xf] %v7525_v15  ;;  %7680 = vst [vmem:[#allocation4 + $0x2ac] sm:$0xf] %v7648_v41  ;;  %v7462_v61 = vld [vmem:[#allocation2 + $0x78] sm:$0xf] }
 0x425   :  { %v7463_v52 = vld [vmem:[#allocation2 + $0x7c] sm:$0xf]  ;;  %7681 = vst [vmem:[#allocation4 + $0x2c8] sm:$0xf] %v7649_v58  ;;  %7494 = vst [vmem:[#allocation4 + $0x348] sm:$0xf] %v7462_v61  ;;  %v7108_v6 = vadd.f32 %v13777_v49, %v16409_v9 }
 0x426   :  { %7495 = vst [vmem:[#allocation4 + $0x364] sm:$0xf] %v7463_v52  ;;  %v7586_v37 = vld [vmem:[#allocation2 + $0x78] sm:$0xf]  ;;  %v7587_v34 = vld [vmem:[#allocation2 + $0x7c] sm:$0xf] }
 0x427   :  { %v15277_v10 = vld [vmem:[#allocation4 + $0x2d8] ss:$28 sps:$4 sm:$0xff]   ;;  %7618 = vst [vmem:[#allocation4 + $0x2e0] sm:$0xf] %v7586_v37  ;;  %7619 = vst [vmem:[#allocation4 + $0x2fc] sm:$0xf] %v7587_v34  ;;  %v7269_v12 = vadd.f32 %v16493_v21, %v7108_v6 }
 0x428   :  { %v15279_v32 = vld [vmem:[#allocation4 + $0x2dc] ss:$28 sps:$4 sm:$0xff]   ;;  %v15280_v20 = vld [vmem:[#allocation4 + $0x270] ss:$28 sps:$4 sm:$0xff]   ;;  %v7829_v2 = vld [vmem:[#allocation2 + $0x64] sm:$0xf] }
 0x429   :  { %9168 = vmatprep.mubr.bf16.mxu0 %v15279_v32  ;;  %v15282_v63 = vld [vmem:[#allocation4 + $0x274] ss:$28 sps:$4 sm:$0xff]   ;;  %7861 = vst [vmem:[#allocation4 + $0x184] sm:$0xf] %v7829_v2  ;;  %13080 = vst [vmem:[#allocation2 + $0x88] sm:$0xff] %v13060_v28   ;;  %v13065_v8 = vpack.c.bf16 %v7269_v12, %v7266_v4  ;;  %v15356_v49 = vld [vmem:[#allocation10 + $0xe8] sm:$0xff]  }
 0x42a   :  { %9169 = vmatmul.mubr.bf16.gmra.mxu0 %v15277_v10  ;;  %9313 = vmatprep.mubr.bf16.mxu1 %v15282_v63  ;;  %v15283_v33 = vld [vmem:[#allocation4 + $0x310] ss:$28 sps:$4 sm:$0xff]   ;;  %v7527_v50 = vld [vmem:[#allocation2 + $0x84] sm:$0xf]  ;;  %v15286_v27 = vld [vmem:[#allocation4 + $0x2a8] ss:$28 sps:$4 sm:$0xff]  }
 0x42b   :  { %9314 = vmatmul.mubr.bf16.gmra.mxu1 %v15280_v20  ;;  %v15285_v44 = vld [vmem:[#allocation4 + $0x314] ss:$28 sps:$4 sm:$0xff]   ;;  %7559 = vst [vmem:[#allocation4 + $0x368] sm:$0xf] %v7527_v50  ;;  %v7830_v40 = vld [vmem:[#allocation2 + $0x68] sm:$0xf] }
 0x42c   :  { %v15288_v35 = vld [vmem:[#allocation4 + $0x2ac] ss:$28 sps:$4 sm:$0xff]   ;;  %v7526_v55 = vld [vmem:[#allocation2 + $0x80] sm:$0xf]  ;;  %9176 = vmatprep.mubr.bf16.mxu0 %v15285_v44  ;;  %v7651_v51 = vld [vmem:[#allocation2 + $0x84] sm:$0xf] }
 0x42d   :  { %7558 = vst [vmem:[#allocation4 + $0x34c] sm:$0xf] %v7526_v55  ;;  %v7650_v24 = vld [vmem:[#allocation2 + $0x80] sm:$0xf]  ;;  %9321 = vmatprep.mubr.bf16.mxu1 %v15288_v35  ;;  %7683 = vst [vmem:[#allocation4 + $0x300] sm:$0xf] %v7651_v51 }
 0x42e   :  { %7682 = vst [vmem:[#allocation4 + $0x2e4] sm:$0xf] %v7650_v24  ;;  %v7588_v39 = vld [vmem:[#allocation2 + $0x80] sm:$0xf]  ;;  %v7589_v18 = vld [vmem:[#allocation2 + $0x84] sm:$0xf] }
 0x42f   :  { %7620 = vst [vmem:[#allocation4 + $0x318] sm:$0xf] %v7588_v39  ;;  %7621 = vst [vmem:[#allocation4 + $0x334] sm:$0xf] %v7589_v18  ;;  %v7831_v9 = vld [vmem:[#allocation2 + $0x6c] sm:$0xf] }
 0x430   :  { %7862 = vst [vmem:[#allocation4 + $0x1a0] sm:$0xf] %v7830_v40  ;;  %v7700_v31 = vld [vmem:[#allocation2 + $0x50] sm:$0xf]  ;;  %7863 = vst [vmem:[#allocation4 + $0x1bc] sm:$0xf] %v7831_v9 }
 0x431   :  { %v7701_v54 = vld [vmem:[#allocation2 + $0x54] sm:$0xf]  ;;  %7732 = vst [vmem:[#allocation4 + $0x160] sm:$0xf] %v7700_v31  ;;  %v7764_v53 = vld [vmem:[#allocation2 + $0x58] sm:$0xf] }
 0x432   :  { %9177 = vmatmul.mubr.bf16.gmra.mxu0 %v15283_v33  ;;  %v7765_v23 = vld [vmem:[#allocation2 + $0x5c] sm:$0xf]  ;;  %v7652_v42 = vld [vmem:[#allocation2 + $0x88] sm:$0xf]  ;;  %v7653_v45 = vld [vmem:[#allocation2 + $0x8c] sm:$0xf] }
 0x433   :  { %9322 = vmatmul.mubr.bf16.gmra.mxu1 %v15286_v27  ;;  %v7590_v15 = vld [vmem:[#allocation2 + $0x88] sm:$0xf]  ;;  %7733 = vst [vmem:[#allocation4 + $0x17c] sm:$0xf] %v7701_v54  ;;  %7796 = vst [vmem:[#allocation4 + $0x164] sm:$0xf] %v7764_v53 }
 0x434   :  { %7797 = vst [vmem:[#allocation4 + $0x180] sm:$0xf] %v7765_v23  ;;  %13081 = vst [vmem:[#allocation2 + $0x90] sm:$0xff] %v13065_v8   ;;  %v7591_v36 = vld [vmem:[#allocation2 + $0x8c] sm:$0xf]  ;;  %v15341_v28 = vld [vmem:[#allocation10 + $0xb0] sm:$0xff]  }
 0x435   :  { %7684 = vst [vmem:[#allocation4 + $0x31c] sm:$0xf] %v7652_v42  ;;  %7685 = vst [vmem:[#allocation4 + $0x338] sm:$0xf] %v7653_v45  ;;  %v7832_v21 = vld [vmem:[#allocation2 + $0x70] sm:$0xf] }
 0x436   :  { %7622 = vst [vmem:[#allocation4 + $0x350] sm:$0xf] %v7590_v15  ;;  %v7833_v41 = vld [vmem:[#allocation2 + $0x74] sm:$0xf]  ;;  %7623 = vst [vmem:[#allocation4 + $0x36c] sm:$0xf] %v7591_v36 }
 0x437   :  { %7864 = vst [vmem:[#allocation4 + $0x1d8] sm:$0xf] %v7832_v21  ;;  %7865 = vst [vmem:[#allocation4 + $0x1f4] sm:$0xf] %v7833_v41  ;;  %v7834_v25 = vld [vmem:[#allocation2 + $0x78] sm:$0xf] }
 0x438   :  { %v15292_v26 = vld [vmem:[#allocation4 + $0x348] ss:$28 sps:$4 sm:$0xff]   ;;  %v15300_v61 = vld [vmem:[#allocation4 + $0x14] ss:$28 sps:$4 sm:$0xff]   ;;  %7866 = vst [vmem:[#allocation4 + $0x210] sm:$0xf] %v7834_v25 }
 0x439   :  { %v15294_v58 = vld [vmem:[#allocation4 + $0x34c] ss:$28 sps:$4 sm:$0xff]   ;;  %v15295_v52 = vld [vmem:[#allocation4 + $0x2e0] ss:$28 sps:$4 sm:$0xff]   ;;  %v15303_v20 = vld [vmem:[#allocation4 + $0x318] ss:$28 sps:$4 sm:$0xff]  }
 0x43a   :  { %9184 = vmatprep.mubr.bf16.mxu0 %v15294_v58  ;;  %v15297_v22 = vld [vmem:[#allocation4 + $0x2e4] ss:$28 sps:$4 sm:$0xff]   ;;  %v7835_v14 = vld [vmem:[#allocation2 + $0x7c] sm:$0xf]  ;;  %v15325_v10 = vld [vmem:[#allocation10 + $0xb8] sm:$0xff]  }
 0x43b   :  { %9185 = vmatmul.mubr.bf16.gmra.mxu0 %v15292_v26  ;;  %7867 = vst [vmem:[#allocation4 + $0x22c] sm:$0xf] %v7835_v14  ;;  %9329 = vmatprep.mubr.bf16.mxu1 %v15297_v22  ;;  %v7654_v34 = vld [vmem:[#allocation2 + $0x90] sm:$0xf]  ;;  %v7655_v11 = vld [vmem:[#allocation2 + $0x94] sm:$0xf] }
 0x43c   :  { %9386 = vmatprep.mubr.bf16.mxu0 %v15300_v61  ;;  %9330 = vmatmul.mubr.bf16.gmra.mxu1 %v15295_v52  ;;  %v15305_v37 = vld [vmem:[#allocation4 + $0x31c] ss:$28 sps:$4 sm:$0xff]   ;;  %v15298_v32 = vld [vmem:[#allocation4 + $0x10] ss:$28 sps:$4 sm:$0xff]   ;;  %7686 = vst [vmem:[#allocation4 + $0x354] sm:$0xf] %v7654_v34 }
 0x43d   :  { %7687 = vst [vmem:[#allocation4 + $0x370] sm:$0xf] %v7655_v11  ;;  %9337 = vmatprep.mubr.bf16.mxu1 %v15305_v37  ;;  %v7702_v57 = vld [vmem:[#allocation2 + $0x58] sm:$0xf]  ;;  %v7703_v62 = vld [vmem:[#allocation2 + $0x5c] sm:$0xf] }
 0x43e   :  { %7734 = vst [vmem:[#allocation4 + $0x198] sm:$0xf] %v7702_v57  ;;  %v7766_v3 = vld [vmem:[#allocation2 + $0x60] sm:$0xf]  ;;  %v7767_v63 = vld [vmem:[#allocation2 + $0x64] sm:$0xf] }
 0x43f   :  { %v15309_v1 = vld [vmem:[#allocation4 + $0x4c] ss:$28 sps:$4 sm:$0xff]   ;;  %7735 = vst [vmem:[#allocation4 + $0x1b4] sm:$0xf] %v7703_v62  ;;  %7798 = vst [vmem:[#allocation4 + $0x19c] sm:$0xf] %v7766_v3 }
 0x440   :  { %7799 = vst [vmem:[#allocation4 + $0x1b8] sm:$0xf] %v7767_v63  ;;  %v7836_v2 = vld [vmem:[#allocation2 + $0x80] sm:$0xf]  ;;  %v7837_v46 = vld [vmem:[#allocation2 + $0x84] sm:$0xf] }
 0x441   :  { %7868 = vst [vmem:[#allocation4 + $0x248] sm:$0xf] %v7836_v2  ;;  %7869 = vst [vmem:[#allocation4 + $0x264] sm:$0xf] %v7837_v46  ;;  %v7838_v47 = vld [vmem:[#allocation2 + $0x88] sm:$0xf] }
 0x442   :  { %v7839_v13 = vld [vmem:[#allocation2 + $0x8c] sm:$0xf]  ;;  %7870 = vst [vmem:[#allocation4 + $0x280] sm:$0xf] %v7838_v47  ;;  %v7704_v44 = vld [vmem:[#allocation2 + $0x60] sm:$0xf] }
 0x443   :  { %9387 = vmatmul.mubr.bf16.vlgmr.msra.gmra.mxu0 %v15298_v32  ;;  %7871 = vst [vmem:[#allocation4 + $0x29c] sm:$0xf] %v7839_v13  ;;  %v7705_v33 = vld [vmem:[#allocation2 + $0x64] sm:$0xf]  ;;  %7736 = vst [vmem:[#allocation4 + $0x1d0] sm:$0xf] %v7704_v44 }
 0x444   :  { %9394 = vmatprep.mubr.bf16.mxu0 %v15309_v1  ;;  %14275 = vmatpush3.bf16.msra.mxu0 %v15325_v10  ;;  %7737 = vst [vmem:[#allocation4 + $0x1ec] sm:$0xf] %v7705_v33  ;;  %v15307_v35 = vld [vmem:[#allocation4 + $0x48] ss:$28 sps:$4 sm:$0xff]   ;;  %v15312_v55 = vld [vmem:[#allocation4 + $0x354] ss:$28 sps:$4 sm:$0xff]  }
 0x445   :  { %9338 = vmatmul.mubr.bf16.gmra.mxu1 %v15303_v20  ;;  %14276 = vmatprep.subr.bf16.mxu0 %v15340_v60  ;;  %v7768_v6 = vld [vmem:[#allocation2 + $0x68] sm:$0xf]  ;;  %v7769_v50 = vld [vmem:[#allocation2 + $0x6c] sm:$0xf]  ;;  %v15357_v24 = vld [vmem:[#allocation10 + $0xa8] sm:$0xff]  }
 0x446   :  { %7800 = vst [vmem:[#allocation4 + $0x1d4] sm:$0xf] %v7768_v6  ;;  %7801 = vst [vmem:[#allocation4 + $0x1f0] sm:$0xf] %v7769_v50  ;;  %v7840_v51 = vld [vmem:[#allocation2 + $0x90] sm:$0xf]  ;;  %9345 = vmatprep.mubr.bf16.mxu1 %v15312_v55 }
 0x447   :  { %v7841_v27 = vld [vmem:[#allocation2 + $0x94] sm:$0xf]  ;;  %v15310_v39 = vld [vmem:[#allocation4 + $0x350] ss:$28 sps:$4 sm:$0xff]   ;;  %7872 = vst [vmem:[#allocation4 + $0x2b8] sm:$0xf] %v7840_v51 }
 0x448   :  { %14277 = vmatpush3.bf16.msra.mxu0 %v15341_v28  ;;  %7873 = vst [vmem:[#allocation4 + $0x2d4] sm:$0xf] %v7841_v27  ;;  %v15315_v18 = vld [vmem:[#allocation4 + $0x84] ss:$28 sps:$4 sm:$0xff]   ;;  %v15316_v4 = vld [vmem:[#allocation4 + $0x18] ss:$28 sps:$4 sm:$0xff]  }
 0x449   :  { %14278 = vmatprep.subr.bf16.mxu0 %v15356_v49  ;;  %v7706_v12 = vld [vmem:[#allocation2 + $0x68] sm:$0xf]  ;;  %v7707_v40 = vld [vmem:[#allocation2 + $0x6c] sm:$0xf]  ;;  %v7770_v9 = vld [vmem:[#allocation2 + $0x70] sm:$0xf] }
 0x44a   :  { %7738 = vst [vmem:[#allocation4 + $0x208] sm:$0xf] %v7706_v12  ;;  %7739 = vst [vmem:[#allocation4 + $0x224] sm:$0xf] %v7707_v40  ;;  %v7771_v31 = vld [vmem:[#allocation2 + $0x74] sm:$0xf] }
 0x44b   :  { %9395 = vmatmul.mubr.bf16.gmra.mxu0 %v15307_v35  ;;  %7802 = vst [vmem:[#allocation4 + $0x20c] sm:$0xf] %v7770_v9  ;;  %v15371_v8 = vld [vmem:[#allocation10 + $0xe0] sm:$0xff]   ;;  %7803 = vst [vmem:[#allocation4 + $0x228] sm:$0xf] %v7771_v31  ;;  %v15323_v54 = vld [vmem:[#allocation10 + $0x38] sm:$0xff]  }
 0x44c   :  { %9402 = vmatprep.mubr.bf16.mxu0 %v15315_v18  ;;  %14279 = vmatpush3.bf16.msra.mxu0 %v15357_v24  ;;  %v15313_v53 = vld [vmem:[#allocation4 + $0x80] ss:$28 sps:$4 sm:$0xff]   ;;  %v15317_v23 = vld [vmem:[#allocation4 + $0x50] ss:$28 sps:$4 sm:$0xff]   ;;  %v7709_v21 = vld [vmem:[#allocation2 + $0x74] sm:$0xf] }
 0x44d   :  { %9346 = vmatmul.mubr.bf16.gmra.mxu1 %v15310_v39  ;;  %14280 = vmatprep.subr.bf16.mxu0 %v15371_v8  ;;  %v15372_v42 = vld [vmem:[#allocation10 + $0xa0] sm:$0xff]   ;;  %v15321_v45 = vld [vmem:[#allocation4 + $0xbc] ss:$28 sps:$4 sm:$0xff]   ;;  %v15327_v15 = vld [vmem:[#allocation10 + $0x70] sm:$0xff]   ;;  %7741 = vst [vmem:[#allocation4 + $0x25c] sm:$0xf] %v7709_v21 }
 0x44e   :  { %14634 = vmatprep.mubr.bf16.mxu1 %v15316_v4  ;;  %v7708_v36 = vld [vmem:[#allocation2 + $0x70] sm:$0xf]  ;;  %v7772_v41 = vld [vmem:[#allocation2 + $0x78] sm:$0xf]  ;;  %v7773_v25 = vld [vmem:[#allocation2 + $0x7c] sm:$0xf] }
 0x44f   :  { %7740 = vst [vmem:[#allocation4 + $0x240] sm:$0xf] %v7708_v36  ;;  %v15322_v26 = vld [vmem:[#allocation4 + $0x88] ss:$28 sps:$4 sm:$0xff]   ;;  %7804 = vst [vmem:[#allocation4 + $0x244] sm:$0xf] %v7772_v41 }
 0x450   :  { %14281 = vmatpush3.bf16.msra.mxu0 %v15372_v42  ;;  %7805 = vst [vmem:[#allocation4 + $0x260] sm:$0xf] %v7773_v25  ;;  %v7710_v58 = vld [vmem:[#allocation2 + $0x78] sm:$0xf]  ;;  %v7711_v61 = vld [vmem:[#allocation2 + $0x7c] sm:$0xf] }
 0x451   :  { %7742 = vst [vmem:[#allocation4 + $0x278] sm:$0xf] %v7710_v58  ;;  %v7774_v52 = vld [vmem:[#allocation2 + $0x80] sm:$0xf]  ;;  %7743 = vst [vmem:[#allocation4 + $0x294] sm:$0xf] %v7711_v61 }
 0x452   :  { %v15332_v22 = vld [vmem:[#allocation10 + $0x30] sm:$0xff]   ;;  %7806 = vst [vmem:[#allocation4 + $0x27c] sm:$0xf] %v7774_v52  ;;  %v15334_v37 = vld [vmem:[#allocation10 + $0x68] sm:$0xff]   ;;  %v15385_v11 = vld [vmem:[#allocation10 + $0xd8] sm:$0xff]  }
 0x453   :  { %9403 = vmatmul.mubr.bf16.gmra.mxu0 %v15313_v53  ;;  %v15319_v14 = vld [vmem:[#allocation4 + $0xb8] ss:$28 sps:$4 sm:$0xff]   ;;  %v7712_v60 = vld [vmem:[#allocation2 + $0x80] sm:$0xf]  ;;  %v15326_v57 = vld [vmem:[#allocation4 + $0xc0] ss:$28 sps:$4 sm:$0xff]   ;;  %14282 = vmatprep.subr.bf16.mxu0 %v15385_v11 }
 0x454   :  { %9410 = vmatprep.mubr.bf16.mxu0 %v15321_v45  ;;  %v7775_v34 = vld [vmem:[#allocation2 + $0x84] sm:$0xf]  ;;  %v15386_v32 = vld [vmem:[#allocation10 + $0x98] sm:$0xff]   ;;  %v15339_v62 = vld [vmem:[#allocation10 + $0x28] sm:$0xff]   ;;  %7744 = vst [vmem:[#allocation4 + $0x2b0] sm:$0xf] %v7712_v60 }
 0x455   :  { %14635 = vmatmul.mubr.bf16.vlgmr.msra.gmra.mxu1 %v15317_v23  ;;  %v15330_v10 = vld [vmem:[#allocation4 + $0xf4] ss:$28 sps:$4 sm:$0xff]   ;;  %7807 = vst [vmem:[#allocation4 + $0x298] sm:$0xf] %v7775_v34  ;;  %v7776_v3 = vld [vmem:[#allocation2 + $0x88] sm:$0xf]  ;;  %14283 = vmatpush3.bf16.msra.mxu0 %v15386_v32 }
 0x456   :  { %14638 = vmatprep.mubr.bf16.mxu1 %v15322_v26  ;;  %14163 = vmatpush3.bf16.msra.mxu1 %v15323_v54  ;;  %v7713_v20 = vld [vmem:[#allocation2 + $0x84] sm:$0xf]  ;;  %v7777_v63 = vld [vmem:[#allocation2 + $0x8c] sm:$0xf]  ;;  %7808 = vst [vmem:[#allocation4 + $0x2b4] sm:$0xf] %v7776_v3 }
 0x457   :  { %14164 = vmatprep.subr.bf16.mxu1 %v15327_v15  ;;  %7745 = vst [vmem:[#allocation4 + $0x2cc] sm:$0xf] %v7713_v20  ;;  %7809 = vst [vmem:[#allocation4 + $0x2d0] sm:$0xf] %v7777_v63  ;;  %v7714_v1 = vld [vmem:[#allocation2 + $0x88] sm:$0xf]  ;;  %v17600_v63 = vcombine.high %v15828_v59, %v15830_v38 }
 0x458   :  { %v7715_v2 = vld [vmem:[#allocation2 + $0x8c] sm:$0xf]  ;;  %v7778_v46 = vld [vmem:[#allocation2 + $0x90] sm:$0xf]  ;;  %7746 = vst [vmem:[#allocation4 + $0x2e8] sm:$0xf] %v7714_v1 }
 0x459   :  { %v15343_v28 = vld [vmem:[#allocation10 + $0x60] sm:$0xff]   ;;  %7747 = vst [vmem:[#allocation4 + $0x304] sm:$0xf] %v7715_v2  ;;  %7810 = vst [vmem:[#allocation4 + $0x2ec] sm:$0xf] %v7778_v46  ;;  %v15395_v49 = vld [vmem:[#allocation10 + $0xd0] sm:$0xff]  }
 0x45a   :  { %14165 = vmatpush3.bf16.msra.mxu1 %v15332_v22  ;;  %v15331_v47 = vld [vmem:[#allocation4 + $0xf8] ss:$28 sps:$4 sm:$0xff]   ;;  %v7779_v13 = vld [vmem:[#allocation2 + $0x94] sm:$0xf]  ;;  %v7716_v35 = vld [vmem:[#allocation2 + $0x90] sm:$0xf]  ;;  %14284 = vmatprep.subr.bf16.mxu0 %v15395_v49 }
 0x45b   :  { %9411 = vmatmul.mubr.bf16.gmra.mxu0 %v15319_v14  ;;  %14166 = vmatprep.subr.bf16.mxu1 %v15334_v37  ;;  %7811 = vst [vmem:[#allocation4 + $0x308] sm:$0xf] %v7779_v13  ;;  %v15396_v44 = vld [vmem:[#allocation10 + $0x90] sm:$0xff]   ;;  %v15348_v33 = vld [vmem:[#allocation10 + $0x20] sm:$0xff]   ;;  %v15350_v6 = vld [vmem:[#allocation10 + $0x58] sm:$0xff]  }
 0x45c   :  { %9418 = vmatprep.mubr.bf16.mxu0 %v15330_v10  ;;  %v7717_v55 = vld [vmem:[#allocation2 + $0x94] sm:$0xf]  ;;  %7748 = vst [vmem:[#allocation4 + $0x320] sm:$0xf] %v7716_v35  ;;  %14285 = vmatpush3.bf16.msra.mxu0 %v15396_v44  ;;  %v15402_v50 = vld [vmem:[#allocation10 + $0xc8] sm:$0xff]   ;;  %v15355_v39 = vld [vmem:[#allocation10 + $0x18] sm:$0xff]   ;;  %v17601_v35 = vcombine.low %v15828_v59, %v15830_v38  ;;  %v13823_v59 = vadd.f32 %v16507_v30, %v16505_v19 }
 0x45d   :  { %14639 = vmatmul.mubr.bf16.gmra.mxu1 %v15326_v57  ;;  %7749 = vst [vmem:[#allocation4 + $0x33c] sm:$0xf] %v7717_v55  ;;  %v15403_v24 = vld [vmem:[#allocation10 + $0x88] sm:$0xff]   ;;  %14286 = vmatprep.subr.bf16.mxu0 %v15402_v50  ;;  %v15359_v4 = vld [vmem:[#allocation10 + $0x50] sm:$0xff]   ;;  %v15407_v12 = vld [vmem:[#allocation10 + $0xc0] sm:$0xff]   ;;  %v16522_v57 = vpop.f32.mrf.mxu0  ;;  %v17602_v50 = vcombine.high %v15850_v56, %v15843_v7 }
 0x45e   :  { %14642 = vmatprep.mubr.bf16.mxu1 %v15331_v47  ;;  %14167 = vmatpush3.bf16.msra.mxu1 %v15339_v62  ;;  %v15328_v51 = vld [vmem:[#allocation4 + $0xf0] ss:$28 sps:$4 sm:$0xff]   ;;  %v15338_v40 = vld [vmem:[#allocation4 + $0x168] ss:$28 sps:$4 sm:$0xff]   ;;  %v16519_v54 = vld [vmem:[#allocation10 + $0x1b8] sm:$0xff]  }
 0x45f   :  { %14168 = vmatprep.subr.bf16.mxu1 %v15343_v28  ;;  %v15337_v27 = vld [vmem:[#allocation4 + $0x12c] ss:$28 sps:$4 sm:$0xff]   ;;  %v15408_v9 = vld [vmem:[#allocation10 + $0x80] sm:$0xff]   ;;  %v15364_v31 = vld [vmem:[#allocation10 + $0x10] sm:$0xff]   ;;  %v16524_v3 = vpop.f32.mrf.mxu0 }
 0x460   :  { %v15333_v18 = vld [vmem:[#allocation4 + $0x130] ss:$28 sps:$4 sm:$0xff]   ;;  %14287 = vmatpush3.bf16.msra.mxu0 %v15403_v24  ;;  %v15335_v53 = vld [vmem:[#allocation4 + $0x128] ss:$28 sps:$4 sm:$0xff]   ;;  %v15342_v45 = vld [vmem:[#allocation4 + $0x1a0] ss:$28 sps:$4 sm:$0xff]  }
 0x461   :  { %14288 = vmatprep.subr.bf16.mxu0 %v15407_v12  ;;  %v15366_v8 = vld [vmem:[#allocation10 + $0x48] sm:$0xff]   ;;  %v15346_v23 = vld [vmem:[#allocation4 + $0x164] ss:$28 sps:$4 sm:$0xff]   ;;  %v15347_v36 = vld [vmem:[#allocation4 + $0x1d8] ss:$28 sps:$4 sm:$0xff]  }
 0x462   :  { %14169 = vmatpush3.bf16.msra.mxu1 %v15348_v33  ;;  %v15370_v42 = vld [vmem:[#allocation10 + $0x8] sm:$0xff]   ;;  %v15375_v15 = vld [vmem:[#allocation10 + $0x40] sm:$0xff]   ;;  %v15380_v41 = vld [vmem:[#allocation10 + $0x178] sm:$0xff]  }
 0x463   :  { %9419 = vmatmul.mubr.bf16.gmra.mxu0 %v15328_v51  ;;  %14170 = vmatprep.subr.bf16.mxu1 %v15350_v6  ;;  %v15379_v21 = vld [vmem:[#allocation10] sm:$0xff]   ;;  %v15353_v26 = vld [vmem:[#allocation4 + $0x19c] ss:$28 sps:$4 sm:$0xff]   ;;  %v15349_v58 = vld [vmem:[#allocation4 + $0x210] ss:$28 sps:$4 sm:$0xff]  }
 0x464   :  { %9426 = vmatprep.mubr.bf16.mxu0 %v15337_v27  ;;  %14289 = vmatpush3.bf16.msra.mxu0 %v15408_v9  ;;  %v15344_v25 = vld [vmem:[#allocation4 + $0x160] ss:$28 sps:$4 sm:$0xff]   ;;  %v15354_v61 = vld [vmem:[#allocation4 + $0x248] ss:$28 sps:$4 sm:$0xff]   ;;  %v15351_v52 = vld [vmem:[#allocation4 + $0x198] ss:$28 sps:$4 sm:$0xff]  }
 0x465   :  { %14643 = vmatmul.mubr.bf16.gmra.mxu1 %v15333_v18  ;;  %14666 = vmatprep.subr.bf16.mxu0 %v16519_v54  ;;  %v15362_v22 = vld [vmem:[#allocation4 + $0x1d4] ss:$28 sps:$4 sm:$0xff]   ;;  %v15358_v14 = vld [vmem:[#allocation4 + $0x280] ss:$28 sps:$4 sm:$0xff]   ;;  %v15369_v10 = vld [vmem:[#allocation4 + $0x20c] ss:$28 sps:$4 sm:$0xff]  }
 0x466   :  { %14646 = vmatprep.mubr.bf16.mxu1 %v15338_v40  ;;  %14171 = vmatpush3.bf16.msra.mxu1 %v15355_v39  ;;  %v15363_v37 = vld [vmem:[#allocation4 + $0x2b8] ss:$28 sps:$4 sm:$0xff]   ;;  %v15360_v34 = vld [vmem:[#allocation4 + $0x1d0] ss:$28 sps:$4 sm:$0xff]   ;;  %v15373_v32 = vld [vmem:[#allocation4 + $0x328] ss:$28 sps:$4 sm:$0xff]  }
 0x467   :  { %14172 = vmatprep.subr.bf16.mxu1 %v15359_v4  ;;  %v15365_v11 = vld [vmem:[#allocation4 + $0x2f0] ss:$28 sps:$4 sm:$0xff]   ;;  %v15367_v60 = vld [vmem:[#allocation4 + $0x208] ss:$28 sps:$4 sm:$0xff]   ;;  %v15374_v20 = vld [vmem:[#allocation4 + $0x360] ss:$28 sps:$4 sm:$0xff]  }
 0x468   :  { %v15378_v62 = vld [vmem:[#allocation4 + $0x244] ss:$28 sps:$4 sm:$0xff]   ;;  %v15383_v28 = vld [vmem:[#allocation4 + $0x27c] ss:$28 sps:$4 sm:$0xff]   ;;  %v15390_v49 = vld [vmem:[#allocation10 + $0x170] sm:$0xff]  }
 0x469   :  { %v15376_v1 = vld [vmem:[#allocation4 + $0x240] ss:$28 sps:$4 sm:$0xff]   ;;  %v15394_v51 = vld [vmem:[#allocation10 + $0x130] sm:$0xff]   ;;  %v15400_v18 = vld [vmem:[#allocation10 + $0x168] sm:$0xff]  }
 0x46a   :  { %14173 = vmatpush3.bf16.msra.mxu1 %v15364_v31  ;;  %v15384_v47 = vld [vmem:[#allocation10 + $0x138] sm:$0xff]   ;;  %v15389_v9 = vld [vmem:[#allocation4 + $0x2b4] ss:$28 sps:$4 sm:$0xff]   ;;  %v15401_v31 = vld [vmem:[#allocation10 + $0x128] sm:$0xff]  }
 0x46b   :  { %9427 = vmatmul.mubr.bf16.gmra.mxu0 %v15335_v53  ;;  %14174 = vmatprep.subr.bf16.mxu1 %v15366_v8  ;;  %v15381_v38 = vld [vmem:[#allocation4 + $0x278] ss:$28 sps:$4 sm:$0xff]  }
 0x46c   :  { %9434 = vmatprep.mubr.bf16.mxu0 %v15346_v23  ;;  %v12353_v23 = vcombine.high %v15872_v43, %v15865_v16 }
 0x46d   :  { %14647 = vmatmul.mubr.bf16.gmra.mxu1 %v15342_v45  ;;  %v17603_v45 = vcombine.low %v15850_v56, %v15843_v7  ;;  %v15393_v7 = vld [vmem:[#allocation4 + $0x2ec] ss:$28 sps:$4 sm:$0xff]   ;;  %v15412_v56 = vld [vmem:[#allocation10 + $0x118] sm:$0xff]  }
 0x46e   :  { %14650 = vmatprep.mubr.bf16.mxu1 %v15347_v36  ;;  %14175 = vmatpush3.bf16.msra.mxu1 %v15370_v42 }
 0x46f   :  { %14176 = vmatprep.subr.bf16.mxu1 %v15375_v15  ;;  %v15410_v15 = vld [vmem:[#allocation10 + $0x120] sm:$0xff]  }
 0x472   :  { %14177 = vmatpush3.bf16.msra.mxu1 %v15379_v21 }
 0x473   :  { %9435 = vmatmul.mubr.bf16.gmra.mxu0 %v15344_v25  ;;  %14386 = vmatprep.subr.bf16.mxu1 %v15380_v41  ;;  %v15411_v41 = vld [vmem:[#allocation10 + $0x158] sm:$0xff]  }
 0x474   :  { %9442 = vmatprep.mubr.bf16.mxu0 %v15353_v26  ;;  %v15387_v26 = vld [vmem:[#allocation4 + $0x2b0] ss:$28 sps:$4 sm:$0xff]  }
 0x475   :  { %14651 = vmatmul.mubr.bf16.gmra.mxu1 %v15349_v58 }
 0x476   :  { %14654 = vmatprep.mubr.bf16.mxu1 %v15354_v61 }
 0x47b   :  { %9443 = vmatmul.mubr.bf16.gmra.mxu0 %v15351_v52 }
 0x47c   :  { %9450 = vmatprep.mubr.bf16.mxu0 %v15362_v22 }
 0x47d   :  { %14655 = vmatmul.mubr.bf16.gmra.mxu1 %v15358_v14 }
 0x47e   :  { %14658 = vmatprep.mubr.bf16.mxu1 %v15363_v37  ;;  %v13830_v2 = vpop.f32.mrf.mxu0 }
 0x47f   :  { %v13930_v46 = vpop.f32.mrf.mxu1 }
 0x480   :  { %v13831_v13 = vpop.f32.mrf.mxu0 }
 0x481   :  { %v16529_v44 = vadd.f32 %v13831_v13, %v13830_v2  ;;  %v13931_v33 = vpop.f32.mrf.mxu1  ;;  %v15417_v2 = vld [vmem:[#allocation10 + $0x148] sm:$0xff]  }
 0x482   :  { %v13932_v55 = vadd.f32 %v13931_v33, %v13930_v46  ;;  %v13833_v6 = vpop.f32.mrf.mxu0  ;;  %v15418_v33 = vld [vmem:[#allocation10 + $0x108] sm:$0xff]  }
 0x483   :  { %9451 = vmatmul.mubr.bf16.gmra.mxu0 %v15360_v34  ;;  %v13933_v24 = vpop.f32.mrf.mxu1  ;;  %v12352_v34 = vcombine.low %v15872_v43, %v15865_v16  ;;  %v15415_v16 = vld [vmem:[#allocation10 + $0x110] sm:$0xff]  }
 0x484   :  { %9458 = vmatprep.mubr.bf16.mxu0 %v15369_v10  ;;  %v16538_v27 = vadd.f32 %v13932_v55, %v16501_v5  ;;  %v13834_v39 = vpop.f32.mrf.mxu0  ;;  %v15409_v5 = vld [vmem:[#allocation10 + $0x160] sm:$0xff]   ;;  %v13829_v10 = vadd.f32 %v16524_v3, %v16522_v57 }
 0x485   :  { %14659 = vmatmul.mubr.bf16.gmra.mxu1 %v15365_v11  ;;  %v16540_v4 = vadd.f32 %v13834_v39, %v13833_v6  ;;  %v13934_v12 = vpop.f32.mrf.mxu1  ;;  %v15414_v11 = vld [vmem:[#allocation10 + $0x150] sm:$0xff]   ;;  %v15391_v3 = vld [vmem:[#allocation4 + $0x2e8] ss:$28 sps:$4 sm:$0xff]   ;;  %v12359_v6 = vcombine.low %v15929_v0, %v15931_v48 }
 0x486   :  { %14662 = vmatprep.mubr.bf16.mxu1 %v15373_v32  ;;  %v13935_v40 = vadd.f32 %v13934_v12, %v13933_v24  ;;  %v13836_v53 = vpop.f32.mrf.mxu0 }
 0x488   :  { %v16544_v8 = vadd.f32 %v13935_v40, %v13823_v59  ;;  %v13837_v19 = vpop.f32.mrf.mxu0 }
 0x489   :  { %v16551_v30 = vadd.f32 %v13837_v19, %v13836_v53 }
 0x48a   :  { %v13839_v21 = vpop.f32.mrf.mxu0 }
 0x48b   :  { %9459 = vmatmul.mubr.bf16.gmra.mxu0 %v15367_v60  ;;  %v13936_v42 = vpop.f32.mrf.mxu1 }
 0x48c   :  { %9466 = vmatprep.mubr.bf16.mxu0 %v15378_v62  ;;  %v13840_v61 = vpop.f32.mrf.mxu0 }
 0x48d   :  { %14663 = vmatmul.mubr.bf16.gmra.mxu1 %v15374_v20  ;;  %v13937_v36 = vpop.f32.mrf.mxu1  ;;  %v16556_v22 = vadd.f32 %v13840_v61, %v13839_v21  ;;  %v17606_v21 = vld [vmem:[#allocation53_spill] sm:$0xff] }
 0x48e   :  { %10620 = vmatprep.mubr.bf16.mxu1 %v17600_v63  ;;  %v13938_v25 = vadd.f32 %v13937_v36, %v13936_v42  ;;  %v17605_v36 = vld [vmem:[#allocation54_spill] sm:$0xff] }
 0x48f   :  { %v13939_v58 = vpop.f32.mrf.mxu1 }
 0x490   :  { %v16554_v52 = vadd.f32 %v13938_v25, %v16511_v17  ;;  %v13842_v37 = vpop.f32.mrf.mxu0  ;;  %v12360_v17 = vcombine.high %v15929_v0, %v15931_v48  ;;  %v15406_v48 = vld [vmem:[#allocation4 + $0x35c] ss:$28 sps:$4 sm:$0xff]  }
 0x491   :  { %v13940_v14 = vpop.f32.mrf.mxu1 }
 0x492   :  { %v13941_v32 = vadd.f32 %v13940_v14, %v13939_v58  ;;  %v13843_v20 = vpop.f32.mrf.mxu0 }
 0x493   :  { %9467 = vmatmul.mubr.bf16.gmra.mxu0 %v15376_v1  ;;  %v13942_v60 = vpop.f32.mrf.mxu1  ;;  %v16566_v63 = vadd.f32 %v13843_v20, %v13842_v37 }
 0x494   :  { %9474 = vmatprep.mubr.bf16.mxu0 %v15383_v28  ;;  %v16564_v62 = vadd.f32 %v13941_v32, %v13829_v10  ;;  %v13845_v1 = vpop.f32.mrf.mxu0  ;;  %v17607_v10 = vld [vmem:[#allocation44_spill] sm:$0xff]  ;;  %v17608_v32 = vld [vmem:[#allocation42_spill] sm:$0xff] }
 0x495   :  { %10621 = vmatmul.mubr.bf16.vlgmr.msra.gmra.mxu1 %v17601_v35  ;;  %v13943_v43 = vpop.f32.mrf.mxu1 }
 0x496   :  { %10628 = vmatprep.mubr.bf16.mxu1 %v17602_v50  ;;  %14387 = vmatpush3.bf16.msra.mxu1 %v15384_v47  ;;  %v13944_v57 = vadd.f32 %v13943_v43, %v13942_v60  ;;  %v13846_v28 = vpop.f32.mrf.mxu0  ;;  %v15420_v50 = vld [vmem:[#allocation10 + $0x140] sm:$0xff]  }
 0x497   :  { %14388 = vmatprep.subr.bf16.mxu1 %v15390_v49  ;;  %v13945_v46 = vpop.f32.mrf.mxu1  ;;  %v16571_v13 = vadd.f32 %v13846_v28, %v13845_v1  ;;  %v15399_v49 = vld [vmem:[#allocation4 + $0x324] ss:$28 sps:$4 sm:$0xff]   ;;  %v17610_v1 = vld [vmem:[#allocation56_spill] sm:$0xff] }
 0x498   :  { %v16569_v47 = vadd.f32 %v13944_v57, %v16529_v44  ;;  %v17609_v43 = vld [vmem:[#allocation19_spill] sm:$0xff] }
 0x499   :  { %v13946_v35 = vpop.f32.mrf.mxu1 }
 0x49a   :  { %14389 = vmatpush3.bf16.msra.mxu1 %v15394_v51  ;;  %v13947_v24 = vadd.f32 %v13946_v35, %v13945_v46  ;;  %v17604_v51 = vld [vmem:[#allocation50_spill] sm:$0xff] }
 0x49b   :  { %9475 = vmatmul.mubr.bf16.gmra.mxu0 %v15381_v38  ;;  %14390 = vmatprep.subr.bf16.mxu1 %v15400_v18  ;;  %v12367_v39 = vcombine.high %v17604_v51, %v15975_v29  ;;  %v15421_v38 = vld [vmem:[#allocation10 + $0x100] sm:$0xff]   ;;  %v12366_v19 = vcombine.low %v17604_v51, %v15975_v29 }
 0x49c   :  { %9482 = vmatprep.mubr.bf16.mxu0 %v15389_v9  ;;  %v16578_v12 = vadd.f32 %v13947_v24, %v16540_v4 }
 0x49d   :  { %10629 = vmatmul.mubr.bf16.gmra.mxu1 %v17603_v45 }
 0x49e   :  { %10636 = vmatprep.mubr.bf16.mxu1 %v12353_v23  ;;  %14391 = vmatpush3.bf16.msra.mxu1 %v15401_v31  ;;  %v15397_v31 = vld [vmem:[#allocation4 + $0x320] ss:$28 sps:$4 sm:$0xff]  }
 0x49f   :  { %14392 = vmatprep.subr.bf16.mxu1 %v15409_v5  ;;  %v13848_v55 = vpop.f32.mrf.mxu0 }
 0x4a0   :  { %v13948_v44 = vpop.f32.mrf.mxu1 }
 0x4a1   :  { %v13849_v18 = vpop.f32.mrf.mxu0 }
 0x4a2   :  { %14393 = vmatpush3.bf16.msra.mxu1 %v15410_v15  ;;  %v13850_v59 = vadd.f32 %v13849_v18, %v13848_v55  ;;  %v13949_v40 = vpop.f32.mrf.mxu1 }
 0x4a3   :  { %9483 = vmatmul.mubr.bf16.gmra.mxu0 %v15387_v26  ;;  %14394 = vmatprep.subr.bf16.mxu1 %v15411_v41  ;;  %v13851_v9 = vpop.f32.mrf.mxu0  ;;  %v13950_v0 = vadd.f32 %v13949_v40, %v13948_v44  ;;  %v12374_v41 = vcombine.high %v17606_v21, %v17605_v36  ;;  %v17612_v44 = vld [vmem:[#allocation43_spill] sm:$0xff]  ;;  %v12380_v40 = vcombine.low %v17610_v1, %v17609_v43 }
 0x4a4   :  { %9490 = vmatprep.mubr.bf16.mxu0 %v15393_v7  ;;  %v13951_v53 = vpop.f32.mrf.mxu1 }
 0x4a5   :  { %10637 = vmatmul.mubr.bf16.gmra.mxu1 %v12352_v34  ;;  %v13852_v5 = vpop.f32.mrf.mxu0  ;;  %v16581_v23 = vadd.f32 %v13950_v0, %v16551_v30  ;;  %v17613_v0 = vld [vmem:[#allocation21_spill] sm:$0xff] }
 0x4a6   :  { %10644 = vmatprep.mubr.bf16.mxu1 %v12360_v17  ;;  %14395 = vmatpush3.bf16.msra.mxu1 %v15412_v56  ;;  %v13853_v42 = vadd.f32 %v13852_v5, %v13851_v9  ;;  %v13952_v45 = vpop.f32.mrf.mxu1  ;;  %v15404_v56 = vld [vmem:[#allocation4 + $0x358] ss:$28 sps:$4 sm:$0xff]   ;;  %v12341_v17 = vcombine.high %v17608_v32, %v17607_v10  ;;  %v15419_v5 = vld [vmem:[#allocation10 + $0x1a8] sm:$0xff]  }
 0x4a7   :  { %14396 = vmatprep.subr.bf16.mxu1 %v15414_v11  ;;  %v13854_v4 = vpop.f32.mrf.mxu0  ;;  %v13953_v15 = vadd.f32 %v13952_v45, %v13951_v53 }
 0x4a8   :  { %v13954_v25 = vpop.f32.mrf.mxu1 }
 0x4a9   :  { %v13855_v26 = vpop.f32.mrf.mxu0  ;;  %v16588_v58 = vadd.f32 %v13953_v15, %v16556_v22  ;;  %v12373_v22 = vcombine.low %v17606_v21, %v17605_v36 }
 0x4aa   :  { %14397 = vmatpush3.bf16.msra.mxu1 %v15415_v16  ;;  %v13856_v30 = vadd.f32 %v13855_v26, %v13854_v4  ;;  %v13955_v61 = vpop.f32.mrf.mxu1 }
 0x4ab   :  { %9491 = vmatmul.mubr.bf16.gmra.mxu0 %v15391_v3  ;;  %14398 = vmatprep.subr.bf16.mxu1 %v15417_v2  ;;  %v13857_v7 = vpop.f32.mrf.mxu0  ;;  %v13956_v14 = vadd.f32 %v13955_v61, %v13954_v25  ;;  %v12381_v2 = vcombine.high %v17610_v1, %v17609_v43 }
 0x4ac   :  { %9498 = vmatprep.mubr.bf16.mxu0 %v15399_v49  ;;  %v13957_v37 = vpop.f32.mrf.mxu1 }
 0x4ad   :  { %10645 = vmatmul.mubr.bf16.gmra.mxu1 %v12359_v6  ;;  %v13858_v34 = vpop.f32.mrf.mxu0  ;;  %v16591_v29 = vadd.f32 %v13956_v14, %v16566_v63  ;;  %v12340_v6 = vcombine.low %v17608_v32, %v17607_v10  ;;  %v17617_v32 = vld [vmem:[#allocation23_spill] sm:$0xff] }
 0x4ae   :  { %10652 = vmatprep.mubr.bf16.mxu1 %v12367_v39  ;;  %14399 = vmatpush3.bf16.msra.mxu1 %v15418_v33  ;;  %v16593_v11 = vadd.f32 %v13858_v34, %v13857_v7  ;;  %v13958_v60 = vpop.f32.mrf.mxu1  ;;  %v17611_v39 = vld [vmem:[#allocation45_spill] sm:$0xff]  ;;  %v17616_v7 = vld [vmem:[#allocation46_spill] sm:$0xff] }
 0x4af   :  { %14400 = vmatprep.subr.bf16.mxu1 %v15420_v50  ;;  %v13959_v16 = vadd.f32 %v13958_v60, %v13957_v37  ;;  %v15416_v50 = vld [vmem:[#allocation10 + $0x1b0] sm:$0xff]   ;;  %v12347_v25 = vcombine.low %v17612_v44, %v17611_v39 }
 0x4b1   :  { %v13860_v20 = vpop.f32.mrf.mxu0  ;;  %v16602_v3 = vadd.f32 %v13959_v16, %v16571_v13  ;;  %v12348_v13 = vcombine.high %v17612_v44, %v17611_v39 }
 0x4b2   :  { %14401 = vmatpush3.bf16.msra.mxu1 %v15421_v38  ;;  %v13960_v57 = vpop.f32.mrf.mxu1 }
 0x4b3   :  { %9499 = vmatmul.mubr.bf16.gmra.mxu0 %v15397_v31  ;;  %v13861_v63 = vpop.f32.mrf.mxu0 }
 0x4b4   :  { %9506 = vmatprep.mubr.bf16.mxu0 %v15406_v48  ;;  %v16604_v46 = vadd.f32 %v13861_v63, %v13860_v20  ;;  %v13961_v28 = vpop.f32.mrf.mxu1  ;;  %v17614_v48 = vld [vmem:[#allocation35_spill] sm:$0xff] }
 0x4b5   :  { %10653 = vmatmul.mubr.bf16.gmra.mxu1 %v12366_v19  ;;  %v13863_v49 = vpop.f32.mrf.mxu0  ;;  %v13962_v33 = vadd.f32 %v13961_v28, %v13960_v57  ;;  %v12388_v31 = vcombine.high %v17614_v48, %v17613_v0  ;;  %v12387_v34 = vcombine.low %v17614_v48, %v17613_v0  ;;  %v15425_v48 = vld [vmem:[#allocation10 + $0x188] sm:$0xff]  }
 0x4b6   :  { %10660 = vmatprep.mubr.bf16.mxu1 %v12374_v41  ;;  %v13963_v35 = vpop.f32.mrf.mxu1 }
 0x4b7   :  { %v13864_v55 = vpop.f32.mrf.mxu0  ;;  %v16608_v24 = vadd.f32 %v13962_v33, %v13850_v59  ;;  %v15424_v33 = vld [vmem:[#allocation10 + $0x190] sm:$0xff]  }
 0x4b8   :  { %v16610_v51 = vadd.f32 %v13864_v55, %v13863_v49  ;;  %v13964_v18 = vpop.f32.mrf.mxu1 }
 0x4b9   :  { %v13866_v38 = vpop.f32.mrf.mxu0  ;;  %v13965_v9 = vadd.f32 %v13964_v18, %v13963_v35 }
 0x4ba   :  { %v13966_v59 = vpop.f32.mrf.mxu1 }
 0x4bb   :  { %9507 = vmatmul.mubr.bf16.gmra.mxu0 %v15404_v56  ;;  %v13867_v53 = vpop.f32.mrf.mxu0  ;;  %v16619_v45 = vadd.f32 %v13965_v9, %v13853_v42  ;;  %v17615_v42 = vld [vmem:[#allocation47_spill] sm:$0xff] }
 0x4bc   :  { %10781 = vmatprep.mubr.bf16.mxu0 %v12341_v17  ;;  %v16621_v4 = vadd.f32 %v13867_v53, %v13866_v38  ;;  %v13967_v19 = vpop.f32.mrf.mxu1  ;;  %v12355_v56 = vcombine.high %v17616_v7, %v17615_v42  ;;  %v17618_v17 = vld [vmem:[#allocation37_spill] sm:$0xff]  ;;  %v12354_v49 = vcombine.low %v17616_v7, %v17615_v42  ;;  %v17621_v38 = vld [vmem:[#allocation39_spill] sm:$0xff]  ;;  %v17623_v42 = vld [vmem:[#allocation52_spill] sm:$0xff] }
 0x4bd   :  { %10661 = vmatmul.mubr.bf16.gmra.mxu1 %v12373_v22  ;;  %v13869_v15 = vpop.f32.mrf.mxu0  ;;  %v13968_v36 = vadd.f32 %v13967_v19, %v13966_v59  ;;  %v12395_v60 = vcombine.high %v17618_v17, %v17617_v32  ;;  %v15423_v22 = vld [vmem:[#allocation10 + $0x198] sm:$0xff]  }
 0x4be   :  { %10668 = vmatprep.mubr.bf16.mxu1 %v12381_v2  ;;  %v13969_v21 = vpop.f32.mrf.mxu1 }
 0x4bf   :  { %v13870_v41 = vpop.f32.mrf.mxu0  ;;  %v16625_v26 = vadd.f32 %v13968_v36, %v13856_v30 }
 0x4c0   :  { %v16627_v61 = vadd.f32 %v13870_v41, %v13869_v15  ;;  %v13970_v14 = vpop.f32.mrf.mxu1  ;;  %v15426_v41 = vld [vmem:[#allocation10 + $0x180] sm:$0xff]  }
 0x4c1   :  { %v13971_v10 = vadd.f32 %v13970_v14, %v13969_v21 }
 0x4c3   :  { %10782 = vmatmul.mubr.bf16.vlgmr.msra.gmra.mxu0 %v12340_v6  ;;  %v16636_v16 = vadd.f32 %v13971_v10, %v16593_v11  ;;  %v17619_v11 = vld [vmem:[#allocation49_spill] sm:$0xff]  ;;  %v17620_v6 = vld [vmem:[#allocation48_spill] sm:$0xff] }
 0x4c4   :  { %10789 = vmatprep.mubr.bf16.mxu0 %v12348_v13  ;;  %14667 = vmatpush3.bf16.msra.mxu0 %v16519_v54  ;;  %v15422_v54 = vld [vmem:[#allocation10 + $0x1a0] sm:$0xff]   ;;  %v13872_v37 = vpop.f32.mrf.mxu0  ;;  %v12394_v13 = vcombine.low %v17618_v17, %v17617_v32  ;;  %v12361_v21 = vcombine.low %v17620_v6, %v17619_v11  ;;  %v17625_v10 = vld [vmem:[#allocation28_spill] sm:$0xff] }
 0x4c5   :  { %10669 = vmatmul.mubr.bf16.gmra.mxu1 %v12380_v40  ;;  %14668 = vmatprep.subr.bf16.mxu0 %v15416_v50  ;;  %v13972_v20 = vpop.f32.mrf.mxu1  ;;  %v17622_v40 = vld [vmem:[#allocation25_spill] sm:$0xff]  ;;  %v17626_v32 = vld [vmem:[#allocation27_spill] sm:$0xff] }
 0x4c6   :  { %10676 = vmatprep.mubr.bf16.mxu1 %v12388_v31  ;;  %v13873_v30 = vpop.f32.mrf.mxu0  ;;  %v12402_v9 = vcombine.high %v17622_v40, %v17621_v38  ;;  %v12409_v17 = vcombine.high %v17626_v32, %v17625_v10 }
 0x4c7   :  { %v16638_v43 = vadd.f32 %v13873_v30, %v13872_v37  ;;  %v13973_v1 = vpop.f32.mrf.mxu1  ;;  %v12401_v37 = vcombine.low %v17622_v40, %v17621_v38  ;;  %v17630_v38 = vld [vmem:[#allocation30_spill] sm:$0xff] }
 0x4c8   :  { %14669 = vmatpush3.bf16.msra.mxu0 %v15416_v50  ;;  %v13875_v2 = vpop.f32.mrf.mxu0  ;;  %v13974_v57 = vadd.f32 %v13973_v1, %v13972_v20  ;;  %v12362_v50 = vcombine.high %v17620_v6, %v17619_v11  ;;  %v17627_v11 = vld [vmem:[#allocation33_spill] sm:$0xff]  ;;  %v17628_v6 = vld [vmem:[#allocation55_spill] sm:$0xff] }
 0x4c9   :  { %14670 = vmatprep.subr.bf16.mxu0 %v15419_v5  ;;  %v13975_v63 = vpop.f32.mrf.mxu1 }
 0x4ca   :  { %v13876_v28 = vpop.f32.mrf.mxu0  ;;  %v16643_v35 = vadd.f32 %v13974_v57, %v16604_v46 }
 0x4cb   :  { %10790 = vmatmul.mubr.bf16.gmra.mxu0 %v12347_v25  ;;  %v16645_v55 = vadd.f32 %v13876_v28, %v13875_v2  ;;  %v13976_v39 = vpop.f32.mrf.mxu1 }
 0x4cc   :  { %10797 = vmatprep.mubr.bf16.mxu0 %v12355_v56  ;;  %14671 = vmatpush3.bf16.msra.mxu0 %v15419_v5  ;;  %v13878_v44 = vpop.f32.mrf.mxu0  ;;  %v13977_v18 = vadd.f32 %v13976_v39, %v13975_v63 }
 0x4cd   :  { %10677 = vmatmul.mubr.bf16.gmra.mxu1 %v12387_v34  ;;  %14672 = vmatprep.subr.bf16.mxu0 %v15422_v54  ;;  %v13978_v0 = vpop.f32.mrf.mxu1 }
 0x4ce   :  { %10684 = vmatprep.mubr.bf16.mxu1 %v12395_v60  ;;  %v13879_v46 = vpop.f32.mrf.mxu0  ;;  %v16654_v31 = vadd.f32 %v13977_v18, %v16610_v51  ;;  %v17624_v51 = vld [vmem:[#allocation51_spill] sm:$0xff] }
 0x4cf   :  { %v13880_v59 = vadd.f32 %v13879_v46, %v13878_v44  ;;  %v13979_v53 = vpop.f32.mrf.mxu1  ;;  %v12369_v7 = vcombine.high %v17624_v51, %v17623_v42  ;;  %v12368_v28 = vcombine.low %v17624_v51, %v17623_v42  ;;  %v12408_v44 = vcombine.low %v17626_v32, %v17625_v10  ;;  %v17629_v18 = vld [vmem:[#allocation31_spill] sm:$0xff]  ;;  %v17631_v42 = vld [vmem:[#allocation20_spill] sm:$0xff]  ;;  %v17632_v51 = vld [vmem:[#allocation34_spill] sm:$0xff] }
 0x4d0   :  { %14673 = vmatpush3.bf16.msra.mxu0 %v15422_v54  ;;  %v13881_v5 = vpop.f32.mrf.mxu0  ;;  %v13980_v19 = vadd.f32 %v13979_v53, %v13978_v0  ;;  %v12416_v40 = vcombine.high %v17630_v38, %v17629_v18  ;;  %v17634_v10 = vld [vmem:[#allocation59_spill] sm:$0xff] }
 0x4d1   :  { %14674 = vmatprep.subr.bf16.mxu0 %v15423_v22  ;;  %v13981_v15 = vpop.f32.mrf.mxu1 }
 0x4d2   :  { %v13882_v36 = vpop.f32.mrf.mxu0  ;;  %v16659_v25 = vadd.f32 %v13980_v19, %v16621_v4 }
 0x4d3   :  { %10798 = vmatmul.mubr.bf16.gmra.mxu0 %v12354_v49  ;;  %v13883_v54 = vadd.f32 %v13882_v36, %v13881_v5  ;;  %v13982_v56 = vpop.f32.mrf.mxu1  ;;  %v12375_v36 = vcombine.low %v17628_v6, %v17627_v11 }
 0x4d4   :  { %10805 = vmatprep.mubr.bf16.mxu0 %v12362_v50  ;;  %14675 = vmatpush3.bf16.msra.mxu0 %v15423_v22  ;;  %v13983_v34 = vadd.f32 %v13982_v56, %v13981_v15  ;;  %v12376_v50 = vcombine.high %v17628_v6, %v17627_v11 }
 0x4d5   :  { %10685 = vmatmul.mubr.bf16.gmra.mxu1 %v12394_v13  ;;  %14676 = vmatprep.subr.bf16.mxu0 %v15424_v33 }
 0x4d6   :  { %10692 = vmatprep.mubr.bf16.mxu1 %v12402_v9  ;;  %v16668_v20 = vadd.f32 %v13983_v34, %v16627_v61  ;;  %v17633_v34 = vld [vmem:[#allocation58_spill] sm:$0xff] }
 0x4d7   :  { %v13884_v14 = vpop.f32.mrf.mxu0  ;;  %v12423_v32 = vcombine.high %v17634_v10, %v17633_v34 }
 0x4d8   :  { %14677 = vmatpush3.bf16.msra.mxu0 %v15424_v33  ;;  %v13984_v60 = vpop.f32.mrf.mxu1 }
 0x4d9   :  { %14678 = vmatprep.subr.bf16.mxu0 %v15425_v48  ;;  %v13885_v4 = vpop.f32.mrf.mxu0 }
 0x4da   :  { %v13886_v30 = vadd.f32 %v13885_v4, %v13884_v14  ;;  %v13985_v22 = vpop.f32.mrf.mxu1 }
 0x4db   :  { %10806 = vmatmul.mubr.bf16.gmra.mxu0 %v12361_v21  ;;  %v13887_v1 = vpop.f32.mrf.mxu0  ;;  %v13986_v2 = vadd.f32 %v13985_v22, %v13984_v60 }
 0x4dc   :  { %10813 = vmatprep.mubr.bf16.mxu0 %v12369_v7  ;;  %14679 = vmatpush3.bf16.msra.mxu0 %v15425_v48  ;;  %v13987_v57 = vpop.f32.mrf.mxu1  ;;  %v12383_v7 = vcombine.high %v17632_v51, %v17631_v42 }
 0x4dd   :  { %10693 = vmatmul.mubr.bf16.gmra.mxu1 %v12401_v37  ;;  %14680 = vmatprep.subr.bf16.mxu0 %v15426_v41  ;;  %v13888_v63 = vpop.f32.mrf.mxu0  ;;  %v16673_v49 = vadd.f32 %v13986_v2, %v16638_v43 }
 0x4de   :  { %10700 = vmatprep.mubr.bf16.mxu1 %v12409_v17  ;;  %v13889_v33 = vadd.f32 %v13888_v63, %v13887_v1  ;;  %v13988_v61 = vpop.f32.mrf.mxu1 }
 0x4df   :  { %v13890_v39 = vpop.f32.mrf.mxu0  ;;  %v13989_v13 = vadd.f32 %v13988_v61, %v13987_v57  ;;  %v17636_v61 = vld [vmem:[#allocation36_spill] sm:$0xff] }
 0x4e0   :  { %14681 = vmatpush3.bf16.msra.mxu0 %v15426_v41  ;;  %v13990_v9 = vpop.f32.mrf.mxu1 }
 0x4e1   :  { %v13891_v0 = vpop.f32.mrf.mxu0  ;;  %v16682_v43 = vadd.f32 %v13989_v13, %v16645_v55  ;;  %v12415_v55 = vcombine.low %v17630_v38, %v17629_v18  ;;  %v17637_v38 = vld [vmem:[#allocation62_spill] sm:$0xff] }
 0x4e2   :  { %v13892_v46 = vadd.f32 %v13891_v0, %v13890_v39  ;;  %v13991_v48 = vpop.f32.mrf.mxu1 }
 0x4e3   :  { %10814 = vmatmul.mubr.bf16.gmra.mxu0 %v12368_v28  ;;  %v13893_v53 = vpop.f32.mrf.mxu0  ;;  %v13992_v5 = vadd.f32 %v13991_v48, %v13990_v9  ;;  %v12382_v28 = vcombine.low %v17632_v51, %v17631_v42 }
 0x4e4   :  { %10821 = vmatprep.mubr.bf16.mxu0 %v12376_v50  ;;  %v13993_v19 = vpop.f32.mrf.mxu1  ;;  %v17635_v50 = vld [vmem:[#allocation22_spill] sm:$0xff] }
 0x4e5   :  { %10701 = vmatmul.mubr.bf16.gmra.mxu1 %v12408_v44  ;;  %v13894_v15 = vpop.f32.mrf.mxu0  ;;  %v16686_v21 = vadd.f32 %v13992_v5, %v13880_v59  ;;  %v12390_v39 = vcombine.high %v17636_v61, %v17635_v50  ;;  %v12389_v51 = vcombine.low %v17636_v61, %v17635_v50 }
 0x4e6   :  { %10708 = vmatprep.mubr.bf16.mxu1 %v12416_v40  ;;  %v13895_v41 = vadd.f32 %v13894_v15, %v13893_v53  ;;  %v13994_v56 = vpop.f32.mrf.mxu1  ;;  %v17638_v40 = vld [vmem:[#allocation63_spill] sm:$0xff] }
 0x4e7   :  { %v13995_v37 = vadd.f32 %v13994_v56, %v13993_v19  ;;  %v12430_v9 = vcombine.high %v17638_v40, %v17637_v38 }
 0x4e9   :  { %v16694_v59 = vadd.f32 %v13995_v37, %v13883_v54  ;;  %v12422_v54 = vcombine.low %v17634_v10, %v17633_v34 }
 0x4ea   :  { %v13896_v14 = vpop.f32.mrf.mxu0 }
 0x4eb   :  { %10822 = vmatmul.mubr.bf16.gmra.mxu0 %v12375_v36  ;;  %v13996_v17 = vpop.f32.mrf.mxu1 }
 0x4ec   :  { %10829 = vmatprep.mubr.bf16.mxu0 %v12383_v7  ;;  %v13897_v60 = vpop.f32.mrf.mxu0 }
 0x4ed   :  { %10709 = vmatmul.mubr.bf16.gmra.mxu1 %v12415_v55  ;;  %v13898_v4 = vadd.f32 %v13897_v60, %v13896_v14  ;;  %v13997_v22 = vpop.f32.mrf.mxu1  ;;  %v17639_v14 = vld [vmem:[#allocation38_spill] sm:$0xff]  ;;  %v17640_v55 = vld [vmem:[#allocation24_spill] sm:$0xff] }
 0x4ee   :  { %10716 = vmatprep.mubr.bf16.mxu1 %v12423_v32  ;;  %v13899_v1 = vpop.f32.mrf.mxu0  ;;  %v13998_v2 = vadd.f32 %v13997_v22, %v13996_v17  ;;  %v12397_v37 = vcombine.high %v17640_v55, %v17639_v14  ;;  %v17641_v17 = vld [vmem:[#allocation67_spill] sm:$0xff]  ;;  %v17642_v60 = vld [vmem:[#allocation66_spill] sm:$0xff] }
 0x4ef   :  { %v13999_v57 = vpop.f32.mrf.mxu1  ;;  %v12437_v22 = vcombine.high %v17642_v60, %v17641_v17 }
 0x4f0   :  { %v13900_v63 = vpop.f32.mrf.mxu0  ;;  %v16698_v11 = vadd.f32 %v13998_v2, %v13886_v30 }
 0x4f1   :  { %v13901_v6 = vadd.f32 %v13900_v63, %v13899_v1  ;;  %v14000_v44 = vpop.f32.mrf.mxu1 }
 0x4f2   :  { %v13902_v13 = vpop.f32.mrf.mxu0  ;;  %v14001_v18 = vadd.f32 %v14000_v44, %v13999_v57  ;;  %v12396_v44 = vcombine.low %v17640_v55, %v17639_v14 }
 0x4f3   :  { %10830 = vmatmul.mubr.bf16.gmra.mxu0 %v12382_v28  ;;  %v14002_v0 = vpop.f32.mrf.mxu1 }
 0x4f4   :  { %10837 = vmatprep.mubr.bf16.mxu0 %v12390_v39  ;;  %v13903_v48 = vpop.f32.mrf.mxu0  ;;  %v16706_v30 = vadd.f32 %v14001_v18, %v13889_v33  ;;  %v12429_v33 = vcombine.low %v17638_v40, %v17637_v38  ;;  %v17643_v18 = vld [vmem:[#allocation40_spill] sm:$0xff]  ;;  %v17644_v38 = vld [vmem:[#allocation26_spill] sm:$0xff] }
 0x4f5   :  { %10717 = vmatmul.mubr.bf16.gmra.mxu1 %v12422_v54  ;;  %v13904_v53 = vadd.f32 %v13903_v48, %v13902_v13  ;;  %v14003_v5 = vpop.f32.mrf.mxu1  ;;  %v12404_v40 = vcombine.high %v17644_v38, %v17643_v18 }
 0x4f6   :  { %10724 = vmatprep.mubr.bf16.mxu1 %v12430_v9  ;;  %v13905_v19 = vpop.f32.mrf.mxu0  ;;  %v14004_v15 = vadd.f32 %v14003_v5, %v14002_v0  ;;  %v17645_v5 = vld [vmem:[#allocation70_spill] sm:$0xff] }
 0x4f7   :  { %v14005_v36 = vpop.f32.mrf.mxu1 }
 0x4f8   :  { %v13906_v42 = vpop.f32.mrf.mxu0  ;;  %v16710_v7 = vadd.f32 %v14004_v15, %v13892_v46 }
 0x4f9   :  { %v13907_v56 = vadd.f32 %v13906_v42, %v13905_v19  ;;  %v14006_v34 = vpop.f32.mrf.mxu1  ;;  %v17646_v19 = vld [vmem:[#allocation71_spill] sm:$0xff] }
 0x4fa   :  { %v14007_v32 = vadd.f32 %v14006_v34, %v14005_v36  ;;  %v12444_v15 = vcombine.high %v17646_v19, %v17645_v5 }
 0x4fb   :  { %v13908_v10 = vpop.f32.mrf.mxu0  ;;  %10838 = vmatmul.mubr.bf16.gmra.mxu0 %v12389_v51 }
 0x4fc   :  { %10845 = vmatprep.mubr.bf16.mxu0 %v12397_v37  ;;  %v14008_v1 = vpop.f32.mrf.mxu1  ;;  %v16718_v46 = vadd.f32 %v14007_v32, %v13895_v41  ;;  %v12436_v41 = vcombine.low %v17642_v60, %v17641_v17  ;;  %v12403_v32 = vcombine.low %v17644_v38, %v17643_v18 }
 0x4fd   :  { %10725 = vmatmul.mubr.bf16.gmra.mxu1 %v12429_v33  ;;  %v13909_v2 = vpop.f32.mrf.mxu0 }
 0x4fe   :  { %10732 = vmatprep.mubr.bf16.mxu1 %v12437_v22  ;;  %v13910_v57 = vadd.f32 %v13909_v2, %v13908_v10  ;;  %v14009_v63 = vpop.f32.mrf.mxu1  ;;  %v17647_v22 = vld [vmem:[#allocation29_spill] sm:$0xff] }
 0x4ff   :  { %v13911_v28 = vpop.f32.mrf.mxu0  ;;  %v14010_v50 = vadd.f32 %v14009_v63, %v14008_v1  ;;  %v17648_v1 = vld [vmem:[#allocation41_spill] sm:$0xff] }
 0x500   :  { %v14011_v61 = vpop.f32.mrf.mxu1  ;;  %v12411_v2 = vcombine.high %v17648_v1, %v17647_v22 }
 0x501   :  { %v13912_v39 = vpop.f32.mrf.mxu0  ;;  %v16722_v13 = vadd.f32 %v14010_v50, %v13898_v4 }
 0x502   :  { %v13913_v54 = vadd.f32 %v13912_v39, %v13911_v28  ;;  %v14012_v9 = vpop.f32.mrf.mxu1  ;;  %v12443_v28 = vcombine.low %v17646_v19, %v17645_v5 }
 0x503   :  { %v14042_v0 = vpop.f32.mrf.mxu0  ;;  %10846 = vmatmul.mubr.bf16.gmra.mxu0 %v12396_v44  ;;  %v14013_v48 = vadd.f32 %v14012_v9, %v14011_v61  ;;  %v17650_v61 = vld [vmem:[#allocation74_spill] sm:$0xff] }
 0x504   :  { %10853 = vmatprep.mubr.bf16.mxu0 %v12404_v40 }
 0x505   :  { %v14014_v36 = vpop.f32.mrf.mxu1  ;;  %10733 = vmatmul.mubr.bf16.gmra.mxu1 %v12436_v41  ;;  %v14043_v42 = vpop.f32.mrf.mxu0  ;;  %v16730_v4 = vadd.f32 %v14013_v48, %v13901_v6 }
 0x506   :  { %10740 = vmatprep.mubr.bf16.mxu1 %v12444_v15  ;;  %v14044_v51 = vadd.f32 %v14043_v42, %v14042_v0  ;;  %v12410_v15 = vcombine.low %v17648_v1, %v17647_v22  ;;  %v17651_v42 = vld [vmem:[#allocation57_spill] sm:$0xff] }
 0x507   :  { %v14015_v14 = vpop.f32.mrf.mxu1  ;;  %v14045_v55 = vpop.f32.mrf.mxu0 }
 0x508   :  { %v14016_v37 = vadd.f32 %v14015_v14, %v14014_v36  ;;  %v9389_v34 = vadd.f32 %v14044_v51, %v16538_v27  ;;  %v17649_v27 = vld [vmem:[#allocation75_spill] sm:$0xff]  ;;  %v17652_v51 = vld [vmem:[#allocation32_spill] sm:$0xff] }
 0x509   :  { %v14017_v10 = vpop.f32.mrf.mxu1  ;;  %v14046_v33 = vpop.f32.mrf.mxu0  ;;  %v12343_v39 = vcombine.high %v17650_v61, %v17649_v27  ;;  %v12418_v14 = vcombine.high %v17652_v51, %v17651_v42 }
 0x50a   :  { %v16735_v17 = vadd.f32 %v14016_v37, %v13904_v53  ;;  %v14047_v60 = vadd.f32 %v14046_v33, %v14045_v55  ;;  %v12342_v37 = vcombine.low %v17650_v61, %v17649_v27  ;;  %v17654_v33 = vld [vmem:[#allocation80_spill] sm:$0xff] }
 0x50b   :  { %v14018_v6 = vpop.f32.mrf.mxu1  ;;  %v14048_v63 = vpop.f32.mrf.mxu0  ;;  %10854 = vmatmul.mubr.bf16.gmra.mxu0 %v12403_v32 }
 0x50c   :  { %v14019_v50 = vadd.f32 %v14018_v6, %v14017_v10  ;;  %10861 = vmatprep.mubr.bf16.mxu0 %v12411_v2  ;;  %v9392_v44 = vadd.f32 %v14047_v60, %v16544_v8 }
 0x50d   :  { %v14020_v18 = vpop.f32.mrf.mxu1  ;;  %10741 = vmatmul.mubr.bf16.gmra.mxu1 %v12443_v28  ;;  %v14049_v53 = vpop.f32.mrf.mxu0 }
 0x50e   :  { %v16744_v38 = vadd.f32 %v14019_v50, %v13907_v56  ;;  %10942 = vmatprep.mubr.bf16.mxu1 %v12343_v39  ;;  %v14050_v40 = vadd.f32 %v14049_v53, %v14048_v63 }
 0x50f   :  { %v14021_v9 = vpop.f32.mrf.mxu1  ;;  %v14051_v0 = vpop.f32.mrf.mxu0 }
 0x510   :  { %v14022_v41 = vadd.f32 %v14021_v9, %v14020_v18  ;;  %v9397_v48 = vadd.f32 %v14050_v40, %v16554_v52  ;;  %v17653_v52 = vld [vmem:[#allocation81_spill] sm:$0xff]  ;;  %v17656_v40 = vld [vmem:[#allocation60_spill] sm:$0xff] }
 0x511   :  { %v14023_v5 = vpop.f32.mrf.mxu1  ;;  %v14052_v19 = vpop.f32.mrf.mxu0  ;;  %v12350_v32 = vcombine.high %v17654_v33, %v17653_v52 }
 0x512   :  { %v16749_v36 = vadd.f32 %v14022_v41, %v13910_v57  ;;  %v14053_v8 = vadd.f32 %v14052_v19, %v14051_v0 }
 0x513   :  { %v14024_v56 = vpop.f32.mrf.mxu1  ;;  %v14054_v55 = vpop.f32.mrf.mxu0  ;;  %10862 = vmatmul.mubr.bf16.gmra.mxu0 %v12410_v15 }
 0x514   :  { %v14025_v10 = vadd.f32 %v14024_v56, %v14023_v5  ;;  %10869 = vmatprep.mubr.bf16.mxu0 %v12418_v14  ;;  %v9400_v60 = vadd.f32 %v14053_v8, %v16564_v62  ;;  %v12417_v62 = vcombine.low %v17652_v51, %v17651_v42  ;;  %v17658_v5 = vld [vmem:[#allocation84_spill] sm:$0xff] }
 0x515   :  { %v14636_v22 = vpop.f32.mrf.mxu1  ;;  %10943 = vmatmul.mubr.bf16.vlgmr.msra.gmra.mxu1 %v12342_v37  ;;  %v14055_v57 = vpop.f32.mrf.mxu0 }
 0x516   :  { %v16758_v1 = vadd.f32 %v14025_v10, %v13913_v54  ;;  %v16760_v2 = vadd.f32 %v14636_v22, %v9397_v48  ;;  %10950 = vmatprep.mubr.bf16.mxu1 %v12350_v32  ;;  %v14056_v6 = vadd.f32 %v14055_v57, %v14054_v55  ;;  %v17655_v54 = vld [vmem:[#allocation61_spill] sm:$0xff]  ;;  %v17659_v32 = vld [vmem:[#allocation64_spill] sm:$0xff] }
 0x517   :  { %v9549_v63 = vpop.f32.mrf.mxu1  ;;  %v14057_v28 = vpop.f32.mrf.mxu0  ;;  %v12425_v9 = vcombine.high %v17656_v40, %v17655_v54 }
 0x518   :  { %v16762_v50 = vadd.f32 %v9549_v63, %v9389_v34  ;;  %v9405_v27 = vadd.f32 %v14056_v6, %v16569_v47  ;;  %v12349_v34 = vcombine.low %v17654_v33, %v17653_v52  ;;  %v17657_v47 = vld [vmem:[#allocation85_spill] sm:$0xff]  ;;  %v12424_v52 = vcombine.low %v17656_v40, %v17655_v54 }
 0x519   :  { %v14637_v61 = vpop.f32.mrf.mxu1  ;;  %v14058_v39 = vpop.f32.mrf.mxu0  ;;  %v12357_v19 = vcombine.high %v17658_v5, %v17657_v47  ;;  %v12356_v63 = vcombine.low %v17658_v5, %v17657_v47 }
 0x51a   :  { %v16767_v18 = vadd.f32 %v14637_v61, %v9400_v60  ;;  %v14059_v53 = vadd.f32 %v14058_v39, %v14057_v28  ;;  %v17660_v60 = vld [vmem:[#allocation65_spill] sm:$0xff]  ;;  %v17662_v61 = vld [vmem:[#allocation88_spill] sm:$0xff] }
 0x51b   :  { %v9552_v0 = vpop.f32.mrf.mxu1  ;;  %v14060_v41 = vpop.f32.mrf.mxu0  ;;  %10870 = vmatmul.mubr.bf16.gmra.mxu0 %v12417_v62 }
 0x51c   :  { %v16773_v48 = vadd.f32 %v9552_v0, %v9392_v44  ;;  %10877 = vmatprep.mubr.bf16.mxu0 %v12425_v9  ;;  %v9408_v15 = vadd.f32 %v14059_v53, %v16578_v12  ;;  %v12432_v12 = vcombine.high %v17660_v60, %v17659_v32 }
 0x51d   :  { %v14640_v8 = vpop.f32.mrf.mxu1  ;;  %10951 = vmatmul.mubr.bf16.gmra.mxu1 %v12349_v34  ;;  %v14061_v42 = vpop.f32.mrf.mxu0 }
 0x51e   :  { %10958 = vmatprep.mubr.bf16.mxu1 %v12357_v19  ;;  %v14062_v51 = vadd.f32 %v14061_v42, %v14060_v41 }
 0x51f   :  { %v9565_v14 = vpop.f32.mrf.mxu1  ;;  %v14063_v56 = vpop.f32.mrf.mxu0 }
 0x520   :  { %v9413_v55 = vadd.f32 %v14062_v51, %v16581_v23  ;;  %v16779_v37 = vadd.f32 %v9565_v14, %v9405_v27  ;;  %v17661_v27 = vld [vmem:[#allocation89_spill] sm:$0xff] }
 0x521   :  { %v14641_v10 = vpop.f32.mrf.mxu1  ;;  %v14064_v44 = vpop.f32.mrf.mxu0  ;;  %v12364_v39 = vcombine.high %v17662_v61, %v17661_v27 }
 0x522   :  { %v14065_v33 = vadd.f32 %v14064_v44, %v14063_v56  ;;  %v16785_v22 = vadd.f32 %v14640_v8, %v9413_v55  ;;  %v17664_v8 = vld [vmem:[#allocation68_spill] sm:$0xff]  ;;  %v12363_v56 = vcombine.low %v17662_v61, %v17661_v27 }
 0x523   :  { %v9568_v57 = vpop.f32.mrf.mxu1  ;;  %v14066_v6 = vpop.f32.mrf.mxu0  ;;  %10878 = vmatmul.mubr.bf16.gmra.mxu0 %v12424_v52  ;;  %v17667_v61 = vld [vmem:[#allocation72_spill] sm:$0xff] }
 0x524   :  { %v9416_v23 = vadd.f32 %v14065_v33, %v16588_v58  ;;  %v16790_v28 = vadd.f32 %v9568_v57, %v9408_v15  ;;  %10885 = vmatprep.mubr.bf16.mxu0 %v12432_v12  ;;  %v12431_v58 = vcombine.low %v17660_v60, %v17659_v32  ;;  %v17663_v15 = vld [vmem:[#allocation69_spill] sm:$0xff] }
 0x525   :  { %v14644_v62 = vpop.f32.mrf.mxu1  ;;  %10959 = vmatmul.mubr.bf16.gmra.mxu1 %v12356_v63  ;;  %v14067_v53 = vpop.f32.mrf.mxu0  ;;  %v12439_v42 = vcombine.high %v17664_v8, %v17663_v15 }
 0x526   :  { %10966 = vmatprep.mubr.bf16.mxu1 %v12364_v39  ;;  %v14068_v54 = vadd.f32 %v14067_v53, %v14066_v6  ;;  %v16794_v40 = vadd.f32 %v14641_v10, %v9416_v23  ;;  %v17666_v10 = vld [vmem:[#allocation92_spill] sm:$0xff]  ;;  %v17668_v39 = vld [vmem:[#allocation73_spill] sm:$0xff] }
 0x527   :  { %v9581_v9 = vpop.f32.mrf.mxu1  ;;  %v14069_v0 = vpop.f32.mrf.mxu0  ;;  %v12446_v53 = vcombine.high %v17668_v39, %v17667_v61 }
 0x528   :  { %v9421_v41 = vadd.f32 %v14068_v54, %v16591_v29  ;;  %v17665_v29 = vld [vmem:[#allocation93_spill] sm:$0xff] }
 0x529   :  { %v14645_v34 = vpop.f32.mrf.mxu1  ;;  %v14070_v47 = vpop.f32.mrf.mxu0  ;;  %v12371_v44 = vcombine.high %v17666_v10, %v17665_v29 }
 0x52a   :  { %v16799_v5 = vadd.f32 %v9581_v9, %v9421_v41  ;;  %v14071_v19 = vadd.f32 %v14070_v47, %v14069_v0  ;;  %v12370_v41 = vcombine.low %v17666_v10, %v17665_v29 }
 0x52b   :  { %v9584_v51 = vpop.f32.mrf.mxu1  ;;  %v14072_v14 = vpop.f32.mrf.mxu0  ;;  %10886 = vmatmul.mubr.bf16.gmra.mxu0 %v12431_v58  ;;  %v17670_v58 = vld [vmem:[#allocation96_spill] sm:$0xff] }
 0x52c   :  { %v9424_v55 = vadd.f32 %v14071_v19, %v16602_v3  ;;  %10893 = vmatprep.mubr.bf16.mxu0 %v12439_v42  ;;  %v12438_v3 = vcombine.low %v17664_v8, %v17663_v15 }
 0x52d   :  { %v14648_v52 = vpop.f32.mrf.mxu1  ;;  %10967 = vmatmul.mubr.bf16.gmra.mxu1 %v12363_v56  ;;  %v14073_v33 = vpop.f32.mrf.mxu0 }
 0x52e   :  { %v16808_v32 = vadd.f32 %v9584_v51, %v9424_v55  ;;  %10974 = vmatprep.mubr.bf16.mxu1 %v12371_v44  ;;  %v14074_v60 = vadd.f32 %v14073_v33, %v14072_v14  ;;  %v17671_v44 = vld [vmem:[#allocation77_spill] sm:$0xff]  ;;  %v17672_v33 = vld [vmem:[#allocation76_spill] sm:$0xff] }
 0x52f   :  { %v9597_v12 = vpop.f32.mrf.mxu1  ;;  %v14075_v57 = vpop.f32.mrf.mxu0 }
 0x530   :  { %v9429_v6 = vadd.f32 %v14074_v60, %v16608_v24  ;;  %v17669_v24 = vld [vmem:[#allocation97_spill] sm:$0xff]  ;;  %v12344_v60 = vcombine.low %v17672_v33, %v17671_v44 }
 0x531   :  { %v14649_v63 = vpop.f32.mrf.mxu1  ;;  %v14076_v23 = vpop.f32.mrf.mxu0  ;;  %v12378_v19 = vcombine.high %v17670_v58, %v17669_v24 }
 0x532   :  { %v14077_v27 = vadd.f32 %v14076_v23, %v14075_v57  ;;  %v16815_v54 = vadd.f32 %v14644_v62, %v9429_v6 }
 0x533   :  { %v9600_v9 = vpop.f32.mrf.mxu1  ;;  %v14078_v0 = vpop.f32.mrf.mxu0  ;;  %10894 = vmatmul.mubr.bf16.gmra.mxu0 %v12438_v3  ;;  %v17673_v3 = vld [vmem:[#allocation101_spill] sm:$0xff] }
 0x534   :  { %v9432_v47 = vadd.f32 %v14077_v27, %v16619_v45  ;;  %10901 = vmatprep.mubr.bf16.mxu0 %v12446_v53  ;;  %v12445_v45 = vcombine.low %v17668_v39, %v17667_v61  ;;  %v17674_v27 = vld [vmem:[#allocation100_spill] sm:$0xff] }
 0x535   :  { %v16822_v42 = vpop.f32.mrf.mxu1  ;;  %10975 = vmatmul.mubr.bf16.gmra.mxu1 %v12370_v41  ;;  %v14079_v15 = vpop.f32.mrf.mxu0  ;;  %v12385_v53 = vcombine.high %v17674_v27, %v17673_v3  ;;  %v12384_v33 = vcombine.low %v17674_v27, %v17673_v3 }
 0x536   :  { %10982 = vmatprep.mubr.bf16.mxu1 %v12378_v19  ;;  %v14080_v8 = vadd.f32 %v14079_v15, %v14078_v0  ;;  %v16824_v62 = vadd.f32 %v14645_v34, %v9432_v47  ;;  %v12377_v34 = vcombine.low %v17670_v58, %v17669_v24  ;;  %v17675_v58 = vld [vmem:[#allocation79_spill] sm:$0xff]  ;;  %v17676_v15 = vld [vmem:[#allocation78_spill] sm:$0xff] }
 0x537   :  { %v9613_v51 = vpop.f32.mrf.mxu1  ;;  %v14081_v14 = vpop.f32.mrf.mxu0 }
 0x538   :  { %v9437_v56 = vadd.f32 %v14080_v8, %v16625_v26  ;;  %v12351_v8 = vcombine.low %v17676_v15, %v17675_v58 }
 0x539   :  { %v16827_v55 = vpop.f32.mrf.mxu1  ;;  %v14082_v29 = vpop.f32.mrf.mxu0 }
 0x53a   :  { %v14083_v10 = vadd.f32 %v14082_v29, %v14081_v14  ;;  %v16833_v57 = vadd.f32 %v9597_v12, %v9437_v56  ;;  %v17677_v56 = vld [vmem:[#allocation83_spill] sm:$0xff]  ;;  %v17678_v29 = vld [vmem:[#allocation82_spill] sm:$0xff] }
 0x53b   :  { %v9616_v6 = vpop.f32.mrf.mxu1  ;;  %v14084_v23 = vpop.f32.mrf.mxu0  ;;  %10902 = vmatmul.mubr.bf16.gmra.mxu0 %v12445_v45  ;;  %v12358_v45 = vcombine.low %v17678_v29, %v17677_v56 }
 0x53c   :  { %v9440_v26 = vadd.f32 %v14083_v10, %v16636_v16  ;;  %14682 = vmatprep.mubr.bf16.mxu0 %v12344_v60  ;;  %v17679_v60 = vld [vmem:[#allocation105_spill] sm:$0xff] }
 0x53d   :  { %v16840_v0 = vpop.f32.mrf.mxu1  ;;  %10983 = vmatmul.mubr.bf16.gmra.mxu1 %v12377_v34  ;;  %v14085_v61 = vpop.f32.mrf.mxu0 }
 0x53e   :  { %10990 = vmatprep.mubr.bf16.mxu1 %v12385_v53  ;;  %v14086_v39 = vadd.f32 %v14085_v61, %v14084_v23  ;;  %v16842_v12 = vadd.f32 %v9600_v9, %v9440_v26  ;;  %v17680_v23 = vld [vmem:[#allocation104_spill] sm:$0xff] }
 0x53f   :  { %v16844_v41 = vpop.f32.mrf.mxu1  ;;  %v14087_v47 = vpop.f32.mrf.mxu0  ;;  %v12392_v34 = vcombine.high %v17680_v23, %v17679_v60 }
 0x540   :  { %v9445_v19 = vadd.f32 %v14086_v39, %v16643_v35 }
 0x541   :  { %v16847_v24 = vpop.f32.mrf.mxu1  ;;  %v14088_v16 = vpop.f32.mrf.mxu0 }
 0x542   :  { %v14089_v14 = vadd.f32 %v14088_v16, %v14087_v47  ;;  %v16853_v10 = vadd.f32 %v14648_v52, %v9445_v19  ;;  %v17681_v19 = vld [vmem:[#allocation87_spill] sm:$0xff]  ;;  %v17682_v16 = vld [vmem:[#allocation86_spill] sm:$0xff] }
 0x543   :  { %v16855_v44 = vpop.f32.mrf.mxu1  ;;  %v14090_v9 = vpop.f32.mrf.mxu0  ;;  %14683 = vmatmul.mubr.bf16.vlgmr.msra.gmra.mxu0 %v12351_v8  ;;  %v12365_v58 = vcombine.low %v17682_v16, %v17681_v19  ;;  %v17683_v8 = vld [vmem:[#allocation91_spill] sm:$0xff]  ;;  %v17688_v16 = vld [vmem:[#allocation94_spill] sm:$0xff] }
 0x544   :  { %v9448_v35 = vadd.f32 %v14089_v14, %v16654_v31  ;;  %14686 = vmatprep.mubr.bf16.mxu0 %v12358_v45  ;;  %v17684_v14 = vld [vmem:[#allocation90_spill] sm:$0xff]  ;;  %v17687_v19 = vld [vmem:[#allocation95_spill] sm:$0xff] }
 0x545   :  { %v16862_v26 = vpop.f32.mrf.mxu1  ;;  %10991 = vmatmul.mubr.bf16.gmra.mxu1 %v12384_v33  ;;  %v14091_v53 = vpop.f32.mrf.mxu0  ;;  %v12372_v56 = vcombine.low %v17684_v14, %v17683_v8  ;;  %v17685_v33 = vld [vmem:[#allocation109_spill] sm:$0xff]  ;;  %v17689_v8 = vld [vmem:[#allocation99_spill] sm:$0xff]  ;;  %v17690_v14 = vld [vmem:[#allocation98_spill] sm:$0xff] }
 0x546   :  { %10998 = vmatprep.mubr.bf16.mxu1 %v12392_v34  ;;  %v14092_v52 = vadd.f32 %v14091_v53, %v14090_v9  ;;  %v16864_v61 = vadd.f32 %v14649_v63, %v9448_v35  ;;  %v12391_v9 = vcombine.low %v17680_v23, %v17679_v60  ;;  %v17686_v35 = vld [vmem:[#allocation108_spill] sm:$0xff] }
 0x547   :  { %v16866_v39 = vpop.f32.mrf.mxu1  ;;  %v14093_v47 = vpop.f32.mrf.mxu0  ;;  %v12399_v34 = vcombine.high %v17686_v35, %v17685_v33 }
 0x548   :  { %v9453_v3 = vadd.f32 %v14092_v52, %v16659_v25 }
 0x549   :  { %v16869_v27 = vpop.f32.mrf.mxu1  ;;  %v14094_v31 = vpop.f32.mrf.mxu0 }
 0x54a   :  { %v14095_v15 = vadd.f32 %v14094_v31, %v14093_v47  ;;  %v16875_v29 = vadd.f32 %v9613_v51, %v9453_v3 }
 0x54b   :  { %v16877_v45 = vpop.f32.mrf.mxu1  ;;  %v14096_v63 = vpop.f32.mrf.mxu0  ;;  %14687 = vmatmul.mubr.bf16.gmra.mxu0 %v12365_v58  ;;  %v12379_v58 = vcombine.low %v17688_v16, %v17687_v19 }
 0x54c   :  { %v9456_v25 = vadd.f32 %v14095_v15, %v16668_v20  ;;  %14690 = vmatprep.mubr.bf16.mxu0 %v12372_v56  ;;  %v12386_v56 = vcombine.low %v17690_v14, %v17689_v8 }
 0x54d   :  { %v16884_v53 = vpop.f32.mrf.mxu1  ;;  %10999 = vmatmul.mubr.bf16.gmra.mxu1 %v12391_v9  ;;  %v14097_v52 = vpop.f32.mrf.mxu0 }
 0x54e   :  { %11006 = vmatprep.mubr.bf16.mxu1 %v12399_v34  ;;  %v14098_v51 = vadd.f32 %v14097_v52, %v14096_v63  ;;  %v16886_v47 = vadd.f32 %v9616_v6, %v9456_v25  ;;  %v12398_v25 = vcombine.low %v17686_v35, %v17685_v33  ;;  %v17692_v34 = vld [vmem:[#allocation113_spill] sm:$0xff]  ;;  %v17693_v52 = vld [vmem:[#allocation112_spill] sm:$0xff] }
 0x54f   :  { %v16888_v3 = vpop.f32.mrf.mxu1  ;;  %v14099_v31 = vpop.f32.mrf.mxu0 }
 0x550   :  { %v9461_v60 = vadd.f32 %v14098_v51, %v16673_v49  ;;  %v12406_v51 = vcombine.high %v17693_v52, %v17692_v34 }
 0x551   :  { %v16891_v23 = vpop.f32.mrf.mxu1  ;;  %v14100_v20 = vpop.f32.mrf.mxu0 }
 0x552   :  { %v14101_v15 = vadd.f32 %v14100_v20, %v14099_v31  ;;  %v16898_v9 = vadd.f32 %v16822_v42, %v9461_v60 }
 0x553   :  { %v16900_v6 = vpop.f32.mrf.mxu1  ;;  %v14102_v63 = vpop.f32.mrf.mxu0  ;;  %14691 = vmatmul.mubr.bf16.gmra.mxu0 %v12379_v58 }
 0x554   :  { %17691 = vst [vmem:[#allocation50_spill] sm:$0xff] %v16898_v9  ;;  %v9464_v49 = vadd.f32 %v14101_v15, %v16682_v43  ;;  %14694 = vmatprep.mubr.bf16.mxu0 %v12386_v56  ;;  %v17694_v43 = vld [vmem:[#allocation103_spill] sm:$0xff]  ;;  %v17695_v15 = vld [vmem:[#allocation102_spill] sm:$0xff] }
 0x555   :  { %v14178_v31 = vpop.f32.mrf.mxu1  ;;  %11007 = vmatmul.mubr.bf16.gmra.mxu1 %v12398_v25  ;;  %v14103_v20 = vpop.f32.mrf.mxu0  ;;  %v12393_v14 = vcombine.low %v17695_v15, %v17694_v43  ;;  %v17696_v9 = vld [vmem:[#allocation107_spill] sm:$0xff]  ;;  %v17699_v43 = vld [vmem:[#allocation116_spill] sm:$0xff] }
 0x556   :  { %11014 = vmatprep.mubr.bf16.mxu1 %v12406_v51  ;;  %v14104_v19 = vadd.f32 %v14103_v20, %v14102_v63  ;;  %v16908_v42 = vadd.f32 %v16827_v55, %v9464_v49  ;;  %v17697_v51 = vld [vmem:[#allocation106_spill] sm:$0xff] }
 0x557   :  { %v14179_v60 = vpop.f32.mrf.mxu1  ;;  %v14105_v16 = vpop.f32.mrf.mxu0  ;;  %v12400_v63 = vcombine.low %v17697_v51, %v17696_v9 }
 0x558   :  { %v9469_v8 = vadd.f32 %v14104_v19, %v16686_v21  ;;  %v14180_v33 = vadd.f32 %v14179_v60, %v14178_v31  ;;  %v12405_v21 = vcombine.low %v17693_v52, %v17692_v34  ;;  %v17698_v60 = vld [vmem:[#allocation117_spill] sm:$0xff] }
 0x559   :  { %v14181_v35 = vpop.f32.mrf.mxu1  ;;  %v14106_v58 = vpop.f32.mrf.mxu0 }
 0x55a   :  { %v16914_v56 = vadd.f32 %v14180_v33, %v16762_v50  ;;  %v14107_v25 = vadd.f32 %v14106_v58, %v14105_v16  ;;  %v16919_v55 = vadd.f32 %v16844_v41, %v9469_v8  ;;  %v12413_v50 = vcombine.high %v17699_v43, %v17698_v60 }
 0x55b   :  { %v14182_v49 = vpop.f32.mrf.mxu1  ;;  %v14108_v20 = vpop.f32.mrf.mxu0  ;;  %14695 = vmatmul.mubr.bf16.gmra.mxu0 %v12393_v14  ;;  %v17700_v14 = vld [vmem:[#allocation111_spill] sm:$0xff] }
 0x55c   :  { %v9472_v31 = vadd.f32 %v14107_v25, %v16694_v59  ;;  %v14183_v19 = vadd.f32 %v14182_v49, %v14181_v35  ;;  %14698 = vmatprep.mubr.bf16.mxu0 %v12400_v63  ;;  %v17701_v25 = vld [vmem:[#allocation110_spill] sm:$0xff]  ;;  %v17702_v49 = vld [vmem:[#allocation115_spill] sm:$0xff] }
 0x55d   :  { %v14184_v16 = vpop.f32.mrf.mxu1  ;;  %11015 = vmatmul.mubr.bf16.gmra.mxu1 %v12405_v21  ;;  %v14109_v33 = vpop.f32.mrf.mxu0  ;;  %v12407_v51 = vcombine.low %v17701_v25, %v17700_v14  ;;  %v17703_v21 = vld [vmem:[#allocation114_spill] sm:$0xff]  ;;  %v17706_v25 = vld [vmem:[#allocation119_spill] sm:$0xff] }
 0x55e   :  { %v16927_v9 = vadd.f32 %v14183_v19, %v16773_v48  ;;  %11022 = vmatprep.mubr.bf16.mxu1 %v12413_v50  ;;  %v14110_v41 = vadd.f32 %v14109_v33, %v14108_v20  ;;  %v16930_v8 = vadd.f32 %v16855_v44, %v9472_v31  ;;  %v12414_v20 = vcombine.low %v17703_v21, %v17702_v49  ;;  %v17704_v33 = vld [vmem:[#allocation121_spill] sm:$0xff]  ;;  %v17708_v21 = vld [vmem:[#allocation123_spill] sm:$0xff] }
 0x55f   :  { %v14185_v34 = vpop.f32.mrf.mxu1  ;;  %v14111_v52 = vpop.f32.mrf.mxu0 }
 0x560   :  { %v9477_v59 = vadd.f32 %v14110_v41, %v16698_v11  ;;  %v14186_v35 = vadd.f32 %v14185_v34, %v14184_v16  ;;  %v12412_v11 = vcombine.low %v17699_v43, %v17698_v60  ;;  %v17705_v41 = vld [vmem:[#allocation120_spill] sm:$0xff] }
 0x561   :  { %v14187_v58 = vpop.f32.mrf.mxu1  ;;  %v14112_v15 = vpop.f32.mrf.mxu0 }
 0x562   :  { %v16936_v63 = vadd.f32 %v14186_v35, %v16760_v2  ;;  %v14113_v48 = vadd.f32 %v14112_v15, %v14111_v52  ;;  %v16941_v44 = vadd.f32 %v16840_v0, %v9477_v59  ;;  %v12420_v2 = vcombine.high %v17705_v41, %v17704_v33 }
 0x563   :  { %v14188_v31 = vpop.f32.mrf.mxu1  ;;  %v14114_v19 = vpop.f32.mrf.mxu0  ;;  %14699 = vmatmul.mubr.bf16.gmra.mxu0 %v12407_v51  ;;  %v17707_v51 = vld [vmem:[#allocation118_spill] sm:$0xff] }
 0x564   :  { %v9480_v50 = vadd.f32 %v14113_v48, %v16706_v30  ;;  %v14189_v16 = vadd.f32 %v14188_v31, %v14187_v58  ;;  %14702 = vmatprep.mubr.bf16.mxu0 %v12414_v20  ;;  %v12421_v48 = vcombine.low %v17707_v51, %v17706_v25  ;;  %v17709_v20 = vld [vmem:[#allocation122_spill] sm:$0xff] }
 0x565   :  { %v14190_v34 = vpop.f32.mrf.mxu1  ;;  %11023 = vmatmul.mubr.bf16.gmra.mxu1 %v12412_v11  ;;  %v14115_v52 = vpop.f32.mrf.mxu0  ;;  %v12428_v31 = vcombine.low %v17709_v20, %v17708_v21  ;;  %v17713_v21 = vld [vmem:[#allocation127_spill] sm:$0xff] }
 0x566   :  { %v16949_v35 = vadd.f32 %v14189_v16, %v16767_v18  ;;  %11030 = vmatprep.mubr.bf16.mxu1 %v12420_v2  ;;  %v14116_v0 = vadd.f32 %v14115_v52, %v14114_v19  ;;  %v16952_v59 = vadd.f32 %v16847_v24, %v9480_v50  ;;  %v17710_v2 = vld [vmem:[#allocation125_spill] sm:$0xff] }
 0x567   :  { %v14191_v60 = vpop.f32.mrf.mxu1  ;;  %v14117_v43 = vpop.f32.mrf.mxu0 }
 0x568   :  { %v9485_v30 = vadd.f32 %v14116_v0, %v16710_v7  ;;  %v14192_v58 = vadd.f32 %v14191_v60, %v14190_v34  ;;  %v12419_v7 = vcombine.low %v17705_v41, %v17704_v33  ;;  %v17711_v34 = vld [vmem:[#allocation124_spill] sm:$0xff] }
 0x569   :  { %v14193_v15 = vpop.f32.mrf.mxu1  ;;  %v14118_v14 = vpop.f32.mrf.mxu0 }
 0x56a   :  { %v16958_v49 = vadd.f32 %v14192_v58, %v16779_v37  ;;  %v14119_v18 = vadd.f32 %v14118_v14, %v14117_v43  ;;  %v16963_v24 = vadd.f32 %v16866_v39, %v9485_v30  ;;  %v12427_v37 = vcombine.high %v17711_v34, %v17710_v2 }
 0x56b   :  { %v14194_v19 = vpop.f32.mrf.mxu1  ;;  %v14120_v11 = vpop.f32.mrf.mxu0  ;;  %14703 = vmatmul.mubr.bf16.gmra.mxu0 %v12421_v48 }
 0x56c   :  { %v9488_v50 = vadd.f32 %v14119_v18, %v16718_v46  ;;  %v14195_v16 = vadd.f32 %v14194_v19, %v14193_v15  ;;  %14706 = vmatprep.mubr.bf16.mxu0 %v12428_v31  ;;  %v17712_v18 = vld [vmem:[#allocation126_spill] sm:$0xff]  ;;  %v17715_v19 = vld [vmem:[#allocation129_spill] sm:$0xff] }
 0x56d   :  { %v14196_v52 = vpop.f32.mrf.mxu1  ;;  %11031 = vmatmul.mubr.bf16.gmra.mxu1 %v12419_v7  ;;  %v14121_v0 = vpop.f32.mrf.mxu0  ;;  %v17714_v20 = vcombine.low %v17712_v18, %v17713_v21  ;;  %v17717_v7 = vld [vmem:[#allocation130_spill] sm:$0xff]  ;;  %v17723_v21 = vld [vmem:[#allocation133_spill] sm:$0xff] }
 0x56e   :  { %v16971_v60 = vadd.f32 %v14195_v16, %v16790_v28  ;;  %11038 = vmatprep.mubr.bf16.mxu1 %v12427_v37  ;;  %v14122_v39 = vadd.f32 %v14121_v0, %v14120_v11  ;;  %v16974_v43 = vadd.f32 %v16877_v45, %v9488_v50  ;;  %v12426_v45 = vcombine.low %v17711_v34, %v17710_v2  ;;  %v17716_v11 = vld [vmem:[#allocation128_spill] sm:$0xff]  ;;  %v17718_v50 = vld [vmem:[#allocation131_spill] sm:$0xff] }
 0x56f   :  { %v14197_v33 = vpop.f32.mrf.mxu1  ;;  %v14123_v41 = vpop.f32.mrf.mxu0  ;;  %v17719_v16 = vcombine.low %v17717_v7, %v17718_v50 }
 0x570   :  { %v9493_v46 = vadd.f32 %v14122_v39, %v16722_v13  ;;  %v14198_v30 = vadd.f32 %v14197_v33, %v14196_v52 }
 0x571   :  { %v14199_v58 = vpop.f32.mrf.mxu1  ;;  %v14124_v15 = vpop.f32.mrf.mxu0 }
 0x572   :  { %v16978_v14 = vadd.f32 %v14198_v30, %v16785_v22  ;;  %v14125_v25 = vadd.f32 %v14124_v15, %v14123_v41  ;;  %v16981_v51 = vadd.f32 %v16862_v26, %v9493_v46  ;;  %v12434_v22 = vcombine.high %v17716_v11, %v17715_v19 }
 0x573   :  { %v14200_v28 = vpop.f32.mrf.mxu1  ;;  %v14126_v48 = vpop.f32.mrf.mxu0  ;;  %14707 = vmatmul.mubr.bf16.gmra.mxu0 %v17714_v20  ;;  %v17724_v20 = vld [vmem:[#allocation132_spill] sm:$0xff] }
 0x574   :  { %v9496_v13 = vadd.f32 %v14125_v25, %v16730_v4  ;;  %v14201_v31 = vadd.f32 %v14200_v28, %v14199_v58  ;;  %14710 = vmatprep.mubr.bf16.mxu0 %v17719_v16  ;;  %v17720_v28 = vld [vmem:[#allocation134_spill] sm:$0xff] }
 0x575   :  { %v14202_v26 = vpop.f32.mrf.mxu1  ;;  %11039 = vmatmul.mubr.bf16.gmra.mxu1 %v12426_v45  ;;  %v14127_v37 = vpop.f32.mrf.mxu0 }
 0x576   :  { %v16995_v52 = vadd.f32 %v14201_v31, %v16794_v40  ;;  %11046 = vmatprep.mubr.bf16.mxu1 %v12434_v22  ;;  %v14128_v2 = vadd.f32 %v14127_v37, %v14126_v48  ;;  %v16998_v34 = vadd.f32 %v16869_v27, %v9496_v13  ;;  %v12433_v27 = vcombine.low %v17716_v11, %v17715_v19  ;;  %v17721_v48 = vld [vmem:[#allocation135_spill] sm:$0xff] }
 0x577   :  { %v14203_v4 = vpop.f32.mrf.mxu1  ;;  %v14129_v0 = vpop.f32.mrf.mxu0  ;;  %v17722_v45 = vcombine.low %v17720_v28, %v17721_v48 }
 0x578   :  { %v9501_v39 = vadd.f32 %v14128_v2, %v16735_v17  ;;  %v14204_v33 = vadd.f32 %v14203_v4, %v14202_v26 }
 0x579   :  { %v14205_v41 = vpop.f32.mrf.mxu1  ;;  %v14130_v46 = vpop.f32.mrf.mxu0 }
 0x57a   :  { %v17002_v30 = vadd.f32 %v14204_v33, %v16799_v5  ;;  %v14131_v58 = vadd.f32 %v14130_v46, %v14129_v0  ;;  %v17005_v15 = vadd.f32 %v16888_v3, %v9501_v39  ;;  %v12441_v5 = vcombine.high %v17724_v20, %v17723_v21 }
 0x57b   :  { %v14206_v40 = vpop.f32.mrf.mxu1  ;;  %v14132_v25 = vpop.f32.mrf.mxu0  ;;  %14711 = vmatmul.mubr.bf16.gmra.mxu0 %v17722_v45 }
 0x57c   :  { %v9504_v17 = vadd.f32 %v14131_v58, %v16744_v38  ;;  %v14207_v18 = vadd.f32 %v14206_v40, %v14205_v41  ;;  %v17726_v58 = vld [vmem:[#allocation137_spill] sm:$0xff] }
 0x57d   :  { %v14208_v13 = vpop.f32.mrf.mxu1  ;;  %11047 = vmatmul.mubr.bf16.gmra.mxu1 %v12433_v27  ;;  %v14133_v31 = vpop.f32.mrf.mxu0 }
 0x57e   :  { %v17016_v3 = vadd.f32 %v14207_v18, %v16808_v32  ;;  %11054 = vmatprep.mubr.bf16.mxu1 %v12441_v5  ;;  %v14134_v22 = vadd.f32 %v14133_v31, %v14132_v25  ;;  %v17019_v19 = vadd.f32 %v16900_v6, %v9504_v17  ;;  %v12440_v6 = vcombine.low %v17724_v20, %v17723_v21 }
 0x57f   :  { %v14209_v11 = vpop.f32.mrf.mxu1  ;;  %v14135_v7 = vpop.f32.mrf.mxu0 }
 0x580   :  { %v9509_v50 = vadd.f32 %v14134_v22, %v16749_v36  ;;  %v14210_v38 = vadd.f32 %v14209_v11, %v14208_v13 }
 0x581   :  { %v14211_v16 = vpop.f32.mrf.mxu1  ;;  %v14136_v26 = vpop.f32.mrf.mxu0 }
 0x582   :  { %v17023_v37 = vadd.f32 %v14210_v38, %v16815_v54  ;;  %v14137_v2 = vadd.f32 %v14136_v26, %v14135_v7  ;;  %v17026_v4 = vadd.f32 %v16884_v53, %v9509_v50  ;;  %v17725_v54 = vld [vmem:[#allocation136_spill] sm:$0xff] }
 0x583   :  { %v14212_v32 = vpop.f32.mrf.mxu1  ;;  %v14290_v0 = vpop.f32.mrf.mxu0  ;;  %v17727_v40 = vcombine.high %v17725_v54, %v17726_v58  ;;  %v17728_v31 = vcombine.low %v17725_v54, %v17726_v58 }
 0x584   :  { %v9512_v39 = vadd.f32 %v14137_v2, %v16758_v1  ;;  %v14213_v33 = vadd.f32 %v14212_v32, %v14211_v16 }
 0x585   :  { %v14214_v41 = vpop.f32.mrf.mxu1  ;;  %11055 = vmatmul.mubr.bf16.gmra.mxu1 %v12440_v6  ;;  %v14291_v36 = vpop.f32.mrf.mxu0 }
 0x586   :  { %v17032_v46 = vadd.f32 %v14213_v33, %v16824_v62  ;;  %11062 = vmatprep.mubr.bf16.mxu1 %v17727_v40  ;;  %v14292_v53 = vadd.f32 %v14291_v36, %v14290_v0  ;;  %v17038_v25 = vadd.f32 %v16891_v23, %v9512_v39 }
 0x587   :  { %v14215_v27 = vpop.f32.mrf.mxu1  ;;  %v14293_v28 = vpop.f32.mrf.mxu0 }
 0x588   :  { %v14216_v48 = vadd.f32 %v14215_v27, %v14214_v41  ;;  %v17041_v1 = vadd.f32 %v14292_v53, %v16914_v56 }
 0x589   :  { %v14217_v45 = vpop.f32.mrf.mxu1  ;;  %v14294_v17 = vpop.f32.mrf.mxu0 }
 0x58a   :  { %v17044_v18 = vadd.f32 %v14216_v48, %v16833_v57  ;;  %v14295_v62 = vadd.f32 %v14294_v17, %v14293_v28 }
 0x58b   :  { %v14218_v21 = vpop.f32.mrf.mxu1  ;;  %v14296_v20 = vpop.f32.mrf.mxu0 }
 0x58c   :  { %v14219_v5 = vadd.f32 %v14218_v21, %v14217_v45  ;;  %v17047_v13 = vadd.f32 %v14295_v62, %v16927_v9 }
 0x58d   :  { %v14220_v23 = vpop.f32.mrf.mxu1  ;;  %11063 = vmatmul.mubr.bf16.gmra.mxu1 %v17728_v31  ;;  %v14297_v22 = vpop.f32.mrf.mxu0 }
 0x58e   :  { %v17053_v56 = vadd.f32 %v14219_v5, %v16842_v12  ;;  %v14298_v11 = vadd.f32 %v14297_v22, %v14296_v20 }
 0x58f   :  { %v14221_v7 = vpop.f32.mrf.mxu1  ;;  %v14299_v57 = vpop.f32.mrf.mxu0 }
 0x590   :  { %v14222_v50 = vadd.f32 %v14221_v7, %v14220_v23  ;;  %v17056_v38 = vadd.f32 %v14298_v11, %v16936_v63  ;;  %v17729_v11 = vld [vmem:[#allocation50_spill] sm:$0xff] }
 0x591   :  { %v14223_v16 = vpop.f32.mrf.mxu1  ;;  %v14300_v26 = vpop.f32.mrf.mxu0 }
 0x592   :  { %v17059_v9 = vadd.f32 %v14222_v50, %v16853_v10  ;;  %v14301_v2 = vadd.f32 %v14300_v26, %v14299_v57 }
 0x593   :  { %v14224_v32 = vpop.f32.mrf.mxu1  ;;  %v14302_v0 = vpop.f32.mrf.mxu0 }
 0x594   :  { %v14225_v6 = vadd.f32 %v14224_v32, %v14223_v16  ;;  %v17062_v39 = vadd.f32 %v14301_v2, %v16949_v35 }
 0x595   :  { %v14226_v12 = vpop.f32.mrf.mxu1  ;;  %v14303_v33 = vpop.f32.mrf.mxu0 }
 0x596   :  { %v17065_v41 = vadd.f32 %v14225_v6, %v16864_v61  ;;  %v14304_v36 = vadd.f32 %v14303_v33, %v14302_v0 }
 0x597   :  { %v14227_v63 = vpop.f32.mrf.mxu1  ;;  %v14305_v54 = vpop.f32.mrf.mxu0 }
 0x598   :  { %v14228_v58 = vadd.f32 %v14227_v63, %v14226_v12  ;;  %v17068_v40 = vadd.f32 %v14304_v36, %v16958_v49 }
 0x599   :  { %v14229_v10 = vpop.f32.mrf.mxu1  ;;  %v14306_v53 = vpop.f32.mrf.mxu0 }
 0x59a   :  { %v17071_v27 = vadd.f32 %v14228_v58, %v16875_v29  ;;  %v14307_v28 = vadd.f32 %v14306_v53, %v14305_v54 }
 0x59b   :  { %v14230_v35 = vpop.f32.mrf.mxu1  ;;  %v14308_v48 = vpop.f32.mrf.mxu0 }
 0x59c   :  { %v14231_v45 = vadd.f32 %v14230_v35, %v14229_v10  ;;  %v17074_v17 = vadd.f32 %v14307_v28, %v16971_v60 }
 0x59d   :  { %v14232_v61 = vpop.f32.mrf.mxu1  ;;  %v14309_v62 = vpop.f32.mrf.mxu0 }
 0x59e   :  { %v17077_v21 = vadd.f32 %v14231_v45, %v16886_v47  ;;  %v14310_v20 = vadd.f32 %v14309_v62, %v14308_v48 }
 0x59f   :  { %v14233_v49 = vpop.f32.mrf.mxu1  ;;  %v14311_v5 = vpop.f32.mrf.mxu0 }
 0x5a0   :  { %v14234_v23 = vadd.f32 %v14233_v49, %v14232_v61  ;;  %v17080_v31 = vadd.f32 %v14310_v20, %v16978_v14 }
 0x5a1   :  { %v14235_v29 = vpop.f32.mrf.mxu1  ;;  %v14312_v22 = vpop.f32.mrf.mxu0 }
 0x5a2   :  { %v17083_v7 = vadd.f32 %v14234_v23, %v17729_v11  ;;  %v14313_v57 = vadd.f32 %v14312_v22, %v14311_v5 }
 0x5a3   :  { %v14236_v60 = vpop.f32.mrf.mxu1  ;;  %v14314_v50 = vpop.f32.mrf.mxu0 }
 0x5a4   :  { %v14237_v16 = vadd.f32 %v14236_v60, %v14235_v29  ;;  %v17086_v26 = vadd.f32 %v14313_v57, %v16995_v52 }
 0x5a5   :  { %v14238_v47 = vpop.f32.mrf.mxu1  ;;  %v14315_v2 = vpop.f32.mrf.mxu0 }
 0x5a6   :  { %v17089_v32 = vadd.f32 %v14237_v16, %v16908_v42  ;;  %v14316_v0 = vadd.f32 %v14315_v2, %v14314_v50 }
 0x5a7   :  { %v14239_v14 = vpop.f32.mrf.mxu1  ;;  %v14317_v6 = vpop.f32.mrf.mxu0 }
 0x5a8   :  { %v14240_v12 = vadd.f32 %v14239_v14, %v14238_v47  ;;  %v17092_v33 = vadd.f32 %v14316_v0, %v17002_v30 }
 0x5a9   :  { %v14241_v36 = vpop.f32.mrf.mxu1  ;;  %v14318_v63 = vpop.f32.mrf.mxu0 }
 0x5aa   :  { %v17095_v54 = vadd.f32 %v14240_v12, %v16919_v55  ;;  %v14319_v58 = vadd.f32 %v14318_v63, %v14317_v6 }
 0x5ab   :  { %v14242_v52 = vpop.f32.mrf.mxu1  ;;  %v14320_v10 = vpop.f32.mrf.mxu0 }
 0x5ac   :  { %v14243_v53 = vadd.f32 %v14242_v52, %v14241_v36  ;;  %v17098_v28 = vadd.f32 %v14319_v58, %v17016_v3 }
 0x5ad   :  { %v14244_v42 = vpop.f32.mrf.mxu1  ;;  %v14321_v35 = vpop.f32.mrf.mxu0 }
 0x5ae   :  { %v17101_v48 = vadd.f32 %v14243_v53, %v16930_v8  ;;  %v14322_v45 = vadd.f32 %v14321_v35, %v14320_v10 }
 0x5af   :  { %v14245_v30 = vpop.f32.mrf.mxu1  ;;  %v14323_v61 = vpop.f32.mrf.mxu0 }
 0x5b0   :  { %v14246_v62 = vadd.f32 %v14245_v30, %v14244_v42  ;;  %v17104_v20 = vadd.f32 %v14322_v45, %v17023_v37 }
 0x5b1   :  { %v14247_v55 = vpop.f32.mrf.mxu1  ;;  %v14324_v49 = vpop.f32.mrf.mxu0 }
 0x5b2   :  { %v17107_v5 = vadd.f32 %v14246_v62, %v16941_v44  ;;  %v14325_v23 = vadd.f32 %v14324_v49, %v14323_v61 }
 0x5b3   :  { %v14248_v3 = vpop.f32.mrf.mxu1  ;;  %v14326_v29 = vpop.f32.mrf.mxu0 }
 0x5b4   :  { %v14249_v22 = vadd.f32 %v14248_v3, %v14247_v55  ;;  %v17110_v11 = vadd.f32 %v14325_v23, %v17032_v46 }
 0x5b5   :  { %v14250_v8 = vpop.f32.mrf.mxu1  ;;  %v14327_v57 = vpop.f32.mrf.mxu0 }
 0x5b6   :  { %v17113_v60 = vadd.f32 %v14249_v22, %v16952_v59  ;;  %v14328_v50 = vadd.f32 %v14327_v57, %v14326_v29 }
 0x5b7   :  { %v14251_v37 = vpop.f32.mrf.mxu1  ;;  %v14329_v16 = vpop.f32.mrf.mxu0 }
 0x5b8   :  { %v14252_v47 = vadd.f32 %v14251_v37, %v14250_v8  ;;  %v17116_v2 = vadd.f32 %v14328_v50, %v17044_v18 }
 0x5b9   :  { %v14253_v44 = vpop.f32.mrf.mxu1  ;;  %v14330_v0 = vpop.f32.mrf.mxu0 }
 0x5ba   :  { %v17119_v14 = vadd.f32 %v14252_v47, %v16963_v24  ;;  %v14331_v6 = vadd.f32 %v14330_v0, %v14329_v16 }
 0x5bb   :  { %v14254_v46 = vpop.f32.mrf.mxu1  ;;  %v14332_v12 = vpop.f32.mrf.mxu0 }
 0x5bc   :  { %v14255_v36 = vadd.f32 %v14254_v46, %v14253_v44  ;;  %v17122_v63 = vadd.f32 %v14331_v6, %v17053_v56 }
 0x5bd   :  { %v14256_v59 = vpop.f32.mrf.mxu1  ;;  %v14333_v58 = vpop.f32.mrf.mxu0 }
 0x5be   :  { %v17125_v52 = vadd.f32 %v14255_v36, %v16974_v43  ;;  %v14334_v10 = vadd.f32 %v14333_v58, %v14332_v12 }
 0x5bf   :  { %v14257_v18 = vpop.f32.mrf.mxu1  ;;  %v14335_v53 = vpop.f32.mrf.mxu0 }
 0x5c0   :  { %v14258_v42 = vadd.f32 %v14257_v18, %v14256_v59  ;;  %v17128_v35 = vadd.f32 %v14334_v10, %v17059_v9 }
 0x5c1   :  { %v14259_v24 = vpop.f32.mrf.mxu1  ;;  %v14336_v45 = vpop.f32.mrf.mxu0 }
 0x5c2   :  { %v17131_v30 = vadd.f32 %v14258_v42, %v16981_v51  ;;  %v14337_v61 = vadd.f32 %v14336_v45, %v14335_v53 }
 0x5c3   :  { %v14260_v56 = vpop.f32.mrf.mxu1  ;;  %v14338_v62 = vpop.f32.mrf.mxu0 }
 0x5c4   :  { %v14261_v55 = vadd.f32 %v14260_v56, %v14259_v24  ;;  %v17134_v49 = vadd.f32 %v14337_v61, %v17065_v41 }
 0x5c5   :  { %v14262_v43 = vpop.f32.mrf.mxu1  ;;  %v14339_v23 = vpop.f32.mrf.mxu0 }
 0x5c6   :  { %v17137_v3 = vadd.f32 %v14261_v55, %v16998_v34  ;;  %v14340_v29 = vadd.f32 %v14339_v23, %v14338_v62 }
 0x5c7   :  { %v14263_v9 = vpop.f32.mrf.mxu1  ;;  %v14341_v22 = vpop.f32.mrf.mxu0 }
 0x5c8   :  { %v14264_v8 = vadd.f32 %v14263_v9, %v14262_v43  ;;  %v17140_v57 = vadd.f32 %v14340_v29, %v17071_v27 }
 0x5c9   :  { %v14265_v51 = vpop.f32.mrf.mxu1  ;;  %v14342_v50 = vpop.f32.mrf.mxu0 }
 0x5ca   :  { %v17143_v37 = vadd.f32 %v14264_v8, %v17005_v15  ;;  %v14343_v16 = vadd.f32 %v14342_v50, %v14341_v22 }
 0x5cb   :  { %v14266_v41 = vpop.f32.mrf.mxu1  ;;  %v14344_v47 = vpop.f32.mrf.mxu0 }
 0x5cc   :  { %v14267_v44 = vadd.f32 %v14266_v41, %v14265_v51  ;;  %v17146_v0 = vadd.f32 %v14343_v16, %v17077_v21 }
 0x5cd   :  { %v14268_v34 = vpop.f32.mrf.mxu1  ;;  %v14345_v6 = vpop.f32.mrf.mxu0 }
 0x5ce   :  { %v17149_v46 = vadd.f32 %v14267_v44, %v17019_v19  ;;  %v14346_v12 = vadd.f32 %v14345_v6, %v14344_v47 }
 0x5cf   :  { %v14269_v27 = vpop.f32.mrf.mxu1  ;;  %v14347_v36 = vpop.f32.mrf.mxu0 }
 0x5d0   :  { %v14270_v59 = vadd.f32 %v14269_v27, %v14268_v34  ;;  %v17152_v58 = vadd.f32 %v14346_v12, %v17083_v7 }
 0x5d1   :  { %v14271_v15 = vpop.f32.mrf.mxu1  ;;  %v14348_v10 = vpop.f32.mrf.mxu0 }
 0x5d2   :  { %v17155_v18 = vadd.f32 %v14270_v59, %v17026_v4  ;;  %v14349_v53 = vadd.f32 %v14348_v10, %v14347_v36 }
 0x5d3   :  { %v14272_v21 = vpop.f32.mrf.mxu1  ;;  %v14350_v42 = vpop.f32.mrf.mxu0 }
 0x5d4   :  { %v14273_v24 = vadd.f32 %v14272_v21, %v14271_v15  ;;  %v17158_v45 = vadd.f32 %v14349_v53, %v17089_v32 }
 0x5d5   :  { %v17160_v19 = vpop.f32.mrf.mxu1  ;;  %v14351_v61 = vpop.f32.mrf.mxu0 }
 0x5d6   :  { %v17163_v56 = vadd.f32 %v14273_v24, %v17038_v25  ;;  %v14352_v7 = vadd.f32 %v14351_v61, %v14350_v42 }
 0x5d7   :  { %v17165_v62 = vpop.f32.mrf.mxu1  ;;  %v14353_v55 = vpop.f32.mrf.mxu0 }
 0x5d8   :  { %v17168_v4 = vadd.f32 %v14352_v7, %v17095_v54 }
 0x5d9   :  { %v17170_v43 = vpop.f32.mrf.mxu1  ;;  %v14354_v23 = vpop.f32.mrf.mxu0 }
 0x5da   :  { %v14355_v29 = vadd.f32 %v14354_v23, %v14353_v55 }
 0x5db   :  { %v17172_v9 = vpop.f32.mrf.mxu1  ;;  %v14356_v32 = vpop.f32.mrf.mxu0 }
 0x5dc   :  { %v17175_v22 = vadd.f32 %v14355_v29, %v17101_v48 }
 0x5dd   :  { %v14408_v8 = vpop.f32.mrf.mxu1  ;;  %v14357_v25 = vpop.f32.mrf.mxu0 }
 0x5de   :  { %v14358_v51 = vadd.f32 %v14357_v25, %v14356_v32 }
 0x5df   :  { %v14409_v50 = vpop.f32.mrf.mxu1  ;;  %v14359_v16 = vpop.f32.mrf.mxu0 }
 0x5e0   :  { %v17178_v41 = vadd.f32 %v14358_v51, %v17107_v5 }
 0x5e1   :  { %v14411_v54 = vpop.f32.mrf.mxu1  ;;  %v14360_v47 = vpop.f32.mrf.mxu0 }
 0x5e2   :  { %v14361_v44 = vadd.f32 %v14360_v47, %v14359_v16 }
 0x5e3   :  { %v14412_v34 = vpop.f32.mrf.mxu1  ;;  %v14362_v6 = vpop.f32.mrf.mxu0 }
 0x5e4   :  { %v17181_v12 = vadd.f32 %v14361_v44, %v17113_v60 }
 0x5e5   :  { %v17183_v27 = vpop.f32.mrf.mxu1  ;;  %v14363_v48 = vpop.f32.mrf.mxu0 }
 0x5e6   :  { %v14364_v36 = vadd.f32 %v14363_v48, %v14362_v6 }
 0x5e7   :  { %v14415_v59 = vpop.f32.mrf.mxu1  ;;  %v14365_v15 = vpop.f32.mrf.mxu0 }
 0x5e8   :  { %v17186_v10 = vadd.f32 %v14364_v36, %v17119_v14 }
 0x5e9   :  { %v17188_v53 = vpop.f32.mrf.mxu1  ;;  %v14366_v5 = vpop.f32.mrf.mxu0 }
 0x5ea   :  { %v14367_v21 = vadd.f32 %v14366_v5, %v14365_v15 }
 0x5eb   :  { %v17190_v42 = vpop.f32.mrf.mxu1  ;;  %v14368_v24 = vpop.f32.mrf.mxu0 }
 0x5ec   :  { %v17193_v61 = vadd.f32 %v14367_v21, %v17125_v52 }
 0x5ed   :  { %v14420_v60 = vpop.f32.mrf.mxu1  ;;  %v14369_v7 = vpop.f32.mrf.mxu0 }
 0x5ee   :  { %17730 = vst [vmem:[#allocation54_spill] sm:$0xff] %v17193_v61  ;;  %v14370_v55 = vadd.f32 %v14369_v7, %v14368_v24 }
 0x5ef   :  { %v14421_v23 = vpop.f32.mrf.mxu1  ;;  %v14371_v29 = vpop.f32.mrf.mxu0 }
 0x5f0   :  { %v17196_v32 = vadd.f32 %v14370_v55, %v17131_v30 }
 0x5f1   :  { %v14423_v14 = vpop.f32.mrf.mxu1  ;;  %v14372_v25 = vpop.f32.mrf.mxu0 }
 0x5f2   :  { %17731 = vst [vmem:[#allocation53_spill] sm:$0xff] %v17196_v32  ;;  %v14373_v51 = vadd.f32 %v14372_v25, %v14371_v29 }
 0x5f3   :  { %v14424_v16 = vpop.f32.mrf.mxu1  ;;  %v14374_v47 = vpop.f32.mrf.mxu0 }
 0x5f4   :  { %v17199_v44 = vadd.f32 %v14373_v51, %v17137_v3  ;;  %v14410_v51 = vadd.f32 %v14409_v50, %v14408_v8  ;;  %v17226_v50 = vld [vmem:[%s17321_s5] ss:$0 sm:$0xff]  ;;  %s15565_s5 = smov [#allocation14]  }
 0x5f5   :  { %v17201_v6 = vpop.f32.mrf.mxu1  ;;  %v14375_v52 = vpop.f32.mrf.mxu0  ;;  %s11340_s21 = sshll.u32 %s15565_s5, 4  ;;  %s11341_s21 = int_to_ptr.vmem [resolvable:$true] %s11340_s21 }
 0x5f6   :  { %17732 = vst [vmem:[#allocation44_spill] sm:$0xff] %v17199_v44  ;;  %v14376_v48 = vadd.f32 %v14375_v52, %v14374_v47  ;;  %v10953_v61 = vadd.f32 %v14410_v51, %v17056_v38  ;;  %s15528_s22 = scalar_lea.vmem %s11341_s21, 4096  ;;  %p15533_p12 = scmp.lt.s32.totalorder %s11341_s21, %s11341_s21 }
 0x5f7   :  { %v17203_v36 = vpop.f32.mrf.mxu1  ;;  %v14377_v15 = vpop.f32.mrf.mxu0  ;;  %p15529_p11 = scmp.ne.s32.totalorder %s11341_s21, %s15528_s22  ;;  %p15534_p13 = scmp.lt.s32.totalorder %s15528_s22, %s15528_s22 }
 0x5f8   :  { %v17206_v5 = vadd.f32 %v14376_v48, %v17143_v37  ;;  %v14404_v37 = vadd.f32 %v17165_v62, %v17160_v19 }
 0x5f9   :  { %v17208_v30 = vpop.f32.mrf.mxu1  ;;  %v14378_v21 = vpop.f32.mrf.mxu0  ;;  %p15535_p0 = por %p15534_p13, %p15533_p12 }
 0x5fa   :  { %17733 = vst [vmem:[#allocation42_spill] sm:$0xff] %v17206_v5  ;;  %v14379_v24 = vadd.f32 %v14378_v21, %v14377_v15  ;;  %v14413_v21 = vadd.f32 %v14412_v34, %v14411_v54  ;;  %v10945_v62 = vadd.f32 %v14404_v37, %v17041_v1  ;;  %v14422_v54 = vadd.f32 %v14421_v23, %v14420_v60 }
 0x5fb   :  { %v17210_v7 = vpop.f32.mrf.mxu1  ;;  %v14380_v55 = vpop.f32.mrf.mxu0  ;;  %v14425_v37 = vadd.f32 %v14424_v16, %v14423_v14  ;;  %p15536_p1 = pnand %p15535_p0, %p15529_p11 }
 0x5fc   :  { %v17213_v3 = vadd.f32 %v14379_v24, %v17149_v46  ;;  %v14407_v46 = vadd.f32 %v17172_v9, %v17170_v43  ;;  %v10956_v9 = vadd.f32 %v14413_v21, %v17062_v39 }
 0x5fd   :  { %v14432_v29 = vpop.f32.mrf.mxu1  ;;  %v14381_v25 = vpop.f32.mrf.mxu0 }
 0x5fe   :  { %v14382_v47 = vadd.f32 %v14381_v25, %v14380_v55  ;;  %v10948_v51 = vadd.f32 %v14407_v46, %v17047_v13  ;;  %v14419_v13 = vadd.f32 %v17190_v42, %v17188_v53  ;;  %v10972_v53 = vadd.f32 %v14425_v37, %v17086_v26 }
 0x5ff   :  { %v14433_v52 = vpop.f32.mrf.mxu1  ;;  %v14383_v44 = vpop.f32.mrf.mxu0 }
 0x600   :  { %v17218_v48 = vadd.f32 %v14382_v47, %v17155_v18  ;;  %v10969_v47 = vadd.f32 %v14422_v54, %v17080_v31  ;;  %v14434_v31 = vadd.f32 %v14433_v52, %v14432_v29 }
 0x601   :  { %v14435_v5 = vpop.f32.mrf.mxu1  ;;  %v14384_v15 = vpop.f32.mrf.mxu0 }
 0x602   :  { %v14385_v32 = vadd.f32 %v14384_v15, %v14383_v44 }
 0x603   :  { %v14436_v24 = vpop.f32.mrf.mxu1  ;;  %v14684_v8 = vpop.f32.mrf.mxu0 }
 0x604   :  { %v17229_v19 = vadd.f32 %v14385_v32, %v17163_v56  ;;  %v11114_v18 = vadd.f32 %v14684_v8, %v10953_v61  ;;  %v14416_v56 = vadd.f32 %v14415_v59, %v17183_v27 }
 0x605   :  { %v17232_v34 = vpop.f32.mrf.mxu1  ;;  %v11105_v38 = vpop.f32.mrf.mxu0 }
 0x606   :  { %v11241_v44 = vadd.f32 %v17226_v50, %v11114_v18  ;;  %v11106_v43 = vadd.f32 %v11105_v38, %v10945_v62  ;;  %v10961_v62 = vadd.f32 %v14416_v56, %v17068_v40 }
 0x607   :  { %v17236_v55 = vpop.f32.mrf.mxu1  ;;  %v14685_v25 = vpop.f32.mrf.mxu0 }
 0x608   :  { %v11273_v32 = vmax.f32 %v11241_v44, 0.0  ;;  %v11239_v61 = vadd.f32 %v17226_v50, %v11106_v43  ;;  %v11117_v1 = vadd.f32 %v14685_v25, %v10956_v9  ;;  %v10964_v9 = vadd.f32 %v14419_v13, %v17074_v17 }
 0x609   :  { %v17241_v60 = vpop.f32.mrf.mxu1  ;;  %v11108_v23 = vpop.f32.mrf.mxu0  ;;  %v14428_v25 = vadd.f32 %v17203_v36, %v17201_v6  ;;  %v14431_v17 = vadd.f32 %v17210_v7, %v17208_v30 }
 0x60a   :  { %11305 = vst [vmem:[#allocation14 + $0x10] sm:$0xff] %v11273_v32  ;;  %v11271_v15 = vmax.f32 %v11239_v61, 0.0  ;;  %v11242_v39 = vadd.f32 %v17226_v50, %v11117_v1  ;;  %v11109_v21 = vadd.f32 %v11108_v23, %v10948_v51  ;;  %v10985_v32 = vadd.f32 %v14434_v31, %v17104_v20 }
 0x60b   :  { %v17247_v46 = vpop.f32.mrf.mxu1  ;;  %v14688_v27 = vpop.f32.mrf.mxu0  ;;  %v14437_v61 = vadd.f32 %v14436_v24, %v14435_v5 }
 0x60c   :  { %11303 = vst [vmem:[#allocation14] sm:$0xff] %v11271_v15  ;;  %v11274_v59 = vmax.f32 %v11242_v39, 0.0  ;;  %v11240_v8 = vadd.f32 %v17226_v50, %v11109_v21  ;;  %v11130_v18 = vadd.f32 %v14688_v27, %v10969_v47  ;;  %v10977_v39 = vadd.f32 %v14428_v25, %v17092_v33 }
 0x60d   :  { %v14444_v14 = vpop.f32.mrf.mxu1  ;;  %v11121_v16 = vpop.f32.mrf.mxu0 }
 0x60e   :  { %11306 = vst [vmem:[#allocation14 + $0x18] sm:$0xff] %v11274_v59  ;;  %v11272_v54 = vmax.f32 %v11240_v8, 0.0  ;;  %v11245_v38 = vadd.f32 %v17226_v50, %v11130_v18  ;;  %v11122_v44 = vadd.f32 %v11121_v16, %v10961_v62  ;;  %v10988_v59 = vadd.f32 %v14437_v61, %v17110_v11 }
 0x60f   :  { %v14445_v42 = vpop.f32.mrf.mxu1  ;;  %v14689_v43 = vpop.f32.mrf.mxu0  ;;  %v10980_v8 = vadd.f32 %v14431_v17, %v17098_v28  ;;  %v14440_v18 = vadd.f32 %v17236_v55, %v17232_v34  ;;  %v14443_v28 = vadd.f32 %v17247_v46, %v17241_v60 }
 0x610   :  { %11304 = vst [vmem:[#allocation14 + $0x8] sm:$0xff] %v11272_v54  ;;  %v11277_v51 = vmax.f32 %v11245_v38, 0.0  ;;  %v11243_v40 = vadd.f32 %v17226_v50, %v11122_v44  ;;  %v11133_v29 = vadd.f32 %v14689_v43, %v10972_v53  ;;  %v14446_v21 = vadd.f32 %v14445_v42, %v14444_v14 }
 0x611   :  { %v14447_v52 = vpop.f32.mrf.mxu1  ;;  %v11124_v56 = vpop.f32.mrf.mxu0  ;;  %v10993_v25 = vadd.f32 %v14440_v18, %v17116_v2  ;;  %v10996_v61 = vadd.f32 %v14443_v28, %v17122_v63 }
 0x612   :  { %11309 = vst [vmem:[#allocation14 + $0x30] sm:$0xff] %v11277_v51  ;;  %v11275_v1 = vmax.f32 %v11243_v40, 0.0  ;;  %v11246_v26 = vadd.f32 %v17226_v50, %v11133_v29  ;;  %v11125_v23 = vadd.f32 %v11124_v56, %v10964_v9  ;;  %v11001_v54 = vadd.f32 %v14446_v21, %v17128_v35 }
 0x613   :  { %v14448_v47 = vpop.f32.mrf.mxu1  ;;  %v14692_v6 = vpop.f32.mrf.mxu0 }
 0x614   :  { %11307 = vst [vmem:[#allocation14 + $0x20] sm:$0xff] %v11275_v1  ;;  %v11278_v36 = vmax.f32 %v11246_v26, 0.0  ;;  %v11244_v37 = vadd.f32 %v17226_v50, %v11125_v23  ;;  %v11146_v15 = vadd.f32 %v14692_v6, %v10985_v32  ;;  %v14449_v38 = vadd.f32 %v14448_v47, %v14447_v52 }
 0x615   :  { %v14450_v20 = vpop.f32.mrf.mxu1  ;;  %v11137_v5 = vpop.f32.mrf.mxu0 }
 0x616   :  { %11310 = vst [vmem:[#allocation14 + $0x38] sm:$0xff] %v11278_v36  ;;  %v11276_v24 = vmax.f32 %v11244_v37, 0.0  ;;  %v11249_v13 = vadd.f32 %v17226_v50, %v11146_v15  ;;  %v11138_v27 = vadd.f32 %v11137_v5, %v10977_v39  ;;  %v11004_v56 = vadd.f32 %v14449_v38, %v17134_v49 }
 0x617   :  { %v14451_v30 = vpop.f32.mrf.mxu1  ;;  %v14693_v7 = vpop.f32.mrf.mxu0 }
 0x618   :  { %11308 = vst [vmem:[#allocation14 + $0x28] sm:$0xff] %v11276_v24  ;;  %v11281_v62 = vmax.f32 %v11249_v13, 0.0  ;;  %v11247_v33 = vadd.f32 %v17226_v50, %v11138_v27  ;;  %v11149_v31 = vadd.f32 %v14693_v7, %v10988_v59  ;;  %v14452_v32 = vadd.f32 %v14451_v30, %v14450_v20 }
 0x619   :  { %v14453_v14 = vpop.f32.mrf.mxu1  ;;  %v11140_v16 = vpop.f32.mrf.mxu0 }
 0x61a   :  { %11313 = vst [vmem:[#allocation14 + $0x50] sm:$0xff] %v11281_v62  ;;  %v11279_v44 = vmax.f32 %v11247_v33, 0.0  ;;  %v11250_v11 = vadd.f32 %v17226_v50, %v11149_v31  ;;  %v11141_v53 = vadd.f32 %v11140_v16, %v10980_v8  ;;  %v11009_v63 = vadd.f32 %v14452_v32, %v17140_v57 }
 0x61b   :  { %v14454_v42 = vpop.f32.mrf.mxu1  ;;  %v14696_v34 = vpop.f32.mrf.mxu0 }
 0x61c   :  { %11311 = vst [vmem:[#allocation14 + $0x40] sm:$0xff] %v11279_v44  ;;  %v11282_v55 = vmax.f32 %v11250_v11, 0.0  ;;  %v11248_v43 = vadd.f32 %v17226_v50, %v11141_v53  ;;  %v11162_v9 = vadd.f32 %v14696_v34, %v11001_v54  ;;  %v14455_v15 = vadd.f32 %v14454_v42, %v14453_v14 }
 0x61d   :  { %v14456_v51 = vpop.f32.mrf.mxu1  ;;  %v11153_v35 = vpop.f32.mrf.mxu0 }
 0x61e   :  { %11314 = vst [vmem:[#allocation14 + $0x58] sm:$0xff] %v11282_v55  ;;  %v11280_v40 = vmax.f32 %v11248_v43, 0.0  ;;  %v11253_v29 = vadd.f32 %v17226_v50, %v11162_v9  ;;  %v11154_v52 = vadd.f32 %v11153_v35, %v10993_v25  ;;  %v11012_v33 = vadd.f32 %v14455_v15, %v17146_v0 }
 0x61f   :  { %v14457_v60 = vpop.f32.mrf.mxu1  ;;  %v14697_v46 = vpop.f32.mrf.mxu0 }
 0x620   :  { %11312 = vst [vmem:[#allocation14 + $0x48] sm:$0xff] %v11280_v40  ;;  %v11285_v1 = vmax.f32 %v11253_v29, 0.0  ;;  %v14458_v26 = vadd.f32 %v14457_v60, %v14456_v51  ;;  %v11251_v23 = vadd.f32 %v17226_v50, %v11154_v52  ;;  %v11165_v2 = vadd.f32 %v14697_v46, %v11004_v56 }
 0x621   :  { %v14459_v17 = vpop.f32.mrf.mxu1  ;;  %v11156_v47 = vpop.f32.mrf.mxu0 }
 0x622   :  { %11317 = vst [vmem:[#allocation14 + $0x70] sm:$0xff] %v11285_v1  ;;  %v11283_v6 = vmax.f32 %v11251_v23, 0.0  ;;  %v11254_v36 = vadd.f32 %v17226_v50, %v11165_v2  ;;  %v11157_v37 = vadd.f32 %v11156_v47, %v10996_v61  ;;  %v11017_v49 = vadd.f32 %v14458_v26, %v17152_v58 }
 0x623   :  { %v14460_v39 = vpop.f32.mrf.mxu1  ;;  %v14700_v21 = vpop.f32.mrf.mxu0 }
 0x624   :  { %11315 = vst [vmem:[#allocation14 + $0x60] sm:$0xff] %v11283_v6  ;;  %v11286_v20 = vmax.f32 %v11254_v36, 0.0  ;;  %v14461_v5 = vadd.f32 %v14460_v39, %v14459_v17  ;;  %v11252_v24 = vadd.f32 %v17226_v50, %v11157_v37  ;;  %v11178_v13 = vadd.f32 %v14700_v21, %v11017_v49 }
 0x625   :  { %v14462_v27 = vpop.f32.mrf.mxu1  ;;  %v11169_v59 = vpop.f32.mrf.mxu0 }
 0x626   :  { %11318 = vst [vmem:[#allocation14 + $0x78] sm:$0xff] %v11286_v20  ;;  %v11284_v30 = vmax.f32 %v11252_v24, 0.0  ;;  %v11257_v7 = vadd.f32 %v17226_v50, %v11178_v13  ;;  %v11170_v8 = vadd.f32 %v11169_v59, %v11009_v63  ;;  %v11020_v58 = vadd.f32 %v14461_v5, %v17158_v45 }
 0x627   :  { %v14463_v18 = vpop.f32.mrf.mxu1  ;;  %v14701_v62 = vpop.f32.mrf.mxu0 }
 0x628   :  { %11316 = vst [vmem:[#allocation14 + $0x68] sm:$0xff] %v11284_v30  ;;  %v11289_v57 = vmax.f32 %v11257_v7, 0.0  ;;  %v14464_v31 = vadd.f32 %v14463_v18, %v14462_v27  ;;  %v11255_v14 = vadd.f32 %v17226_v50, %v11170_v8  ;;  %v11181_v16 = vadd.f32 %v14701_v62, %v11020_v58  ;;  %v17734_v7 = vld [vmem:[#allocation54_spill] sm:$0xff] }
 0x629   :  { %v14465_v54 = vpop.f32.mrf.mxu1  ;;  %v11172_v38 = vpop.f32.mrf.mxu0 }
 0x62a   :  { %11321 = vst [vmem:[#allocation14 + $0x90] sm:$0xff] %v11289_v57  ;;  %v11287_v44 = vmax.f32 %v11255_v14, 0.0  ;;  %v11258_v11 = vadd.f32 %v17226_v50, %v11181_v16  ;;  %v11173_v53 = vadd.f32 %v11172_v38, %v11012_v33  ;;  %v11025_v55 = vadd.f32 %v14464_v31, %v17168_v4  ;;  %v17735_v14 = vld [vmem:[#allocation53_spill] sm:$0xff] }
 0x62b   :  { %v14466_v28 = vpop.f32.mrf.mxu1  ;;  %v14704_v42 = vpop.f32.mrf.mxu0 }
 0x62c   :  { %11319 = vst [vmem:[#allocation14 + $0x80] sm:$0xff] %v11287_v44  ;;  %v11290_v45 = vmax.f32 %v11258_v11, 0.0  ;;  %v14467_v34 = vadd.f32 %v14466_v28, %v14465_v54  ;;  %v11256_v0 = vadd.f32 %v17226_v50, %v11173_v53 }
 0x62d   :  { %v14468_v43 = vpop.f32.mrf.mxu1  ;;  %v11185_v9 = vpop.f32.mrf.mxu0 }
 0x62e   :  { %11322 = vst [vmem:[#allocation14 + $0x98] sm:$0xff] %v11290_v45  ;;  %v11288_v25 = vmax.f32 %v11256_v0, 0.0  ;;  %v11186_v51 = vadd.f32 %v11185_v9, %v11025_v55  ;;  %v11028_v56 = vadd.f32 %v14467_v34, %v17175_v22  ;;  %v17736_v45 = vld [vmem:[#allocation44_spill] sm:$0xff] }
 0x62f   :  { %v14469_v35 = vpop.f32.mrf.mxu1  ;;  %v14705_v40 = vpop.f32.mrf.mxu0 }
 0x630   :  { %11320 = vst [vmem:[#allocation14 + $0x88] sm:$0xff] %v11288_v25  ;;  %v14470_v29 = vadd.f32 %v14469_v35, %v14468_v43  ;;  %v11259_v52 = vadd.f32 %v17226_v50, %v11186_v51 }
 0x631   :  { %v14471_v32 = vpop.f32.mrf.mxu1  ;;  %v11188_v60 = vpop.f32.mrf.mxu0 }
 0x632   :  { %v11033_v46 = vadd.f32 %v14470_v29, %v17178_v41  ;;  %v11291_v61 = vmax.f32 %v11259_v52, 0.0  ;;  %v11189_v1 = vadd.f32 %v11188_v60, %v11028_v56 }
 0x633   :  { %v14472_v4 = vpop.f32.mrf.mxu1  ;;  %v14708_v26 = vpop.f32.mrf.mxu0 }
 0x634   :  { %v11194_v23 = vadd.f32 %v14704_v42, %v11033_v46  ;;  %11323 = vst [vmem:[#allocation14 + $0xa0] sm:$0xff] %v11291_v61  ;;  %v14473_v2 = vadd.f32 %v14472_v4, %v14471_v32  ;;  %v11260_v17 = vadd.f32 %v17226_v50, %v11189_v1 }
 0x635   :  { %v14474_v47 = vpop.f32.mrf.mxu1  ;;  %v11201_v49 = vpop.f32.mrf.mxu0 }
 0x636   :  { %v11261_v6 = vadd.f32 %v17226_v50, %v11194_v23  ;;  %v11036_v36 = vadd.f32 %v14473_v2, %v17181_v12  ;;  %v11292_v37 = vmax.f32 %v11260_v17, 0.0 }
 0x637   :  { %v14475_v22 = vpop.f32.mrf.mxu1  ;;  %v14709_v5 = vpop.f32.mrf.mxu0 }
 0x638   :  { %v11293_v15 = vmax.f32 %v11261_v6, 0.0  ;;  %v11197_v39 = vadd.f32 %v14705_v40, %v11036_v36  ;;  %11324 = vst [vmem:[#allocation14 + $0xa8] sm:$0xff] %v11292_v37  ;;  %v14476_v41 = vadd.f32 %v14475_v22, %v14474_v47  ;;  %v17737_v40 = vld [vmem:[#allocation42_spill] sm:$0xff] }
 0x639   :  { %v14477_v21 = vpop.f32.mrf.mxu1  ;;  %v11204_v58 = vpop.f32.mrf.mxu0 }
 0x63a   :  { %11325 = vst [vmem:[#allocation14 + $0xb0] sm:$0xff] %v11293_v15  ;;  %v11262_v63 = vadd.f32 %v17226_v50, %v11197_v39  ;;  %v11041_v20 = vadd.f32 %v14476_v41, %v17186_v10 }
 0x63b   :  { %v14478_v24 = vpop.f32.mrf.mxu1  ;;  %v14712_v54 = vpop.f32.mrf.mxu0 }
 0x63c   :  { %v11294_v13 = vmax.f32 %v11262_v63, 0.0  ;;  %v11202_v27 = vadd.f32 %v11201_v49, %v11041_v20  ;;  %v14479_v59 = vadd.f32 %v14478_v24, %v14477_v21 }
 0x63d   :  { %v14480_v30 = vpop.f32.mrf.mxu1  ;;  %v11217_v0 = vpop.f32.mrf.mxu0 }
 0x63e   :  { %11326 = vst [vmem:[#allocation14 + $0xb8] sm:$0xff] %v11294_v13  ;;  %v11263_v12 = vadd.f32 %v17226_v50, %v11202_v27  ;;  %v11044_v8 = vadd.f32 %v14479_v59, %v17734_v7 }
 0x63f   :  { %v14481_v18 = vpop.f32.mrf.mxu1  ;;  %v14713_v52 = vpop.f32.mrf.mxu0 }
 0x640   :  { %v11295_v62 = vmax.f32 %v11263_v12, 0.0  ;;  %v11205_v33 = vadd.f32 %v11204_v58, %v11044_v8  ;;  %v14482_v57 = vadd.f32 %v14481_v18, %v14480_v30 }
 0x641   :  { %v14483_v31 = vpop.f32.mrf.mxu1 }
 0x642   :  { %11327 = vst [vmem:[#allocation14 + $0xc0] sm:$0xff] %v11295_v62  ;;  %v11264_v10 = vadd.f32 %v17226_v50, %v11205_v33  ;;  %v11049_v16 = vadd.f32 %v14482_v57, %v17735_v14 }
 0x643   :  { %v14484_v38 = vpop.f32.mrf.mxu1 }
 0x644   :  { %v11296_v44 = vmax.f32 %v11264_v10, 0.0  ;;  %v11210_v11 = vadd.f32 %v14708_v26, %v11049_v16  ;;  %v14485_v53 = vadd.f32 %v14484_v38, %v14483_v31  ;;  %v11220_v26 = vpop.f32.mrf.mxu0 }
 0x645   :  { %v14486_v28 = vpop.f32.mrf.mxu1 }
 0x646   :  { %11328 = vst [vmem:[#allocation14 + $0xc8] sm:$0xff] %v11296_v44  ;;  %v11265_v42 = vadd.f32 %v17226_v50, %v11210_v11  ;;  %v11052_v34 = vadd.f32 %v14485_v53, %v17736_v45 }
 0x647   :  { %v14487_v55 = vpop.f32.mrf.mxu1 }
 0x648   :  { %v11297_v43 = vmax.f32 %v11265_v42, 0.0  ;;  %v11213_v9 = vadd.f32 %v14709_v5, %v11052_v34  ;;  %v14488_v25 = vadd.f32 %v14487_v55, %v14486_v28 }
 0x649   :  { %v14489_v51 = vpop.f32.mrf.mxu1 }
 0x64a   :  { %11329 = vst [vmem:[#allocation14 + $0xd0] sm:$0xff] %v11297_v43  ;;  %v11266_v35 = vadd.f32 %v17226_v50, %v11213_v9  ;;  %v11057_v29 = vadd.f32 %v14488_v25, %v17737_v40 }
 0x64b   :  { %v14490_v56 = vpop.f32.mrf.mxu1 }
 0x64c   :  { %v11298_v32 = vmax.f32 %v11266_v35, 0.0  ;;  %v11218_v60 = vadd.f32 %v11217_v0, %v11057_v29  ;;  %v14491_v46 = vadd.f32 %v14490_v56, %v14489_v51 }
 0x64d   :  { %v14492_v61 = vpop.f32.mrf.mxu1 }
 0x64e   :  { %11330 = vst [vmem:[#allocation14 + $0xd8] sm:$0xff] %v11298_v32  ;;  %v11267_v1 = vadd.f32 %v17226_v50, %v11218_v60  ;;  %v11060_v4 = vadd.f32 %v14491_v46, %v17213_v3 }
 0x64f   :  { %v14493_v23 = vpop.f32.mrf.mxu1 }
 0x650   :  { %v11299_v2 = vmax.f32 %v11267_v1, 0.0  ;;  %v11221_v17 = vadd.f32 %v11220_v26, %v11060_v4  ;;  %v14494_v47 = vadd.f32 %v14493_v23, %v14492_v61 }
 0x651   :  { %v14495_v6 = vpop.f32.mrf.mxu1 }
 0x652   :  { %11331 = vst [vmem:[#allocation14 + $0xe0] sm:$0xff] %v11299_v2  ;;  %v11268_v36 = vadd.f32 %v17226_v50, %v11221_v17  ;;  %v11065_v37 = vadd.f32 %v14494_v47, %v17218_v48 }
 0x653   :  { %v14496_v22 = vpop.f32.mrf.mxu1 }
 0x654   :  { %v11300_v49 = vmax.f32 %v11268_v36, 0.0  ;;  %v11226_v15 = vadd.f32 %v14712_v54, %v11065_v37  ;;  %v14497_v39 = vadd.f32 %v14496_v22, %v14495_v6 }
 0x656   :  { %11332 = vst [vmem:[#allocation14 + $0xe8] sm:$0xff] %v11300_v49  ;;  %v11269_v41 = vadd.f32 %v17226_v50, %v11226_v15  ;;  %v11068_v3 = vadd.f32 %v14497_v39, %v17229_v19 }
 0x658   :  { %v11301_v21 = vmax.f32 %v11269_v41, 0.0  ;;  %v11229_v63 = vadd.f32 %v14713_v52, %v11068_v3 }
 0x65a   :  { %11333 = vst [vmem:[#allocation14 + $0xf0] sm:$0xff] %v11301_v21  ;;  %v11270_v20 = vadd.f32 %v17226_v50, %v11229_v63 }
 0x65c   :  { %v11302_v5 = vmax.f32 %v11270_v20, 0.0 }
 0x65e   :  { %11334 = vst [vmem:[#allocation14 + $0xf8] sm:$0xff] %v11302_v5 }
 0x65f   :  { %15539 = shalt.err (!%p15536_p1)
}
 0x660   :  { %s15566_s23 = smov 128   ;;  %s15567_s24 = smov 8  }
 0x661   :  { %11346 = dma.vmem_to_hbm [thread:$0]  %s11341_s21, 4096, %s17322_s6, [#allocation7], %s15566_s23, %s15566_s23, %s15567_s24  }
 0x662   :  { %15554 = dma.done.wait [#allocation7], 4096  }
 0x663   :  { %15555 = vsyncadd [#allocation7], 4294963200 }
 0x664   :  { %11350 = vsyncpa [#allocation6], 1 }
 0x665   :  { %11351 = vsyncpa [#allocation9], 1 }
 0x666   :  { %11352 = vsyncpa [#allocation12], 1 }
 0x667   :  { %11353 = vsyncpa [#allocation7], 1 }

</bundles_post_ra>
